<compile_context>
chip_gen: v6e
topology: v6e:2x2x1
jax: 0.10.0
libtpu: 0.0.40
codegen_flags: <defaults>
</compile_context>

<pallas_src>
import functools

import numpy as np

import jax
import jax.numpy as jnp
from jax.experimental import pallas as pl
from jax.experimental.pallas import tpu as pltpu


NEG = -1e9  # finite "-inf" for masked (cross-window) attention entries


# --------------------------------------------------------------------------
# compute_mask (faithful replica of the PyTorch helper, returns (nW, W, W))
# --------------------------------------------------------------------------
def compute_mask(L, window_size, shift_size):
    Lp = int(np.ceil(L / window_size)) * window_size
    img_mask = np.zeros((Lp,), dtype=np.float32)
    pad_size = int(Lp - L)
    if pad_size == 0 or pad_size + shift_size == window_size:
        segs = (slice(None, -window_size),
                slice(-window_size, -shift_size),
                slice(-shift_size, None))
    elif pad_size + shift_size > window_size:
        seg1 = int(window_size * 2 - L + shift_size)
        segs = (slice(None, -seg1),
                slice(-seg1, -window_size),
                slice(-window_size, -shift_size),
                slice(-shift_size, None))
    else:
        seg1 = int(window_size * 2 - L + shift_size)
        segs = (slice(None, -window_size),
                slice(-window_size, -seg1),
                slice(-seg1, -shift_size),
                slice(-shift_size, None))
    for cnt, d in enumerate(segs):
        img_mask[d] = cnt
    mask_windows = img_mask.reshape(Lp // window_size, window_size)      # (nW, W)
    attn_mask = mask_windows[:, None, :] - mask_windows[:, :, None]      # (nW, W, W)
    attn_mask = np.where(attn_mask != 0, -100.0, 0.0).astype(np.float32)
    return jnp.asarray(attn_mask)


# --------------------------------------------------------------------------
# Pallas kernel: one grid step = NSW superwindows = R = NSW * S rows
# --------------------------------------------------------------------------
def _superwindow_attn_kernel(x_ref, wqkv_ref, bqkv_ref, wp_ref, bp_ref,
                             rel_ref, mask_ref, o_ref, ctx_ref,
                             *, num_heads, nsw, sw):
    """
    x_ref    : (R, C)   bf16   R = nsw * sw rows of window tokens
    wqkv_ref : (C, 3C)  bf16   fused qkv weight (scale folded into Q columns)
    bqkv_ref : (1, 3C)  f32    fused qkv bias (scale folded into Q part)
    wp_ref   : (C, C)   bf16   output projection weight (transposed)
    bp_ref   : (1, C)   f32    output projection bias
    rel_ref  : (H, sw, sw) f32 block-diagonal relative-position bias
    mask_ref : (nsw, sw, sw) f32 per-superwindow mask (shift mask + off-diag -1e9)
    o_ref    : (R, C)   f32
    ctx_ref  : (R, C)   f32 VMEM scratch (per-head context columns)
    """
    R, C = x_ref.shape
    hd = C // num_heads

    # Fused QKV projection: one MXU push, bf16 operands, f32 accumulation.
    qkv = jnp.dot(x_ref[...], wqkv_ref[...],
                  preferred_element_type=jnp.float32) + bqkv_ref[...]     # (R, 3C)

    mask = mask_ref[...]                                                  # (nsw, sw, sw)

    for h in range(num_heads):                                            # static unroll
        q_h = qkv[:, h * hd:(h + 1) * hd].astype(jnp.bfloat16).reshape(nsw, sw, hd)
        k_h = qkv[:, C + h * hd:C + (h + 1) * hd].astype(jnp.bfloat16).reshape(nsw, sw, hd)
        v_h = qkv[:, 2 * C + h * hd:2 * C + (h + 1) * hd].astype(jnp.bfloat16).reshape(nsw, sw, hd)

        # Block-diagonal scores for G windows at once: lane-dense 128-wide rows.
        s = jnp.einsum('nqd,nkd->nqk', q_h, k_h,
                       preferred_element_type=jnp.float32)                # (nsw, sw, sw)
        s = s + rel_ref[h][None] + mask                                   # bias + mask

        s = s - jnp.max(s, axis=-1, keepdims=True)                        # stable softmax
        e = jnp.exp(s)
        p = e * pl.reciprocal(jnp.sum(e, axis=-1, keepdims=True), approx=True)

        ctx = jnp.einsum('nqk,nkd->nqd', p.astype(jnp.bfloat16), v_h,
                         preferred_element_type=jnp.float32)              # (nsw, sw, hd)
        ctx_ref[:, h * hd:(h + 1) * hd] = ctx.reshape(R, hd)

    # Single fused K=128 output projection (replaces 8 K=16 matmuls).
    out = jnp.dot(ctx_ref[...].astype(jnp.bfloat16), wp_ref[...],
                  preferred_element_type=jnp.float32) + bp_ref[...]
    o_ref[...] = out.astype(o_ref.dtype)


# --------------------------------------------------------------------------
# Wrapper: pad / shift / window-partition glue + pallas_call
# --------------------------------------------------------------------------
def window_attention_1d(x, params, *, window_size, shift_size, num_heads,
                        attn_mask=None):
    B, L, C = x.shape
    W = window_size
    H = num_heads
    hd = C // H
    scale = hd ** (-0.5)

    # ---- pad_shift_x (glue) ----
    pad_r = (W - L % W) % W
    xp = jnp.pad(x, ((0, 0), (0, pad_r), (0, 0)))
    Lp = L + pad_r
    if shift_size > 0:
        xp = jnp.roll(xp, -shift_size, axis=1)
    nW = Lp // W

    # ---- superwindow geometry ----
    G = max(1, 128 // W)                 # windows per superwindow
    S = G * W                            # superwindow rows (=128 when W | 128)

    # ---- block sizing: whole batch elements per block, target ~2048 rows ----
    target_rows = 2048
    bpb = max(1, min(B, target_rows // max(Lp, 1)))     # batch elements per block
    if B >= 2:
        bpb = min(bpb, (B + 1) // 2)                    # keep grid length >= 2
    num_blocks = -(-B // bpb)
    Bpad = num_blocks * bpb
    if Bpad != B:
        xp = jnp.pad(xp, ((0, Bpad - B), (0, 0), (0, 0)))

    TB = bpb * nW                         # real windows per block
    NSW = -(-TB // G)                     # superwindows per block
    TBpad = NSW * G                       # windows per block incl. padding windows
    R = TBpad * W                         # rows per block

    # ---- window partition + per-block window padding, flattened to rows ----
    xg = xp.reshape(num_blocks, TB * W, C)
    if TBpad != TB:
        xg = jnp.pad(xg, ((0, 0), (0, (TBpad - TB) * W), (0, 0)))
    x_rows = xg.reshape(num_blocks * R, C).astype(jnp.bfloat16)

    # ---- parameter plumbing: fold qk scale into Q columns, cast to bf16 ----
    col_scale = jnp.concatenate([jnp.full((C,), scale, jnp.float32),
                                 jnp.ones((2 * C,), jnp.float32)])
    wqkv = (params["w_qkv"].astype(jnp.float32).T * col_scale[None, :]).astype(jnp.bfloat16)
    bqkv = (params["b_qkv"].astype(jnp.float32) * col_scale).reshape(1, 3 * C)
    wproj = params["w_proj"].astype(jnp.float32).T.astype(jnp.bfloat16)
    bproj = params["b_proj"].astype(jnp.float32).reshape(1, C)

    # ---- block-diagonal relative-position bias (H, S, S), grid-invariant ----
    coords = jnp.arange(W)
    rel_idx = coords[:, None] - coords[None, :] + W - 1                  # (W, W)
    rel = params["rel_table"][rel_idx.reshape(-1)].reshape(W, W, H)
    rel = jnp.transpose(rel, (2, 0, 1)).astype(jnp.float32)              # (H, W, W)

    pos = jnp.arange(S)
    win_of_pos = pos // W
    off_in_win = pos % W
    same_win = win_of_pos[:, None] == win_of_pos[None, :]                # (S, S)
    rel_bd = jnp.where(same_win[None], jnp.tile(rel, (1, G, G)), 0.0)    # (H, S, S)

    # ---- per-superwindow mask (shifted-window mask + off-diag -1e9) ----
    blk_win = jnp.arange(NSW)[:, None] * G + win_of_pos[None, :]         # (NSW, S)
    if attn_mask is not None:
        am = jnp.asarray(attn_mask, jnp.float32)                         # (nW, W, W)
        is_real = (blk_win < TB).astype(jnp.float32)                     # (NSW, S)
        widx = jnp.where(blk_win < TB, blk_win % nW, 0)                  # (NSW, S)
        shifted = am[widx[:, :, None],
                     off_in_win[None, :, None],
                     off_in_win[None, None, :]]                          # (NSW, S, S)
        shifted = shifted * is_real[:, :, None]                          # padding windows: 0
        mask_sw = jnp.where(same_win[None], shifted, NEG)
    else:
        mask_sw = jnp.broadcast_to(jnp.where(same_win, 0.0, NEG)[None], (NSW, S, S))
    mask_sw = mask_sw.astype(jnp.float32)

    kernel = functools.partial(_superwindow_attn_kernel,
                               num_heads=H, nsw=NSW, sw=S)

    out = pl.pallas_call(
        kernel,
        out_shape=jax.ShapeDtypeStruct((num_blocks * R, C), jnp.float32),
        grid=(num_blocks,),
        in_specs=[
            pl.BlockSpec((R, C), lambda i: (i, 0)),                      # x rows (bf16)
            pl.BlockSpec((C, 3 * C), lambda i: (0, 0)),                  # fused qkv w
            pl.BlockSpec((1, 3 * C), lambda i: (0, 0)),                  # fused qkv b
            pl.BlockSpec((C, C), lambda i: (0, 0)),                      # proj w
            pl.BlockSpec((1, C), lambda i: (0, 0)),                      # proj b
            pl.BlockSpec((H, S, S), lambda i: (0, 0, 0)),                # rel bias
            pl.BlockSpec((NSW, S, S), lambda i: (0, 0, 0)),              # sw mask
        ],
        out_specs=pl.BlockSpec((R, C), lambda i: (i, 0)),
        scratch_shapes=[pltpu.VMEM((R, C), jnp.float32)],                # ctx scratch
        compiler_params=pltpu.CompilerParams(
            dimension_semantics=("parallel",),
            vmem_limit_bytes=48 * 1024 * 1024,
        ),
    )(x_rows, wqkv, bqkv, wproj, bproj, rel_bd, mask_sw)

    # ---- drop padding windows, window_reverse, un-shift, crop (glue) ----
    y = out.reshape(num_blocks, R, C)[:, :TB * W, :].reshape(Bpad, Lp, C)[:B]
    if shift_size > 0:
        y = jnp.roll(y, shift_size, axis=1)
    return y[:, :L, :].astype(x.dtype)


# --------------------------------------------------------------------------
# Pure-JAX reference (replica of the PyTorch forward, dropout p = 0, f32)
# --------------------------------------------------------------------------
def _reference(x, params, *, window_size, shift_size, num_heads, attn_mask=None):
    B, L, C = x.shape
    hd = C // num_heads
    scale = hd ** (-0.5)
    hp = jax.lax.Precision.HIGHEST

    pad_r = (window_size - L % window_size) % window_size
    xp = jnp.pad(x, ((0, 0), (0, pad_r), (0, 0)))
    Lp = L + pad_r
    if shift_size > 0:
        xp = jnp.roll(xp, -shift_size, axis=1)
    nW = Lp // window_size
    xw = xp.reshape(B * nW, window_size, C)

    qkv = jnp.einsum('bnc,dc->bnd', xw, params["w_qkv"], precision=hp) + params["b_qkv"]
    qkv = qkv.reshape(B * nW, window_size, 3, num_heads, hd).transpose(2, 0, 3, 1, 4)
    q, k, v = qkv[0] * scale, qkv[1], qkv[2]
    attn = jnp.einsum('bhnd,bhmd->bhnm', q, k, precision=hp)

    coords = jnp.arange(window_size)
    rel_idx = coords[:, None] - coords[None, :] + window_size - 1
    rel_bias = params["rel_table"][rel_idx.reshape(-1)].reshape(window_size, window_size, num_heads)
    rel_bias = jnp.transpose(rel_bias, (2, 0, 1))
    attn = attn + rel_bias[None]

    if attn_mask is not None:
        attn = attn.reshape(B, nW, num_heads, window_size, window_size)
        attn = attn + attn_mask[None, :, None]
        attn = attn.reshape(B * nW, num_heads, window_size, window_size)

    attn = jax.nn.softmax(attn, axis=-1)
    out = jnp.einsum('bhnm,bhmd->bhnd', attn, v, precision=hp)
    out = out.transpose(0, 2, 1, 3).reshape(B * nW, window_size, C)
    out = jnp.einsum('bnc,dc->bnd', out, params["w_proj"], precision=hp) + params["b_proj"]

    y = out.reshape(B, Lp, C)
    if shift_size > 0:
        y = jnp.roll(y, shift_size, axis=1)
    return y[:, :L, :]


# --------------------------------------------------------------------------
if __name__ == "__main__":
    # Small shapes consistent with TSTEncoder / PatchTST defaults.
    B, L = 4, 20
    d_model = 128                 # PatchTST default d_model -> lane-dense tiles
    window_size = 8
    num_heads = 8
    shift = window_size // 2      # TSTEncoder: odd layers use shifted windows

    key = jax.random.PRNGKey(0)
    kx, kw1, kb1, kw2, kb2, kt = jax.random.split(key, 6)

    x = jax.random.normal(kx, (B, L, d_model), dtype=jnp.float32)
    params = {
        "w_qkv": 0.02 * jax.random.normal(kw1, (3 * d_model, d_model), jnp.float32),
        "b_qkv": 0.02 * jax.random.normal(kb1, (3 * d_model,), jnp.float32),
        "w_proj": 0.02 * jax.random.normal(kw2, (d_model, d_model), jnp.float32),
        "b_proj": 0.02 * jax.random.normal(kb2, (d_model,), jnp.float32),
        # relative_position_bias_table: (2*window_size - 1, num_heads)
        "rel_table": 0.02 * jax.random.normal(kt, (2 * window_size - 1, num_heads),
                                              jnp.float32),
    }

    # --- layer 0 of TSTEncoder: shift = 0, no attention mask ---
    out0 = window_attention_1d(x, params, window_size=window_size, shift_size=0,
                               num_heads=num_heads, attn_mask=None)
    out0 = jax.block_until_ready(out0)
    ref0 = _reference(x, params, window_size=window_size, shift_size=0,
                      num_heads=num_heads, attn_mask=None)

    # --- layer 1 of TSTEncoder: shifted windows + compute_mask attention mask ---
    mask = compute_mask(L, window_size, shift)
    out1 = window_attention_1d(x, params, window_size=window_size, shift_size=shift,
                               num_heads=num_heads, attn_mask=mask)
    out1 = jax.block_until_ready(out1)
    ref1 = _reference(x, params, window_size=window_size, shift_size=shift,
                      num_heads=num_heads, attn_mask=mask)

    # Tolerance accounts for bf16 MXU operands (f32 accumulation) and the
    # approximate EUP reciprocal in the softmax.
    for o, r in ((out0, ref0), (out1, ref1)):
        assert o.shape == (B, L, d_model), o.shape
        err = float(jnp.max(jnp.abs(o - r)))
        assert jnp.allclose(o, r, atol=3e-2, rtol=3e-2), err

    print("KERNEL_OK")
</pallas_src>

<mosaic_0001>
module attributes {stable_mosaic.version = 11 : i64} {
  func.func @_superwindow_attn_kernel(%arg0: i32, %arg1: memref<128x128xbf16, #tpu.memory_space<vmem>>, %arg2: memref<128x384xbf16, #tpu.memory_space<vmem>>, %arg3: memref<1x384xf32, #tpu.memory_space<vmem>>, %arg4: memref<128x128xbf16, #tpu.memory_space<vmem>>, %arg5: memref<1x128xf32, #tpu.memory_space<vmem>>, %arg6: memref<8x128x128xf32, #tpu.memory_space<vmem>>, %arg7: memref<1x128x128xf32, #tpu.memory_space<vmem>>, %arg8: memref<128x128xf32, #tpu.memory_space<vmem>>, %arg9: memref<128x128xf32, #tpu.memory_space<vmem>>) attributes {dimension_semantics = [#tpu.dimension_semantics<parallel>], iteration_bounds = array<i64: 2>, scalar_prefetch = 0 : i64, scratch_operands = 1 : i64, tpu.core_type = #tpu.core_type<tc>, window_params = [{transform_indices = @transform_0, window_bounds = array<i64: 128, 128>}, {pipeline_mode = #tpu.pipeline_mode<synchronous>, transform_indices = @transform_1, window_bounds = array<i64: 128, 384>}, {pipeline_mode = #tpu.pipeline_mode<synchronous>, transform_indices = @transform_2, window_bounds = array<i64: 1, 384>}, {pipeline_mode = #tpu.pipeline_mode<synchronous>, transform_indices = @transform_3, window_bounds = array<i64: 128, 128>}, {pipeline_mode = #tpu.pipeline_mode<synchronous>, transform_indices = @transform_4, window_bounds = array<i64: 1, 128>}, {pipeline_mode = #tpu.pipeline_mode<synchronous>, transform_indices = @transform_5, window_bounds = array<i64: 8, 128, 128>}, {pipeline_mode = #tpu.pipeline_mode<synchronous>, transform_indices = @transform_6, window_bounds = array<i64: 1, 128, 128>}, {transform_indices = @transform_7, window_bounds = array<i64: 128, 128>}]} {
    %c0 = arith.constant 0 : index
    %c0_0 = arith.constant 0 : index
    %0 = vector.load %arg1[%c0, %c0_0] : memref<128x128xbf16, #tpu.memory_space<vmem>>, vector<128x128xbf16>
    %c0_1 = arith.constant 0 : index
    %c0_2 = arith.constant 0 : index
    %1 = vector.load %arg2[%c0_1, %c0_2] : memref<128x384xbf16, #tpu.memory_space<vmem>>, vector<128x384xbf16>
    %cst = arith.constant dense<0.000000e+00> : vector<128x384xf32>
    %2 = tpu.matmul %0, %1, %cst {dimension_numbers = #tpu.dot_dimension_numbers<[1], [0], [0], [1], [0, 0, 1, 1], [], []>} : vector<128x128xbf16>, vector<128x384xbf16>, vector<128x384xf32> -> vector<128x384xf32>
    %c0_3 = arith.constant 0 : index
    %c0_4 = arith.constant 0 : index
    %3 = vector.load %arg3[%c0_3, %c0_4] : memref<1x384xf32, #tpu.memory_space<vmem>>, vector<1x384xf32>
    %4 = vector.broadcast %3 : vector<1x384xf32> to vector<128x384xf32>
    %5 = arith.addf %2, %4 : vector<128x384xf32>
    %c0_5 = arith.constant 0 : index
    %c0_6 = arith.constant 0 : index
    %c0_7 = arith.constant 0 : index
    %6 = vector.load %arg7[%c0_5, %c0_6, %c0_7] : memref<1x128x128xf32, #tpu.memory_space<vmem>>, vector<1x128x128xf32>
    %7 = vector.extract_strided_slice %5 {offsets = [0, 0], sizes = [128, 16], strides = [1, 1]} : vector<128x384xf32> to vector<128x16xf32>
    %8 = arith.truncf %7 : vector<128x16xf32> to vector<128x16xbf16>
    %9 = vector.shape_cast %8 : vector<128x16xbf16> to vector<1x128x16xbf16>
    %10 = vector.extract_strided_slice %5 {offsets = [0, 128], sizes = [128, 16], strides = [1, 1]} : vector<128x384xf32> to vector<128x16xf32>
    %11 = arith.truncf %10 : vector<128x16xf32> to vector<128x16xbf16>
    %12 = vector.shape_cast %11 : vector<128x16xbf16> to vector<1x128x16xbf16>
    %13 = vector.extract_strided_slice %5 {offsets = [0, 256], sizes = [128, 16], strides = [1, 1]} : vector<128x384xf32> to vector<128x16xf32>
    %14 = arith.truncf %13 : vector<128x16xf32> to vector<128x16xbf16>
    %15 = vector.shape_cast %14 : vector<128x16xbf16> to vector<1x128x16xbf16>
    "tpu.trace_start"() <{level = 10 : i32, message = "nqd,nkd->nqk"}> : () -> ()
    %cst_8 = arith.constant dense<0.000000e+00> : vector<1x128x128xf32>
    %16 = tpu.matmul %9, %12, %cst_8 {dimension_numbers = #tpu.dot_dimension_numbers<[2], [2], [1], [1], [0, 0, 0, 1, 1, 1], [0], [0]>} : vector<1x128x16xbf16>, vector<1x128x16xbf16>, vector<1x128x128xf32> -> vector<1x128x128xf32>
    "tpu.trace_stop"() : () -> ()
    %c0_9 = arith.constant 0 : index
    %c0_10 = arith.constant 0 : index
    %c0_11 = arith.constant 0 : index
    %17 = vector.load %arg6[%c0_9, %c0_10, %c0_11] : memref<8x128x128xf32, #tpu.memory_space<vmem>>, vector<1x128x128xf32>
    %18 = vector.shape_cast %17 : vector<1x128x128xf32> to vector<128x128xf32>
    %19 = vector.shape_cast %18 : vector<128x128xf32> to vector<1x128x128xf32>
    %20 = arith.addf %16, %19 : vector<1x128x128xf32>
    %21 = arith.addf %20, %6 : vector<1x128x128xf32>
    %cst_12 = arith.constant dense<0xFF800000> : vector<1x128xf32>
    %22 = vector.multi_reduction <maximumf>, %21, %cst_12 [2] : vector<1x128x128xf32> to vector<1x128xf32>
    %23 = vector.shape_cast %22 : vector<1x128xf32> to vector<1x128x1xf32>
    %24 = vector.broadcast %23 : vector<1x128x1xf32> to vector<1x128x128xf32>
    %25 = arith.subf %21, %24 : vector<1x128x128xf32>
    %26 = math.exp %25 : vector<1x128x128xf32>
    %cst_13 = arith.constant dense<0.000000e+00> : vector<1x128xf32>
    %27 = vector.multi_reduction <add>, %26, %cst_13 [2] : vector<1x128x128xf32> to vector<1x128xf32>
    %28 = vector.shape_cast %27 : vector<1x128xf32> to vector<1x128x1xf32>
    %29 = tpu.reciprocal %28 {approx = true} : vector<1x128x1xf32> -> vector<1x128x1xf32>
    %30 = vector.broadcast %29 : vector<1x128x1xf32> to vector<1x128x128xf32>
    %31 = arith.mulf %26, %30 : vector<1x128x128xf32>
    %32 = arith.truncf %31 : vector<1x128x128xf32> to vector<1x128x128xbf16>
    "tpu.trace_start"() <{level = 10 : i32, message = "nqk,nkd->nqd"}> : () -> ()
    %cst_14 = arith.constant dense<0.000000e+00> : vector<1x128x16xf32>
    %33 = tpu.matmul %32, %15, %cst_14 {dimension_numbers = #tpu.dot_dimension_numbers<[2], [1], [1], [2], [0, 0, 0, 1, 1, 2], [0], [0]>} : vector<1x128x128xbf16>, vector<1x128x16xbf16>, vector<1x128x16xf32> -> vector<1x128x16xf32>
    "tpu.trace_stop"() : () -> ()
    %34 = vector.shape_cast %33 : vector<1x128x16xf32> to vector<128x16xf32>
    %c0_15 = arith.constant 0 : index
    %c0_16 = arith.constant 0 : index
    %35 = vector.load %arg9[%c0_15, %c0_16] : memref<128x128xf32, #tpu.memory_space<vmem>>, vector<128x16xf32>
    tpu.vector_store %arg9[%c0_15, %c0_16], %34 {strides = array<i32>} : memref<128x128xf32, #tpu.memory_space<vmem>>, vector<128x16xf32>,
    %36 = vector.extract_strided_slice %5 {offsets = [0, 16], sizes = [128, 16], strides = [1, 1]} : vector<128x384xf32> to vector<128x16xf32>
    %37 = arith.truncf %36 : vector<128x16xf32> to vector<128x16xbf16>
    %38 = vector.shape_cast %37 : vector<128x16xbf16> to vector<1x128x16xbf16>
    %39 = vector.extract_strided_slice %5 {offsets = [0, 144], sizes = [128, 16], strides = [1, 1]} : vector<128x384xf32> to vector<128x16xf32>
    %40 = arith.truncf %39 : vector<128x16xf32> to vector<128x16xbf16>
    %41 = vector.shape_cast %40 : vector<128x16xbf16> to vector<1x128x16xbf16>
    %42 = vector.extract_strided_slice %5 {offsets = [0, 272], sizes = [128, 16], strides = [1, 1]} : vector<128x384xf32> to vector<128x16xf32>
    %43 = arith.truncf %42 : vector<128x16xf32> to vector<128x16xbf16>
    %44 = vector.shape_cast %43 : vector<128x16xbf16> to vector<1x128x16xbf16>
    "tpu.trace_start"() <{level = 10 : i32, message = "nqd,nkd->nqk"}> : () -> ()
    %cst_17 = arith.constant dense<0.000000e+00> : vector<1x128x128xf32>
    %45 = tpu.matmul %38, %41, %cst_17 {dimension_numbers = #tpu.dot_dimension_numbers<[2], [2], [1], [1], [0, 0, 0, 1, 1, 1], [0], [0]>} : vector<1x128x16xbf16>, vector<1x128x16xbf16>, vector<1x128x128xf32> -> vector<1x128x128xf32>
    "tpu.trace_stop"() : () -> ()
    %c1 = arith.constant 1 : index
    %c0_18 = arith.constant 0 : index
    %c0_19 = arith.constant 0 : index
    %46 = vector.load %arg6[%c1, %c0_18, %c0_19] : memref<8x128x128xf32, #tpu.memory_space<vmem>>, vector<1x128x128xf32>
    %47 = vector.shape_cast %46 : vector<1x128x128xf32> to vector<128x128xf32>
    %48 = vector.shape_cast %47 : vector<128x128xf32> to vector<1x128x128xf32>
    %49 = arith.addf %45, %48 : vector<1x128x128xf32>
    %50 = arith.addf %49, %6 : vector<1x128x128xf32>
    %cst_20 = arith.constant dense<0xFF800000> : vector<1x128xf32>
    %51 = vector.multi_reduction <maximumf>, %50, %cst_20 [2] : vector<1x128x128xf32> to vector<1x128xf32>
    %52 = vector.shape_cast %51 : vector<1x128xf32> to vector<1x128x1xf32>
    %53 = vector.broadcast %52 : vector<1x128x1xf32> to vector<1x128x128xf32>
    %54 = arith.subf %50, %53 : vector<1x128x128xf32>
    %55 = math.exp %54 : vector<1x128x128xf32>
    %cst_21 = arith.constant dense<0.000000e+00> : vector<1x128xf32>
    %56 = vector.multi_reduction <add>, %55, %cst_21 [2] : vector<1x128x128xf32> to vector<1x128xf32>
    %57 = vector.shape_cast %56 : vector<1x128xf32> to vector<1x128x1xf32>
    %58 = tpu.reciprocal %57 {approx = true} : vector<1x128x1xf32> -> vector<1x128x1xf32>
    %59 = vector.broadcast %58 : vector<1x128x1xf32> to vector<1x128x128xf32>
    %60 = arith.mulf %55, %59 : vector<1x128x128xf32>
    %61 = arith.truncf %60 : vector<1x128x128xf32> to vector<1x128x128xbf16>
    "tpu.trace_start"() <{level = 10 : i32, message = "nqk,nkd->nqd"}> : () -> ()
    %cst_22 = arith.constant dense<0.000000e+00> : vector<1x128x16xf32>
    %62 = tpu.matmul %61, %44, %cst_22 {dimension_numbers = #tpu.dot_dimension_numbers<[2], [1], [1], [2], [0, 0, 0, 1, 1, 2], [0], [0]>} : vector<1x128x128xbf16>, vector<1x128x16xbf16>, vector<1x128x16xf32> -> vector<1x128x16xf32>
    "tpu.trace_stop"() : () -> ()
    %63 = vector.shape_cast %62 : vector<1x128x16xf32> to vector<128x16xf32>
    %c0_23 = arith.constant 0 : index
    %c16 = arith.constant 16 : index
    %64 = vector.load %arg9[%c0_23, %c16] : memref<128x128xf32, #tpu.memory_space<vmem>>, vector<128x16xf32>
    tpu.vector_store %arg9[%c0_23, %c16], %63 {strides = array<i32>} : memref<128x128xf32, #tpu.memory_space<vmem>>, vector<128x16xf32>,
    %65 = vector.extract_strided_slice %5 {offsets = [0, 32], sizes = [128, 16], strides = [1, 1]} : vector<128x384xf32> to vector<128x16xf32>
    %66 = arith.truncf %65 : vector<128x16xf32> to vector<128x16xbf16>
    %67 = vector.shape_cast %66 : vector<128x16xbf16> to vector<1x128x16xbf16>
    %68 = vector.extract_strided_slice %5 {offsets = [0, 160], sizes = [128, 16], strides = [1, 1]} : vector<128x384xf32> to vector<128x16xf32>
    %69 = arith.truncf %68 : vector<128x16xf32> to vector<128x16xbf16>
    %70 = vector.shape_cast %69 : vector<128x16xbf16> to vector<1x128x16xbf16>
    %71 = vector.extract_strided_slice %5 {offsets = [0, 288], sizes = [128, 16], strides = [1, 1]} : vector<128x384xf32> to vector<128x16xf32>
    %72 = arith.truncf %71 : vector<128x16xf32> to vector<128x16xbf16>
    %73 = vector.shape_cast %72 : vector<128x16xbf16> to vector<1x128x16xbf16>
    "tpu.trace_start"() <{level = 10 : i32, message = "nqd,nkd->nqk"}> : () -> ()
    %cst_24 = arith.constant dense<0.000000e+00> : vector<1x128x128xf32>
    %74 = tpu.matmul %67, %70, %cst_24 {dimension_numbers = #tpu.dot_dimension_numbers<[2], [2], [1], [1], [0, 0, 0, 1, 1, 1], [0], [0]>} : vector<1x128x16xbf16>, vector<1x128x16xbf16>, vector<1x128x128xf32> -> vector<1x128x128xf32>
    "tpu.trace_stop"() : () -> ()
    %c2 = arith.constant 2 : index
    %c0_25 = arith.constant 0 : index
    %c0_26 = arith.constant 0 : index
    %75 = vector.load %arg6[%c2, %c0_25, %c0_26] : memref<8x128x128xf32, #tpu.memory_space<vmem>>, vector<1x128x128xf32>
    %76 = vector.shape_cast %75 : vector<1x128x128xf32> to vector<128x128xf32>
    %77 = vector.shape_cast %76 : vector<128x128xf32> to vector<1x128x128xf32>
    %78 = arith.addf %74, %77 : vector<1x128x128xf32>
    %79 = arith.addf %78, %6 : vector<1x128x128xf32>
    %cst_27 = arith.constant dense<0xFF800000> : vector<1x128xf32>
    %80 = vector.multi_reduction <maximumf>, %79, %cst_27 [2] : vector<1x128x128xf32> to vector<1x128xf32>
    %81 = vector.shape_cast %80 : vector<1x128xf32> to vector<1x128x1xf32>
    %82 = vector.broadcast %81 : vector<1x128x1xf32> to vector<1x128x128xf32>
    %83 = arith.subf %79, %82 : vector<1x128x128xf32>
    %84 = math.exp %83 : vector<1x128x128xf32>
    %cst_28 = arith.constant dense<0.000000e+00> : vector<1x128xf32>
    %85 = vector.multi_reduction <add>, %84, %cst_28 [2] : vector<1x128x128xf32> to vector<1x128xf32>
    %86 = vector.shape_cast %85 : vector<1x128xf32> to vector<1x128x1xf32>
    %87 = tpu.reciprocal %86 {approx = true} : vector<1x128x1xf32> -> vector<1x128x1xf32>
    %88 = vector.broadcast %87 : vector<1x128x1xf32> to vector<1x128x128xf32>
    %89 = arith.mulf %84, %88 : vector<1x128x128xf32>
    %90 = arith.truncf %89 : vector<1x128x128xf32> to vector<1x128x128xbf16>
    "tpu.trace_start"() <{level = 10 : i32, message = "nqk,nkd->nqd"}> : () -> ()
    %cst_29 = arith.constant dense<0.000000e+00> : vector<1x128x16xf32>
    %91 = tpu.matmul %90, %73, %cst_29 {dimension_numbers = #tpu.dot_dimension_numbers<[2], [1], [1], [2], [0, 0, 0, 1, 1, 2], [0], [0]>} : vector<1x128x128xbf16>, vector<1x128x16xbf16>, vector<1x128x16xf32> -> vector<1x128x16xf32>
    "tpu.trace_stop"() : () -> ()
    %92 = vector.shape_cast %91 : vector<1x128x16xf32> to vector<128x16xf32>
    %c0_30 = arith.constant 0 : index
    %c32 = arith.constant 32 : index
    %93 = vector.load %arg9[%c0_30, %c32] : memref<128x128xf32, #tpu.memory_space<vmem>>, vector<128x16xf32>
    tpu.vector_store %arg9[%c0_30, %c32], %92 {strides = array<i32>} : memref<128x128xf32, #tpu.memory_space<vmem>>, vector<128x16xf32>,
    %94 = vector.extract_strided_slice %5 {offsets = [0, 48], sizes = [128, 16], strides = [1, 1]} : vector<128x384xf32> to vector<128x16xf32>
    %95 = arith.truncf %94 : vector<128x16xf32> to vector<128x16xbf16>
    %96 = vector.shape_cast %95 : vector<128x16xbf16> to vector<1x128x16xbf16>
    %97 = vector.extract_strided_slice %5 {offsets = [0, 176], sizes = [128, 16], strides = [1, 1]} : vector<128x384xf32> to vector<128x16xf32>
    %98 = arith.truncf %97 : vector<128x16xf32> to vector<128x16xbf16>
    %99 = vector.shape_cast %98 : vector<128x16xbf16> to vector<1x128x16xbf16>
    %100 = vector.extract_strided_slice %5 {offsets = [0, 304], sizes = [128, 16], strides = [1, 1]} : vector<128x384xf32> to vector<128x16xf32>
    %101 = arith.truncf %100 : vector<128x16xf32> to vector<128x16xbf16>
    %102 = vector.shape_cast %101 : vector<128x16xbf16> to vector<1x128x16xbf16>
    "tpu.trace_start"() <{level = 10 : i32, message = "nqd,nkd->nqk"}> : () -> ()
    %cst_31 = arith.constant dense<0.000000e+00> : vector<1x128x128xf32>
    %103 = tpu.matmul %96, %99, %cst_31 {dimension_numbers = #tpu.dot_dimension_numbers<[2], [2], [1], [1], [0, 0, 0, 1, 1, 1], [0], [0]>} : vector<1x128x16xbf16>, vector<1x128x16xbf16>, vector<1x128x128xf32> -> vector<1x128x128xf32>
    "tpu.trace_stop"() : () -> ()
    %c3 = arith.constant 3 : index
    %c0_32 = arith.constant 0 : index
    %c0_33 = arith.constant 0 : index
    %104 = vector.load %arg6[%c3, %c0_32, %c0_33] : memref<8x128x128xf32, #tpu.memory_space<vmem>>, vector<1x128x128xf32>
    %105 = vector.shape_cast %104 : vector<1x128x128xf32> to vector<128x128xf32>
    %106 = vector.shape_cast %105 : vector<128x128xf32> to vector<1x128x128xf32>
    %107 = arith.addf %103, %106 : vector<1x128x128xf32>
    %108 = arith.addf %107, %6 : vector<1x128x128xf32>
    %cst_34 = arith.constant dense<0xFF800000> : vector<1x128xf32>
    %109 = vector.multi_reduction <maximumf>, %108, %cst_34 [2] : vector<1x128x128xf32> to vector<1x128xf32>
    %110 = vector.shape_cast %109 : vector<1x128xf32> to vector<1x128x1xf32>
    %111 = vector.broadcast %110 : vector<1x128x1xf32> to vector<1x128x128xf32>
    %112 = arith.subf %108, %111 : vector<1x128x128xf32>
    %113 = math.exp %112 : vector<1x128x128xf32>
    %cst_35 = arith.constant dense<0.000000e+00> : vector<1x128xf32>
    %114 = vector.multi_reduction <add>, %113, %cst_35 [2] : vector<1x128x128xf32> to vector<1x128xf32>
    %115 = vector.shape_cast %114 : vector<1x128xf32> to vector<1x128x1xf32>
    %116 = tpu.reciprocal %115 {approx = true} : vector<1x128x1xf32> -> vector<1x128x1xf32>
    %117 = vector.broadcast %116 : vector<1x128x1xf32> to vector<1x128x128xf32>
    %118 = arith.mulf %113, %117 : vector<1x128x128xf32>
    %119 = arith.truncf %118 : vector<1x128x128xf32> to vector<1x128x128xbf16>
    "tpu.trace_start"() <{level = 10 : i32, message = "nqk,nkd->nqd"}> : () -> ()
    %cst_36 = arith.constant dense<0.000000e+00> : vector<1x128x16xf32>
    %120 = tpu.matmul %119, %102, %cst_36 {dimension_numbers = #tpu.dot_dimension_numbers<[2], [1], [1], [2], [0, 0, 0, 1, 1, 2], [0], [0]>} : vector<1x128x128xbf16>, vector<1x128x16xbf16>, vector<1x128x16xf32> -> vector<1x128x16xf32>
    "tpu.trace_stop"() : () -> ()
    %121 = vector.shape_cast %120 : vector<1x128x16xf32> to vector<128x16xf32>
    %c0_37 = arith.constant 0 : index
    %c48 = arith.constant 48 : index
    %122 = vector.load %arg9[%c0_37, %c48] : memref<128x128xf32, #tpu.memory_space<vmem>>, vector<128x16xf32>
    tpu.vector_store %arg9[%c0_37, %c48], %121 {strides = array<i32>} : memref<128x128xf32, #tpu.memory_space<vmem>>, vector<128x16xf32>,
    %123 = vector.extract_strided_slice %5 {offsets = [0, 64], sizes = [128, 16], strides = [1, 1]} : vector<128x384xf32> to vector<128x16xf32>
    %124 = arith.truncf %123 : vector<128x16xf32> to vector<128x16xbf16>
    %125 = vector.shape_cast %124 : vector<128x16xbf16> to vector<1x128x16xbf16>
    %126 = vector.extract_strided_slice %5 {offsets = [0, 192], sizes = [128, 16], strides = [1, 1]} : vector<128x384xf32> to vector<128x16xf32>
    %127 = arith.truncf %126 : vector<128x16xf32> to vector<128x16xbf16>
    %128 = vector.shape_cast %127 : vector<128x16xbf16> to vector<1x128x16xbf16>
    %129 = vector.extract_strided_slice %5 {offsets = [0, 320], sizes = [128, 16], strides = [1, 1]} : vector<128x384xf32> to vector<128x16xf32>
    %130 = arith.truncf %129 : vector<128x16xf32> to vector<128x16xbf16>
    %131 = vector.shape_cast %130 : vector<128x16xbf16> to vector<1x128x16xbf16>
    "tpu.trace_start"() <{level = 10 : i32, message = "nqd,nkd->nqk"}> : () -> ()
    %cst_38 = arith.constant dense<0.000000e+00> : vector<1x128x128xf32>
    %132 = tpu.matmul %125, %128, %cst_38 {dimension_numbers = #tpu.dot_dimension_numbers<[2], [2], [1], [1], [0, 0, 0, 1, 1, 1], [0], [0]>} : vector<1x128x16xbf16>, vector<1x128x16xbf16>, vector<1x128x128xf32> -> vector<1x128x128xf32>
    "tpu.trace_stop"() : () -> ()
    %c4 = arith.constant 4 : index
    %c0_39 = arith.constant 0 : index
    %c0_40 = arith.constant 0 : index
    %133 = vector.load %arg6[%c4, %c0_39, %c0_40] : memref<8x128x128xf32, #tpu.memory_space<vmem>>, vector<1x128x128xf32>
    %134 = vector.shape_cast %133 : vector<1x128x128xf32> to vector<128x128xf32>
    %135 = vector.shape_cast %134 : vector<128x128xf32> to vector<1x128x128xf32>
    %136 = arith.addf %132, %135 : vector<1x128x128xf32>
    %137 = arith.addf %136, %6 : vector<1x128x128xf32>
    %cst_41 = arith.constant dense<0xFF800000> : vector<1x128xf32>
    %138 = vector.multi_reduction <maximumf>, %137, %cst_41 [2] : vector<1x128x128xf32> to vector<1x128xf32>
    %139 = vector.shape_cast %138 : vector<1x128xf32> to vector<1x128x1xf32>
    %140 = vector.broadcast %139 : vector<1x128x1xf32> to vector<1x128x128xf32>
    %141 = arith.subf %137, %140 : vector<1x128x128xf32>
    %142 = math.exp %141 : vector<1x128x128xf32>
    %cst_42 = arith.constant dense<0.000000e+00> : vector<1x128xf32>
    %143 = vector.multi_reduction <add>, %142, %cst_42 [2] : vector<1x128x128xf32> to vector<1x128xf32>
    %144 = vector.shape_cast %143 : vector<1x128xf32> to vector<1x128x1xf32>
    %145 = tpu.reciprocal %144 {approx = true} : vector<1x128x1xf32> -> vector<1x128x1xf32>
    %146 = vector.broadcast %145 : vector<1x128x1xf32> to vector<1x128x128xf32>
    %147 = arith.mulf %142, %146 : vector<1x128x128xf32>
    %148 = arith.truncf %147 : vector<1x128x128xf32> to vector<1x128x128xbf16>
    "tpu.trace_start"() <{level = 10 : i32, message = "nqk,nkd->nqd"}> : () -> ()
    %cst_43 = arith.constant dense<0.000000e+00> : vector<1x128x16xf32>
    %149 = tpu.matmul %148, %131, %cst_43 {dimension_numbers = #tpu.dot_dimension_numbers<[2], [1], [1], [2], [0, 0, 0, 1, 1, 2], [0], [0]>} : vector<1x128x128xbf16>, vector<1x128x16xbf16>, vector<1x128x16xf32> -> vector<1x128x16xf32>
    "tpu.trace_stop"() : () -> ()
    %150 = vector.shape_cast %149 : vector<1x128x16xf32> to vector<128x16xf32>
    %c0_44 = arith.constant 0 : index
    %c64 = arith.constant 64 : index
    %151 = vector.load %arg9[%c0_44, %c64] : memref<128x128xf32, #tpu.memory_space<vmem>>, vector<128x16xf32>
    tpu.vector_store %arg9[%c0_44, %c64], %150 {strides = array<i32>} : memref<128x128xf32, #tpu.memory_space<vmem>>, vector<128x16xf32>,
    %152 = vector.extract_strided_slice %5 {offsets = [0, 80], sizes = [128, 16], strides = [1, 1]} : vector<128x384xf32> to vector<128x16xf32>
    %153 = arith.truncf %152 : vector<128x16xf32> to vector<128x16xbf16>
    %154 = vector.shape_cast %153 : vector<128x16xbf16> to vector<1x128x16xbf16>
    %155 = vector.extract_strided_slice %5 {offsets = [0, 208], sizes = [128, 16], strides = [1, 1]} : vector<128x384xf32> to vector<128x16xf32>
    %156 = arith.truncf %155 : vector<128x16xf32> to vector<128x16xbf16>
    %157 = vector.shape_cast %156 : vector<128x16xbf16> to vector<1x128x16xbf16>
    %158 = vector.extract_strided_slice %5 {offsets = [0, 336], sizes = [128, 16], strides = [1, 1]} : vector<128x384xf32> to vector<128x16xf32>
    %159 = arith.truncf %158 : vector<128x16xf32> to vector<128x16xbf16>
    %160 = vector.shape_cast %159 : vector<128x16xbf16> to vector<1x128x16xbf16>
    "tpu.trace_start"() <{level = 10 : i32, message = "nqd,nkd->nqk"}> : () -> ()
    %cst_45 = arith.constant dense<0.000000e+00> : vector<1x128x128xf32>
    %161 = tpu.matmul %154, %157, %cst_45 {dimension_numbers = #tpu.dot_dimension_numbers<[2], [2], [1], [1], [0, 0, 0, 1, 1, 1], [0], [0]>} : vector<1x128x16xbf16>, vector<1x128x16xbf16>, vector<1x128x128xf32> -> vector<1x128x128xf32>
    "tpu.trace_stop"() : () -> ()
    %c5 = arith.constant 5 : index
    %c0_46 = arith.constant 0 : index
    %c0_47 = arith.constant 0 : index
    %162 = vector.load %arg6[%c5, %c0_46, %c0_47] : memref<8x128x128xf32, #tpu.memory_space<vmem>>, vector<1x128x128xf32>
    %163 = vector.shape_cast %162 : vector<1x128x128xf32> to vector<128x128xf32>
    %164 = vector.shape_cast %163 : vector<128x128xf32> to vector<1x128x128xf32>
    %165 = arith.addf %161, %164 : vector<1x128x128xf32>
    %166 = arith.addf %165, %6 : vector<1x128x128xf32>
    %cst_48 = arith.constant dense<0xFF800000> : vector<1x128xf32>
    %167 = vector.multi_reduction <maximumf>, %166, %cst_48 [2] : vector<1x128x128xf32> to vector<1x128xf32>
    %168 = vector.shape_cast %167 : vector<1x128xf32> to vector<1x128x1xf32>
    %169 = vector.broadcast %168 : vector<1x128x1xf32> to vector<1x128x128xf32>
    %170 = arith.subf %166, %169 : vector<1x128x128xf32>
    %171 = math.exp %170 : vector<1x128x128xf32>
    %cst_49 = arith.constant dense<0.000000e+00> : vector<1x128xf32>
    %172 = vector.multi_reduction <add>, %171, %cst_49 [2] : vector<1x128x128xf32> to vector<1x128xf32>
    %173 = vector.shape_cast %172 : vector<1x128xf32> to vector<1x128x1xf32>
    %174 = tpu.reciprocal %173 {approx = true} : vector<1x128x1xf32> -> vector<1x128x1xf32>
    %175 = vector.broadcast %174 : vector<1x128x1xf32> to vector<1x128x128xf32>
    %176 = arith.mulf %171, %175 : vector<1x128x128xf32>
    %177 = arith.truncf %176 : vector<1x128x128xf32> to vector<1x128x128xbf16>
    "tpu.trace_start"() <{level = 10 : i32, message = "nqk,nkd->nqd"}> : () -> ()
    %cst_50 = arith.constant dense<0.000000e+00> : vector<1x128x16xf32>
    %178 = tpu.matmul %177, %160, %cst_50 {dimension_numbers = #tpu.dot_dimension_numbers<[2], [1], [1], [2], [0, 0, 0, 1, 1, 2], [0], [0]>} : vector<1x128x128xbf16>, vector<1x128x16xbf16>, vector<1x128x16xf32> -> vector<1x128x16xf32>
    "tpu.trace_stop"() : () -> ()
    %179 = vector.shape_cast %178 : vector<1x128x16xf32> to vector<128x16xf32>
    %c0_51 = arith.constant 0 : index
    %c80 = arith.constant 80 : index
    %180 = vector.load %arg9[%c0_51, %c80] : memref<128x128xf32, #tpu.memory_space<vmem>>, vector<128x16xf32>
    tpu.vector_store %arg9[%c0_51, %c80], %179 {strides = array<i32>} : memref<128x128xf32, #tpu.memory_space<vmem>>, vector<128x16xf32>,
    %181 = vector.extract_strided_slice %5 {offsets = [0, 96], sizes = [128, 16], strides = [1, 1]} : vector<128x384xf32> to vector<128x16xf32>
    %182 = arith.truncf %181 : vector<128x16xf32> to vector<128x16xbf16>
    %183 = vector.shape_cast %182 : vector<128x16xbf16> to vector<1x128x16xbf16>
    %184 = vector.extract_strided_slice %5 {offsets = [0, 224], sizes = [128, 16], strides = [1, 1]} : vector<128x384xf32> to vector<128x16xf32>
    %185 = arith.truncf %184 : vector<128x16xf32> to vector<128x16xbf16>
    %186 = vector.shape_cast %185 : vector<128x16xbf16> to vector<1x128x16xbf16>
    %187 = vector.extract_strided_slice %5 {offsets = [0, 352], sizes = [128, 16], strides = [1, 1]} : vector<128x384xf32> to vector<128x16xf32>
    %188 = arith.truncf %187 : vector<128x16xf32> to vector<128x16xbf16>
    %189 = vector.shape_cast %188 : vector<128x16xbf16> to vector<1x128x16xbf16>
    "tpu.trace_start"() <{level = 10 : i32, message = "nqd,nkd->nqk"}> : () -> ()
    %cst_52 = arith.constant dense<0.000000e+00> : vector<1x128x128xf32>
    %190 = tpu.matmul %183, %186, %cst_52 {dimension_numbers = #tpu.dot_dimension_numbers<[2], [2], [1], [1], [0, 0, 0, 1, 1, 1], [0], [0]>} : vector<1x128x16xbf16>, vector<1x128x16xbf16>, vector<1x128x128xf32> -> vector<1x128x128xf32>
    "tpu.trace_stop"() : () -> ()
    %c6 = arith.constant 6 : index
    %c0_53 = arith.constant 0 : index
    %c0_54 = arith.constant 0 : index
    %191 = vector.load %arg6[%c6, %c0_53, %c0_54] : memref<8x128x128xf32, #tpu.memory_space<vmem>>, vector<1x128x128xf32>
    %192 = vector.shape_cast %191 : vector<1x128x128xf32> to vector<128x128xf32>
    %193 = vector.shape_cast %192 : vector<128x128xf32> to vector<1x128x128xf32>
    %194 = arith.addf %190, %193 : vector<1x128x128xf32>
    %195 = arith.addf %194, %6 : vector<1x128x128xf32>
    %cst_55 = arith.constant dense<0xFF800000> : vector<1x128xf32>
    %196 = vector.multi_reduction <maximumf>, %195, %cst_55 [2] : vector<1x128x128xf32> to vector<1x128xf32>
    %197 = vector.shape_cast %196 : vector<1x128xf32> to vector<1x128x1xf32>
    %198 = vector.broadcast %197 : vector<1x128x1xf32> to vector<1x128x128xf32>
    %199 = arith.subf %195, %198 : vector<1x128x128xf32>
    %200 = math.exp %199 : vector<1x128x128xf32>
    %cst_56 = arith.constant dense<0.000000e+00> : vector<1x128xf32>
    %201 = vector.multi_reduction <add>, %200, %cst_56 [2] : vector<1x128x128xf32> to vector<1x128xf32>
    %202 = vector.shape_cast %201 : vector<1x128xf32> to vector<1x128x1xf32>
    %203 = tpu.reciprocal %202 {approx = true} : vector<1x128x1xf32> -> vector<1x128x1xf32>
    %204 = vector.broadcast %203 : vector<1x128x1xf32> to vector<1x128x128xf32>
    %205 = arith.mulf %200, %204 : vector<1x128x128xf32>
    %206 = arith.truncf %205 : vector<1x128x128xf32> to vector<1x128x128xbf16>
    "tpu.trace_start"() <{level = 10 : i32, message = "nqk,nkd->nqd"}> : () -> ()
    %cst_57 = arith.constant dense<0.000000e+00> : vector<1x128x16xf32>
    %207 = tpu.matmul %206, %189, %cst_57 {dimension_numbers = #tpu.dot_dimension_numbers<[2], [1], [1], [2], [0, 0, 0, 1, 1, 2], [0], [0]>} : vector<1x128x128xbf16>, vector<1x128x16xbf16>, vector<1x128x16xf32> -> vector<1x128x16xf32>
    "tpu.trace_stop"() : () -> ()
    %208 = vector.shape_cast %207 : vector<1x128x16xf32> to vector<128x16xf32>
    %c0_58 = arith.constant 0 : index
    %c96 = arith.constant 96 : index
    %209 = vector.load %arg9[%c0_58, %c96] : memref<128x128xf32, #tpu.memory_space<vmem>>, vector<128x16xf32>
    tpu.vector_store %arg9[%c0_58, %c96], %208 {strides = array<i32>} : memref<128x128xf32, #tpu.memory_space<vmem>>, vector<128x16xf32>,
    %210 = vector.extract_strided_slice %5 {offsets = [0, 112], sizes = [128, 16], strides = [1, 1]} : vector<128x384xf32> to vector<128x16xf32>
    %211 = arith.truncf %210 : vector<128x16xf32> to vector<128x16xbf16>
    %212 = vector.shape_cast %211 : vector<128x16xbf16> to vector<1x128x16xbf16>
    %213 = vector.extract_strided_slice %5 {offsets = [0, 240], sizes = [128, 16], strides = [1, 1]} : vector<128x384xf32> to vector<128x16xf32>
    %214 = arith.truncf %213 : vector<128x16xf32> to vector<128x16xbf16>
    %215 = vector.shape_cast %214 : vector<128x16xbf16> to vector<1x128x16xbf16>
    %216 = vector.extract_strided_slice %5 {offsets = [0, 368], sizes = [128, 16], strides = [1, 1]} : vector<128x384xf32> to vector<128x16xf32>
    %217 = arith.truncf %216 : vector<128x16xf32> to vector<128x16xbf16>
    %218 = vector.shape_cast %217 : vector<128x16xbf16> to vector<1x128x16xbf16>
    "tpu.trace_start"() <{level = 10 : i32, message = "nqd,nkd->nqk"}> : () -> ()
    %cst_59 = arith.constant dense<0.000000e+00> : vector<1x128x128xf32>
    %219 = tpu.matmul %212, %215, %cst_59 {dimension_numbers = #tpu.dot_dimension_numbers<[2], [2], [1], [1], [0, 0, 0, 1, 1, 1], [0], [0]>} : vector<1x128x16xbf16>, vector<1x128x16xbf16>, vector<1x128x128xf32> -> vector<1x128x128xf32>
    "tpu.trace_stop"() : () -> ()
    %c7 = arith.constant 7 : index
    %c0_60 = arith.constant 0 : index
    %c0_61 = arith.constant 0 : index
    %220 = vector.load %arg6[%c7, %c0_60, %c0_61] : memref<8x128x128xf32, #tpu.memory_space<vmem>>, vector<1x128x128xf32>
    %221 = vector.shape_cast %220 : vector<1x128x128xf32> to vector<128x128xf32>
    %222 = vector.shape_cast %221 : vector<128x128xf32> to vector<1x128x128xf32>
    %223 = arith.addf %219, %222 : vector<1x128x128xf32>
    %224 = arith.addf %223, %6 : vector<1x128x128xf32>
    %cst_62 = arith.constant dense<0xFF800000> : vector<1x128xf32>
    %225 = vector.multi_reduction <maximumf>, %224, %cst_62 [2] : vector<1x128x128xf32> to vector<1x128xf32>
    %226 = vector.shape_cast %225 : vector<1x128xf32> to vector<1x128x1xf32>
    %227 = vector.broadcast %226 : vector<1x128x1xf32> to vector<1x128x128xf32>
    %228 = arith.subf %224, %227 : vector<1x128x128xf32>
    %229 = math.exp %228 : vector<1x128x128xf32>
    %cst_63 = arith.constant dense<0.000000e+00> : vector<1x128xf32>
    %230 = vector.multi_reduction <add>, %229, %cst_63 [2] : vector<1x128x128xf32> to vector<1x128xf32>
    %231 = vector.shape_cast %230 : vector<1x128xf32> to vector<1x128x1xf32>
    %232 = tpu.reciprocal %231 {approx = true} : vector<1x128x1xf32> -> vector<1x128x1xf32>
    %233 = vector.broadcast %232 : vector<1x128x1xf32> to vector<1x128x128xf32>
    %234 = arith.mulf %229, %233 : vector<1x128x128xf32>
    %235 = arith.truncf %234 : vector<1x128x128xf32> to vector<1x128x128xbf16>
    "tpu.trace_start"() <{level = 10 : i32, message = "nqk,nkd->nqd"}> : () -> ()
    %cst_64 = arith.constant dense<0.000000e+00> : vector<1x128x16xf32>
    %236 = tpu.matmul %235, %218, %cst_64 {dimension_numbers = #tpu.dot_dimension_numbers<[2], [1], [1], [2], [0, 0, 0, 1, 1, 2], [0], [0]>} : vector<1x128x128xbf16>, vector<1x128x16xbf16>, vector<1x128x16xf32> -> vector<1x128x16xf32>
    "tpu.trace_stop"() : () -> ()
    %237 = vector.shape_cast %236 : vector<1x128x16xf32> to vector<128x16xf32>
    %c0_65 = arith.constant 0 : index
    %c112 = arith.constant 112 : index
    %238 = vector.load %arg9[%c0_65, %c112] : memref<128x128xf32, #tpu.memory_space<vmem>>, vector<128x16xf32>
    tpu.vector_store %arg9[%c0_65, %c112], %237 {strides = array<i32>} : memref<128x128xf32, #tpu.memory_space<vmem>>, vector<128x16xf32>,
    %c0_66 = arith.constant 0 : index
    %c0_67 = arith.constant 0 : index
    %239 = vector.load %arg9[%c0_66, %c0_67] : memref<128x128xf32, #tpu.memory_space<vmem>>, vector<128x128xf32>
    %240 = arith.truncf %239 : vector<128x128xf32> to vector<128x128xbf16>
    %c0_68 = arith.constant 0 : index
    %c0_69 = arith.constant 0 : index
    %241 = vector.load %arg4[%c0_68, %c0_69] : memref<128x128xbf16, #tpu.memory_space<vmem>>, vector<128x128xbf16>
    %cst_70 = arith.constant dense<0.000000e+00> : vector<128x128xf32>
    %242 = tpu.matmul %240, %241, %cst_70 {dimension_numbers = #tpu.dot_dimension_numbers<[1], [0], [0], [1], [0, 0, 1, 1], [], []>} : vector<128x128xbf16>, vector<128x128xbf16>, vector<128x128xf32> -> vector<128x128xf32>
    %c0_71 = arith.constant 0 : index
    %c0_72 = arith.constant 0 : index
    %243 = vector.load %arg5[%c0_71, %c0_72] : memref<1x128xf32, #tpu.memory_space<vmem>>, vector<1x128xf32>
    %244 = vector.broadcast %243 : vector<1x128xf32> to vector<128x128xf32>
    %245 = arith.addf %242, %244 : vector<128x128xf32>
    %c0_73 = arith.constant 0 : index
    %c0_74 = arith.constant 0 : index
    %246 = vector.load %arg8[%c0_73, %c0_74] : memref<128x128xf32, #tpu.memory_space<vmem>>, vector<128x128xf32>
    tpu.vector_store %arg8[%c0_73, %c0_74], %245 {strides = array<i32>} : memref<128x128xf32, #tpu.memory_space<vmem>>, vector<128x128xf32>,
    return
  }
  func.func @transform_0(%arg0: i32) -> (i32, i32) {
    %c0_i32 = arith.constant 0 : i32
    %c0_i32_0 = arith.constant 0 : i32
    return %arg0, %c0_i32 : i32, i32
  }
  func.func @transform_1(%arg0: i32) -> (i32, i32) {
    %c0_i32 = arith.constant 0 : i32
    %c0_i32_0 = arith.constant 0 : i32
    %c0_i32_1 = arith.constant 0 : i32
    return %c0_i32, %c0_i32_0 : i32, i32
  }
  func.func @transform_2(%arg0: i32) -> (i32, i32) {
    %c0_i32 = arith.constant 0 : i32
    %c0_i32_0 = arith.constant 0 : i32
    %c0_i32_1 = arith.constant 0 : i32
    return %c0_i32, %c0_i32_0 : i32, i32
  }
  func.func @transform_3(%arg0: i32) -> (i32, i32) {
    %c0_i32 = arith.constant 0 : i32
    %c0_i32_0 = arith.constant 0 : i32
    %c0_i32_1 = arith.constant 0 : i32
    return %c0_i32, %c0_i32_0 : i32, i32
  }
  func.func @transform_4(%arg0: i32) -> (i32, i32) {
    %c0_i32 = arith.constant 0 : i32
    %c0_i32_0 = arith.constant 0 : i32
    %c0_i32_1 = arith.constant 0 : i32
    return %c0_i32, %c0_i32_0 : i32, i32
  }
  func.func @transform_5(%arg0: i32) -> (i32, i32, i32) {
    %c0_i32 = arith.constant 0 : i32
    %c0_i32_0 = arith.constant 0 : i32
    %c0_i32_1 = arith.constant 0 : i32
    %c0_i32_2 = arith.constant 0 : i32
    return %c0_i32, %c0_i32_0, %c0_i32_1 : i32, i32, i32
  }
  func.func @transform_6(%arg0: i32) -> (i32, i32, i32) {
    %c0_i32 = arith.constant 0 : i32
    %c0_i32_0 = arith.constant 0 : i32
    %c0_i32_1 = arith.constant 0 : i32
    %c0_i32_2 = arith.constant 0 : i32
    return %c0_i32, %c0_i32_0, %c0_i32_1 : i32, i32, i32
  }
  func.func @transform_7(%arg0: i32) -> (i32, i32) {
    %c0_i32 = arith.constant 0 : i32
    %c0_i32_0 = arith.constant 0 : i32
    return %arg0, %c0_i32 : i32, i32
  }
}

</mosaic_0001>

<bundles_post_ra>
// kernel: tpu_custom_call.1
= control target key start
LH: loop header
LB: loop body
LE: loop exit
PB: predicated region body
PF: predicated region fallthrough
CT: control target
= control target key end

     0   :  { %s10541_s0 = inlined_call_operand.hbm [shape: bf16[256,128], index: 0, kind: input, shape index: {}]   ;;  %s10542_s1 = inlined_call_operand.hbm [shape: bf16[128,384], index: 1, kind: input, shape index: {}]   ;;  %s10543_s2 = inlined_call_operand.vmem [shape: f32[1,384], index: 2, kind: input, shape index: {}]   ;;  %s10544_s3 = inlined_call_operand.hbm [shape: bf16[128,128], index: 3, kind: input, shape index: {}]   ;;  %s10545_s4 = inlined_call_operand.vmem [shape: f32[1,128], index: 4, kind: input, shape index: {}]   ;;  %s10546_s5 = inlined_call_operand.hbm [shape: f32[8,128,128], index: 5, kind: input, shape index: {}]   ;;  %s10547_s6 = inlined_call_operand.hbm [shape: f32[1,128,128], index: 6, kind: input, shape index: {}]   ;;  %s10548_s7 = inlined_call_operand.hbm [shape: f32[256,128], index: 7, kind: output, shape index: {}]  }
   0x1   :  { %10592 = sst [smem:[#allocation99_spill]] %s10542_s1 }
   0x2   :  { %12 = vsyncpa [#allocation4], 0 }
   0x3   :  { %14 = vsyncpa [#allocation4 + $0x1], 0 }
   0x4   :  { %15 = vsyncpa [#allocation7], 0 }
   0x5   :  { %16 = vsyncpa [#allocation10], 0 }
   0x6   :  { %17 = vsyncpa [#allocation5], 0 }
   0x7   :  { %19 = vsyncpa [#allocation5 + $0x1], 0  ;;  %s7649_s24 = smov 0   ;;  %s7651_s25 = smov 0  }
   0x8   :  { %s7653_s26 = smov 0   ;;  %s7655_s27 = smov 0  }
   0x9 LB: > { %s7670_s28 = sadd.s32 4294967295, %s7585_s27   ;;  %s5597_s29 = sadd.s32 4294967294, %s7585_s27   ;;  %s7585_s27 = sphi %s7655_s27, %s10830_s27   ;;  %s7581_s26 = sphi %s7653_s26, %s10829_s26   ;;  %s7577_s25 = sphi %s7651_s25, %s10828_s25   ;;  %s7573_s24 = sphi %s7649_s24, %s10827_s24  }
   0xa   : > { %p45_p0 = scmp.ne.s32.totalorder %s7577_s25, %s7573_s24  ;;  %p10549_p1 = scmp.eq.s32.totalorder %s7670_s28, 0 }
   0xb   : > { %p201_p3 = scmp.eq.s32.totalorder %s5597_s29, 1  ;;  %p5598_p5 = scmp.ge.s32.totalorder %s7585_s27, 1 }
   0xc   : > { %p7679_p4 = por %p10549_p1, %p45_p0  ;;  %p208_p7 = scmp.lt.s32.totalorder %s7585_s27, 3 }
   0xd   : > { %p7684_p6 = por %p201_p3, %p45_p0  ;;  %s7587_s10 = smov [#allocation6]  }
   0xe   : > { %s10593_s30 = scalar_select %p7679_p4, 1, 0 }
   0xf   : > { %s10594_s8 = scalar_select %p7684_p6, 1, 0 }
  0x10   : > { %p7689_p8 = pnand %p5598_p5, %p208_p7  ;;  %s220_s11 = sshll.u32 %s7587_s10, 4  ;;  %s221_s11 = int_to_ptr.vmem [resolvable:$true] %s220_s11 }
  0x11   : > { %s7588_s13 = smov [#allocation9]   ;;  %s7392_s15 = scalar_lea.vmem %s221_s11, 3072 }
  0x12   : > { %s10595_s9 = scalar_select %p7689_p8, 1, 0 }
  0x13   : > { %p6690_p9 = pneg %p7689_p8  ;;  %s252_s14 = sshll.u32 %s7588_s13, 4  ;;  %s253_s14 = int_to_ptr.vmem [resolvable:$true] %s252_s14 }
  0x14   : > { %p7393_p13 = scmp.ne.s32.totalorder %s221_s11, %s7392_s15  ;;  %p7400_p5 = scmp.lt.s32.totalorder %s221_s11, %s221_s11 }
  0x15   : > { %p7698_p11 = pnand %p6690_p9, %p10549_p1  ;;  %p7401_p7 = scmp.lt.s32.totalorder %s7392_s15, %s7392_s15 }
  0x17   : > { %p7383_p12 = pneg %p7698_p11  ;;  %p7402_p10 = por %p7401_p7, %p7400_p5 }
  0x19   : > { %p7395_p0 = pnand %p7393_p13, %p7383_p12 }
  0x1b   : > { %p7396_p3 = pneg %p7395_p0 }
  0x1d   : > { %p7403_p9 = pnand %p7402_p10, %p7396_p3 }
  0x1f   : > { %7406 = shalt.err (!%p7403_p9)
}
  0x20   : > { %s7589_s16 = smov 192   ;;  %s7590_s17 = smov 12  }
  0x21   : > { %s10597_s1 = sld [smem:[#allocation99_spill]]  ;;  %s7418_s20 = scalar_lea.vmem %s253_s14, 16384 }
  0x22   : > { %p7419_p1 = scmp.ne.s32.totalorder %s253_s14, %s7418_s20  ;;  %p7426_p2 = scmp.lt.s32.totalorder %s253_s14, %s253_s14 }
  0x23   : > { %p7427_p6 = scmp.lt.s32.totalorder %s7418_s20, %s7418_s20 }
  0x24   : > { %p7421_p13 = pnand %p7419_p1, %p7383_p12 }
  0x25   : > { %p7428_p5 = por %p7427_p6, %p7426_p2 }
  0x26   : > { %p7422_p0 = pneg %p7421_p13 }
  0x27   : > { %6693 = dma.hbm_to_vmem [thread:$0]  (!%p7698_p11), %s10597_s1, 3072, %s221_s11, [#allocation7], %s7589_s16, %s7589_s16, %s7590_s17  }
  0x28   : > { %p7429_p10 = pnand %p7428_p5, %p7422_p0 }
  0x2a   : > { %7432 = shalt.err (!%p7429_p10)
}
  0x2b   : > { %s7591_s21 = smov 128   ;;  %s7592_s22 = smov 8  }
  0x2c   : > { %6699 = dma.hbm_to_vmem [thread:$0]  (!%p7698_p11), %s10546_s5, 16384, %s253_s14, [#allocation10], %s7591_s21, %s7591_s21, %s7592_s22  }
  0x2d   : > { %s7593_s10 = smov [#allocation8]  }
  0x2e   : > { %s236_s11 = sshll.u32 %s7593_s10, 4  ;;  %s237_s11 = int_to_ptr.vmem [resolvable:$true] %s236_s11 }
  0x2f   : > { %s7444_s13 = scalar_lea.vmem %s237_s11, 1024  ;;  %p7452_p3 = scmp.lt.s32.totalorder %s237_s11, %s237_s11 }
  0x30   : > { %p7445_p1 = scmp.ne.s32.totalorder %s237_s11, %s7444_s13  ;;  %p7453_p7 = scmp.lt.s32.totalorder %s7444_s13, %s7444_s13 }
  0x32   : > { %p7447_p2 = pnand %p7445_p1, %p7383_p12  ;;  %p7454_p9 = por %p7453_p7, %p7452_p3 }
  0x34   : > { %p7448_p6 = pneg %p7447_p2 }
  0x36   : > { %p7455_p13 = pnand %p7454_p9, %p7448_p6 }
  0x38   : > { %7458 = shalt.err (!%p7455_p13)
}
  0x39   : > { %s10550_s15 = smov 64   ;;  %s10551_s16 = smov 4  }
  0x3a   : > { %6696 = dma.hbm_to_vmem [thread:$0]  (!%p7698_p11), %s10544_s3, 1024, %s237_s11, [#allocation7], %s10550_s15, %s10550_s15, %s10551_s16  }
  0x3b   : > { %s7596_s18 = smov [#allocation11]  }
  0x3c   : > { %s265_s19 = sshll.u32 %s7596_s18, 4  ;;  %s266_s19 = int_to_ptr.vmem [resolvable:$true] %s265_s19 }
  0x3d   : > { %s7470_s20 = scalar_lea.vmem %s266_s19, 2048  ;;  %p7478_p1 = scmp.lt.s32.totalorder %s266_s19, %s266_s19 }
  0x3e   : > { %p7471_p0 = scmp.ne.s32.totalorder %s266_s19, %s7470_s20  ;;  %p7479_p2 = scmp.lt.s32.totalorder %s7470_s20, %s7470_s20 }
  0x40   : > { %p7473_p5 = pnand %p7471_p0, %p7383_p12  ;;  %p7480_p6 = por %p7479_p2, %p7478_p1 }
  0x42   : > { %p7474_p10 = pneg %p7473_p5 }
  0x44   : > { %p7481_p3 = pnand %p7480_p6, %p7474_p10 }
  0x46   : > { %7484 = shalt.err (!%p7481_p3)
}
  0x47   : > { %6702 = dma.hbm_to_vmem [thread:$0]  (!%p7698_p11), %s10547_s6, 2048, %s266_s19, [#allocation10], %s7591_s21, %s7591_s21, %s7592_s22  }
  0x48   : > { %s7746_s10 = sadd.s32 1, %s7585_s27   ;;  %s32_s12 = sadd.s32 1, %s7581_s26 }
  0x49   : > { %s29_s11 = ssub.s32 %s7585_s27, %s7746_s10  ;;  %p39_p12 = scmp.ne.s32.totalorder %s7581_s26, %s7577_s25 }
  0x4a   : > { %p30_p7 = scmp.eq.s32.totalorder %s29_s11, 0  ;;  %p40_p9 = scmp.eq.s32.totalorder %s7585_s27, 0 }
  0x4b   : > { %p10598_p13 = scmp.eq.s32.totalorder %s7670_s28, 1  ;;  %p6715_p5 = scmp.lt.s32.totalorder %s7585_s27, 2 }
  0x4c   : > { %s7762_s14 = scalar_select %p30_p7, %s7581_s26, %s32_s12  }
  0x4d   : > { %p7756_p0 = por %p10598_p13, %p39_p12  ;;  %p41_p10 = por %p40_p9, %p39_p12 }
  0x4e   : > { %s279_s17 = sand.u32 1, %s7581_s26   ;;  %s5724_s21 = sshll.u32 %s7585_s27, 10 }
  0x4f   : > { %s10599_s13 = scalar_select %p7756_p0, 1, 0 }
  0x50   : > { %s5604_s18 = sshll.u32 %s279_s17, 6  ;;  %s7769_s20 = scalar_lea.hbm %s10541_s0, %s5724_s21 }
  0x51   : > { %s283_s23 = scalar_lea.vmem [#allocation3], %s5604_s18  ;;  %p7773_p11 = pnand %p6715_p5, %p41_p10 }
  0x52   : > { %s290_s29 = sshll.u32 %s283_s23, 4  ;;  %s7777_s12 = scalar_lea.sflag [#allocation4], %s279_s17  ;;  %s7771_s29 = int_to_ptr.vmem [resolvable:$true] %s290_s29 }
  0x53   : > { %s7485_s15 = scalar_lea.hbm %s7769_s20, 1024  ;;  %p7487_p2 = pneg %p7773_p11 }
  0x54   : > { %p7486_p1 = scmp.ne.s32.totalorder %s7769_s20, %s7485_s15  ;;  %s7490_s18 = scalar_lea.hbm %s10541_s0, 2048 }
  0x55   : > { %p7491_p12 = scmp.lt.s32.totalorder %s7769_s20, %s10541_s0  ;;  %p7492_p7 = scmp.lt.s32.totalorder %s7490_s18, %s7485_s15 }
  0x56   : > { %p7488_p6 = pnand %p7487_p2, %p7486_p1 }
  0x57   : > { %p7493_p9 = por %p7492_p7, %p7491_p12 }
  0x58   : > { %p7489_p3 = pneg %p7488_p6 }
  0x5a   : > { %p7494_p13 = pnand %p7493_p9, %p7489_p3 }
  0x5c   : > { %7497 = shalt.err (!%p7494_p13)
}
  0x5d   : > { %s7498_s17 = scalar_lea.vmem %s7771_s29, 1024  ;;  %s7597_s16 = smov [#allocation3]  }
  0x5e   : > { %p7499_p5 = scmp.ne.s32.totalorder %s7771_s29, %s7498_s17  ;;  %s7503_s1 = sshll.u32 %s7597_s16, 4  ;;  %s7504_s1 = int_to_ptr.vmem [resolvable:$false] %s7503_s1 }
  0x5f   : > { %s7505_s21 = scalar_lea.vmem %s7504_s1, 2048  ;;  %p7506_p6 = scmp.lt.s32.totalorder %s7771_s29, %s7504_s1 }
  0x60   : > { %p7501_p10 = pnand %p7499_p5, %p7487_p2  ;;  %p7507_p0 = scmp.lt.s32.totalorder %s7505_s21, %s7498_s17 }
  0x62   : > { %p7502_p1 = pneg %p7501_p10  ;;  %p7508_p4 = por %p7507_p0, %p7506_p6 }
  0x64   : > { %p7509_p8 = pnand %p7508_p4, %p7502_p1 }
  0x66   : > { %7512 = shalt.err (!%p7509_p8)
}
  0x67   : > { %s10601_s15 = smov 4   ;;  %s10602_s22 = smov 64  }
  0x68   : > { %6706 = dma.hbm_to_vmem [thread:$0]  (!%p7773_p11), %s7769_s20, 1024, %s7771_s29, %s7777_s12, %s10602_s22, %s10602_s22, %s10601_s15  }
  0x69   : > { %p10603_p2 = scmp.ne.s32.totalorder %s10595_s9, 0 }
  0x6b   : > { %302 = sbr.rel (%p10603_p2) target bundleno = 5870 (0x16ee), region = 48 }
  0x70   : > { %s7804_s16 = sand.u32 1, %s7577_s25   ;;  %p10604_p4 = scmp.ne.s32.totalorder %s10593_s30, 0 }
  0x71   : > { %s5608_s1 = sshll.u32 %s7804_s16, 6  ;;  %s305_s18 = scalar_lea.sflag [#allocation4], %s7804_s16 }
  0x72   : > { %s7808_s19 = scalar_lea.vmem [#allocation3], %s5608_s1 }
  0x73   : > { %7556 = dma.done.wait (%p10604_p4), %s305_s18, 1024  }
  0x74   : > { %7558 = vsyncadd (%p10604_p4), %s305_s18, 4294966272  ;;  %p10605_p8 = scmp.eq.s32.totalorder %s7670_s28, 0 }
  0x76   : > { %7560 = dma.done.wait (%p10605_p8), [#allocation7], 4096   ;;  %p10606_p0 = pmov %p10605_p8 }
  0x78   : > { %7562 = vsyncadd (%p10606_p0), [#allocation7], 4294963200  ;;  %p10607_p11 = pmov %p10606_p0 }
  0x79   : > { %p10608_p3 = pmov %p10606_p0 }
  0x7a   : > { %7564 = dma.done.wait (%p10607_p11), [#allocation10], 18432  }
  0x7b   : > { %7566 = vsyncadd (%p10608_p3), [#allocation10], 4294948864  ;;  %v7598_v0 = vmov 0   ;;  %v6773_v1 = vld [vmem:[#allocation6 + $0xac] ss:$12 sps:$4 sm:$0xff]   ;;  %v6797_v9 = vld [vmem:[%s7808_s19] sm:$0xff]   ;;  %v408_v33 = vlaneseq }
  0x7c   : > { %631 = vmatprep.mubr.bf16.mxu0 %v7598_v0  ;;  %v6775_v2 = vld [vmem:[#allocation6 + $0xa8] ss:$12 sps:$4 sm:$0xff]   ;;  %599 = vmatprep.subr.bf16.mxu0 %v6773_v1  ;;  %v6778_v4 = vld [vmem:[#allocation6 + $0x90] ss:$12 sps:$4 sm:$0xff]   ;;  %v6781_v6 = vld [vmem:[#allocation6 + $0x78] ss:$12 sps:$4 sm:$0xff]  }
  0x7d   : > { %v6776_v3 = vld [vmem:[#allocation6 + $0x94] ss:$12 sps:$4 sm:$0xff]   ;;  %600 = vmatpush1.bf16.msra.mxu0 %v6775_v2  ;;  %v6779_v5 = vld [vmem:[#allocation6 + $0x7c] ss:$12 sps:$4 sm:$0xff]   ;;  %v6782_v7 = vld [vmem:[#allocation6 + $0x64] ss:$12 sps:$4 sm:$0xff]   ;;  %6030 = vmatprep.mubr.bf16.mxu1 %v6797_v9 }
  0x7e   : > { %601 = vmatprep.subr.bf16.mxu0 %v6776_v3  ;;  %v6784_v8 = vld [vmem:[#allocation6 + $0x60] ss:$12 sps:$4 sm:$0xff]   ;;  %v6787_v11 = vld [vmem:[#allocation6 + $0x48] ss:$12 sps:$4 sm:$0xff]   ;;  %v6790_v13 = vld [vmem:[#allocation6 + $0x30] ss:$12 sps:$4 sm:$0xff]  }
  0x7f   : > { %v6785_v10 = vld [vmem:[#allocation6 + $0x4c] ss:$12 sps:$4 sm:$0xff]   ;;  %v6788_v12 = vld [vmem:[#allocation6 + $0x34] ss:$12 sps:$4 sm:$0xff]   ;;  %v6791_v14 = vld [vmem:[#allocation6 + $0x1c] ss:$12 sps:$4 sm:$0xff]  }
  0x80   : > { %v6805_v15 = vld [vmem:[#allocation6 + $0xb0] ss:$12 sps:$4 sm:$0xff]   ;;  %v6806_v16 = vld [vmem:[#allocation6 + $0x98] ss:$12 sps:$4 sm:$0xff]   ;;  %v6807_v18 = vld [vmem:[#allocation6 + $0x80] ss:$12 sps:$4 sm:$0xff]  }
  0x81   : > { %602 = vmatpush1.bf16.msra.mxu0 %v6778_v4  ;;  %6014 = vmatprep.subr.bf16.mxu1 %v6805_v15  ;;  %v6793_v17 = vld [vmem:[#allocation6 + $0x18] ss:$12 sps:$4 sm:$0xff]   ;;  %v6796_v20 = vld [vmem:[#allocation6] ss:$12 sps:$4 sm:$0xff]   ;;  %v6808_v21 = vld [vmem:[#allocation6 + $0x68] ss:$12 sps:$4 sm:$0xff]  }
  0x82   : > { %603 = vmatprep.subr.bf16.mxu0 %v6779_v5  ;;  %6015 = vmatpush3.bf16.msra.mxu1 %v6805_v15  ;;  %v6794_v19 = vld [vmem:[#allocation6 + $0x4] ss:$12 sps:$4 sm:$0xff]   ;;  %v6798_v24 = vld [vmem:[%s7808_s19 + $0x8] sm:$0xff]   ;;  %v6800_v28 = vld [vmem:[%s7808_s19 + $0x18] sm:$0xff]   ;;  %v7838_v34 = vshrl.u32 %v408_v33, 7  ;;  %vm865_vm0 = vcmask 130048  }
  0x83   : > { %6016 = vmatprep.subr.bf16.mxu1 %v6806_v16  ;;  %v6809_v22 = vld [vmem:[#allocation6 + $0x50] ss:$12 sps:$4 sm:$0xff]   ;;  %v6810_v23 = vld [vmem:[#allocation6 + $0x38] ss:$12 sps:$4 sm:$0xff]   ;;  %v6811_v25 = vld [vmem:[#allocation6 + $0x20] ss:$12 sps:$4 sm:$0xff]  }
  0x84   : > { %v6812_v26 = vld [vmem:[#allocation6 + $0x8] ss:$12 sps:$4 sm:$0xff]   ;;  %v6801_v29 = vld [vmem:[%s7808_s19 + $0x20] sm:$0xff]   ;;  %v6804_v32 = vld [vmem:[%s7808_s19 + $0x38] sm:$0xff]   ;;  %v410_v35 = vsub.s32 0, %v7838_v34  ;;  %s7599_s20 = smov 112  }
  0x85   : > { %604 = vmatpush1.bf16.msra.mxu0 %v6781_v6  ;;  %v6799_v27 = vld [vmem:[%s7808_s19 + $0x10] sm:$0xff]   ;;  %v6802_v30 = vld [vmem:[%s7808_s19 + $0x28] sm:$0xff]   ;;  %v7844_v36 = vld [vmem:[%s10543_s2] sm:$0x7]  ;;  %s7600_s29 = smov 96   ;;  %s7601_s11 = smov 80  }
  0x86   : > { %605 = vmatprep.subr.bf16.mxu0 %v6782_v7  ;;  %6017 = vmatpush3.bf16.msra.mxu1 %v6806_v16  ;;  %v6803_v31 = vld [vmem:[%s7808_s19 + $0x30] sm:$0xff]   ;;  %v7847_v38 = vrot.slane %v7844_v36, %v410_v35  ;;  %s7602_s12 = smov 64   ;;  %s7603_s23 = smov 48   ;;  %vm1863_vm1 = vcmask 261248   ;;  %vm2427_vm2 = vcmask 392448   ;;  %vm2991_vm3 = vcmask 523648  }
  0x87   : > { %6018 = vmatprep.subr.bf16.mxu1 %v6807_v18  ;;  %s7604_s17 = smov 32   ;;  %s7605_s21 = smov 16   ;;  %vm3555_vm4 = vcmask 654848   ;;  %vm4119_vm5 = vcmask 786048   ;;  %vm4683_vm6 = vcmask 917248   ;;  %vm5247_vm7 = vcmask 1048448  }
  0x88   : > { %s5613_s15 = sshll.u32 %s7804_s16, 7  ;;  %s5725_s19 = sshll.u32 %s7670_s28, 11 }
  0x89   : > { %606 = vmatpush1.bf16.msra.mxu0 %v6784_v8  ;;  %s10473_s18 = scalar_lea.vmem [#allocation12], %s5613_s15  ;;  %p10824_p7 = scmp.ne.s32.totalorder %s10599_s13, 0 }
  0x8a   : > { %607 = vmatprep.subr.bf16.mxu0 %v6785_v10  ;;  %6019 = vmatpush3.bf16.msra.mxu1 %v6807_v18  ;;  %v418_v18 = vsub.s32 2, %v7838_v34  ;;  %s5486_s30 = sshll.u32 %s10473_s18, 4  ;;  %s10496_s30 = int_to_ptr.vmem [resolvable:$true] %s5486_s30 }
  0x8b   : > { %6020 = vmatprep.subr.bf16.mxu1 %v6808_v21  ;;  %s7513_s28 = scalar_lea.vmem %s10496_s30, 2048 }
  0x8c   : > { %p7514_p12 = scmp.ne.s32.totalorder %s10496_s30, %s7513_s28 }
  0x8d   : > { %608 = vmatpush1.bf16.msra.mxu0 %v6787_v11 }
  0x8e   : > { %609 = vmatprep.subr.bf16.mxu0 %v6788_v12  ;;  %6021 = vmatpush3.bf16.msra.mxu1 %v6808_v21  ;;  %p7515_p9 = pnand %p7514_p12, %p10824_p7 }
  0x8f   : > { %6022 = vmatprep.subr.bf16.mxu1 %v6809_v22 }
  0x90   : > { %p7516_p13 = pneg %p7515_p9 }
  0x91   : > { %610 = vmatpush1.bf16.msra.mxu0 %v6790_v13 }
  0x92   : > { %611 = vmatprep.subr.bf16.mxu0 %v6791_v14  ;;  %6023 = vmatpush3.bf16.msra.mxu1 %v6809_v22 }
  0x93   : > { %6024 = vmatprep.subr.bf16.mxu1 %v6810_v23 }
  0x95   : > { %612 = vmatpush1.bf16.msra.mxu0 %v6793_v17 }
  0x96   : > { %613 = vmatprep.subr.bf16.mxu0 %v6794_v19  ;;  %6025 = vmatpush3.bf16.msra.mxu1 %v6810_v23 }
  0x97   : > { %6026 = vmatprep.subr.bf16.mxu1 %v6811_v25 }
  0x99   : > { %614 = vmatpush1.bf16.msra.mxu0 %v6796_v20 }
  0x9a   : > { %6027 = vmatpush3.bf16.msra.mxu1 %v6811_v25  ;;  %v7908_v25 = vrot.slane %v7844_v36, %v418_v18 }
  0x9b   : > { %6028 = vmatprep.subr.bf16.mxu1 %v6812_v26 }
  0x9c   : > { %632 = vmatmul.mubr.bf16.vlgmr.msra.gmra.mxu0 %v6797_v9 }
  0x9d   : > { %641 = vmatprep.mubr.bf16.mxu0 %v7598_v0 }
  0x9e   : > { %6029 = vmatpush3.bf16.msra.mxu1 %v6812_v26 }
  0xa1   : > { %6031 = vmatmul.mubr.bf16.vlgmr.msra.gmra.mxu1 %v6798_v24 }
  0xa2   : > { %6034 = vmatprep.mubr.bf16.mxu1 %v6799_v27 }
  0xa4   : > { %642 = vmatmul.mubr.bf16.gmra.mxu0 %v6798_v24 }
  0xa5   : > { %651 = vmatprep.mubr.bf16.mxu0 %v7598_v0 }
  0xa9   : > { %6035 = vmatmul.mubr.bf16.gmra.mxu1 %v6800_v28 }
  0xaa   : > { %6038 = vmatprep.mubr.bf16.mxu1 %v6801_v29 }
  0xac   : > { %652 = vmatmul.mubr.bf16.gmra.mxu0 %v6799_v27 }
  0xad   : > { %661 = vmatprep.mubr.bf16.mxu0 %v7598_v0 }
  0xb1   : > { %6039 = vmatmul.mubr.bf16.gmra.mxu1 %v6802_v30 }
  0xb2   : > { %6042 = vmatprep.mubr.bf16.mxu1 %v6803_v31 }
  0xb4   : > { %662 = vmatmul.mubr.bf16.gmra.mxu0 %v6800_v28 }
  0xb5   : > { %671 = vmatprep.mubr.bf16.mxu0 %v7598_v0 }
  0xb9   : > { %6043 = vmatmul.mubr.bf16.gmra.mxu1 %v6804_v32 }
  0xbc   : > { %672 = vmatmul.mubr.bf16.gmra.mxu0 %v6801_v29 }
  0xbd   : > { %681 = vmatprep.mubr.bf16.mxu0 %v7598_v0 }
  0xc4   : > { %682 = vmatmul.mubr.bf16.gmra.mxu0 %v6802_v30 }
  0xc5   : > { %691 = vmatprep.mubr.bf16.mxu0 %v7598_v0 }
  0xcc   : > { %692 = vmatmul.mubr.bf16.gmra.mxu0 %v6803_v31 }
  0xcd   : > { %701 = vmatprep.mubr.bf16.mxu0 %v7598_v0 }
  0xd4   : > { %702 = vmatmul.mubr.bf16.gmra.mxu0 %v6804_v32 }
 0x15c   : > { %v633_v37 = vpop.f32.mrf.mxu0 }
 0x15d   : > { %v634_v41 = vadd.f32 %v633_v37, %v7847_v38 }
 0x15e   : > { %v7849_v39 = vpop.f32.mrf.mxu0 }
 0x160   : > { %v637_v40 = vpop.f32.mrf.mxu0 }
 0x161   : > { %v638_v42 = vadd.f32 %v637_v40, %v7847_v38  ;;  %v7870_v55 = vpop.f32.mrf.mxu1 }
 0x162   : > { %v7853_v43 = vpop.f32.mrf.mxu0 }
 0x163   : > { %v7855_v44 = vpack.c.bf16 %v638_v42, %v634_v41  ;;  %v7873_v58 = vpop.f32.mrf.mxu1  ;;  %v414_v41 = vsub.s32 1, %v7838_v34 }
 0x164   : > { %v643_v45 = vpop.f32.mrf.mxu0 }
 0x165   : > { %v644_v46 = vadd.f32 %v643_v45, %v7847_v38  ;;  %6062 = vmatprep.mubr.msk.bf16.mxu0 %vm865_vm0, %v7855_v44  ;;  %v7879_v61 = vpop.f32.mrf.mxu1 }
 0x166   : > { %v7860_v47 = vpop.f32.mrf.mxu0 }
 0x167   : > { %v7882_v0 = vpop.f32.mrf.mxu1 }
 0x168   : > { %v647_v48 = vpop.f32.mrf.mxu0 }
 0x169   : > { %v648_v49 = vadd.f32 %v647_v48, %v7847_v38  ;;  %v6036_v2 = vpop.f32.mrf.mxu1 }
 0x16a   : > { %v7863_v50 = vpop.f32.mrf.mxu0 }
 0x16b   : > { %v7865_v51 = vpack.c.bf16 %v648_v49, %v644_v46  ;;  %v7887_v5 = vpop.f32.mrf.mxu1 }
 0x16c   : > { %v653_v52 = vpop.f32.mrf.mxu0 }
 0x16d   : > { %v654_v53 = vadd.f32 %v653_v52, %v7847_v38  ;;  %v6037_v8 = vpop.f32.mrf.mxu1 }
 0x16e   : > { %v7868_v54 = vpop.f32.mrf.mxu0 }
 0x16f   : > { %v7894_v11 = vpop.f32.mrf.mxu1 }
 0x170   : > { %v657_v56 = vpop.f32.mrf.mxu0 }
 0x171   : > { %v658_v57 = vadd.f32 %v657_v56, %v7847_v38  ;;  %v6040_v13 = vpop.f32.mrf.mxu1 }
 0x172   : > { %v7875_v59 = vpop.f32.mrf.mxu0  ;;  %v787_v48 = vadd.f32 %v6040_v13, %v7908_v25 }
 0x173   : > { %v7877_v60 = vpack.c.bf16 %v658_v57, %v654_v53  ;;  %v778_v16 = vpop.f32.mrf.mxu1 }
 0x174   : > { %v663_v62 = vpop.f32.mrf.mxu0 }
 0x175   : > { %v664_v63 = vadd.f32 %v663_v62, %v7847_v38  ;;  %v6041_v20 = vpop.f32.mrf.mxu1  ;;  %v7929_v62 = vrot.slane %v7844_v36, %v414_v41 }
 0x176   : > { %v7884_v1 = vpop.f32.mrf.mxu0  ;;  %v790_v49 = vadd.f32 %v6041_v20, %v7908_v25  ;;  %v771_v20 = vadd.f32 %v6036_v2, %v7908_v25 }
 0x177   : > { %v781_v23 = vpop.f32.mrf.mxu1 }
 0x178   : > { %v667_v3 = vpop.f32.mrf.mxu0 }
 0x179   : > { %v668_v4 = vadd.f32 %v667_v3, %v7847_v38  ;;  %v6044_v26 = vpop.f32.mrf.mxu1  ;;  %v779_v3 = vadd.f32 %v778_v16, %v7908_v25 }
 0x17a   : > { %v7889_v6 = vpop.f32.mrf.mxu0  ;;  %v803_v31 = vadd.f32 %v6044_v26, %v7908_v25 }
 0x17b   : > { %v7891_v7 = vpack.c.bf16 %v668_v4, %v664_v63  ;;  %v794_v29 = vpop.f32.mrf.mxu1  ;;  %v7934_v4 = vpack.c.bf16 %v790_v49, %v787_v48  ;;  %v670_v48 = vadd.f32 %v7889_v6, %v7929_v62  ;;  %v650_v6 = vadd.f32 %v7863_v50, %v7929_v62 }
 0x17c   : > { %v673_v9 = vpop.f32.mrf.mxu0  ;;  %v795_v37 = vadd.f32 %v794_v29, %v7908_v25 }
 0x17d   : > { %v674_v10 = vadd.f32 %v673_v9, %v7847_v38  ;;  %v6045_v33 = vpop.f32.mrf.mxu1  ;;  %v782_v9 = vadd.f32 %v781_v23, %v7908_v25 }
 0x17e   : > { %v7896_v12 = vpop.f32.mrf.mxu0  ;;  %v806_v40 = vadd.f32 %v6045_v33, %v7908_v25 }
 0x17f   : > { %v797_v45 = vpop.f32.mrf.mxu1 }
 0x180   : > { %v677_v14 = vpop.f32.mrf.mxu0  ;;  %v7922_v52 = vpack.c.bf16 %v806_v40, %v803_v31  ;;  %v798_v53 = vadd.f32 %v797_v45, %v7908_v25  ;;  %v750_v40 = vadd.f32 %v7882_v0, %v7908_v25 }
 0x181   : > { %v678_v15 = vadd.f32 %v677_v14, %v7847_v38 }
 0x182   : > { %v7899_v17 = vpop.f32.mrf.mxu0  ;;  %v7925_v57 = vpack.c.bf16 %v798_v53, %v795_v37  ;;  %6078 = vmatprep.subr.bf16.mxu1 %v7922_v52  ;;  %v660_v53 = vadd.f32 %v7875_v59, %v7929_v62  ;;  %v640_v59 = vadd.f32 %v7853_v43, %v7929_v62  ;;  %v851_v43 = vld [vmem:[#allocation9 + $0x10] sm:$0xff] }
 0x183   : > { %v7902_v19 = vpack.c.bf16 %v678_v15, %v674_v10  ;;  %6079 = vmatpush3.bf16.msra.mxu1 %v7922_v52  ;;  %v680_v0 = vadd.f32 %v7899_v17, %v7929_v62  ;;  %v666_v17 = vadd.f32 %v7884_v1, %v7929_v62 }
 0x184   : > { %v683_v21 = vpop.f32.mrf.mxu0  ;;  %6080 = vmatprep.subr.bf16.mxu1 %v7925_v57 }
 0x185   : > { %v684_v22 = vadd.f32 %v683_v21, %v7847_v38  ;;  %v774_v21 = vadd.f32 %v6037_v8, %v7908_v25  ;;  %v766_v8 = vadd.f32 %v7894_v11, %v7908_v25  ;;  %v8023_v49 = vpack.c.bf16 %v670_v48, %v666_v17  ;;  %v8102_v48 = vld [vmem:[#allocation11 + $0x30] sm:$0xff] }
 0x186   : > { %v7905_v24 = vpop.f32.mrf.mxu0  ;;  %10616 = vst [vmem:[#allocation24_spill] sm:$0xff] %v8102_v48 }
 0x187   : > { %6081 = vmatpush3.bf16.msra.mxu1 %v7925_v57  ;;  %v7957_v2 = vpack.c.bf16 %v774_v21, %v771_v20  ;;  %10614 = vst [vmem:[#allocation22_spill] sm:$0xff] %v8023_v49  ;;  %v900_v1 = vsel %vm865_vm0, %v8023_v49, 0  ;;  %v852_v20 = vld [vmem:[#allocation9 + $0x18] sm:$0xff]  ;;  %v8081_v21 = vld [vmem:[#allocation11] sm:$0xff] }
 0x188   : > { %v687_v27 = vpop.f32.mrf.mxu0  ;;  %6082 = vmatprep.subr.bf16.mxu1 %v7934_v4 }
 0x189   : > { %v688_v28 = vadd.f32 %v687_v27, %v7847_v38  ;;  %10609 = vst [vmem:[#allocation17_spill] sm:$0xff] %v7957_v2 }
 0x18a   : > { %v7911_v30 = vpop.f32.mrf.mxu0 }
 0x18b   : > { %v7914_v32 = vpack.c.bf16 %v688_v28, %v684_v22  ;;  %v7948_v22 = vpack.c.bf16 %v782_v9, %v779_v3  ;;  %6083 = vmatpush3.bf16.msra.mxu1 %v7934_v4  ;;  %v763_v28 = vadd.f32 %v7887_v5, %v7908_v25  ;;  %v755_v5 = vadd.f32 %v7870_v55, %v7908_v25 }
 0x18c   : > { %v693_v35 = vpop.f32.mrf.mxu0  ;;  %v747_v55 = vadd.f32 %v7873_v58, %v7908_v25  ;;  %v690_v41 = vadd.f32 %v7911_v30, %v7929_v62  ;;  %v636_v9 = vadd.f32 %v7849_v39, %v7929_v62 }
 0x18d   : > { %v694_v42 = vadd.f32 %v693_v35, %v7847_v38  ;;  %6084 = vmatprep.subr.bf16.mxu1 %v7948_v22  ;;  %v758_v35 = vadd.f32 %v7879_v61, %v7908_v25  ;;  %v7973_v37 = vpack.c.bf16 %v766_v8, %v763_v28  ;;  %v850_v28 = vld [vmem:[#allocation9 + $0x8] sm:$0xff]  ;;  %v8086_v8 = vld [vmem:[#allocation11 + $0x18] sm:$0xff] }
 0x18e   : > { %v695_v46 = vpop.f32.mrf.mxu0  ;;  %v7997_v45 = vpack.c.bf16 %v750_v40, %v747_v55 }
 0x18f   : > { %v696_v10 = vadd.f32 %v695_v46, %v7929_v62  ;;  %6085 = vmatpush3.bf16.msra.mxu1 %v7948_v22  ;;  %v7987_v61 = vpack.c.bf16 %v758_v35, %v755_v5  ;;  %v855_v35 = vld [vmem:[#allocation9 + $0x30] sm:$0xff] }
 0x190   : > { %v697_v56 = vpop.f32.mrf.mxu0  ;;  %6086 = vmatprep.subr.bf16.mxu1 %v7957_v2  ;;  %10612 = vst [vmem:[#allocation20_spill] sm:$0xff] %v7997_v45 }
 0x191   : > { %v698_v34 = vadd.f32 %v697_v56, %v7847_v38  ;;  %10611 = vst [vmem:[#allocation19_spill] sm:$0xff] %v7987_v61  ;;  %v656_v56 = vadd.f32 %v7868_v54, %v7929_v62 }
 0x192   : > { %v699_v63 = vpop.f32.mrf.mxu0 }
 0x193   : > { %v7939_v13 = vpack.c.bf16 %v698_v34, %v694_v42  ;;  %v700_v36 = vadd.f32 %v699_v63, %v7929_v62  ;;  %6087 = vmatpush3.bf16.msra.mxu1 %v7957_v2  ;;  %v686_v42 = vadd.f32 %v7905_v24, %v7929_v62  ;;  %v676_v24 = vadd.f32 %v7896_v12, %v7929_v62 }
 0x194   : > { %v703_v14 = vpop.f32.mrf.mxu0  ;;  %6088 = vmatprep.subr.bf16.mxu1 %v7973_v37  ;;  %v8033_v34 = vpack.c.bf16 %v660_v53, %v656_v56  ;;  %v646_v63 = vadd.f32 %v7860_v47, %v7929_v62  ;;  %v8105_v53 = vld [vmem:[#allocation11 + $0x38] sm:$0xff] }
 0x195   : > { %v7942_v15 = vpack.c.bf16 %v700_v36, %v696_v10  ;;  %v704_v18 = vadd.f32 %v703_v14, %v7847_v38  ;;  %v8000_v58 = vpack.c.bf16 %v690_v41, %v686_v42  ;;  %v8013_v25 = vpack.c.bf16 %v680_v0, %v676_v24  ;;  %v849_v36 = vld [vmem:[#allocation9] sm:$0xff]  ;;  %v8079_v14 = vld [vmem:[#allocation11 + $0x10] sm:$0xff] }
 0x196   : > { %v705_v16 = vpop.f32.mrf.mxu0  ;;  %10615 = vst [vmem:[#allocation23_spill] sm:$0xff] %v8033_v34  ;;  %v8043_v3 = vpack.c.bf16 %v650_v6, %v646_v63  ;;  %v897_v54 = vsel %vm865_vm0, %v8033_v34, 0  ;;  %v8053_v10 = vpack.c.bf16 %v640_v59, %v636_v9  ;;  %v853_v24 = vld [vmem:[#allocation9 + $0x20] sm:$0xff] }
 0x197   : > { %1353 = vrot.lane.b32.xlu1 %v7942_v15, %s7599_s20  ;;  %v706_v29 = vadd.f32 %v705_v16, %v7929_v62  ;;  %6089 = vmatpush3.bf16.msra.mxu1 %v7973_v37  ;;  %10613 = vst [vmem:[#allocation21_spill] sm:$0xff] %v8000_v58  ;;  %v909_v46 = vsel %vm865_vm0, %v7942_v15, 0  ;;  %v906_v30 = vsel %vm865_vm0, %v8000_v58, 0  ;;  %v903_v12 = vsel %vm865_vm0, %v8013_v25, 0  ;;  %v8110_v59 = vld [vmem:[#allocation11 + $0x20] sm:$0xff] }
 0x198   : > { %v707_v23 = vpop.f32.mrf.mxu0  ;;  %6090 = vmatprep.subr.bf16.mxu1 %v7987_v61  ;;  %v894_v47 = vsel %vm865_vm0, %v8043_v3, 0  ;;  %v891_v50 = vsel %vm865_vm0, %v8053_v10, 0  ;;  %10617 = vst [vmem:[#allocation25_spill] sm:$0xff] %v8110_v59 }
 0x199   : > { %v708_v26 = vadd.f32 %v707_v23, %v7847_v38 }
 0x19a   : > { %v709_v27 = vpop.f32.mrf.mxu0 }
 0x19b   : > { %v7963_v31 = vpack.c.bf16 %v708_v26, %v704_v18  ;;  %v710_v33 = vadd.f32 %v709_v27, %v7929_v62  ;;  %6091 = vmatpush3.bf16.msra.mxu1 %v7987_v61 }
 0x19c   : > { %6092 = vmatprep.subr.bf16.mxu1 %v7997_v45 }
 0x19d   : > { %v7966_v38 = vpack.c.bf16 %v710_v33, %v706_v29 }
 0x19f   : > { %10610 = vst [vmem:[#allocation18_spill] sm:$0xff] %v7966_v38  ;;  %1355 = vrot.lane.b32.xlu0 %v7966_v38, %s7599_s20  ;;  %6606 = vmatprep.subr.msk.bf16.mxu0 %vm865_vm0, %v7966_v38  ;;  %v912_v11 = vsel %vm865_vm0, %v7966_v38, 0 }
 0x1a0   : > { %6047 = vmatpush3.bf16.xpose.msra.mxu0 %v912_v11  ;;  %6093 = vmatpush3.bf16.msra.mxu1 %v7997_v45  ;;  %v8092_v11 = vld [vmem:[#allocation11 + $0x8] sm:$0xff] }
 0x1a1   : > { %6607 = vmatprep.subr.msk.bf16.mxu0 %vm865_vm0, %v7942_v15 }
 0x1a8   : > { %6049 = vmatpush3.bf16.xpose.msra.mxu0 %v909_v46 }
 0x1a9   : > { %6608 = vmatprep.subr.msk.bf16.mxu0 %vm865_vm0, %v8000_v58 }
 0x1b0   : > { %6051 = vmatpush3.bf16.xpose.msra.mxu0 %v906_v30  ;;  %v856_v30 = vld [vmem:[#allocation9 + $0x38] sm:$0xff] }
 0x1b1   : > { %6609 = vmatprep.subr.msk.bf16.mxu0 %vm865_vm0, %v8013_v25 }
 0x1b8   : > { %6053 = vmatpush3.bf16.xpose.msra.mxu0 %v903_v12  ;;  %v854_v12 = vld [vmem:[#allocation9 + $0x28] sm:$0xff] }
 0x1b9   : > { %6610 = vmatprep.subr.msk.bf16.mxu0 %vm865_vm0, %v8023_v49 }
 0x1c0   : > { %6055 = vmatpush3.bf16.xpose.msra.mxu0 %v900_v1 }
 0x1c1   : > { %6611 = vmatprep.subr.msk.bf16.mxu0 %vm865_vm0, %v8033_v34 }
 0x1c8   : > { %6057 = vmatpush3.bf16.xpose.msra.mxu0 %v897_v54  ;;  %v859_v54 = vld [vmem:[#allocation9 + $0x50] sm:$0xff] }
 0x1c9   : > { %6612 = vmatprep.subr.msk.bf16.mxu0 %vm865_vm0, %v8043_v3 }
 0x1d0   : > { %6059 = vmatpush3.bf16.xpose.msra.mxu0 %v894_v47 }
 0x1d1   : > { %6613 = vmatprep.subr.msk.bf16.mxu0 %vm865_vm0, %v8053_v10 }
 0x1d8   : > { %6061 = vmatpush3.bf16.xpose.msra.mxu0 %v891_v50 }
 0x1df   : > { %6063 = vmatmul.mubr.msk.bf16.vlgmr.msra.gmra.mxu0 %vm865_vm0, %v7865_v51 }
 0x1e0   : > { %6066 = vmatprep.mubr.msk.bf16.mxu0 %vm865_vm0, %v7877_v60 }
 0x1e7   : > { %6067 = vmatmul.mubr.msk.bf16.gmra.mxu0 %vm865_vm0, %v7891_v7 }
 0x1e8   : > { %6070 = vmatprep.mubr.msk.bf16.mxu0 %vm865_vm0, %v7902_v19 }
 0x1ef   : > { %6071 = vmatmul.mubr.msk.bf16.gmra.mxu0 %vm865_vm0, %v7914_v32 }
 0x1f0   : > { %6074 = vmatprep.mubr.msk.bf16.mxu0 %vm865_vm0, %v7939_v13 }
 0x1f7   : > { %6075 = vmatmul.mubr.msk.bf16.gmra.mxu0 %vm865_vm0, %v7963_v31 }
 0x211   : > { %v8075_v39 = vpop.permute.xlu0 %1355 }
 0x212   : > { %6614 = vmatprep.subr.msk.bf16.mxu1 %vm865_vm0, %v8075_v39 }
 0x29f   : > { %v6064_v62 = vpop.f32.mrf.mxu0 }
 0x2a0   : > { %v957_v18 = vadd.f32 %v6064_v62, %v851_v43  ;;  %v8116_v43 = vld [vmem:[#allocation11 + $0x28] sm:$0xff] }
 0x2a1   : > { %v948_v16 = vpop.f32.mrf.mxu0 }
 0x2a2   : > { %v949_v23 = vadd.f32 %v948_v16, %v849_v36  ;;  %v8084_v26 = vadd.f32 %v957_v18, %v8079_v14  ;;  %v857_v16 = vld [vmem:[#allocation9 + $0x40] sm:$0xff] }
 0x2a3   : > { %v6065_v27 = vpop.f32.mrf.mxu0 }
 0x2a4   : > { %v960_v29 = vadd.f32 %v6065_v27, %v852_v20  ;;  %1031 = vmax.xlane.f32.xlu1 %v8084_v26  ;;  %v8090_v33 = vadd.f32 %v949_v23, %v8081_v21  ;;  %v860_v20 = vld [vmem:[#allocation9 + $0x58] sm:$0xff]  ;;  %v8122_v23 = vld [vmem:[#allocation11 + $0x50] sm:$0xff] }
 0x2a5   : > { %v951_v5 = vpop.f32.mrf.mxu0  ;;  %10618 = vst [vmem:[#allocation26_spill] sm:$0xff] %v8122_v23 }
 0x2a6   : > { %v952_v55 = vadd.f32 %v951_v5, %v850_v28  ;;  %1027 = vmax.xlane.f32.xlu0 %v8090_v33  ;;  %v8096_v40 = vadd.f32 %v960_v29, %v8086_v8  ;;  %v858_v29 = vld [vmem:[#allocation9 + $0x48] sm:$0xff]  ;;  %v8128_v5 = vld [vmem:[#allocation11 + $0x58] sm:$0xff] }
 0x2a7   : > { %v6068_v41 = vpop.f32.mrf.mxu0 }
 0x2a8   : > { %v973_v42 = vadd.f32 %v6068_v41, %v855_v35  ;;  %1033 = vmax.xlane.f32.xlu1 %v8096_v40  ;;  %v8100_v46 = vadd.f32 %v952_v55, %v8092_v11 }
 0x2a9   : > { %v964_v0 = vpop.f32.mrf.mxu0 }
 0x2aa   : > { %1029 = vmax.xlane.f32.xlu0 %v8100_v46  ;;  %v965_v56 = vadd.f32 %v964_v0, %v853_v24  ;;  %v8108_v6 = vadd.f32 %v973_v42, %v8102_v48  ;;  %v863_v0 = vld [vmem:[#allocation9 + $0x70] sm:$0xff]  ;;  %v8134_v24 = vld [vmem:[#allocation11 + $0x40] sm:$0xff] }
 0x2ab   : > { %v6069_v17 = vpop.f32.mrf.mxu0  ;;  %10619 = vst [vmem:[#allocation27_spill] sm:$0xff] %v8134_v24 }
 0x2ac   : > { %v976_v1 = vadd.f32 %v6069_v17, %v856_v30  ;;  %v8120_v36 = vadd.f32 %v965_v56, %v8110_v59  ;;  %v8140_v56 = vld [vmem:[#allocation11 + $0x48] sm:$0xff] }
 0x2ad   : > { %v967_v63 = vpop.f32.mrf.mxu0 }
 0x2ae   : > { %v968_v9 = vadd.f32 %v967_v63, %v854_v12  ;;  %1039 = vmax.xlane.f32.xlu0 %v8108_v6  ;;  %v8114_v47 = vadd.f32 %v976_v1, %v8105_v53 }
 0x2af   : > { %v6072_v50 = vpop.f32.mrf.mxu0 }
 0x2b0   : > { %v989_v62 = vadd.f32 %v6072_v50, %v859_v54  ;;  %1041 = vmax.xlane.f32.xlu1 %v8114_v47  ;;  %v8126_v27 = vadd.f32 %v968_v9, %v8116_v43  ;;  %v861_v9 = vld [vmem:[#allocation9 + $0x60] sm:$0xff]  ;;  %v8146_v50 = vld [vmem:[#allocation11 + $0x70] sm:$0xff] }
 0x2b1   : > { %v980_v18 = vpop.f32.mrf.mxu0  ;;  %10620 = vst [vmem:[#allocation28_spill] sm:$0xff] %v8146_v50 }
 0x2b2   : > { %1035 = vmax.xlane.f32.xlu0 %v8120_v36  ;;  %v981_v35 = vadd.f32 %v980_v18, %v857_v16  ;;  %v8132_v41 = vadd.f32 %v989_v62, %v8122_v23 }
 0x2b3   : > { %v6073_v28 = vpop.f32.mrf.mxu0 }
 0x2b4   : > { %v992_v55 = vadd.f32 %v6073_v28, %v860_v20  ;;  %1037 = vmax.xlane.f32.xlu1 %v8126_v27  ;;  %v8144_v63 = vadd.f32 %v981_v35, %v8134_v24  ;;  %v8156_v20 = vld [vmem:[#allocation11 + $0x60] sm:$0xff] }
 0x2b5   : > { %v983_v42 = vpop.f32.mrf.mxu0  ;;  %10621 = vst [vmem:[#allocation29_spill] sm:$0xff] %v8156_v20 }
 0x2b6   : > { %v984_v30 = vadd.f32 %v983_v42, %v858_v29  ;;  %1047 = vmax.xlane.f32.xlu0 %v8132_v41  ;;  %v8138_v17 = vadd.f32 %v992_v55, %v8128_v5  ;;  %v864_v29 = vld [vmem:[#allocation9 + $0x78] sm:$0xff] }
 0x2b7   : > { %v6076_v12 = vpop.f32.mrf.mxu0 }
 0x2b8   : > { %v1005_v1 = vadd.f32 %v6076_v12, %v863_v0  ;;  %1049 = vmax.xlane.f32.xlu1 %v8138_v17  ;;  %v8150_v62 = vadd.f32 %v984_v30, %v8140_v56  ;;  %v862_v0 = vld [vmem:[#allocation9 + $0x68] sm:$0xff]  ;;  %v8167_v30 = vld [vmem:[#allocation11 + $0x78] sm:$0xff] }
 0x2b9   : > { %v996_v54 = vpop.f32.mrf.mxu0  ;;  %10622 = vst [vmem:[#allocation30_spill] sm:$0xff] %v8167_v30 }
 0x2ba   : > { %1043 = vmax.xlane.f32.xlu0 %v8144_v63  ;;  %v997_v18 = vadd.f32 %v996_v54, %v861_v9  ;;  %v8154_v16 = vadd.f32 %v1005_v1, %v8146_v50  ;;  %v8172_v54 = vld [vmem:[#allocation11 + $0x68] sm:$0xff] }
 0x2bb   : > { %v6077_v35 = vpop.f32.mrf.mxu0  ;;  %10623 = vst [vmem:[#allocation31_spill] sm:$0xff] %v8172_v54 }
 0x2bc   : > { %1045 = vmax.xlane.f32.xlu1 %v8150_v62  ;;  %v8160_v28 = vadd.f32 %v997_v18, %v8156_v20  ;;  %v1008_v55 = vadd.f32 %v6077_v35, %v864_v29  ;;  %v8179_v18 = vpop.permute.xlu1 %1353 }
 0x2bd   : > { %v999_v42 = vpop.f32.mrf.mxu0 }
 0x2be   : > { %1055 = vmax.xlane.f32.xlu0 %v8154_v16  ;;  %v1000_v12 = vadd.f32 %v999_v42, %v862_v0  ;;  %v8170_v1 = vadd.f32 %v1008_v55, %v8167_v30 }
 0x2c0   : > { %v8176_v9 = vadd.f32 %v1000_v12, %v8172_v54 }
 0x2c2   : > { %1051 = vmax.xlane.f32.xlu0 %v8160_v28 }
 0x2cd   : > { %1349 = vrot.lane.b32.xlu1 %v8013_v25, %s7599_s20 }
 0x2d8   : > { %1351 = vrot.lane.b32.xlu0 %v8000_v58, %s7599_s20 }
 0x2f1   : > { %1057 = vmax.xlane.f32.xlu1 %v8170_v1 }
 0x2f5   : > { %1053 = vmax.xlane.f32.xlu1 %v8176_v9 }
 0x32d   : > { %v1032_v29 = vpop.xlane.xlu1 %1031 }
 0x32e   : > { %v1061_v35 = vsub.f32 %v8084_v26, %v1032_v29 }
 0x32f   : > { %v1028_v58 = vpop.xlane.xlu0 %1027 }
 0x330   : > { %v1079_v38 = vmul.f32 1.442695, %v1061_v35  ;;  %v1059_v42 = vsub.f32 %v8090_v33, %v1028_v58 }
 0x331   : > { %v1034_v55 = vpop.xlane.xlu1 %1033 }
 0x332   : > { %6821 = vpow2.f32 %v1079_v38  ;;  %v1075_v0 = vmul.f32 1.442695, %v1059_v42  ;;  %v1062_v20 = vsub.f32 %v8096_v40, %v1034_v55 }
 0x333   : > { %v1030_v30 = vpop.xlane.xlu0 %1029 }
 0x334   : > { %v1081_v50 = vmul.f32 1.442695, %v1062_v20  ;;  %v1060_v12 = vsub.f32 %v8100_v46, %v1030_v30  ;;  %6823 = vpow2.f32 %v1075_v0 }
 0x336   : > { %6825 = vpow2.f32 %v1081_v50  ;;  %v1077_v54 = vmul.f32 1.442695, %v1060_v12 }
 0x337   : > { %v1040_v33 = vpop.xlane.xlu0 %1039 }
 0x338   : > { %6827 = vpow2.f32 %v1077_v54  ;;  %v1065_v30 = vsub.f32 %v8108_v6, %v1040_v33 }
 0x339   : > { %v1042_v50 = vpop.xlane.xlu1 %1041 }
 0x33a   : > { %v1087_v42 = vmul.f32 1.442695, %v1065_v30  ;;  %v1066_v0 = vsub.f32 %v8114_v47, %v1042_v50 }
 0x33b   : > { %v1036_v40 = vpop.xlane.xlu0 %1035 }
 0x33c   : > { %v1063_v29 = vsub.f32 %v8120_v36, %v1036_v40  ;;  %6829 = vpow2.f32 %v1087_v42  ;;  %v1089_v48 = vmul.f32 1.442695, %v1066_v0 }
 0x33d   : > { %v1038_v54 = vpop.xlane.xlu1 %1037 }
 0x33e   : > { %v1064_v55 = vsub.f32 %v8126_v27, %v1038_v54  ;;  %v1083_v12 = vmul.f32 1.442695, %v1063_v29 }
 0x33f   : > { %v8185_v24 = vpop.eup %6821  ;;  %v1048_v46 = vpop.xlane.xlu0 %1047 }
 0x340   : > { %1111 = vadd.xlane.f32.xlu0 %v8185_v24  ;;  %6831 = vpow2.f32 %v1083_v12  ;;  %v1069_v6 = vsub.f32 %v8132_v41, %v1048_v46 }
 0x341   : > { %v8188_v26 = vpop.eup %6823  ;;  %v1050_v23 = vpop.xlane.xlu1 %1049 }
 0x342   : > { %v1095_v27 = vmul.f32 1.442695, %v1069_v6  ;;  %v1070_v30 = vsub.f32 %v8138_v17, %v1050_v23 }
 0x343   : > { %v8190_v58 = vpop.eup %6825  ;;  %v1044_v20 = vpop.xlane.xlu0 %1043 }
 0x344   : > { %1113 = vadd.xlane.f32.xlu1 %v8190_v58  ;;  %1107 = vadd.xlane.f32.xlu0 %v8188_v26  ;;  %v1067_v47 = vsub.f32 %v8144_v63, %v1044_v20 }
 0x345   : > { %v8194_v38 = vpop.eup %6827  ;;  %v1046_v40 = vpop.xlane.xlu1 %1045 }
 0x346   : > { %v1091_v54 = vmul.f32 1.442695, %v1067_v47 }
 0x347   : > { %v1056_v35 = vpop.xlane.xlu0 %1055 }
 0x348   : > { %1109 = vadd.xlane.f32.xlu1 %v8194_v38  ;;  %v1073_v59 = vsub.f32 %v8154_v16, %v1056_v35 }
 0x349   : > { %v8210_v16 = vpop.permute.xlu1 %1349  ;;  %v8212_v29 = vpop.eup %6829 }
 0x34a   : > { %v1103_v33 = vmul.f32 1.442695, %v1073_v59 }
 0x34d   : > { %v8215_v59 = vpop.eup %6831 }
 0x359   : > { %1345 = vrot.lane.b32.xlu1 %v8033_v34, %s7599_s20  ;;  %v1085_v34 = vmul.f32 1.442695, %v1064_v55 }
 0x35a   : > { %1347 = vrot.lane.b32.xlu0 %v8023_v49, %s7599_s20  ;;  %v1052_v49 = vpop.xlane.xlu0 %1051 }
 0x35b   : > { %6833 = vpow2.f32 %v1085_v34  ;;  %v1071_v36 = vsub.f32 %v8160_v28, %v1052_v49  ;;  %v1097_v34 = vmul.f32 1.442695, %v1070_v30 }
 0x35c   : > { %6835 = vpow2.f32 %v1089_v48  ;;  %v1068_v48 = vsub.f32 %v8150_v62, %v1046_v40 }
 0x35d   : > { %6837 = vpow2.f32 %v1103_v33  ;;  %v1099_v50 = vmul.f32 1.442695, %v1071_v36 }
 0x35e   : > { %6839 = vpow2.f32 %v1095_v27  ;;  %v1093_v46 = vmul.f32 1.442695, %v1068_v48  ;;  %v1352_v33 = vpop.permute.xlu0 %1351 }
 0x35f   : > { %6841 = vpow2.f32 %v1099_v50 }
 0x360   : > { %6843 = vpow2.f32 %v1091_v54 }
 0x361   : > { %6845 = vpow2.f32 %v1097_v34 }
 0x368   : > { %v8219_v63 = vpop.eup %6833 }
 0x369   : > { %v8223_v28 = vpop.eup %6835 }
 0x36a   : > { %v8226_v35 = vpop.eup %6837 }
 0x36b   : > { %v8230_v62 = vpop.eup %6839 }
 0x36c   : > { %v8232_v42 = vpop.eup %6841 }
 0x36d   : > { %v8236_v55 = vpop.eup %6843 }
 0x379   : > { %1119 = vadd.xlane.f32.xlu0 %v8212_v29 }
 0x37a   : > { %v1058_v49 = vpop.xlane.xlu1 %1057 }
 0x37b   : > { %v1074_v41 = vsub.f32 %v8170_v1, %v1058_v49 }
 0x37d   : > { %v1105_v23 = vmul.f32 1.442695, %v1074_v41  ;;  %1117 = vadd.xlane.f32.xlu0 %v8219_v63  ;;  %1115 = vadd.xlane.f32.xlu1 %v8215_v59 }
 0x37e   : > { %v1054_v17 = vpop.xlane.xlu1 %1053 }
 0x37f   : > { %6847 = vpow2.f32 %v1105_v23  ;;  %v1072_v20 = vsub.f32 %v8176_v9, %v1054_v17  ;;  %v8239_v9 = vpop.eup %6845 }
 0x380   : > { %6849 = vpow2.f32 %v1093_v46 }
 0x381   : > { %1121 = vadd.xlane.f32.xlu1 %v8223_v28  ;;  %1135 = vadd.xlane.f32.xlu0 %v8226_v35  ;;  %v1101_v1 = vmul.f32 1.442695, %v1072_v20  ;;  %v1403_v20 = vsel %vm865_vm0, %v8075_v39, 0 }
 0x383   : > { %6851 = vpow2.f32 %v1101_v1 }
 0x385   : > { %1127 = vadd.xlane.f32.xlu1 %v8230_v62  ;;  %1131 = vadd.xlane.f32.xlu0 %v8232_v42 }
 0x389   : > { %1123 = vadd.xlane.f32.xlu1 %v8236_v55 }
 0x38c   : > { %v8241_v0 = vpop.eup %6847 }
 0x38d   : > { %1129 = vadd.xlane.f32.xlu1 %v8239_v9  ;;  %1137 = vadd.xlane.f32.xlu0 %v8241_v0  ;;  %v8245_v12 = vpop.eup %6849 }
 0x390   : > { %v8248_v6 = vpop.eup %6851 }
 0x391   : > { %1125 = vadd.xlane.f32.xlu1 %v8245_v12 }
 0x395   : > { %1133 = vadd.xlane.f32.xlu1 %v8248_v6 }
 0x3a3   : > { %1343 = vrot.lane.b32.xlu0 %v8043_v3, %s7599_s20 }
 0x3a6   : > { %1341 = vrot.lane.b32.xlu1 %v8053_v10, %s7599_s20 }
 0x3a7   : > { %1317 = vrot.lane.b32.xlu0 %v7855_v44, %s7599_s20 }
 0x3aa   : > { %1319 = vrot.lane.b32.xlu1 %v7865_v51, %s7599_s20 }
 0x3ab   : > { %1321 = vrot.lane.b32.xlu0 %v7877_v60, %s7599_s20 }
 0x3ae   : > { %1323 = vrot.lane.b32.xlu1 %v7891_v7, %s7599_s20 }
 0x3af   : > { %1325 = vrot.lane.b32.xlu0 %v7902_v19, %s7599_s20 }
 0x3b2   : > { %1327 = vrot.lane.b32.xlu1 %v7914_v32, %s7599_s20 }
 0x3b3   : > { %1329 = vrot.lane.b32.xlu0 %v7939_v13, %s7599_s20 }
 0x3b6   : > { %1331 = vrot.lane.b32.xlu1 %v7963_v31, %s7599_s20 }
 0x3b7   : > { %1692 = vrot.lane.b32.xlu0 %v7922_v52, %s7599_s20 }
 0x3ba   : > { %1690 = vrot.lane.b32.xlu1 %v7925_v57, %s7599_s20 }
 0x3bb   : > { %1688 = vrot.lane.b32.xlu0 %v7934_v4, %s7599_s20 }
 0x3be   : > { %1682 = vrot.lane.b32.xlu1 %v7973_v37, %s7599_s20 }
 0x3bf   : > { %1686 = vrot.lane.b32.xlu0 %v7948_v22, %s7599_s20 }
 0x3c2   : > { %1678 = vrot.lane.b32.xlu1 %v7997_v45, %s7599_s20 }
 0x3c3   : > { %1684 = vrot.lane.b32.xlu0 %v7957_v2, %s7599_s20 }
 0x3c9   : > { %v1112_v36 = vpop.xlane.xlu0 %1111 }
 0x3cd   : > { %v1114_v40 = vpop.xlane.xlu1 %1113  ;;  %v1108_v27 = vpop.xlane.xlu0 %1107 }
 0x3ce   : > { %6853 = vrcp.f32 %v1114_v40 }
 0x3cf   : > { %6855 = vrcp.f32 %v1108_v27 }
 0x3d0   : > { %6857 = vrcp.f32 %v1112_v36 }
 0x3d1   : > { %v1110_v47 = vpop.xlane.xlu1 %1109  ;;  %v1348_v39 = vpop.permute.xlu0 %1347 }
 0x3d2   : > { %6859 = vrcp.f32 %v1110_v47 }
 0x3db   : > { %v6854_v50 = vpop.eup %6853 }
 0x3dc   : > { %v6856_v30 = vpop.eup %6855  ;;  %v1158_v49 = vmul.f32 %v6854_v50, %v8190_v58  ;;  %v1400_v58 = vsel %vm865_vm0, %v8179_v18, 0 }
 0x3dd   : > { %v6858_v54 = vpop.eup %6857  ;;  %v1155_v48 = vmul.f32 %v6856_v30, %v8188_v26  ;;  %v1397_v26 = vsel %vm865_vm0, %v1352_v33, 0 }
 0x3de   : > { %v1157_v23 = vmul.f32 %v6858_v54, %v8185_v24  ;;  %v1394_v24 = vsel %vm865_vm0, %v8210_v16, 0 }
 0x3df   : > { %v6860_v34 = vpop.eup %6859 }
 0x3e0   : > { %v1156_v41 = vmul.f32 %v6860_v34, %v8194_v38  ;;  %v1172_v46 = vpack.c.bf16 %v1158_v49, %v1157_v23  ;;  %v1346_v38 = vpop.permute.xlu1 %1345 }
 0x3e2   : > { %v1171_v17 = vpack.c.bf16 %v1156_v41, %v1155_v48 }
 0x3e4   : > { %6094 = vmatprep.mubr.bf16.mxu1 %v1171_v17 }
 0x3e5   : > { %6095 = vmatmul.mubr.bf16.vlgmr.msra.gmra.mxu1 %v1172_v46 }
 0x3e6   : > { %6111 = vmatpush3.bf16.xpose.msra.mxu1 %v1403_v20 }
 0x3e7   : > { %6615 = vmatprep.subr.msk.bf16.mxu1 %vm865_vm0, %v8179_v18  ;;  %v1391_v18 = vsel %vm865_vm0, %v1348_v39, 0 }
 0x3ee   : > { %6113 = vmatpush3.bf16.xpose.msra.mxu1 %v1400_v58 }
 0x3ef   : > { %6616 = vmatprep.subr.msk.bf16.mxu1 %vm865_vm0, %v1352_v33 }
 0x3f6   : > { %6115 = vmatpush3.bf16.xpose.msra.mxu1 %v1397_v26 }
 0x3f7   : > { %6617 = vmatprep.subr.msk.bf16.mxu1 %vm865_vm0, %v8210_v16  ;;  %v1388_v16 = vsel %vm865_vm0, %v1346_v38, 0 }
 0x3fe   : > { %6117 = vmatpush3.bf16.xpose.msra.mxu1 %v1394_v24 }
 0x3ff   : > { %6618 = vmatprep.subr.msk.bf16.mxu1 %vm865_vm0, %v1348_v39 }
 0x402   : > { %v1120_v1 = vpop.xlane.xlu0 %1119 }
 0x406   : > { %6119 = vmatpush3.bf16.xpose.msra.mxu1 %v1391_v18  ;;  %v1116_v36 = vpop.xlane.xlu1 %1115  ;;  %v1118_v40 = vpop.xlane.xlu0 %1117 }
 0x407   : > { %6861 = vrcp.f32 %v1116_v36  ;;  %6619 = vmatprep.subr.msk.bf16.mxu1 %vm865_vm0, %v1346_v38 }
 0x408   : > { %6863 = vrcp.f32 %v1118_v40 }
 0x409   : > { %6865 = vrcp.f32 %v1120_v1 }
 0x40a   : > { %v1122_v33 = vpop.xlane.xlu1 %1121  ;;  %v1136_v27 = vpop.xlane.xlu0 %1135 }
 0x40b   : > { %6867 = vrcp.f32 %v1122_v33 }
 0x40e   : > { %6121 = vmatpush3.bf16.xpose.msra.mxu1 %v1388_v16  ;;  %v1128_v47 = vpop.xlane.xlu1 %1127  ;;  %v1132_v50 = vpop.xlane.xlu0 %1131 }
 0x412   : > { %v1124_v30 = vpop.xlane.xlu1 %1123 }
 0x414   : > { %v6862_v54 = vpop.eup %6861 }
 0x415   : > { %v6864_v34 = vpop.eup %6863  ;;  %v1159_v49 = vmul.f32 %v6862_v54, %v8215_v59 }
 0x416   : > { %v6866_v48 = vpop.eup %6865  ;;  %v1130_v41 = vpop.xlane.xlu1 %1129  ;;  %v1160_v17 = vmul.f32 %v6864_v34, %v8219_v63 }
 0x417   : > { %v1138_v23 = vpop.xlane.xlu0 %1137  ;;  %6869 = vrcp.f32 %v1130_v41  ;;  %v1161_v58 = vmul.f32 %v6866_v48, %v8212_v29 }
 0x418   : > { %v6868_v46 = vpop.eup %6867  ;;  %v1173_v20 = vpack.c.bf16 %v1160_v17, %v1159_v49  ;;  %6871 = vrcp.f32 %v1124_v30 }
 0x419   : > { %v1162_v26 = vmul.f32 %v6868_v46, %v8223_v28  ;;  %6873 = vrcp.f32 %v1128_v47 }
 0x41a   : > { %6098 = vmatprep.mubr.bf16.mxu1 %v1173_v20  ;;  %v1126_v24 = vpop.xlane.xlu1 %1125 }
 0x41b   : > { %v1344_v39 = vpop.permute.xlu0 %1343  ;;  %6875 = vrcp.f32 %v1126_v24  ;;  %v1174_v38 = vpack.c.bf16 %v1162_v26, %v1161_v58 }
 0x41c   : > { %6620 = vmatprep.subr.msk.bf16.mxu1 %vm865_vm0, %v1344_v39  ;;  %v1385_v59 = vsel %vm865_vm0, %v1344_v39, 0  ;;  %6877 = vrcp.f32 %v1132_v50 }
 0x41d   : > { %6123 = vmatpush3.bf16.xpose.msra.mxu1 %v1385_v59 }
 0x41e   : > { %6099 = vmatmul.mubr.bf16.gmra.mxu1 %v1174_v38  ;;  %v1134_v63 = vpop.xlane.xlu1 %1133 }
 0x41f   : > { %v1318_v1 = vpop.permute.xlu0 %1317  ;;  %6879 = vrcp.f32 %v1134_v63 }
 0x420   : > { %6881 = vrcp.f32 %v1138_v23 }
 0x421   : > { %6883 = vrcp.f32 %v1136_v27 }
 0x422   : > { %v1342_v29 = vpop.permute.xlu1 %1341 }
 0x423   : > { %v1322_v28 = vpop.permute.xlu0 %1321  ;;  %6621 = vmatprep.subr.msk.bf16.mxu1 %vm865_vm0, %v1342_v29  ;;  %v1382_v18 = vsel %vm865_vm0, %v1342_v29, 0 }
 0x424   : > { %v6870_v36 = vpop.eup %6869 }
 0x425   : > { %6125 = vmatpush3.bf16.xpose.msra.mxu1 %v1382_v18  ;;  %v6872_v40 = vpop.eup %6871  ;;  %v1166_v50 = vmul.f32 %v6870_v36, %v8239_v9 }
 0x426   : > { %v1320_v33 = vpop.permute.xlu1 %1319  ;;  %v6874_v47 = vpop.eup %6873  ;;  %v1163_v54 = vmul.f32 %v6872_v40, %v8236_v55 }
 0x427   : > { %v1326_v16 = vpop.permute.xlu0 %1325  ;;  %v1165_v41 = vmul.f32 %v6874_v47, %v8230_v62 }
 0x428   : > { %v6876_v30 = vpop.eup %6875 }
 0x429   : > { %v1164_v34 = vmul.f32 %v6876_v30, %v8245_v12  ;;  %v6878_v27 = vpop.eup %6877  ;;  %v1176_v46 = vpack.c.bf16 %v1166_v50, %v1165_v41  ;;  %v1295_v41 = vld [vmem:[#allocation9 + $0x90] sm:$0xff] }
 0x42a   : > { %v1324_v49 = vpop.permute.xlu1 %1323  ;;  %v1167_v58 = vmul.f32 %v6878_v27, %v8232_v42 }
 0x42b   : > { %v1330_v48 = vpop.permute.xlu0 %1329  ;;  %v1175_v23 = vpack.c.bf16 %v1164_v34, %v1163_v54 }
 0x42c   : > { %v6880_v17 = vpop.eup %6879 }
 0x42d   : > { %v6882_v20 = vpop.eup %6881  ;;  %6102 = vmatprep.mubr.bf16.mxu1 %v1175_v23  ;;  %v1168_v26 = vmul.f32 %v6880_v17, %v8248_v6  ;;  %v1293_v17 = vld [vmem:[#allocation9 + $0x80] sm:$0xff] }
 0x42e   : > { %v1328_v24 = vpop.permute.xlu1 %1327  ;;  %6103 = vmatmul.mubr.bf16.gmra.mxu1 %v1176_v46  ;;  %v6884_v55 = vpop.eup %6883  ;;  %v1170_v12 = vmul.f32 %v6882_v20, %v8241_v0 }
 0x42f   : > { %v1693_v9 = vpop.permute.xlu0 %1692  ;;  %v1177_v39 = vpack.c.bf16 %v1168_v26, %v1167_v58  ;;  %v1169_v59 = vmul.f32 %v6884_v55, %v8226_v35  ;;  %v1294_v55 = vld [vmem:[#allocation9 + $0x88] sm:$0xff] }
 0x430   : > { %6142 = vmatprep.subr.bf16.mxu0 %v1693_v9 }
 0x431   : > { %6143 = vmatpush3.bf16.msra.mxu0 %v1693_v9  ;;  %6106 = vmatprep.mubr.bf16.mxu1 %v1177_v39  ;;  %v1178_v63 = vpack.c.bf16 %v1170_v12, %v1169_v59 }
 0x432   : > { %v1332_v62 = vpop.permute.xlu1 %1331 }
 0x433   : > { %v1689_v38 = vpop.permute.xlu0 %1688 }
 0x436   : > { %v1691_v29 = vpop.permute.xlu1 %1690  ;;  %6107 = vmatmul.mubr.bf16.gmra.mxu1 %v1178_v63 }
 0x437   : > { %6126 = vmatprep.mubr.msk.bf16.mxu1 %vm865_vm0, %v1318_v1  ;;  %6144 = vmatprep.subr.bf16.mxu0 %v1691_v29  ;;  %v1687_v42 = vpop.permute.xlu0 %1686 }
 0x438   : > { %6145 = vmatpush3.bf16.msra.mxu0 %v1691_v29 }
 0x439   : > { %6146 = vmatprep.subr.bf16.mxu0 %v1689_v38 }
 0x43a   : > { %v1683_v35 = vpop.permute.xlu1 %1682 }
 0x43b   : > { %v1685_v0 = vpop.permute.xlu0 %1684 }
 0x43c   : > { %6147 = vmatpush3.bf16.msra.mxu0 %v1689_v38 }
 0x43d   : > { %6148 = vmatprep.subr.bf16.mxu0 %v1687_v42 }
 0x43e   : > { %6127 = vmatmul.mubr.msk.bf16.vlgmr.msra.gmra.mxu1 %vm865_vm0, %v1320_v33 }
 0x43f   : > { %6130 = vmatprep.mubr.msk.bf16.mxu1 %vm865_vm0, %v1322_v28 }
 0x440   : > { %6149 = vmatpush3.bf16.msra.mxu0 %v1687_v42 }
 0x441   : > { %6150 = vmatprep.subr.bf16.mxu0 %v1685_v0 }
 0x444   : > { %6151 = vmatpush3.bf16.msra.mxu0 %v1685_v0 }
 0x445   : > { %6152 = vmatprep.subr.bf16.mxu0 %v1683_v35 }
 0x446   : > { %6131 = vmatmul.mubr.msk.bf16.gmra.mxu1 %vm865_vm0, %v1324_v49 }
 0x447   : > { %6134 = vmatprep.mubr.msk.bf16.mxu1 %vm865_vm0, %v1326_v16 }
 0x448   : > { %6153 = vmatpush3.bf16.msra.mxu0 %v1683_v35  ;;  %v1298_v35 = vld [vmem:[#allocation9 + $0xa8] sm:$0xff] }
 0x44e   : > { %6135 = vmatmul.mubr.msk.bf16.gmra.mxu1 %vm865_vm0, %v1328_v24  ;;  %v1296_v24 = vld [vmem:[#allocation9 + $0x98] sm:$0xff] }
 0x44f   : > { %6138 = vmatprep.mubr.msk.bf16.mxu1 %vm865_vm0, %v1330_v48 }
 0x456   : > { %6139 = vmatmul.mubr.msk.bf16.gmra.mxu1 %vm865_vm0, %v1332_v62 }
 0x4a5   : > { %v6096_v6 = vpop.f32.mrf.mxu1 }
 0x4a6   : > { %1278 = vst.msk [vmem:[#allocation2 + $0x10] sm:$0xff] %vm865_vm0, %v6096_v6 }
 0x4a7   : > { %v1213_v1 = vpop.f32.mrf.mxu1 }
 0x4a8   : > { %1276 = vst.msk [vmem:[#allocation2] sm:$0xff] %vm865_vm0, %v1213_v1 }
 0x4a9   : > { %v6097_v28 = vpop.f32.mrf.mxu1 }
 0x4aa   : > { %1279 = vst.msk [vmem:[#allocation2 + $0x18] sm:$0xff] %vm865_vm0, %v6097_v28 }
 0x4ab   : > { %v1216_v18 = vpop.f32.mrf.mxu1 }
 0x4ac   : > { %1277 = vst.msk [vmem:[#allocation2 + $0x8] sm:$0xff] %vm865_vm0, %v1216_v18 }
 0x4de   : > { %v6100_v36 = vpop.f32.mrf.mxu1 }
 0x4df   : > { %1282 = vst.msk [vmem:[#allocation2 + $0x30] sm:$0xff] %vm865_vm0, %v6100_v36  ;;  %v1304_v36 = vld [vmem:[#allocation9 + $0xd8] sm:$0xff] }
 0x4e0   : > { %v1229_v40 = vpop.f32.mrf.mxu1 }
 0x4e1   : > { %1280 = vst.msk [vmem:[#allocation2 + $0x20] sm:$0xff] %vm865_vm0, %v1229_v40 }
 0x4e2   : > { %v6101_v33 = vpop.f32.mrf.mxu1 }
 0x4e3   : > { %1283 = vst.msk [vmem:[#allocation2 + $0x38] sm:$0xff] %vm865_vm0, %v6101_v33  ;;  %v1302_v33 = vld [vmem:[#allocation9 + $0xc8] sm:$0xff] }
 0x4e4   : > { %v1232_v16 = vpop.f32.mrf.mxu1 }
 0x4e5   : > { %1281 = vst.msk [vmem:[#allocation2 + $0x28] sm:$0xff] %vm865_vm0, %v1232_v16 }
 0x4ee   : > { %v6104_v47 = vpop.f32.mrf.mxu1 }
 0x4ef   : > { %1286 = vst.msk [vmem:[#allocation2 + $0x50] sm:$0xff] %vm865_vm0, %v6104_v47 }
 0x4f0   : > { %v1245_v30 = vpop.f32.mrf.mxu1 }
 0x4f1   : > { %1284 = vst.msk [vmem:[#allocation2 + $0x40] sm:$0xff] %vm865_vm0, %v1245_v30 }
 0x4f2   : > { %v6105_v50 = vpop.f32.mrf.mxu1 }
 0x4f3   : > { %1287 = vst.msk [vmem:[#allocation2 + $0x58] sm:$0xff] %vm865_vm0, %v6105_v50 }
 0x4f4   : > { %v1248_v54 = vpop.f32.mrf.mxu1 }
 0x4f5   : > { %1285 = vst.msk [vmem:[#allocation2 + $0x48] sm:$0xff] %vm865_vm0, %v1248_v54  ;;  %v1297_v54 = vld [vmem:[#allocation9 + $0xa0] sm:$0xff] }
 0x4f6   : > { %v6108_v34 = vpop.f32.mrf.mxu1 }
 0x4f7   : > { %1290 = vst.msk [vmem:[#allocation2 + $0x70] sm:$0xff] %vm865_vm0, %v6108_v34 }
 0x4f8   : > { %v1261_v27 = vpop.f32.mrf.mxu1 }
 0x4f9   : > { %1288 = vst.msk [vmem:[#allocation2 + $0x60] sm:$0xff] %vm865_vm0, %v1261_v27  ;;  %v10624_v27 = vld [vmem:[#allocation24_spill] sm:$0xff] }
 0x4fa   : > { %v6109_v49 = vpop.f32.mrf.mxu1 }
 0x4fb   : > { %1291 = vst.msk [vmem:[#allocation2 + $0x78] sm:$0xff] %vm865_vm0, %v6109_v49 }
 0x4fc   : > { %v1264_v48 = vpop.f32.mrf.mxu1 }
 0x4fd   : > { %1289 = vst.msk [vmem:[#allocation2 + $0x68] sm:$0xff] %vm865_vm0, %v1264_v48 }
 0x4fe   : > { %v6128_v23 = vpop.f32.mrf.mxu1 }
 0x4ff   : > { %v1448_v46 = vadd.f32 %v6128_v23, %v1295_v41  ;;  %v10625_v41 = vld [vmem:[#allocation25_spill] sm:$0xff] }
 0x500   : > { %v1439_v20 = vpop.f32.mrf.mxu1 }
 0x501   : > { %v1440_v58 = vadd.f32 %v1439_v20, %v1293_v17  ;;  %v8346_v26 = vadd.f32 %v1448_v46, %v8079_v14  ;;  %v1300_v14 = vld [vmem:[#allocation9 + $0xb8] sm:$0xff]  ;;  %v1301_v17 = vld [vmem:[#allocation9 + $0xc0] sm:$0xff] }
 0x502   : > { %v6129_v9 = vpop.f32.mrf.mxu1 }
 0x503   : > { %1522 = vmax.xlane.f32.xlu0 %v8346_v26  ;;  %v1451_v12 = vadd.f32 %v6129_v9, %v1296_v24  ;;  %v8350_v59 = vadd.f32 %v1440_v58, %v8081_v21  ;;  %v10626_v58 = vld [vmem:[#allocation26_spill] sm:$0xff]  ;;  %v1307_v9 = vld [vmem:[#allocation9 + $0xf0] sm:$0xff] }
 0x504   : > { %v1442_v39 = vpop.f32.mrf.mxu1 }
 0x505   : > { %v1443_v62 = vadd.f32 %v1442_v39, %v1294_v55  ;;  %v8358_v42 = vadd.f32 %v1451_v12, %v8086_v8  ;;  %v10627_v12 = vld [vmem:[#allocation27_spill] sm:$0xff] }
 0x506   : > { %v6132_v38 = vpop.f32.mrf.mxu1 }
 0x507   : > { %1518 = vmax.xlane.f32.xlu0 %v8350_v59  ;;  %v8354_v63 = vadd.f32 %v1443_v62, %v8092_v11 }
 0x508   : > { %v1455_v29 = vpop.f32.mrf.mxu1 }
 0x509   : > { %1520 = vmax.xlane.f32.xlu1 %v8354_v63  ;;  %v1456_v34 = vadd.f32 %v1455_v29, %v1297_v54  ;;  %v1308_v29 = vld [vmem:[#allocation9 + $0xf8] sm:$0xff]  ;;  %v10634_v54 = vld [vmem:[#allocation22_spill] sm:$0xff] }
 0x50a   : > { %v6133_v0 = vpop.f32.mrf.mxu1 }
 0x50b   : > { %v1467_v6 = vadd.f32 %v6133_v0, %v1300_v14  ;;  %1524 = vmax.xlane.f32.xlu0 %v8358_v42  ;;  %v8388_v23 = vadd.f32 %v1456_v34, %v10625_v41 }
 0x50c   : > { %v1458_v21 = vpop.f32.mrf.mxu1 }
 0x50d   : > { %v1459_v1 = vadd.f32 %v1458_v21, %v1298_v35  ;;  %v8362_v28 = vadd.f32 %v1467_v6, %v8105_v53  ;;  %v10628_v6 = vld [vmem:[#allocation28_spill] sm:$0xff] }
 0x50e   : > { %v6136_v18 = vpop.f32.mrf.mxu1 }
 0x50f   : > { %1532 = vmax.xlane.f32.xlu1 %v8362_v28  ;;  %v8366_v40 = vadd.f32 %v1459_v1, %v8116_v43  ;;  %v1299_v43 = vld [vmem:[#allocation9 + $0xb0] sm:$0xff] }
 0x510   : > { %v1471_v11 = vpop.f32.mrf.mxu1 }
 0x511   : > { %v1472_v20 = vadd.f32 %v1471_v11, %v1301_v17 }
 0x512   : > { %v6137_v8 = vpop.f32.mrf.mxu1 }
 0x513   : > { %v1483_v16 = vadd.f32 %v6137_v8, %v1304_v36  ;;  %1528 = vmax.xlane.f32.xlu1 %v8366_v40  ;;  %v8396_v62 = vadd.f32 %v1472_v20, %v10627_v12  ;;  %v10629_v36 = vld [vmem:[#allocation30_spill] sm:$0xff] }
 0x514   : > { %v1474_v47 = vpop.f32.mrf.mxu1 }
 0x515   : > { %v1475_v30 = vadd.f32 %v1474_v47, %v1302_v33  ;;  %v8370_v50 = vadd.f32 %v1483_v16, %v8128_v5  ;;  %v1464_v5 = vadd.f32 %v6132_v38, %v1299_v43  ;;  %v1305_v38 = vld [vmem:[#allocation9 + $0xe0] sm:$0xff]  ;;  %v10631_v47 = vld [vmem:[#allocation31_spill] sm:$0xff]  ;;  %v10632_v43 = vld [vmem:[#allocation18_spill] sm:$0xff] }
 0x516   : > { %v6140_v46 = vpop.f32.mrf.mxu1  ;;  %v10630_v33 = vld [vmem:[#allocation29_spill] sm:$0xff] }
 0x517   : > { %1540 = vmax.xlane.f32.xlu1 %v8370_v50  ;;  %v8374_v53 = vadd.f32 %v1475_v30, %v8140_v56  ;;  %v8384_v49 = vadd.f32 %v1464_v5, %v10624_v27  ;;  %v1303_v56 = vld [vmem:[#allocation9 + $0xd0] sm:$0xff]  ;;  %v1496_v39 = vadd.f32 %v6140_v46, %v1307_v9  ;;  %v10633_v5 = vld [vmem:[#allocation21_spill] sm:$0xff] }
 0x518   : > { %v1480_v48 = vadd.f32 %v6136_v18, %v1303_v56  ;;  %v1487_v55 = vpop.f32.mrf.mxu1  ;;  %v1306_v18 = vld [vmem:[#allocation9 + $0xe8] sm:$0xff]  ;;  %v1679_v56 = vpop.permute.xlu1 %1678 }
 0x519   : > { %v1488_v0 = vadd.f32 %v1487_v55, %v1305_v38  ;;  %v8400_v21 = vadd.f32 %v1496_v39, %v10628_v6 }
 0x51a   : > { %v8392_v24 = vadd.f32 %v1480_v48, %v10626_v58  ;;  %v6141_v14 = vpop.f32.mrf.mxu1 }
 0x51b   : > { %1536 = vmax.xlane.f32.xlu1 %v8374_v53  ;;  %v1499_v35 = vadd.f32 %v6141_v14, %v1308_v29  ;;  %v8407_v16 = vadd.f32 %v1488_v0, %v10630_v33  ;;  %v10635_v14 = vld [vmem:[#allocation23_spill] sm:$0xff] }
 0x51c   : > { %v1490_v1 = vpop.f32.mrf.mxu1 }
 0x51d   : > { %v1491_v11 = vadd.f32 %v1490_v1, %v1306_v18  ;;  %v8404_v8 = vadd.f32 %v1499_v35, %v10629_v36 }
 0x51f   : > { %v8412_v30 = vadd.f32 %v1491_v11, %v10631_v47 }
 0x521   : > { %1680 = vrot.lane.b32.xlu0 %v7987_v61, %s7599_s20 }
 0x52c   : > { %1925 = vrot.lane.b32.xlu1 %v7942_v15, %s7600_s29 }
 0x530   : > { %1921 = vrot.lane.b32.xlu1 %v8013_v25, %s7600_s29 }
 0x540   : > { %1530 = vmax.xlane.f32.xlu0 %v8384_v49 }
 0x544   : > { %1526 = vmax.xlane.f32.xlu0 %v8388_v23 }
 0x548   : > { %1538 = vmax.xlane.f32.xlu0 %v8392_v24 }
 0x54c   : > { %1534 = vmax.xlane.f32.xlu0 %v8396_v62 }
 0x550   : > { %1546 = vmax.xlane.f32.xlu0 %v8400_v21 }
 0x554   : > { %1548 = vmax.xlane.f32.xlu1 %v8404_v8  ;;  %1542 = vmax.xlane.f32.xlu0 %v8407_v16 }
 0x558   : > { %1544 = vmax.xlane.f32.xlu1 %v8412_v30 }
 0x56a   : > { %1927 = vrot.lane.b32.xlu0 %v10632_v43, %s7600_s29 }
 0x56e   : > { %1923 = vrot.lane.b32.xlu0 %v10633_v5, %s7600_s29 }
 0x572   : > { %1919 = vrot.lane.b32.xlu0 %v10634_v54, %s7600_s29 }
 0x58c   : > { %v1523_v34 = vpop.xlane.xlu0 %1522 }
 0x58d   : > { %v1552_v27 = vsub.f32 %v8346_v26, %v1523_v34 }
 0x58f   : > { %v1570_v48 = vmul.f32 1.442695, %v1552_v27 }
 0x590   : > { %v1519_v41 = vpop.xlane.xlu0 %1518 }
 0x591   : > { %6885 = vpow2.f32 %v1570_v48  ;;  %v1550_v17 = vsub.f32 %v8350_v59, %v1519_v41 }
 0x592   : > { %v1521_v46 = vpop.xlane.xlu1 %1520 }
 0x593   : > { %v1566_v20 = vmul.f32 1.442695, %v1550_v17  ;;  %v1551_v9 = vsub.f32 %v8354_v63, %v1521_v46 }
 0x594   : > { %v1525_v58 = vpop.xlane.xlu0 %1524 }
 0x595   : > { %6887 = vpow2.f32 %v1566_v20  ;;  %v1553_v55 = vsub.f32 %v8358_v42, %v1525_v58  ;;  %v1568_v38 = vmul.f32 1.442695, %v1551_v9 }
 0x597   : > { %v1572_v39 = vmul.f32 1.442695, %v1553_v55 }
 0x598   : > { %v1681_v12 = vpop.permute.xlu0 %1680  ;;  %v1533_v29 = vpop.xlane.xlu1 %1532 }
 0x599   : > { %6889 = vpow2.f32 %v1572_v39  ;;  %6154 = vmatprep.subr.bf16.mxu0 %v1681_v12  ;;  %v1557_v36 = vsub.f32 %v8362_v28, %v1533_v29 }
 0x59a   : > { %6155 = vmatpush3.bf16.msra.mxu0 %v1681_v12  ;;  %6891 = vpow2.f32 %v1568_v38 }
 0x59b   : > { %6156 = vmatprep.subr.bf16.mxu0 %v1679_v56  ;;  %v1580_v48 = vmul.f32 1.442695, %v1557_v36 }
 0x59c   : > { %v1529_v0 = vpop.xlane.xlu1 %1528 }
 0x59d   : > { %v1555_v6 = vsub.f32 %v8366_v40, %v1529_v0 }
 0x59e   : > { %v8425_v26 = vpop.eup %6885  ;;  %6157 = vmatpush3.bf16.msra.mxu0 %v1679_v56 }
 0x59f   : > { %1602 = vadd.xlane.f32.xlu1 %v8425_v26  ;;  %v1576_v33 = vmul.f32 1.442695, %v1555_v6 }
 0x5a0   : > { %v1541_v35 = vpop.xlane.xlu1 %1540 }
 0x5a2   : > { %v8428_v59 = vpop.eup %6887 }
 0x5a3   : > { %1598 = vadd.xlane.f32.xlu1 %v8428_v59 }
 0x5a4   : > { %v1537_v47 = vpop.xlane.xlu1 %1536 }
 0x5a5   : > { %v1559_v39 = vsub.f32 %v8374_v53, %v1537_v47 }
 0x5a6   : > { %v8431_v63 = vpop.eup %6889 }
 0x5a7   : > { %1604 = vadd.xlane.f32.xlu1 %v8431_v63  ;;  %v8434_v42 = vpop.eup %6891 }
 0x5a8   : > { %v8444_v40 = vpop.permute.xlu1 %1925 }
 0x5ab   : > { %1600 = vadd.xlane.f32.xlu1 %v8434_v42 }
 0x5bc   : > { %1917 = vrot.lane.b32.xlu1 %v10635_v14, %s7600_s29 }
 0x5c9   : > { %v1531_v1 = vpop.xlane.xlu0 %1530 }
 0x5ca   : > { %v1556_v18 = vsub.f32 %v8384_v49, %v1531_v1  ;;  %v1561_v49 = vsub.f32 %v8370_v50, %v1541_v35 }
 0x5cc   : > { %v1578_v11 = vmul.f32 1.442695, %v1556_v18  ;;  %v1588_v9 = vmul.f32 1.442695, %v1561_v49 }
 0x5cd   : > { %v1527_v34 = vpop.xlane.xlu0 %1526 }
 0x5ce   : > { %6893 = vpow2.f32 %v1578_v11  ;;  %v1554_v27 = vsub.f32 %v8388_v23, %v1527_v34  ;;  %v8448_v23 = vpop.permute.xlu1 %1921 }
 0x5cf   : > { %6895 = vpow2.f32 %v1576_v33 }
 0x5d0   : > { %v1574_v56 = vmul.f32 1.442695, %v1554_v27 }
 0x5d1   : > { %v1539_v41 = vpop.xlane.xlu0 %1538 }
 0x5d2   : > { %6897 = vpow2.f32 %v1574_v56  ;;  %v1560_v17 = vsub.f32 %v8392_v24, %v1539_v41 }
 0x5d3   : > { %6899 = vpow2.f32 %v1580_v48 }
 0x5d4   : > { %v1586_v46 = vmul.f32 1.442695, %v1560_v17 }
 0x5d5   : > { %v1535_v28 = vpop.xlane.xlu0 %1534 }
 0x5d6   : > { %6901 = vpow2.f32 %v1586_v46  ;;  %v1558_v20 = vsub.f32 %v8396_v62, %v1535_v28  ;;  %v1584_v62 = vmul.f32 1.442695, %v1559_v39 }
 0x5d8   : > { %v1582_v58 = vmul.f32 1.442695, %v1558_v20 }
 0x5d9   : > { %v1547_v55 = vpop.xlane.xlu0 %1546 }
 0x5da   : > { %6903 = vpow2.f32 %v1582_v58  ;;  %v1564_v24 = vsub.f32 %v8400_v21, %v1547_v55 }
 0x5db   : > { %v8452_v12 = vpop.eup %6893  ;;  %6905 = vpow2.f32 %v1588_v9 }
 0x5dc   : > { %v1594_v38 = vmul.f32 1.442695, %v1564_v24  ;;  %1610 = vadd.xlane.f32.xlu0 %v8452_v12  ;;  %v8455_v0 = vpop.eup %6895 }
 0x5dd   : > { %v1549_v50 = vpop.xlane.xlu1 %1548  ;;  %v1543_v29 = vpop.xlane.xlu0 %1542 }
 0x5de   : > { %6907 = vpow2.f32 %v1594_v38  ;;  %v1562_v35 = vsub.f32 %v8407_v16, %v1543_v29  ;;  %v1565_v53 = vsub.f32 %v8404_v8, %v1549_v50 }
 0x5df   : > { %v8458_v6 = vpop.eup %6897  ;;  %6909 = vpow2.f32 %v1584_v62 }
 0x5e0   : > { %v1590_v1 = vmul.f32 1.442695, %v1562_v35  ;;  %1608 = vadd.xlane.f32.xlu1 %v8455_v0  ;;  %1606 = vadd.xlane.f32.xlu0 %v8458_v6  ;;  %v8465_v11 = vpop.eup %6899  ;;  %v1596_v33 = vmul.f32 1.442695, %v1565_v53 }
 0x5e1   : > { %v1545_v21 = vpop.xlane.xlu1 %1544  ;;  %v8463_v18 = vpop.permute.xlu0 %1927 }
 0x5e2   : > { %v1563_v36 = vsub.f32 %v8412_v30, %v1545_v21  ;;  %6622 = vmatprep.subr.msk.bf16.mxu0 %vm865_vm0, %v8463_v18  ;;  %6911 = vpow2.f32 %v1590_v1  ;;  %v1975_v35 = vsel %vm865_vm0, %v8463_v18, 0 }
 0x5e3   : > { %v8470_v16 = vpop.eup %6901 }
 0x5e4   : > { %v1592_v8 = vmul.f32 1.442695, %v1563_v36  ;;  %1612 = vadd.xlane.f32.xlu0 %v8465_v11  ;;  %1618 = vadd.xlane.f32.xlu1 %v8470_v16 }
 0x5e5   : > { %v1924_v53 = vpop.permute.xlu0 %1923 }
 0x5e6   : > { %6913 = vpow2.f32 %v1592_v8 }
 0x5e7   : > { %v8474_v47 = vpop.eup %6903  ;;  %6915 = vpow2.f32 %v1596_v33 }
 0x5e8   : > { %1614 = vadd.xlane.f32.xlu1 %v8474_v47  ;;  %v8477_v34 = vpop.eup %6905 }
 0x5eb   : > { %v8479_v30 = vpop.eup %6907 }
 0x5ec   : > { %1620 = vadd.xlane.f32.xlu1 %v8477_v34  ;;  %1626 = vadd.xlane.f32.xlu0 %v8479_v30  ;;  %v8483_v27 = vpop.eup %6909 }
 0x5ef   : > { %v8485_v56 = vpop.eup %6911 }
 0x5f0   : > { %1616 = vadd.xlane.f32.xlu1 %v8483_v27  ;;  %1622 = vadd.xlane.f32.xlu0 %v8485_v56 }
 0x5f3   : > { %v8489_v48 = vpop.eup %6913 }
 0x5f4   : > { %v8491_v41 = vpop.eup %6915  ;;  %1624 = vadd.xlane.f32.xlu1 %v8489_v48 }
 0x5f5   : > { %1628 = vadd.xlane.f32.xlu0 %v8491_v41 }
 0x605   : > { %1913 = vrot.lane.b32.xlu1 %v8053_v10, %s7600_s29 }
 0x609   : > { %1899 = vrot.lane.b32.xlu1 %v7865_v51, %s7600_s29 }
 0x60b   : > { %1915 = vrot.lane.b32.xlu0 %v8043_v3, %s7600_s29 }
 0x60d   : > { %1903 = vrot.lane.b32.xlu1 %v7891_v7, %s7600_s29 }
 0x60f   : > { %1897 = vrot.lane.b32.xlu0 %v7855_v44, %s7600_s29 }
 0x611   : > { %1907 = vrot.lane.b32.xlu1 %v7914_v32, %s7600_s29 }
 0x613   : > { %1901 = vrot.lane.b32.xlu0 %v7877_v60, %s7600_s29 }
 0x615   : > { %1911 = vrot.lane.b32.xlu1 %v7963_v31, %s7600_s29 }
 0x617   : > { %1905 = vrot.lane.b32.xlu0 %v7902_v19, %s7600_s29 }
 0x619   : > { %2254 = vrot.lane.b32.xlu1 %v7925_v57, %s7600_s29 }
 0x61b   : > { %1909 = vrot.lane.b32.xlu0 %v7939_v13, %s7600_s29 }
 0x61d   : > { %2246 = vrot.lane.b32.xlu1 %v7973_v37, %s7600_s29 }
 0x61f   : > { %2256 = vrot.lane.b32.xlu0 %v7922_v52, %s7600_s29 }
 0x621   : > { %2242 = vrot.lane.b32.xlu1 %v7997_v45, %s7600_s29 }
 0x623   : > { %2252 = vrot.lane.b32.xlu0 %v7934_v4, %s7600_s29 }
 0x627   : > { %2250 = vrot.lane.b32.xlu0 %v7948_v22, %s7600_s29 }
 0x628   : > { %v1603_v17 = vpop.xlane.xlu1 %1602 }
 0x62b   : > { %2248 = vrot.lane.b32.xlu0 %v7957_v2, %s7600_s29 }
 0x62c   : > { %v1599_v46 = vpop.xlane.xlu1 %1598 }
 0x630   : > { %v1605_v49 = vpop.xlane.xlu1 %1604 }
 0x631   : > { %6917 = vrcp.f32 %v1605_v49 }
 0x632   : > { %6919 = vrcp.f32 %v1599_v46 }
 0x633   : > { %6921 = vrcp.f32 %v1603_v17 }
 0x634   : > { %v1601_v28 = vpop.xlane.xlu1 %1600 }
 0x635   : > { %6923 = vrcp.f32 %v1601_v28 }
 0x638   : > { %v1918_v1 = vpop.permute.xlu1 %1917 }
 0x63e   : > { %v6918_v20 = vpop.eup %6917 }
 0x63f   : > { %v6920_v58 = vpop.eup %6919  ;;  %v1649_v39 = vmul.f32 %v6918_v20, %v8431_v63  ;;  %v1972_v63 = vsel %vm865_vm0, %v8444_v40, 0 }
 0x640   : > { %v6922_v9 = vpop.eup %6921  ;;  %v1646_v24 = vmul.f32 %v6920_v58, %v8428_v59  ;;  %v1966_v59 = vsel %vm865_vm0, %v8448_v23, 0 }
 0x641   : > { %v1648_v50 = vmul.f32 %v6922_v9, %v8425_v26  ;;  %v1969_v26 = vsel %vm865_vm0, %v1924_v53, 0 }
 0x642   : > { %v6924_v55 = vpop.eup %6923 }
 0x643   : > { %v1647_v38 = vmul.f32 %v6924_v55, %v8434_v42  ;;  %v1663_v62 = vpack.c.bf16 %v1649_v39, %v1648_v50  ;;  %v1920_v42 = vpop.permute.xlu0 %1919 }
 0x645   : > { %v1662_v29 = vpack.c.bf16 %v1647_v38, %v1646_v24 }
 0x647   : > { %6158 = vmatprep.mubr.bf16.mxu0 %v1662_v29 }
 0x648   : > { %6159 = vmatmul.mubr.bf16.vlgmr.msra.gmra.mxu0 %v1663_v62 }
 0x649   : > { %6175 = vmatpush3.bf16.xpose.msra.mxu0 %v1975_v35 }
 0x64a   : > { %6623 = vmatprep.subr.msk.bf16.mxu0 %vm865_vm0, %v8444_v40  ;;  %v1963_v40 = vsel %vm865_vm0, %v1920_v42, 0 }
 0x651   : > { %6177 = vmatpush3.bf16.xpose.msra.mxu0 %v1972_v63 }
 0x652   : > { %6624 = vmatprep.subr.msk.bf16.mxu0 %vm865_vm0, %v1924_v53 }
 0x659   : > { %6179 = vmatpush3.bf16.xpose.msra.mxu0 %v1969_v26 }
 0x65a   : > { %6625 = vmatprep.subr.msk.bf16.mxu0 %vm865_vm0, %v8448_v23  ;;  %v1960_v23 = vsel %vm865_vm0, %v1918_v1, 0 }
 0x661   : > { %6181 = vmatpush3.bf16.xpose.msra.mxu0 %v1966_v59 }
 0x662   : > { %6626 = vmatprep.subr.msk.bf16.mxu0 %vm865_vm0, %v1920_v42 }
 0x665   : > { %v1611_v21 = vpop.xlane.xlu0 %1610 }
 0x669   : > { %6183 = vmatpush3.bf16.xpose.msra.mxu0 %v1963_v40  ;;  %v1609_v18 = vpop.xlane.xlu1 %1608  ;;  %v1607_v36 = vpop.xlane.xlu0 %1606 }
 0x66a   : > { %6925 = vrcp.f32 %v1609_v18  ;;  %6627 = vmatprep.subr.msk.bf16.mxu0 %vm865_vm0, %v1918_v1 }
 0x66b   : > { %6927 = vrcp.f32 %v1607_v36 }
 0x66c   : > { %6929 = vrcp.f32 %v1611_v21 }
 0x66d   : > { %v1619_v33 = vpop.xlane.xlu1 %1618  ;;  %v1613_v8 = vpop.xlane.xlu0 %1612 }
 0x66e   : > { %6931 = vrcp.f32 %v1613_v8 }
 0x671   : > { %6185 = vmatpush3.bf16.xpose.msra.mxu0 %v1960_v23  ;;  %v1615_v17 = vpop.xlane.xlu1 %1614 }
 0x675   : > { %v1621_v46 = vpop.xlane.xlu1 %1620  ;;  %v1627_v49 = vpop.xlane.xlu0 %1626 }
 0x676   : > { %6933 = vrcp.f32 %v1621_v46 }
 0x677   : > { %v6926_v28 = vpop.eup %6925  ;;  %6935 = vrcp.f32 %v1615_v17 }
 0x678   : > { %v6928_v20 = vpop.eup %6927  ;;  %v1651_v58 = vmul.f32 %v6926_v28, %v8455_v0  ;;  %6937 = vrcp.f32 %v1619_v33 }
 0x679   : > { %v1617_v9 = vpop.xlane.xlu1 %1616  ;;  %v1650_v55 = vmul.f32 %v6928_v20, %v8458_v6  ;;  %v6930_v39 = vpop.eup %6929 }
 0x67a   : > { %6939 = vrcp.f32 %v1617_v9  ;;  %v1623_v24 = vpop.xlane.xlu0 %1622  ;;  %v1652_v62 = vmul.f32 %v6930_v39, %v8452_v12 }
 0x67b   : > { %v1664_v38 = vpack.c.bf16 %v1651_v58, %v1650_v55  ;;  %v6932_v50 = vpop.eup %6931  ;;  %6941 = vrcp.f32 %v1623_v24 }
 0x67c   : > { %v1653_v35 = vmul.f32 %v6932_v50, %v8465_v11 }
 0x67d   : > { %6162 = vmatprep.mubr.bf16.mxu0 %v1664_v38  ;;  %v1625_v29 = vpop.xlane.xlu1 %1624 }
 0x67e   : > { %6943 = vrcp.f32 %v1625_v29  ;;  %v1629_v63 = vpop.xlane.xlu0 %1628  ;;  %v1665_v0 = vpack.c.bf16 %v1653_v35, %v1652_v62 }
 0x67f   : > { %6945 = vrcp.f32 %v1629_v63 }
 0x680   : > { %6947 = vrcp.f32 %v1627_v49  ;;  %6163 = vmatmul.mubr.bf16.gmra.mxu0 %v1665_v0 }
 0x681   : > { %v1914_v53 = vpop.permute.xlu1 %1913 }
 0x682   : > { %v1916_v6 = vpop.permute.xlu0 %1915  ;;  %v1954_v28 = vsel %vm865_vm0, %v1914_v53, 0 }
 0x683   : > { %6628 = vmatprep.subr.msk.bf16.mxu0 %vm865_vm0, %v1916_v6  ;;  %v1957_v26 = vsel %vm865_vm0, %v1916_v6, 0  ;;  %v6934_v59 = vpop.eup %6933 }
 0x684   : > { %6187 = vmatpush3.bf16.xpose.msra.mxu0 %v1957_v26  ;;  %v6936_v42 = vpop.eup %6935  ;;  %v1657_v40 = vmul.f32 %v6934_v59, %v8477_v34 }
 0x685   : > { %6629 = vmatprep.subr.msk.bf16.mxu0 %vm865_vm0, %v1914_v53  ;;  %v1900_v12 = vpop.permute.xlu1 %1899  ;;  %v6938_v1 = vpop.eup %6937  ;;  %v1654_v18 = vmul.f32 %v6936_v42, %v8474_v47 }
 0x686   : > { %v1898_v11 = vpop.permute.xlu0 %1897  ;;  %v1656_v23 = vmul.f32 %v6938_v1, %v8470_v16 }
 0x687   : > { %v6940_v21 = vpop.eup %6939 }
 0x688   : > { %v1655_v36 = vmul.f32 %v6940_v21, %v8483_v27  ;;  %v6942_v33 = vpop.eup %6941  ;;  %v1667_v20 = vpack.c.bf16 %v1657_v40, %v1656_v23  ;;  %v1883_v23 = vld [vmem:[#allocation9 + $0x110] sm:$0xff] }
 0x689   : > { %v1904_v8 = vpop.permute.xlu1 %1903  ;;  %v1658_v9 = vmul.f32 %v6942_v33, %v8485_v56 }
 0x68a   : > { %v1902_v17 = vpop.permute.xlu0 %1901  ;;  %v1666_v46 = vpack.c.bf16 %v1655_v36, %v1654_v18 }
 0x68b   : > { %v6944_v49 = vpop.eup %6943 }
 0x68c   : > { %v6946_v58 = vpop.eup %6945  ;;  %6189 = vmatpush3.bf16.xpose.msra.mxu0 %v1954_v28  ;;  %6166 = vmatprep.mubr.bf16.mxu0 %v1666_v46  ;;  %v1659_v34 = vmul.f32 %v6944_v49, %v8489_v48  ;;  %v1881_v46 = vld [vmem:[#allocation9 + $0x100] sm:$0xff] }
 0x68d   : > { %v1908_v47 = vpop.permute.xlu1 %1907  ;;  %6167 = vmatmul.mubr.bf16.gmra.mxu0 %v1667_v20  ;;  %v6948_v27 = vpop.eup %6947  ;;  %v1661_v16 = vmul.f32 %v6946_v58, %v8491_v41  ;;  %v8605_v20 = vld [vmem:[#allocation11 + $0x10] sm:$0xff] }
 0x68e   : > { %v1906_v55 = vpop.permute.xlu0 %1905  ;;  %v1668_v39 = vpack.c.bf16 %v1659_v34, %v1658_v9  ;;  %v1660_v24 = vmul.f32 %v6948_v27, %v8479_v30  ;;  %v1884_v34 = vld [vmem:[#allocation9 + $0x118] sm:$0xff]  ;;  %v1882_v27 = vld [vmem:[#allocation9 + $0x108] sm:$0xff] }
 0x690   : > { %6170 = vmatprep.mubr.bf16.mxu0 %v1668_v39  ;;  %v1669_v29 = vpack.c.bf16 %v1661_v16, %v1660_v24  ;;  %v8611_v39 = vld [vmem:[#allocation11] sm:$0xff] }
 0x691   : > { %v1912_v38 = vpop.permute.xlu1 %1911 }
 0x692   : > { %v1910_v50 = vpop.permute.xlu0 %1909 }
 0x695   : > { %6171 = vmatmul.mubr.bf16.gmra.mxu0 %v1669_v29  ;;  %v2255_v56 = vpop.permute.xlu1 %2254  ;;  %v8616_v29 = vld [vmem:[#allocation11 + $0x8] sm:$0xff] }
 0x696   : > { %v2257_v62 = vpop.permute.xlu0 %2256  ;;  %6190 = vmatprep.mubr.msk.bf16.mxu0 %vm865_vm0, %v1898_v11 }
 0x697   : > { %6206 = vmatprep.subr.bf16.mxu1 %v2257_v62 }
 0x698   : > { %6207 = vmatpush3.bf16.msra.mxu1 %v2257_v62 }
 0x699   : > { %6208 = vmatprep.subr.bf16.mxu1 %v2255_v56  ;;  %v2247_v35 = vpop.permute.xlu1 %2246 }
 0x69a   : > { %v2253_v48 = vpop.permute.xlu0 %2252 }
 0x69c   : > { %6209 = vmatpush3.bf16.msra.mxu1 %v2255_v56 }
 0x69d   : > { %6210 = vmatprep.subr.bf16.mxu1 %v2253_v48  ;;  %6191 = vmatmul.mubr.msk.bf16.vlgmr.msra.gmra.mxu0 %vm865_vm0, %v1900_v12 }
 0x69e   : > { %v2251_v41 = vpop.permute.xlu0 %2250  ;;  %6194 = vmatprep.mubr.msk.bf16.mxu0 %vm865_vm0, %v1902_v17 }
 0x6a0   : > { %6211 = vmatpush3.bf16.msra.mxu1 %v2253_v48  ;;  %v1888_v48 = vld [vmem:[#allocation9 + $0x138] sm:$0xff] }
 0x6a1   : > { %6212 = vmatprep.subr.bf16.mxu1 %v2251_v41 }
 0x6a2   : > { %v2249_v30 = vpop.permute.xlu0 %2248 }
 0x6a4   : > { %6213 = vmatpush3.bf16.msra.mxu1 %v2251_v41  ;;  %v8622_v41 = vld [vmem:[#allocation11 + $0x18] sm:$0xff] }
 0x6a5   : > { %6214 = vmatprep.subr.bf16.mxu1 %v2249_v30  ;;  %6195 = vmatmul.mubr.msk.bf16.gmra.mxu0 %vm865_vm0, %v1904_v8 }
 0x6a6   : > { %6198 = vmatprep.mubr.msk.bf16.mxu0 %vm865_vm0, %v1906_v55 }
 0x6a8   : > { %6215 = vmatpush3.bf16.msra.mxu1 %v2249_v30 }
 0x6a9   : > { %6216 = vmatprep.subr.bf16.mxu1 %v2247_v35 }
 0x6ac   : > { %6217 = vmatpush3.bf16.msra.mxu1 %v2247_v35 }
 0x6ad   : > { %6199 = vmatmul.mubr.msk.bf16.gmra.mxu0 %vm865_vm0, %v1908_v47 }
 0x6ae   : > { %6202 = vmatprep.mubr.msk.bf16.mxu0 %vm865_vm0, %v1910_v50 }
 0x6b5   : > { %6203 = vmatmul.mubr.msk.bf16.gmra.mxu0 %vm865_vm0, %v1912_v38 }
 0x708   : > { %v8573_v63 = vpop.f32.mrf.mxu0 }
 0x709   : > { %10636 = vst [vmem:[#allocation24_spill] sm:$0xff] %v8573_v63  ;;  %v1896_v63 = vld [vmem:[#allocation9 + $0x178] sm:$0xff] }
 0x70a   : > { %v8575_v0 = vpop.f32.mrf.mxu0 }
 0x70b   : > { %10637 = vst [vmem:[#allocation25_spill] sm:$0xff] %v8575_v0 }
 0x70c   : > { %v8577_v53 = vpop.f32.mrf.mxu0 }
 0x70d   : > { %10638 = vst [vmem:[#allocation26_spill] sm:$0xff] %v8577_v53 }
 0x70e   : > { %v8579_v6 = vpop.f32.mrf.mxu0 }
 0x70f   : > { %10639 = vst [vmem:[#allocation27_spill] sm:$0xff] %v8579_v6 }
 0x740   : > { %v8581_v26 = vpop.f32.mrf.mxu0 }
 0x741   : > { %10640 = vst [vmem:[#allocation28_spill] sm:$0xff] %v8581_v26  ;;  %v8641_v26 = vld [vmem:[#allocation11 + $0x58] sm:$0xff] }
 0x742   : > { %v8583_v59 = vpop.f32.mrf.mxu0 }
 0x743   : > { %10641 = vst [vmem:[#allocation30_spill] sm:$0xff] %v8583_v59  ;;  %v8665_v59 = vld [vmem:[#allocation11 + $0x20] sm:$0xff] }
 0x744   : > { %v8585_v42 = vpop.f32.mrf.mxu0 }
 0x745   : > { %10642 = vst [vmem:[#allocation29_spill] sm:$0xff] %v8585_v42 }
 0x746   : > { %v8587_v12 = vpop.f32.mrf.mxu0 }
 0x747   : > { %10643 = vst [vmem:[#allocation31_spill] sm:$0xff] %v8587_v12 }
 0x74d   : > { %v8589_v1 = vpop.f32.mrf.mxu0 }
 0x74e   : > { %10644 = vst [vmem:[#allocation32_spill] sm:$0xff] %v8589_v1  ;;  %v8677_v1 = vld [vmem:[#allocation11 + $0x40] sm:$0xff] }
 0x74f   : > { %v8591_v11 = vpop.f32.mrf.mxu0 }
 0x750   : > { %10645 = vst [vmem:[#allocation33_spill] sm:$0xff] %v8591_v11  ;;  %v8689_v11 = vld [vmem:[#allocation11 + $0x60] sm:$0xff] }
 0x751   : > { %v8593_v21 = vpop.f32.mrf.mxu0  ;;  %10653 = vst [vmem:[#allocation41_spill] sm:$0xff] %v8689_v11 }
 0x752   : > { %10646 = vst [vmem:[#allocation34_spill] sm:$0xff] %v8593_v21  ;;  %v8683_v21 = vld [vmem:[#allocation11 + $0x70] sm:$0xff] }
 0x753   : > { %v8595_v40 = vpop.f32.mrf.mxu0  ;;  %10652 = vst [vmem:[#allocation40_spill] sm:$0xff] %v8683_v21 }
 0x754   : > { %10647 = vst [vmem:[#allocation35_spill] sm:$0xff] %v8595_v40  ;;  %v1894_v40 = vld [vmem:[#allocation9 + $0x168] sm:$0xff] }
 0x755   : > { %v8597_v18 = vpop.f32.mrf.mxu0 }
 0x756   : > { %10648 = vst [vmem:[#allocation36_spill] sm:$0xff] %v8597_v18 }
 0x757   : > { %v8599_v36 = vpop.f32.mrf.mxu0 }
 0x758   : > { %10649 = vst [vmem:[#allocation37_spill] sm:$0xff] %v8599_v36 }
 0x759   : > { %v8601_v33 = vpop.f32.mrf.mxu0 }
 0x75a   : > { %10650 = vst [vmem:[#allocation38_spill] sm:$0xff] %v8601_v33 }
 0x75b   : > { %v8603_v8 = vpop.f32.mrf.mxu0 }
 0x75c   : > { %10651 = vst [vmem:[#allocation39_spill] sm:$0xff] %v8603_v8  ;;  %v1889_v8 = vld [vmem:[#allocation9 + $0x140] sm:$0xff] }
 0x75d   : > { %v6192_v17 = vpop.f32.mrf.mxu0 }
 0x75e   : > { %v2020_v49 = vadd.f32 %v6192_v17, %v1883_v23  ;;  %v1886_v23 = vld [vmem:[#allocation9 + $0x128] sm:$0xff] }
 0x75f   : > { %v2011_v28 = vpop.f32.mrf.mxu0 }
 0x760   : > { %v8608_v58 = vadd.f32 %v8605_v20, %v2020_v49  ;;  %v2012_v9 = vadd.f32 %v2011_v28, %v1881_v46  ;;  %v8629_v49 = vld [vmem:[#allocation11 + $0x38] sm:$0xff] }
 0x761   : > { %v6193_v47 = vpop.f32.mrf.mxu0 }
 0x762   : > { %2094 = vmax.xlane.f32.xlu0 %v8608_v58  ;;  %v8614_v16 = vadd.f32 %v8611_v39, %v2012_v9  ;;  %v2023_v24 = vadd.f32 %v6193_v47, %v1884_v34 }
 0x763   : > { %v2014_v55 = vpop.f32.mrf.mxu0 }
 0x764   : > { %v2015_v38 = vadd.f32 %v2014_v55, %v1882_v27  ;;  %v8625_v30 = vadd.f32 %v8622_v41, %v2023_v24  ;;  %v1892_v27 = vld [vmem:[#allocation9 + $0x158] sm:$0xff]  ;;  %v8635_v55 = vld [vmem:[#allocation11 + $0x28] sm:$0xff] }
 0x765   : > { %v6196_v50 = vpop.f32.mrf.mxu0 }
 0x766   : > { %v8619_v62 = vadd.f32 %v8616_v29, %v2015_v38  ;;  %2090 = vmax.xlane.f32.xlu0 %v8614_v16 }
 0x767   : > { %v2027_v56 = vpop.f32.mrf.mxu0 }
 0x768   : > { %2092 = vmax.xlane.f32.xlu1 %v8619_v62 }
 0x769   : > { %v6197_v35 = vpop.f32.mrf.mxu0 }
 0x76a   : > { %v2039_v17 = vadd.f32 %v6197_v35, %v1888_v48  ;;  %2096 = vmax.xlane.f32.xlu0 %v8625_v30  ;;  %v1890_v48 = vld [vmem:[#allocation9 + $0x148] sm:$0xff] }
 0x76b   : > { %v2030_v46 = vpop.f32.mrf.mxu0 }
 0x76c   : > { %v8632_v28 = vadd.f32 %v8629_v49, %v2039_v17  ;;  %v2031_v9 = vadd.f32 %v2030_v46, %v1886_v23  ;;  %v8647_v46 = vld [vmem:[#allocation11 + $0x48] sm:$0xff] }
 0x76d   : > { %v6200_v34 = vpop.f32.mrf.mxu0 }
 0x76e   : > { %2104 = vmax.xlane.f32.xlu1 %v8632_v28  ;;  %v8638_v24 = vadd.f32 %v8635_v55, %v2031_v9 }
 0x76f   : > { %v2043_v47 = vpop.f32.mrf.mxu0 }
 0x771   : > { %v6201_v38 = vpop.f32.mrf.mxu0 }
 0x772   : > { %v2055_v35 = vadd.f32 %v6201_v38, %v1892_v27  ;;  %2100 = vmax.xlane.f32.xlu1 %v8638_v24  ;;  %v1885_v27 = vld [vmem:[#allocation9 + $0x120] sm:$0xff]  ;;  %v8659_v38 = vld [vmem:[#allocation11 + $0x30] sm:$0xff] }
 0x773   : > { %v2046_v18 = vpop.f32.mrf.mxu0 }
 0x774   : > { %v8644_v23 = vadd.f32 %v8641_v26, %v2055_v35  ;;  %v2047_v17 = vadd.f32 %v2046_v18, %v1890_v48  ;;  %v1887_v18 = vld [vmem:[#allocation9 + $0x130] sm:$0xff]  ;;  %v2028_v35 = vadd.f32 %v2027_v56, %v1885_v27 }
 0x775   : > { %v2036_v9 = vadd.f32 %v6196_v50, %v1887_v18  ;;  %v6204_v12 = vpop.f32.mrf.mxu0  ;;  %v8671_v50 = vld [vmem:[#allocation11 + $0x50] sm:$0xff] }
 0x776   : > { %2112 = vmax.xlane.f32.xlu1 %v8644_v23  ;;  %v8650_v36 = vadd.f32 %v8647_v46, %v2047_v17  ;;  %v1891_v17 = vld [vmem:[#allocation9 + $0x150] sm:$0xff]  ;;  %v8668_v33 = vadd.f32 %v8665_v59, %v2028_v35 }
 0x777   : > { %v8662_v48 = vadd.f32 %v8659_v38, %v2036_v9  ;;  %v2052_v42 = vadd.f32 %v6200_v34, %v1891_v17  ;;  %v2044_v9 = vadd.f32 %v2043_v47, %v1889_v8  ;;  %v1895_v56 = vld [vmem:[#allocation9 + $0x170] sm:$0xff]  ;;  %v2059_v27 = vpop.f32.mrf.mxu0  ;;  %v1893_v17 = vld [vmem:[#allocation9 + $0x160] sm:$0xff] }
 0x778   : > { %v2068_v34 = vadd.f32 %v6204_v12, %v1895_v56  ;;  %v2060_v8 = vadd.f32 %v2059_v27, %v1893_v17  ;;  %v2243_v27 = vpop.permute.xlu1 %2242 }
 0x779   : > { %v8674_v18 = vadd.f32 %v8671_v50, %v2052_v42  ;;  %v8680_v35 = vadd.f32 %v8677_v1, %v2044_v9  ;;  %v6205_v0 = vpop.f32.mrf.mxu0  ;;  %v8694_v9 = vld [vmem:[#allocation11 + $0x78] sm:$0xff] }
 0x77a   : > { %2108 = vmax.xlane.f32.xlu1 %v8650_v36  ;;  %v8686_v42 = vadd.f32 %v8683_v21, %v2068_v34  ;;  %v2071_v47 = vadd.f32 %v6205_v0, %v1896_v63  ;;  %v8692_v12 = vadd.f32 %v8689_v11, %v2060_v8  ;;  %10654 = vst [vmem:[#allocation42_spill] sm:$0xff] %v8694_v9  ;;  %v8701_v63 = vld [vmem:[#allocation11 + $0x68] sm:$0xff] }
 0x77b   : > { %v2062_v53 = vpop.f32.mrf.mxu0  ;;  %10655 = vst [vmem:[#allocation43_spill] sm:$0xff] %v8701_v63 }
 0x77c   : > { %v8697_v56 = vadd.f32 %v8694_v9, %v2071_v47  ;;  %v2063_v6 = vadd.f32 %v2062_v53, %v1894_v40 }
 0x77e   : > { %v8704_v0 = vadd.f32 %v8701_v63, %v2063_v6 }
 0x780   : > { %2244 = vrot.lane.b32.xlu0 %v7987_v61, %s7600_s29 }
 0x78b   : > { %2489 = vrot.lane.b32.xlu1 %v7942_v15, %s7601_s11 }
 0x78f   : > { %2485 = vrot.lane.b32.xlu1 %v8013_v25, %s7601_s11 }
 0x79f   : > { %2102 = vmax.xlane.f32.xlu0 %v8662_v48 }
 0x7a3   : > { %2098 = vmax.xlane.f32.xlu0 %v8668_v33 }
 0x7a7   : > { %2110 = vmax.xlane.f32.xlu0 %v8674_v18 }
 0x7ab   : > { %2106 = vmax.xlane.f32.xlu0 %v8680_v35 }
 0x7af   : > { %2118 = vmax.xlane.f32.xlu0 %v8686_v42 }
 0x7b3   : > { %2120 = vmax.xlane.f32.xlu1 %v8697_v56  ;;  %2114 = vmax.xlane.f32.xlu0 %v8692_v12 }
 0x7b7   : > { %2116 = vmax.xlane.f32.xlu1 %v8704_v0 }
 0x7c9   : > { %2491 = vrot.lane.b32.xlu0 %v10632_v43, %s7601_s11 }
 0x7cd   : > { %2487 = vrot.lane.b32.xlu0 %v10633_v5, %s7601_s11 }
 0x7d1   : > { %2483 = vrot.lane.b32.xlu0 %v10634_v54, %s7601_s11 }
 0x7eb   : > { %v2095_v53 = vpop.xlane.xlu0 %2094 }
 0x7ec   : > { %v2124_v40 = vsub.f32 %v8608_v58, %v2095_v53 }
 0x7ee   : > { %v2142_v34 = vmul.f32 1.442695, %v2124_v40 }
 0x7ef   : > { %v2091_v17 = vpop.xlane.xlu0 %2090 }
 0x7f0   : > { %6949 = vpow2.f32 %v2142_v34  ;;  %v2122_v6 = vsub.f32 %v8614_v16, %v2091_v17 }
 0x7f1   : > { %v2093_v8 = vpop.xlane.xlu1 %2092 }
 0x7f2   : > { %v2138_v47 = vmul.f32 1.442695, %v2122_v6  ;;  %v2123_v43 = vsub.f32 %v8619_v62, %v2093_v8 }
 0x7f3   : > { %v2097_v63 = vpop.xlane.xlu0 %2096 }
 0x7f4   : > { %6951 = vpow2.f32 %v2138_v47  ;;  %v2125_v5 = vsub.f32 %v8625_v30, %v2097_v63  ;;  %v2140_v54 = vmul.f32 1.442695, %v2123_v43 }
 0x7f6   : > { %v2144_v9 = vmul.f32 1.442695, %v2125_v5 }
 0x7f7   : > { %v2245_v11 = vpop.permute.xlu0 %2244  ;;  %v2105_v43 = vpop.xlane.xlu1 %2104 }
 0x7f8   : > { %6953 = vpow2.f32 %v2144_v9  ;;  %6218 = vmatprep.subr.bf16.mxu1 %v2245_v11  ;;  %v2129_v40 = vsub.f32 %v8632_v28, %v2105_v43 }
 0x7f9   : > { %6219 = vmatpush3.bf16.msra.mxu1 %v2245_v11  ;;  %6955 = vpow2.f32 %v2140_v54 }
 0x7fa   : > { %6220 = vmatprep.subr.bf16.mxu1 %v2243_v27  ;;  %v2152_v47 = vmul.f32 1.442695, %v2129_v40 }
 0x7fb   : > { %v2101_v54 = vpop.xlane.xlu1 %2100 }
 0x7fc   : > { %v2127_v30 = vsub.f32 %v8638_v24, %v2101_v54 }
 0x7fd   : > { %v8717_v58 = vpop.eup %6949  ;;  %6221 = vmatpush3.bf16.msra.mxu1 %v2243_v27 }
 0x7fe   : > { %2174 = vadd.xlane.f32.xlu1 %v8717_v58  ;;  %v2148_v27 = vmul.f32 1.442695, %v2127_v30 }
 0x7ff   : > { %v2113_v11 = vpop.xlane.xlu1 %2112 }
 0x801   : > { %v8720_v16 = vpop.eup %6951 }
 0x802   : > { %2170 = vadd.xlane.f32.xlu1 %v8720_v16 }
 0x803   : > { %v2109_v34 = vpop.xlane.xlu1 %2108 }
 0x805   : > { %v8723_v62 = vpop.eup %6953 }
 0x806   : > { %2176 = vadd.xlane.f32.xlu1 %v8723_v62  ;;  %v8726_v5 = vpop.eup %6955 }
 0x807   : > { %v8736_v24 = vpop.permute.xlu1 %2489 }
 0x80a   : > { %2172 = vadd.xlane.f32.xlu1 %v8726_v5 }
 0x81b   : > { %2481 = vrot.lane.b32.xlu1 %v10635_v14, %s7601_s11 }
 0x828   : > { %v2103_v9 = vpop.xlane.xlu0 %2102 }
 0x829   : > { %v2128_v63 = vsub.f32 %v8662_v48, %v2103_v9  ;;  %v2133_v48 = vsub.f32 %v8644_v23, %v2113_v11 }
 0x82b   : > { %v2150_v53 = vmul.f32 1.442695, %v2128_v63  ;;  %v2160_v9 = vmul.f32 1.442695, %v2133_v48 }
 0x82c   : > { %v2099_v17 = vpop.xlane.xlu0 %2098 }
 0x82d   : > { %6957 = vpow2.f32 %v2150_v53  ;;  %v2126_v6 = vsub.f32 %v8668_v33, %v2099_v17  ;;  %v8740_v33 = vpop.permute.xlu1 %2485  ;;  %v2131_v53 = vsub.f32 %v8650_v36, %v2109_v34 }
 0x82e   : > { %6959 = vpow2.f32 %v2148_v27 }
 0x82f   : > { %v2146_v8 = vmul.f32 1.442695, %v2126_v6 }
 0x830   : > { %v2111_v14 = vpop.xlane.xlu0 %2110 }
 0x831   : > { %6961 = vpow2.f32 %v2146_v8  ;;  %v2132_v21 = vsub.f32 %v8674_v18, %v2111_v14 }
 0x832   : > { %6963 = vpow2.f32 %v2152_v47 }
 0x833   : > { %v2158_v54 = vmul.f32 1.442695, %v2132_v21 }
 0x834   : > { %v2107_v28 = vpop.xlane.xlu0 %2106 }
 0x835   : > { %6965 = vpow2.f32 %v2158_v54  ;;  %v2130_v43 = vsub.f32 %v8680_v35, %v2107_v28  ;;  %v2156_v35 = vmul.f32 1.442695, %v2131_v53 }
 0x837   : > { %v2154_v30 = vmul.f32 1.442695, %v2130_v43 }
 0x838   : > { %v2119_v63 = vpop.xlane.xlu0 %2118 }
 0x839   : > { %6967 = vpow2.f32 %v2154_v30  ;;  %v2136_v14 = vsub.f32 %v8686_v42, %v2119_v63 }
 0x83a   : > { %v8744_v18 = vpop.eup %6957  ;;  %6969 = vpow2.f32 %v2160_v9 }
 0x83b   : > { %v2166_v21 = vmul.f32 1.442695, %v2136_v14  ;;  %2182 = vadd.xlane.f32.xlu0 %v8744_v18  ;;  %v8747_v40 = vpop.eup %6959 }
 0x83c   : > { %v2121_v23 = vpop.xlane.xlu1 %2120  ;;  %v2115_v11 = vpop.xlane.xlu0 %2114 }
 0x83d   : > { %6971 = vpow2.f32 %v2166_v21  ;;  %v2134_v27 = vsub.f32 %v8692_v12, %v2115_v11  ;;  %v2137_v36 = vsub.f32 %v8697_v56, %v2121_v23 }
 0x83e   : > { %v8750_v17 = vpop.eup %6961  ;;  %6973 = vpow2.f32 %v2156_v35 }
 0x83f   : > { %v2162_v34 = vmul.f32 1.442695, %v2134_v27  ;;  %2180 = vadd.xlane.f32.xlu1 %v8747_v40  ;;  %2178 = vadd.xlane.f32.xlu0 %v8750_v17  ;;  %v8757_v8 = vpop.eup %6963  ;;  %v2168_v54 = vmul.f32 1.442695, %v2137_v36 }
 0x840   : > { %v2117_v42 = vpop.xlane.xlu1 %2116  ;;  %v8755_v6 = vpop.permute.xlu0 %2491 }
 0x841   : > { %v2135_v47 = vsub.f32 %v8704_v0, %v2117_v42  ;;  %6630 = vmatprep.subr.msk.bf16.mxu1 %vm865_vm0, %v8755_v6  ;;  %6975 = vpow2.f32 %v2162_v34 }
 0x842   : > { %v8762_v12 = vpop.eup %6965 }
 0x843   : > { %v2164_v56 = vmul.f32 1.442695, %v2135_v47  ;;  %2184 = vadd.xlane.f32.xlu0 %v8757_v8  ;;  %2190 = vadd.xlane.f32.xlu1 %v8762_v12 }
 0x845   : > { %6977 = vpow2.f32 %v2164_v56 }
 0x846   : > { %v8766_v48 = vpop.eup %6967  ;;  %6979 = vpow2.f32 %v2168_v54 }
 0x847   : > { %2186 = vadd.xlane.f32.xlu1 %v8766_v48  ;;  %v8769_v28 = vpop.eup %6969 }
 0x84a   : > { %v8771_v0 = vpop.eup %6971 }
 0x84b   : > { %2192 = vadd.xlane.f32.xlu1 %v8769_v28  ;;  %2198 = vadd.xlane.f32.xlu0 %v8771_v0  ;;  %v8775_v43 = vpop.eup %6973 }
 0x84e   : > { %v8777_v30 = vpop.eup %6975 }
 0x84f   : > { %2188 = vadd.xlane.f32.xlu1 %v8775_v43  ;;  %2194 = vadd.xlane.f32.xlu0 %v8777_v30 }
 0x852   : > { %v8781_v9 = vpop.eup %6977 }
 0x853   : > { %v8783_v63 = vpop.eup %6979  ;;  %2196 = vadd.xlane.f32.xlu1 %v8781_v9 }
 0x854   : > { %2200 = vadd.xlane.f32.xlu0 %v8783_v63 }
 0x864   : > { %2477 = vrot.lane.b32.xlu1 %v8053_v10, %s7601_s11 }
 0x868   : > { %2463 = vrot.lane.b32.xlu1 %v7865_v51, %s7601_s11 }
 0x86a   : > { %2479 = vrot.lane.b32.xlu0 %v8043_v3, %s7601_s11 }
 0x86c   : > { %2467 = vrot.lane.b32.xlu1 %v7891_v7, %s7601_s11 }
 0x86e   : > { %2461 = vrot.lane.b32.xlu0 %v7855_v44, %s7601_s11 }
 0x870   : > { %2471 = vrot.lane.b32.xlu1 %v7914_v32, %s7601_s11 }
 0x872   : > { %2465 = vrot.lane.b32.xlu0 %v7877_v60, %s7601_s11 }
 0x874   : > { %2475 = vrot.lane.b32.xlu1 %v7963_v31, %s7601_s11 }
 0x876   : > { %2469 = vrot.lane.b32.xlu0 %v7902_v19, %s7601_s11 }
 0x878   : > { %2818 = vrot.lane.b32.xlu1 %v7925_v57, %s7601_s11 }
 0x87a   : > { %2473 = vrot.lane.b32.xlu0 %v7939_v13, %s7601_s11 }
 0x87c   : > { %2810 = vrot.lane.b32.xlu1 %v7973_v37, %s7601_s11 }
 0x87e   : > { %2820 = vrot.lane.b32.xlu0 %v7922_v52, %s7601_s11 }
 0x880   : > { %2806 = vrot.lane.b32.xlu1 %v7997_v45, %s7601_s11 }
 0x882   : > { %2816 = vrot.lane.b32.xlu0 %v7934_v4, %s7601_s11 }
 0x886   : > { %2814 = vrot.lane.b32.xlu0 %v7948_v22, %s7601_s11 }
 0x887   : > { %v2175_v53 = vpop.xlane.xlu1 %2174 }
 0x88a   : > { %2812 = vrot.lane.b32.xlu0 %v7957_v2, %s7601_s11 }
 0x88b   : > { %v2171_v14 = vpop.xlane.xlu1 %2170 }
 0x88f   : > { %v2177_v21 = vpop.xlane.xlu1 %2176 }
 0x890   : > { %6981 = vrcp.f32 %v2177_v21 }
 0x891   : > { %6983 = vrcp.f32 %v2171_v14  ;;  %v2488_v14 = vpop.permute.xlu0 %2487 }
 0x892   : > { %6985 = vrcp.f32 %v2175_v53  ;;  %v2539_v53 = vsel %vm865_vm0, %v8755_v6, 0 }
 0x893   : > { %v2173_v23 = vpop.xlane.xlu1 %2172 }
 0x894   : > { %6987 = vrcp.f32 %v2173_v23 }
 0x89d   : > { %v6982_v11 = vpop.eup %6981 }
 0x89e   : > { %v6984_v35 = vpop.eup %6983  ;;  %v2221_v34 = vmul.f32 %v6982_v11, %v8723_v62  ;;  %v2536_v62 = vsel %vm865_vm0, %v8736_v24, 0 }
 0x89f   : > { %v6986_v27 = vpop.eup %6985  ;;  %v2218_v42 = vmul.f32 %v6984_v35, %v8720_v16  ;;  %v2484_v16 = vpop.permute.xlu0 %2483 }
 0x8a0   : > { %v2220_v54 = vmul.f32 %v6986_v27, %v8717_v58  ;;  %v2533_v58 = vsel %vm865_vm0, %v2488_v14, 0 }
 0x8a1   : > { %v6988_v36 = vpop.eup %6987 }
 0x8a2   : > { %v2219_v47 = vmul.f32 %v6988_v36, %v8726_v5  ;;  %v2235_v2 = vpack.c.bf16 %v2221_v34, %v2220_v54  ;;  %v2482_v5 = vpop.permute.xlu1 %2481 }
 0x8a4   : > { %v2234_v56 = vpack.c.bf16 %v2219_v47, %v2218_v42 }
 0x8a6   : > { %6222 = vmatprep.mubr.bf16.mxu1 %v2234_v56 }
 0x8a7   : > { %6223 = vmatmul.mubr.bf16.vlgmr.msra.gmra.mxu1 %v2235_v2  ;;  %v2530_v2 = vsel %vm865_vm0, %v8740_v33, 0 }
 0x8a8   : > { %6239 = vmatpush3.bf16.xpose.msra.mxu1 %v2539_v53 }
 0x8a9   : > { %6631 = vmatprep.subr.msk.bf16.mxu1 %vm865_vm0, %v8736_v24  ;;  %v2527_v24 = vsel %vm865_vm0, %v2484_v16, 0 }
 0x8b0   : > { %6241 = vmatpush3.bf16.xpose.msra.mxu1 %v2536_v62 }
 0x8b1   : > { %6632 = vmatprep.subr.msk.bf16.mxu1 %vm865_vm0, %v2488_v14 }
 0x8b8   : > { %6243 = vmatpush3.bf16.xpose.msra.mxu1 %v2533_v58 }
 0x8b9   : > { %6633 = vmatprep.subr.msk.bf16.mxu1 %vm865_vm0, %v8740_v33  ;;  %v2524_v33 = vsel %vm865_vm0, %v2482_v5, 0 }
 0x8c0   : > { %6245 = vmatpush3.bf16.xpose.msra.mxu1 %v2530_v2 }
 0x8c1   : > { %6634 = vmatprep.subr.msk.bf16.mxu1 %vm865_vm0, %v2484_v16 }
 0x8c4   : > { %v2183_v6 = vpop.xlane.xlu0 %2182 }
 0x8c8   : > { %6247 = vmatpush3.bf16.xpose.msra.mxu1 %v2527_v24  ;;  %v2181_v21 = vpop.xlane.xlu1 %2180  ;;  %v2179_v23 = vpop.xlane.xlu0 %2178 }
 0x8c9   : > { %6989 = vrcp.f32 %v2181_v21  ;;  %6635 = vmatprep.subr.msk.bf16.mxu1 %vm865_vm0, %v2482_v5 }
 0x8ca   : > { %6991 = vrcp.f32 %v2179_v23 }
 0x8cb   : > { %6993 = vrcp.f32 %v2183_v6 }
 0x8cc   : > { %v2191_v11 = vpop.xlane.xlu1 %2190  ;;  %v2185_v35 = vpop.xlane.xlu0 %2184 }
 0x8cd   : > { %6995 = vrcp.f32 %v2185_v35 }
 0x8d0   : > { %6249 = vmatpush3.bf16.xpose.msra.mxu1 %v2524_v33  ;;  %v2187_v27 = vpop.xlane.xlu1 %2186 }
 0x8d4   : > { %v2193_v36 = vpop.xlane.xlu1 %2192  ;;  %v2199_v34 = vpop.xlane.xlu0 %2198 }
 0x8d5   : > { %6997 = vrcp.f32 %v2193_v36 }
 0x8d6   : > { %v6990_v42 = vpop.eup %6989  ;;  %6999 = vrcp.f32 %v2187_v27 }
 0x8d7   : > { %v6992_v47 = vpop.eup %6991  ;;  %v2223_v54 = vmul.f32 %v6990_v42, %v8747_v40  ;;  %7001 = vrcp.f32 %v2191_v11 }
 0x8d8   : > { %v2189_v56 = vpop.xlane.xlu1 %2188  ;;  %v2222_v53 = vmul.f32 %v6992_v47, %v8750_v17  ;;  %v6994_v62 = vpop.eup %6993 }
 0x8d9   : > { %7003 = vrcp.f32 %v2189_v56  ;;  %v2195_v14 = vpop.xlane.xlu0 %2194  ;;  %v2224_v5 = vmul.f32 %v6994_v62, %v8744_v18 }
 0x8da   : > { %v2236_v58 = vpack.c.bf16 %v2223_v54, %v2222_v53  ;;  %v6996_v2 = vpop.eup %6995  ;;  %7005 = vrcp.f32 %v2195_v14 }
 0x8db   : > { %v2225_v6 = vmul.f32 %v6996_v2, %v8757_v8 }
 0x8dc   : > { %6226 = vmatprep.mubr.bf16.mxu1 %v2236_v58  ;;  %v2197_v16 = vpop.xlane.xlu1 %2196 }
 0x8dd   : > { %7007 = vrcp.f32 %v2197_v16  ;;  %v2201_v24 = vpop.xlane.xlu0 %2200  ;;  %v2237_v40 = vpack.c.bf16 %v2225_v6, %v2224_v5 }
 0x8de   : > { %7009 = vrcp.f32 %v2201_v24 }
 0x8df   : > { %7011 = vrcp.f32 %v2199_v34  ;;  %6227 = vmatmul.mubr.bf16.gmra.mxu1 %v2237_v40 }
 0x8e0   : > { %v2478_v21 = vpop.permute.xlu1 %2477 }
 0x8e1   : > { %v2480_v17 = vpop.permute.xlu0 %2479  ;;  %v2518_v58 = vsel %vm865_vm0, %v2478_v21, 0 }
 0x8e2   : > { %6636 = vmatprep.subr.msk.bf16.mxu1 %vm865_vm0, %v2480_v17  ;;  %v2521_v23 = vsel %vm865_vm0, %v2480_v17, 0  ;;  %v6998_v11 = vpop.eup %6997 }
 0x8e3   : > { %6251 = vmatpush3.bf16.xpose.msra.mxu1 %v2521_v23  ;;  %v7000_v35 = vpop.eup %6999  ;;  %v2229_v36 = vmul.f32 %v6998_v11, %v8769_v28 }
 0x8e4   : > { %6637 = vmatprep.subr.msk.bf16.mxu1 %vm865_vm0, %v2478_v21  ;;  %v2464_v18 = vpop.permute.xlu1 %2463  ;;  %v7002_v33 = vpop.eup %7001  ;;  %v2226_v34 = vmul.f32 %v7000_v35, %v8766_v48 }
 0x8e5   : > { %v2462_v8 = vpop.permute.xlu0 %2461  ;;  %v2228_v56 = vmul.f32 %v7002_v33, %v8762_v12 }
 0x8e6   : > { %v7004_v27 = vpop.eup %7003 }
 0x8e7   : > { %v2227_v42 = vmul.f32 %v7004_v27, %v8775_v43  ;;  %v7006_v47 = vpop.eup %7005  ;;  %v2239_v2 = vpack.c.bf16 %v2229_v36, %v2228_v56 }
 0x8e8   : > { %v2468_v54 = vpop.permute.xlu1 %2467  ;;  %v2230_v5 = vmul.f32 %v7006_v47, %v8777_v30 }
 0x8e9   : > { %v2466_v53 = vpop.permute.xlu0 %2465  ;;  %v2238_v62 = vpack.c.bf16 %v2227_v42, %v2226_v34 }
 0x8ea   : > { %v7008_v14 = vpop.eup %7007 }
 0x8eb   : > { %v7010_v16 = vpop.eup %7009  ;;  %6253 = vmatpush3.bf16.xpose.msra.mxu1 %v2518_v58  ;;  %6230 = vmatprep.mubr.bf16.mxu1 %v2238_v62  ;;  %v2231_v28 = vmul.f32 %v7008_v14, %v8781_v9 }
 0x8ec   : > { %v2472_v48 = vpop.permute.xlu1 %2471  ;;  %6231 = vmatmul.mubr.bf16.gmra.mxu1 %v2239_v2  ;;  %v7012_v43 = vpop.eup %7011  ;;  %v2233_v12 = vmul.f32 %v7010_v16, %v8783_v63 }
 0x8ed   : > { %v2470_v6 = vpop.permute.xlu0 %2469  ;;  %v2240_v24 = vpack.c.bf16 %v2231_v28, %v2230_v5  ;;  %v2232_v40 = vmul.f32 %v7012_v43, %v8771_v0  ;;  %v2447_v5 = vld [vmem:[#allocation9 + $0x190] sm:$0xff] }
 0x8ef   : > { %6234 = vmatprep.mubr.bf16.mxu1 %v2240_v24  ;;  %v2241_v23 = vpack.c.bf16 %v2233_v12, %v2232_v40  ;;  %v2448_v40 = vld [vmem:[#allocation9 + $0x198] sm:$0xff] }
 0x8f0   : > { %v2476_v17 = vpop.permute.xlu1 %2475 }
 0x8f1   : > { %v2474_v21 = vpop.permute.xlu0 %2473 }
 0x8f4   : > { %6235 = vmatmul.mubr.bf16.gmra.mxu1 %v2241_v23  ;;  %v2819_v30 = vpop.permute.xlu1 %2818 }
 0x8f5   : > { %v2821_v11 = vpop.permute.xlu0 %2820  ;;  %6254 = vmatprep.mubr.msk.bf16.mxu1 %vm865_vm0, %v2462_v8 }
 0x8f6   : > { %6270 = vmatprep.subr.bf16.mxu0 %v2821_v11 }
 0x8f7   : > { %6271 = vmatpush3.bf16.msra.mxu0 %v2821_v11 }
 0x8f8   : > { %6272 = vmatprep.subr.bf16.mxu0 %v2819_v30  ;;  %v2811_v35 = vpop.permute.xlu1 %2810 }
 0x8f9   : > { %v2817_v9 = vpop.permute.xlu0 %2816 }
 0x8fb   : > { %6273 = vmatpush3.bf16.msra.mxu0 %v2819_v30 }
 0x8fc   : > { %6274 = vmatprep.subr.bf16.mxu0 %v2817_v9  ;;  %6255 = vmatmul.mubr.msk.bf16.vlgmr.msra.gmra.mxu1 %vm865_vm0, %v2464_v18 }
 0x8fd   : > { %v2815_v63 = vpop.permute.xlu0 %2814  ;;  %6258 = vmatprep.mubr.msk.bf16.mxu1 %vm865_vm0, %v2466_v53 }
 0x8ff   : > { %6275 = vmatpush3.bf16.msra.mxu0 %v2817_v9 }
 0x900   : > { %6276 = vmatprep.subr.bf16.mxu0 %v2815_v63 }
 0x901   : > { %v2813_v0 = vpop.permute.xlu0 %2812 }
 0x903   : > { %6277 = vmatpush3.bf16.msra.mxu0 %v2815_v63 }
 0x904   : > { %6278 = vmatprep.subr.bf16.mxu0 %v2813_v0  ;;  %6259 = vmatmul.mubr.msk.bf16.gmra.mxu1 %vm865_vm0, %v2468_v54 }
 0x905   : > { %6262 = vmatprep.mubr.msk.bf16.mxu1 %vm865_vm0, %v2470_v6 }
 0x907   : > { %6279 = vmatpush3.bf16.msra.mxu0 %v2813_v0 }
 0x908   : > { %6280 = vmatprep.subr.bf16.mxu0 %v2811_v35 }
 0x90b   : > { %6281 = vmatpush3.bf16.msra.mxu0 %v2811_v35  ;;  %v2452_v35 = vld [vmem:[#allocation9 + $0x1b8] sm:$0xff] }
 0x90c   : > { %6263 = vmatmul.mubr.msk.bf16.gmra.mxu1 %vm865_vm0, %v2472_v48  ;;  %v2445_v48 = vld [vmem:[#allocation9 + $0x180] sm:$0xff] }
 0x90d   : > { %6266 = vmatprep.mubr.msk.bf16.mxu1 %vm865_vm0, %v2474_v21  ;;  %v2446_v21 = vld [vmem:[#allocation9 + $0x188] sm:$0xff] }
 0x914   : > { %6267 = vmatmul.mubr.msk.bf16.gmra.mxu1 %vm865_vm0, %v2476_v17 }
 0x967   : > { %v8865_v18 = vpop.f32.mrf.mxu1 }
 0x968   : > { %10656 = vst [vmem:[#allocation44_spill] sm:$0xff] %v8865_v18 }
 0x969   : > { %v8867_v33 = vpop.f32.mrf.mxu1 }
 0x96a   : > { %10657 = vst [vmem:[#allocation45_spill] sm:$0xff] %v8867_v33 }
 0x96b   : > { %v8869_v8 = vpop.f32.mrf.mxu1 }
 0x96c   : > { %10658 = vst [vmem:[#allocation46_spill] sm:$0xff] %v8869_v8  ;;  %v3022_v8 = vld [vmem:[#allocation9 + $0x268] sm:$0xff] }
 0x96d   : > { %v8871_v27 = vpop.f32.mrf.mxu1 }
 0x96e   : > { %10659 = vst [vmem:[#allocation47_spill] sm:$0xff] %v8871_v27 }
 0x99f   : > { %v8873_v36 = vpop.f32.mrf.mxu1 }
 0x9a0   : > { %10660 = vst [vmem:[#allocation48_spill] sm:$0xff] %v8873_v36 }
 0x9a1   : > { %v8875_v34 = vpop.f32.mrf.mxu1 }
 0x9a2   : > { %10661 = vst [vmem:[#allocation49_spill] sm:$0xff] %v8875_v34 }
 0x9a3   : > { %v8877_v42 = vpop.f32.mrf.mxu1 }
 0x9a4   : > { %10662 = vst [vmem:[#allocation50_spill] sm:$0xff] %v8877_v42 }
 0x9a5   : > { %v8879_v47 = vpop.f32.mrf.mxu1 }
 0x9a6   : > { %10663 = vst [vmem:[#allocation51_spill] sm:$0xff] %v8879_v47 }
 0x9ac   : > { %v8881_v54 = vpop.f32.mrf.mxu1 }
 0x9ad   : > { %10664 = vst [vmem:[#allocation52_spill] sm:$0xff] %v8881_v54 }
 0x9ae   : > { %v8883_v56 = vpop.f32.mrf.mxu1 }
 0x9af   : > { %10665 = vst [vmem:[#allocation53_spill] sm:$0xff] %v8883_v56  ;;  %v3017_v56 = vld [vmem:[#allocation9 + $0x240] sm:$0xff] }
 0x9b0   : > { %v8885_v53 = vpop.f32.mrf.mxu1 }
 0x9b1   : > { %10666 = vst [vmem:[#allocation54_spill] sm:$0xff] %v8885_v53 }
 0x9b2   : > { %v8887_v62 = vpop.f32.mrf.mxu1 }
 0x9b3   : > { %10667 = vst [vmem:[#allocation55_spill] sm:$0xff] %v8887_v62  ;;  %v9241_v62 = vld [vmem:[#allocation11 + $0x60] sm:$0xff] }
 0x9b4   : > { %v8889_v14 = vpop.f32.mrf.mxu1  ;;  %10698 = vst [vmem:[#allocation73_spill] sm:$0xff] %v9241_v62 }
 0x9b5   : > { %10668 = vst [vmem:[#allocation56_spill] sm:$0xff] %v8889_v14 }
 0x9b6   : > { %v8891_v58 = vpop.f32.mrf.mxu1 }
 0x9b7   : > { %10669 = vst [vmem:[#allocation57_spill] sm:$0xff] %v8891_v58 }
 0x9b8   : > { %v8893_v2 = vpop.f32.mrf.mxu1 }
 0x9b9   : > { %10670 = vst [vmem:[#allocation58_spill] sm:$0xff] %v8893_v2 }
 0x9ba   : > { %v8895_v16 = vpop.f32.mrf.mxu1 }
 0x9bb   : > { %10671 = vst [vmem:[#allocation59_spill] sm:$0xff] %v8895_v16 }
 0x9bc   : > { %v6256_v28 = vpop.f32.mrf.mxu1 }
 0x9bd   : > { %v2584_v43 = vadd.f32 %v6256_v28, %v2447_v5 }
 0x9be   : > { %v2575_v6 = vpop.f32.mrf.mxu1 }
 0x9bf   : > { %v8898_v24 = vadd.f32 %v8605_v20, %v2584_v43  ;;  %v2576_v12 = vadd.f32 %v2575_v6, %v2445_v48  ;;  %v2450_v48 = vld [vmem:[#allocation9 + $0x1a8] sm:$0xff] }
 0x9c0   : > { %v6257_v17 = vpop.f32.mrf.mxu1 }
 0x9c1   : > { %2658 = vmax.xlane.f32.xlu0 %v8898_v24  ;;  %v8902_v11 = vadd.f32 %v8611_v39, %v2576_v12  ;;  %v2587_v30 = vadd.f32 %v6257_v17, %v2448_v40  ;;  %v2456_v17 = vld [vmem:[#allocation9 + $0x1d8] sm:$0xff] }
 0x9c2   : > { %v2578_v23 = vpop.f32.mrf.mxu1 }
 0x9c3   : > { %v2579_v9 = vadd.f32 %v2578_v23, %v2446_v21  ;;  %v8909_v5 = vadd.f32 %v8622_v41, %v2587_v30  ;;  %v2454_v23 = vld [vmem:[#allocation9 + $0x1c8] sm:$0xff] }
 0x9c4   : > { %v6260_v63 = vpop.f32.mrf.mxu1 }
 0x9c5   : > { %v8905_v0 = vadd.f32 %v8616_v29, %v2579_v9  ;;  %2654 = vmax.xlane.f32.xlu0 %v8902_v11 }
 0x9c6   : > { %v2591_v20 = vpop.f32.mrf.mxu1 }
 0x9c7   : > { %2656 = vmax.xlane.f32.xlu1 %v8905_v0 }
 0x9c8   : > { %v6261_v28 = vpop.f32.mrf.mxu1 }
 0x9c9   : > { %v2603_v43 = vadd.f32 %v6261_v28, %v2452_v35  ;;  %2660 = vmax.xlane.f32.xlu0 %v8909_v5 }
 0x9ca   : > { %v2594_v39 = vpop.f32.mrf.mxu1 }
 0x9cb   : > { %v8914_v6 = vadd.f32 %v8629_v49, %v2603_v43  ;;  %v2595_v29 = vadd.f32 %v2594_v39, %v2450_v48  ;;  %v2449_v48 = vld [vmem:[#allocation9 + $0x1a0] sm:$0xff]  ;;  %v2455_v39 = vld [vmem:[#allocation9 + $0x1d0] sm:$0xff] }
 0x9cc   : > { %v6264_v12 = vpop.f32.mrf.mxu1 }
 0x9cd   : > { %2668 = vmax.xlane.f32.xlu1 %v8914_v6  ;;  %v8918_v41 = vadd.f32 %v8635_v55, %v2595_v29 }
 0x9ce   : > { %v2607_v40 = vpop.f32.mrf.mxu1 }
 0x9d0   : > { %v6265_v21 = vpop.f32.mrf.mxu1 }
 0x9d1   : > { %v2619_v30 = vadd.f32 %v6265_v21, %v2456_v17  ;;  %2664 = vmax.xlane.f32.xlu1 %v8918_v41  ;;  %v2616_v17 = vadd.f32 %v6264_v12, %v2455_v39  ;;  %v2453_v21 = vld [vmem:[#allocation9 + $0x1c0] sm:$0xff]  ;;  %v10672_v12 = vld [vmem:[#allocation40_spill] sm:$0xff] }
 0x9d2   : > { %v2610_v9 = vpop.f32.mrf.mxu1 }
 0x9d3   : > { %v8922_v35 = vadd.f32 %v8641_v26, %v2619_v30  ;;  %v2611_v49 = vadd.f32 %v2610_v9, %v2454_v23  ;;  %v2451_v26 = vld [vmem:[#allocation9 + $0x1b0] sm:$0xff]  ;;  %v8944_v30 = vadd.f32 %v8671_v50, %v2616_v17  ;;  %v10673_v17 = vld [vmem:[#allocation41_spill] sm:$0xff] }
 0x9d4   : > { %v2600_v55 = vadd.f32 %v6260_v63, %v2451_v26  ;;  %v6268_v23 = vpop.f32.mrf.mxu1  ;;  %v2608_v63 = vadd.f32 %v2607_v40, %v2453_v21  ;;  %v2459_v9 = vld [vmem:[#allocation9 + $0x1f0] sm:$0xff]  ;;  %v2457_v26 = vld [vmem:[#allocation9 + $0x1e0] sm:$0xff]  ;;  %v2458_v40 = vld [vmem:[#allocation9 + $0x1e8] sm:$0xff] }
 0x9d5   : > { %2676 = vmax.xlane.f32.xlu1 %v8922_v35  ;;  %v8926_v28 = vadd.f32 %v8647_v46, %v2611_v49  ;;  %v2592_v46 = vadd.f32 %v2591_v20, %v2449_v48  ;;  %v2632_v20 = vadd.f32 %v6268_v23, %v2459_v9  ;;  %v10675_v9 = vld [vmem:[#allocation43_spill] sm:$0xff] }
 0x9d6   : > { %v8936_v43 = vadd.f32 %v8659_v38, %v2600_v55  ;;  %v2623_v49 = vpop.f32.mrf.mxu1  ;;  %v8948_v38 = vadd.f32 %v8677_v1, %v2608_v63  ;;  %v10674_v1 = vld [vmem:[#allocation42_spill] sm:$0xff] }
 0x9d7   : > { %v8940_v29 = vadd.f32 %v8665_v59, %v2592_v46  ;;  %v2460_v59 = vld [vmem:[#allocation9 + $0x1f8] sm:$0xff]  ;;  %v8952_v48 = vadd.f32 %v10672_v12, %v2632_v20  ;;  %v2624_v46 = vadd.f32 %v2623_v49, %v2457_v26  ;;  %v10676_v49 = vld [vmem:[#allocation18_spill] sm:$0xff]  ;;  %v10677_v26 = vld [vmem:[#allocation21_spill] sm:$0xff] }
 0x9d8   : > { %v6269_v55 = vpop.f32.mrf.mxu1 }
 0x9d9   : > { %2672 = vmax.xlane.f32.xlu1 %v8926_v28  ;;  %v2635_v50 = vadd.f32 %v6269_v55, %v2460_v59  ;;  %v8956_v21 = vadd.f32 %v10673_v17, %v2624_v46  ;;  %v10678_v59 = vld [vmem:[#allocation22_spill] sm:$0xff]  ;;  %v2807_v46 = vpop.permute.xlu1 %2806 }
 0x9da   : > { %v2626_v39 = vpop.f32.mrf.mxu1 }
 0x9db   : > { %v8959_v63 = vadd.f32 %v10674_v1, %v2635_v50  ;;  %v2627_v23 = vadd.f32 %v2626_v39, %v2458_v40 }
 0x9dd   : > { %v8964_v20 = vadd.f32 %v10675_v9, %v2627_v23 }
 0x9df   : > { %2808 = vrot.lane.b32.xlu0 %v7987_v61, %s7601_s11 }
 0x9ea   : > { %3053 = vrot.lane.b32.xlu1 %v7942_v15, %s7602_s12 }
 0x9ee   : > { %3049 = vrot.lane.b32.xlu1 %v8013_v25, %s7602_s12 }
 0x9fe   : > { %2666 = vmax.xlane.f32.xlu0 %v8936_v43 }
 0xa02   : > { %2662 = vmax.xlane.f32.xlu0 %v8940_v29 }
 0xa06   : > { %2674 = vmax.xlane.f32.xlu0 %v8944_v30 }
 0xa0a   : > { %2670 = vmax.xlane.f32.xlu0 %v8948_v38 }
 0xa0e   : > { %2682 = vmax.xlane.f32.xlu0 %v8952_v48 }
 0xa12   : > { %2684 = vmax.xlane.f32.xlu1 %v8959_v63  ;;  %2678 = vmax.xlane.f32.xlu0 %v8956_v21 }
 0xa16   : > { %2680 = vmax.xlane.f32.xlu1 %v8964_v20 }
 0xa28   : > { %3055 = vrot.lane.b32.xlu0 %v10676_v49, %s7602_s12 }
 0xa2c   : > { %3051 = vrot.lane.b32.xlu0 %v10677_v26, %s7602_s12 }
 0xa30   : > { %3047 = vrot.lane.b32.xlu0 %v10678_v59, %s7602_s12 }
 0xa4a   : > { %v2659_v55 = vpop.xlane.xlu0 %2658 }
 0xa4b   : > { %v2688_v12 = vsub.f32 %v8898_v24, %v2659_v55 }
 0xa4d   : > { %v2706_v50 = vmul.f32 1.442695, %v2688_v12 }
 0xa4e   : > { %v2655_v39 = vpop.xlane.xlu0 %2654 }
 0xa4f   : > { %7013 = vpow2.f32 %v2706_v50  ;;  %v2686_v40 = vsub.f32 %v8902_v11, %v2655_v39 }
 0xa50   : > { %v2657_v17 = vpop.xlane.xlu1 %2656 }
 0xa51   : > { %v2702_v1 = vmul.f32 1.442695, %v2686_v40  ;;  %v2687_v9 = vsub.f32 %v8905_v0, %v2657_v17 }
 0xa52   : > { %v2661_v23 = vpop.xlane.xlu0 %2660 }
 0xa53   : > { %7015 = vpow2.f32 %v2702_v1  ;;  %v2689_v14 = vsub.f32 %v8909_v5, %v2661_v23  ;;  %v2704_v34 = vmul.f32 1.442695, %v2687_v9 }
 0xa55   : > { %v2708_v36 = vmul.f32 1.442695, %v2689_v14 }
 0xa56   : > { %v2809_v58 = vpop.permute.xlu0 %2808 }
 0xa57   : > { %7017 = vpow2.f32 %v2708_v36  ;;  %6282 = vmatprep.subr.bf16.mxu0 %v2809_v58  ;;  %v2669_v36 = vpop.xlane.xlu1 %2668 }
 0xa58   : > { %6283 = vmatpush3.bf16.msra.mxu0 %v2809_v58  ;;  %7019 = vpow2.f32 %v2704_v34  ;;  %v10679_v34 = vld [vmem:[#allocation23_spill] sm:$0xff]  ;;  %v2693_v39 = vsub.f32 %v8914_v6, %v2669_v36 }
 0xa59   : > { %6284 = vmatprep.subr.bf16.mxu0 %v2807_v46 }
 0xa5a   : > { %v2716_v2 = vmul.f32 1.442695, %v2693_v39 }
 0xa5b   : > { %v2665_v58 = vpop.xlane.xlu1 %2664 }
 0xa5c   : > { %v8977_v24 = vpop.eup %7013  ;;  %6285 = vmatpush3.bf16.msra.mxu0 %v2807_v46  ;;  %v2691_v55 = vsub.f32 %v8918_v41, %v2665_v58 }
 0xa5d   : > { %2738 = vadd.xlane.f32.xlu1 %v8977_v24 }
 0xa5e   : > { %v2712_v40 = vmul.f32 1.442695, %v2691_v55 }
 0xa5f   : > { %v2677_v5 = vpop.xlane.xlu1 %2676 }
 0xa60   : > { %v8980_v11 = vpop.eup %7015 }
 0xa61   : > { %2734 = vadd.xlane.f32.xlu1 %v8980_v11 }
 0xa63   : > { %v2673_v17 = vpop.xlane.xlu1 %2672 }
 0xa64   : > { %v8983_v0 = vpop.eup %7017 }
 0xa65   : > { %2740 = vadd.xlane.f32.xlu1 %v8983_v0  ;;  %v8986_v14 = vpop.eup %7019 }
 0xa67   : > { %v8996_v41 = vpop.permute.xlu1 %3053 }
 0xa69   : > { %2736 = vadd.xlane.f32.xlu1 %v8986_v14 }
 0xa7a   : > { %3045 = vrot.lane.b32.xlu1 %v10679_v34, %s7602_s12 }
 0xa87   : > { %v2667_v12 = vpop.xlane.xlu0 %2666 }
 0xa88   : > { %v2692_v46 = vsub.f32 %v8936_v43, %v2667_v12  ;;  %v2697_v43 = vsub.f32 %v8922_v35, %v2677_v5 }
 0xa8a   : > { %v2714_v50 = vmul.f32 1.442695, %v2692_v46  ;;  %v2724_v12 = vmul.f32 1.442695, %v2697_v43 }
 0xa8b   : > { %v2663_v1 = vpop.xlane.xlu0 %2662 }
 0xa8c   : > { %7021 = vpow2.f32 %v2714_v50  ;;  %v2690_v23 = vsub.f32 %v8940_v29, %v2663_v1  ;;  %v9000_v29 = vpop.permute.xlu1 %3049  ;;  %v2695_v50 = vsub.f32 %v8926_v28, %v2673_v17 }
 0xa8d   : > { %7023 = vpow2.f32 %v2712_v40 }
 0xa8e   : > { %v2710_v9 = vmul.f32 1.442695, %v2690_v23 }
 0xa8f   : > { %v2675_v42 = vpop.xlane.xlu0 %2674 }
 0xa90   : > { %7025 = vpow2.f32 %v2710_v9  ;;  %v2696_v16 = vsub.f32 %v8944_v30, %v2675_v42 }
 0xa91   : > { %7027 = vpow2.f32 %v2716_v2 }
 0xa92   : > { %v2722_v58 = vmul.f32 1.442695, %v2696_v16 }
 0xa93   : > { %v2671_v6 = vpop.xlane.xlu0 %2670 }
 0xa94   : > { %7029 = vpow2.f32 %v2722_v58  ;;  %v2694_v36 = vsub.f32 %v8948_v38, %v2671_v6  ;;  %v2720_v38 = vmul.f32 1.442695, %v2695_v50 }
 0xa96   : > { %v2718_v55 = vmul.f32 1.442695, %v2694_v36 }
 0xa97   : > { %v2683_v46 = vpop.xlane.xlu0 %2682 }
 0xa98   : > { %7031 = vpow2.f32 %v2718_v55  ;;  %v2700_v42 = vsub.f32 %v8952_v48, %v2683_v46 }
 0xa99   : > { %v9004_v30 = vpop.eup %7021  ;;  %7033 = vpow2.f32 %v2724_v12 }
 0xa9a   : > { %v2730_v16 = vmul.f32 1.442695, %v2700_v42  ;;  %2746 = vadd.xlane.f32.xlu0 %v9004_v30  ;;  %v9007_v5 = vpop.eup %7023  ;;  %v10680_v42 = vld [vmem:[#allocation17_spill] sm:$0xff] }
 0xa9b   : > { %v2685_v2 = vpop.xlane.xlu1 %2684  ;;  %v2679_v35 = vpop.xlane.xlu0 %2678 }
 0xa9c   : > { %7035 = vpow2.f32 %v2730_v16  ;;  %v2698_v39 = vsub.f32 %v8956_v21, %v2679_v35  ;;  %v2701_v28 = vsub.f32 %v8959_v63, %v2685_v2 }
 0xa9d   : > { %v9010_v40 = vpop.eup %7025  ;;  %7037 = vpow2.f32 %v2720_v38 }
 0xa9e   : > { %v2726_v17 = vmul.f32 1.442695, %v2698_v39  ;;  %2744 = vadd.xlane.f32.xlu1 %v9007_v5  ;;  %2742 = vadd.xlane.f32.xlu0 %v9010_v40  ;;  %v9017_v23 = vpop.eup %7027  ;;  %v2732_v58 = vmul.f32 1.442695, %v2701_v28 }
 0xa9f   : > { %v2681_v48 = vpop.xlane.xlu1 %2680  ;;  %v9015_v1 = vpop.permute.xlu0 %3055 }
 0xaa0   : > { %v2699_v9 = vsub.f32 %v8964_v20, %v2681_v48  ;;  %6638 = vmatprep.subr.msk.bf16.mxu0 %vm865_vm0, %v9015_v1  ;;  %7039 = vpow2.f32 %v2726_v17 }
 0xaa1   : > { %v9022_v21 = vpop.eup %7029 }
 0xaa2   : > { %v2728_v63 = vmul.f32 1.442695, %v2699_v9  ;;  %2748 = vadd.xlane.f32.xlu0 %v9017_v23  ;;  %2754 = vadd.xlane.f32.xlu1 %v9022_v21 }
 0xaa4   : > { %7041 = vpow2.f32 %v2728_v63 }
 0xaa5   : > { %v9026_v43 = vpop.eup %7031  ;;  %7043 = vpow2.f32 %v2732_v58 }
 0xaa6   : > { %2750 = vadd.xlane.f32.xlu1 %v9026_v43  ;;  %v9029_v6 = vpop.eup %7033 }
 0xaa9   : > { %v9031_v20 = vpop.eup %7035 }
 0xaaa   : > { %2756 = vadd.xlane.f32.xlu1 %v9029_v6  ;;  %2762 = vadd.xlane.f32.xlu0 %v9031_v20  ;;  %v9035_v36 = vpop.eup %7037 }
 0xaad   : > { %v9037_v55 = vpop.eup %7039 }
 0xaae   : > { %2752 = vadd.xlane.f32.xlu1 %v9035_v36  ;;  %2758 = vadd.xlane.f32.xlu0 %v9037_v55 }
 0xab1   : > { %v9041_v12 = vpop.eup %7041 }
 0xab2   : > { %v9043_v46 = vpop.eup %7043  ;;  %2760 = vadd.xlane.f32.xlu1 %v9041_v12 }
 0xab3   : > { %2764 = vadd.xlane.f32.xlu0 %v9043_v46 }
 0xac3   : > { %3041 = vrot.lane.b32.xlu1 %v8053_v10, %s7602_s12 }
 0xac7   : > { %3027 = vrot.lane.b32.xlu1 %v7865_v51, %s7602_s12 }
 0xac9   : > { %3043 = vrot.lane.b32.xlu0 %v8043_v3, %s7602_s12 }
 0xacb   : > { %3031 = vrot.lane.b32.xlu1 %v7891_v7, %s7602_s12 }
 0xacd   : > { %3025 = vrot.lane.b32.xlu0 %v7855_v44, %s7602_s12 }
 0xacf   : > { %3035 = vrot.lane.b32.xlu1 %v7914_v32, %s7602_s12 }
 0xad1   : > { %3029 = vrot.lane.b32.xlu0 %v7877_v60, %s7602_s12 }
 0xad3   : > { %3039 = vrot.lane.b32.xlu1 %v7963_v31, %s7602_s12 }
 0xad5   : > { %3033 = vrot.lane.b32.xlu0 %v7902_v19, %s7602_s12 }
 0xad7   : > { %3382 = vrot.lane.b32.xlu1 %v7925_v57, %s7602_s12 }
 0xad9   : > { %3037 = vrot.lane.b32.xlu0 %v7939_v13, %s7602_s12 }
 0xadb   : > { %3374 = vrot.lane.b32.xlu1 %v7973_v37, %s7602_s12 }
 0xadd   : > { %3384 = vrot.lane.b32.xlu0 %v7922_v52, %s7602_s12 }
 0xadf   : > { %3370 = vrot.lane.b32.xlu1 %v7997_v45, %s7602_s12 }
 0xae1   : > { %3380 = vrot.lane.b32.xlu0 %v7934_v4, %s7602_s12 }
 0xae5   : > { %3378 = vrot.lane.b32.xlu0 %v7948_v22, %s7602_s12 }
 0xae6   : > { %v2739_v50 = vpop.xlane.xlu1 %2738 }
 0xae9   : > { %3376 = vrot.lane.b32.xlu0 %v10680_v42, %s7602_s12 }
 0xaea   : > { %v2735_v16 = vpop.xlane.xlu1 %2734 }
 0xaee   : > { %v2741_v2 = vpop.xlane.xlu1 %2740 }
 0xaef   : > { %7045 = vrcp.f32 %v2741_v2 }
 0xaf0   : > { %7047 = vrcp.f32 %v2735_v16  ;;  %v3052_v16 = vpop.permute.xlu0 %3051 }
 0xaf1   : > { %7049 = vrcp.f32 %v2739_v50  ;;  %v3103_v50 = vsel %vm865_vm0, %v9015_v1, 0 }
 0xaf2   : > { %v2737_v35 = vpop.xlane.xlu1 %2736 }
 0xaf3   : > { %7051 = vrcp.f32 %v2737_v35 }
 0xafc   : > { %v7046_v38 = vpop.eup %7045 }
 0xafd   : > { %v7048_v39 = vpop.eup %7047  ;;  %v2785_v48 = vmul.f32 %v7046_v38, %v8983_v0  ;;  %v3100_v0 = vsel %vm865_vm0, %v8996_v41, 0 }
 0xafe   : > { %v7050_v28 = vpop.eup %7049  ;;  %v2782_v9 = vmul.f32 %v7048_v39, %v8980_v11  ;;  %v3046_v11 = vpop.permute.xlu1 %3045 }
 0xaff   : > { %v2784_v63 = vmul.f32 %v7050_v28, %v8977_v24  ;;  %v3097_v24 = vsel %vm865_vm0, %v3052_v16, 0 }
 0xb00   : > { %v7052_v17 = vpop.eup %7051 }
 0xb01   : > { %v2783_v58 = vmul.f32 %v7052_v17, %v8986_v14  ;;  %v2799_v54 = vpack.c.bf16 %v2785_v48, %v2784_v63 }
 0xb03   : > { %v2798_v47 = vpack.c.bf16 %v2783_v58, %v2782_v9 }
 0xb05   : > { %6286 = vmatprep.mubr.bf16.mxu0 %v2798_v47  ;;  %v3094_v47 = vsel %vm865_vm0, %v9000_v29, 0 }
 0xb06   : > { %6287 = vmatmul.mubr.bf16.vlgmr.msra.gmra.mxu0 %v2799_v54  ;;  %v3048_v54 = vpop.permute.xlu0 %3047 }
 0xb07   : > { %6303 = vmatpush3.bf16.xpose.msra.mxu0 %v3103_v50 }
 0xb08   : > { %6639 = vmatprep.subr.msk.bf16.mxu0 %vm865_vm0, %v8996_v41  ;;  %v3091_v41 = vsel %vm865_vm0, %v3048_v54, 0 }
 0xb0f   : > { %6305 = vmatpush3.bf16.xpose.msra.mxu0 %v3100_v0 }
 0xb10   : > { %6640 = vmatprep.subr.msk.bf16.mxu0 %vm865_vm0, %v3052_v16 }
 0xb17   : > { %6307 = vmatpush3.bf16.xpose.msra.mxu0 %v3097_v24 }
 0xb18   : > { %6641 = vmatprep.subr.msk.bf16.mxu0 %vm865_vm0, %v9000_v29  ;;  %v3088_v29 = vsel %vm865_vm0, %v3046_v11, 0 }
 0xb1f   : > { %6309 = vmatpush3.bf16.xpose.msra.mxu0 %v3094_v47 }
 0xb20   : > { %6642 = vmatprep.subr.msk.bf16.mxu0 %vm865_vm0, %v3048_v54 }
 0xb23   : > { %v2747_v14 = vpop.xlane.xlu0 %2746 }
 0xb27   : > { %6311 = vmatpush3.bf16.xpose.msra.mxu0 %v3091_v41  ;;  %v2745_v1 = vpop.xlane.xlu1 %2744  ;;  %v2743_v2 = vpop.xlane.xlu0 %2742 }
 0xb28   : > { %7053 = vrcp.f32 %v2745_v1  ;;  %6643 = vmatprep.subr.msk.bf16.mxu0 %vm865_vm0, %v3046_v11 }
 0xb29   : > { %7055 = vrcp.f32 %v2743_v2 }
 0xb2a   : > { %7057 = vrcp.f32 %v2747_v14 }
 0xb2b   : > { %v2755_v35 = vpop.xlane.xlu1 %2754  ;;  %v2749_v38 = vpop.xlane.xlu0 %2748 }
 0xb2c   : > { %7059 = vrcp.f32 %v2749_v38 }
 0xb2f   : > { %6313 = vmatpush3.bf16.xpose.msra.mxu0 %v3088_v29  ;;  %v2751_v39 = vpop.xlane.xlu1 %2750 }
 0xb33   : > { %v2757_v28 = vpop.xlane.xlu1 %2756  ;;  %v2763_v17 = vpop.xlane.xlu0 %2762 }
 0xb34   : > { %7061 = vrcp.f32 %v2757_v28 }
 0xb35   : > { %v7054_v48 = vpop.eup %7053  ;;  %7063 = vrcp.f32 %v2751_v39 }
 0xb36   : > { %v7056_v9 = vpop.eup %7055  ;;  %v2787_v58 = vmul.f32 %v7054_v48, %v9007_v5  ;;  %7065 = vrcp.f32 %v2755_v35 }
 0xb37   : > { %v2753_v63 = vpop.xlane.xlu1 %2752  ;;  %v2786_v50 = vmul.f32 %v7056_v9, %v9010_v40  ;;  %v7058_v0 = vpop.eup %7057 }
 0xb38   : > { %7067 = vrcp.f32 %v2753_v63  ;;  %v2759_v16 = vpop.xlane.xlu0 %2758  ;;  %v2788_v11 = vmul.f32 %v7058_v0, %v9004_v30 }
 0xb39   : > { %v2800_v24 = vpack.c.bf16 %v2787_v58, %v2786_v50  ;;  %v7060_v47 = vpop.eup %7059  ;;  %7069 = vrcp.f32 %v2759_v16 }
 0xb3a   : > { %v2789_v14 = vmul.f32 %v7060_v47, %v9017_v23 }
 0xb3b   : > { %6290 = vmatprep.mubr.bf16.mxu0 %v2800_v24  ;;  %v2761_v54 = vpop.xlane.xlu1 %2760 }
 0xb3c   : > { %7071 = vrcp.f32 %v2761_v54  ;;  %v2765_v41 = vpop.xlane.xlu0 %2764  ;;  %v2801_v5 = vpack.c.bf16 %v2789_v14, %v2788_v11 }
 0xb3d   : > { %7073 = vrcp.f32 %v2765_v41 }
 0xb3e   : > { %7075 = vrcp.f32 %v2763_v17  ;;  %6291 = vmatmul.mubr.bf16.gmra.mxu0 %v2801_v5 }
 0xb3f   : > { %v3042_v1 = vpop.permute.xlu1 %3041 }
 0xb40   : > { %v3044_v40 = vpop.permute.xlu0 %3043  ;;  %v3082_v24 = vsel %vm865_vm0, %v3042_v1, 0 }
 0xb41   : > { %6644 = vmatprep.subr.msk.bf16.mxu0 %vm865_vm0, %v3044_v40  ;;  %v3085_v2 = vsel %vm865_vm0, %v3044_v40, 0  ;;  %v7062_v35 = vpop.eup %7061 }
 0xb42   : > { %6315 = vmatpush3.bf16.xpose.msra.mxu0 %v3085_v2  ;;  %v7064_v38 = vpop.eup %7063  ;;  %v2793_v28 = vmul.f32 %v7062_v35, %v9029_v6 }
 0xb43   : > { %6645 = vmatprep.subr.msk.bf16.mxu0 %vm865_vm0, %v3042_v1  ;;  %v3028_v30 = vpop.permute.xlu1 %3027  ;;  %v7066_v29 = vpop.eup %7065  ;;  %v2790_v17 = vmul.f32 %v7064_v38, %v9026_v43 }
 0xb44   : > { %v3026_v23 = vpop.permute.xlu0 %3025  ;;  %v2792_v63 = vmul.f32 %v7066_v29, %v9022_v21 }
 0xb45   : > { %v7068_v39 = vpop.eup %7067 }
 0xb46   : > { %v2791_v48 = vmul.f32 %v7068_v39, %v9035_v36  ;;  %v7070_v9 = vpop.eup %7069  ;;  %v2803_v47 = vpack.c.bf16 %v2793_v28, %v2792_v63 }
 0xb47   : > { %v3032_v58 = vpop.permute.xlu1 %3031  ;;  %v2794_v11 = vmul.f32 %v7070_v9, %v9037_v55 }
 0xb48   : > { %v3030_v50 = vpop.permute.xlu0 %3029  ;;  %v2802_v0 = vpack.c.bf16 %v2791_v48, %v2790_v17 }
 0xb49   : > { %v7072_v16 = vpop.eup %7071 }
 0xb4a   : > { %v7074_v54 = vpop.eup %7073  ;;  %6317 = vmatpush3.bf16.xpose.msra.mxu0 %v3082_v24  ;;  %6294 = vmatprep.mubr.bf16.mxu0 %v2802_v0  ;;  %v2795_v6 = vmul.f32 %v7072_v16, %v9041_v12 }
 0xb4b   : > { %v3036_v43 = vpop.permute.xlu1 %3035  ;;  %6295 = vmatmul.mubr.bf16.gmra.mxu0 %v2803_v47  ;;  %v7076_v36 = vpop.eup %7075  ;;  %v2797_v21 = vmul.f32 %v7074_v54, %v9043_v46 }
 0xb4c   : > { %v3034_v14 = vpop.permute.xlu0 %3033  ;;  %v2804_v41 = vpack.c.bf16 %v2795_v6, %v2794_v11  ;;  %v2796_v5 = vmul.f32 %v7076_v36, %v9031_v20  ;;  %v3011_v11 = vld [vmem:[#allocation9 + $0x210] sm:$0xff] }
 0xb4e   : > { %6298 = vmatprep.mubr.bf16.mxu0 %v2804_v41  ;;  %v2805_v2 = vpack.c.bf16 %v2797_v21, %v2796_v5  ;;  %v9157_v41 = vld [vmem:[#allocation11 + $0x10] sm:$0xff] }
 0xb4f   : > { %v3040_v40 = vpop.permute.xlu1 %3039 }
 0xb50   : > { %v3038_v1 = vpop.permute.xlu0 %3037 }
 0xb53   : > { %6299 = vmatmul.mubr.bf16.gmra.mxu0 %v2805_v2  ;;  %v3383_v55 = vpop.permute.xlu1 %3382  ;;  %v3010_v2 = vld [vmem:[#allocation9 + $0x208] sm:$0xff] }
 0xb54   : > { %v3385_v35 = vpop.permute.xlu0 %3384  ;;  %6318 = vmatprep.mubr.msk.bf16.mxu0 %vm865_vm0, %v3026_v23 }
 0xb55   : > { %6334 = vmatprep.subr.bf16.mxu1 %v3385_v35 }
 0xb56   : > { %6335 = vmatpush3.bf16.msra.mxu1 %v3385_v35 }
 0xb57   : > { %6336 = vmatprep.subr.bf16.mxu1 %v3383_v55  ;;  %v3375_v38 = vpop.permute.xlu1 %3374 }
 0xb58   : > { %v3381_v12 = vpop.permute.xlu0 %3380 }
 0xb5a   : > { %6337 = vmatpush3.bf16.msra.mxu1 %v3383_v55  ;;  %v9163_v55 = vld [vmem:[#allocation11] sm:$0xff] }
 0xb5b   : > { %6338 = vmatprep.subr.bf16.mxu1 %v3381_v12  ;;  %6319 = vmatmul.mubr.msk.bf16.vlgmr.msra.gmra.mxu0 %vm865_vm0, %v3028_v30 }
 0xb5c   : > { %v3379_v46 = vpop.permute.xlu0 %3378  ;;  %6322 = vmatprep.mubr.msk.bf16.mxu0 %vm865_vm0, %v3030_v50 }
 0xb5e   : > { %6339 = vmatpush3.bf16.msra.mxu1 %v3381_v12 }
 0xb5f   : > { %6340 = vmatprep.subr.bf16.mxu1 %v3379_v46 }
 0xb60   : > { %v3377_v20 = vpop.permute.xlu0 %3376 }
 0xb62   : > { %6341 = vmatpush3.bf16.msra.mxu1 %v3379_v46 }
 0xb63   : > { %6342 = vmatprep.subr.bf16.mxu1 %v3377_v20  ;;  %6323 = vmatmul.mubr.msk.bf16.gmra.mxu0 %vm865_vm0, %v3032_v58 }
 0xb64   : > { %6326 = vmatprep.mubr.msk.bf16.mxu0 %vm865_vm0, %v3034_v14 }
 0xb66   : > { %6343 = vmatpush3.bf16.msra.mxu1 %v3377_v20 }
 0xb67   : > { %6344 = vmatprep.subr.bf16.mxu1 %v3375_v38 }
 0xb6a   : > { %6345 = vmatpush3.bf16.msra.mxu1 %v3375_v38 }
 0xb6b   : > { %6327 = vmatmul.mubr.msk.bf16.gmra.mxu0 %vm865_vm0, %v3036_v43  ;;  %v3009_v43 = vld [vmem:[#allocation9 + $0x200] sm:$0xff] }
 0xb6c   : > { %6330 = vmatprep.mubr.msk.bf16.mxu0 %vm865_vm0, %v3038_v1 }
 0xb73   : > { %6331 = vmatmul.mubr.msk.bf16.gmra.mxu0 %vm865_vm0, %v3040_v40  ;;  %v3012_v40 = vld [vmem:[#allocation9 + $0x218] sm:$0xff] }
 0xbc6   : > { %v9125_v30 = vpop.f32.mrf.mxu0 }
 0xbc7   : > { %10681 = vst [vmem:[#allocation40_spill] sm:$0xff] %v9125_v30 }
 0xbc8   : > { %v9127_v29 = vpop.f32.mrf.mxu0 }
 0xbc9   : > { %10682 = vst [vmem:[#allocation41_spill] sm:$0xff] %v9127_v29 }
 0xbca   : > { %v9129_v23 = vpop.f32.mrf.mxu0 }
 0xbcb   : > { %10683 = vst [vmem:[#allocation42_spill] sm:$0xff] %v9129_v23  ;;  %v3024_v23 = vld [vmem:[#allocation9 + $0x278] sm:$0xff] }
 0xbcc   : > { %v9131_v39 = vpop.f32.mrf.mxu0 }
 0xbcd   : > { %10684 = vst [vmem:[#allocation43_spill] sm:$0xff] %v9131_v39  ;;  %v9235_v39 = vld [vmem:[#allocation11 + $0x70] sm:$0xff] }
 0xbce   : > { %10697 = vst [vmem:[#allocation72_spill] sm:$0xff] %v9235_v39 }
 0xbfe   : > { %v9133_v28 = vpop.f32.mrf.mxu0 }
 0xbff   : > { %10685 = vst [vmem:[#allocation60_spill] sm:$0xff] %v9133_v28 }
 0xc00   : > { %v9135_v17 = vpop.f32.mrf.mxu0 }
 0xc01   : > { %10686 = vst [vmem:[#allocation61_spill] sm:$0xff] %v9135_v17 }
 0xc02   : > { %v9137_v48 = vpop.f32.mrf.mxu0 }
 0xc03   : > { %10687 = vst [vmem:[#allocation62_spill] sm:$0xff] %v9137_v48 }
 0xc04   : > { %v9139_v9 = vpop.f32.mrf.mxu0 }
 0xc05   : > { %10688 = vst [vmem:[#allocation63_spill] sm:$0xff] %v9139_v9 }
 0xc0b   : > { %v9141_v58 = vpop.f32.mrf.mxu0 }
 0xc0c   : > { %10689 = vst [vmem:[#allocation64_spill] sm:$0xff] %v9141_v58  ;;  %v9193_v58 = vld [vmem:[#allocation11 + $0x58] sm:$0xff] }
 0xc0d   : > { %v9143_v63 = vpop.f32.mrf.mxu0 }
 0xc0e   : > { %10690 = vst [vmem:[#allocation65_spill] sm:$0xff] %v9143_v63  ;;  %v9217_v63 = vld [vmem:[#allocation11 + $0x20] sm:$0xff] }
 0xc0f   : > { %v9145_v50 = vpop.f32.mrf.mxu0 }
 0xc10   : > { %10691 = vst [vmem:[#allocation66_spill] sm:$0xff] %v9145_v50  ;;  %v9229_v50 = vld [vmem:[#allocation11 + $0x40] sm:$0xff] }
 0xc11   : > { %v9147_v0 = vpop.f32.mrf.mxu0 }
 0xc12   : > { %10692 = vst [vmem:[#allocation67_spill] sm:$0xff] %v9147_v0 }
 0xc13   : > { %v9149_v16 = vpop.f32.mrf.mxu0 }
 0xc14   : > { %10693 = vst [vmem:[#allocation68_spill] sm:$0xff] %v9149_v16 }
 0xc15   : > { %v9151_v24 = vpop.f32.mrf.mxu0 }
 0xc16   : > { %10694 = vst [vmem:[#allocation69_spill] sm:$0xff] %v9151_v24 }
 0xc17   : > { %v9153_v47 = vpop.f32.mrf.mxu0 }
 0xc18   : > { %10695 = vst [vmem:[#allocation70_spill] sm:$0xff] %v9153_v47  ;;  %v9187_v47 = vld [vmem:[#allocation11 + $0x28] sm:$0xff] }
 0xc19   : > { %v9155_v54 = vpop.f32.mrf.mxu0 }
 0xc1a   : > { %10696 = vst [vmem:[#allocation71_spill] sm:$0xff] %v9155_v54 }
 0xc1b   : > { %v6320_v6 = vpop.f32.mrf.mxu0 }
 0xc1c   : > { %v3148_v36 = vadd.f32 %v6320_v6, %v3011_v11  ;;  %v9168_v11 = vld [vmem:[#allocation11 + $0x8] sm:$0xff] }
 0xc1d   : > { %v3139_v14 = vpop.f32.mrf.mxu0 }
 0xc1e   : > { %v9160_v21 = vadd.f32 %v9157_v41, %v3148_v36  ;;  %v3140_v5 = vadd.f32 %v3139_v14, %v3009_v43  ;;  %v3016_v36 = vld [vmem:[#allocation9 + $0x238] sm:$0xff] }
 0xc1f   : > { %v6321_v1 = vpop.f32.mrf.mxu0  ;;  %v9174_v14 = vld [vmem:[#allocation11 + $0x18] sm:$0xff] }
 0xc20   : > { %3222 = vmax.xlane.f32.xlu0 %v9160_v21  ;;  %v9166_v12 = vadd.f32 %v9163_v55, %v3140_v5  ;;  %v3151_v46 = vadd.f32 %v6321_v1, %v3012_v40  ;;  %v3014_v40 = vld [vmem:[#allocation9 + $0x228] sm:$0xff] }
 0xc21   : > { %v3142_v35 = vpop.f32.mrf.mxu0 }
 0xc22   : > { %v3143_v20 = vadd.f32 %v3142_v35, %v3010_v2  ;;  %v9177_v16 = vadd.f32 %v9174_v14, %v3151_v46  ;;  %v9181_v35 = vld [vmem:[#allocation11 + $0x38] sm:$0xff] }
 0xc23   : > { %v6324_v38 = vpop.f32.mrf.mxu0  ;;  %v3020_v46 = vld [vmem:[#allocation9 + $0x258] sm:$0xff] }
 0xc24   : > { %v9171_v6 = vadd.f32 %v9168_v11, %v3143_v20  ;;  %3218 = vmax.xlane.f32.xlu0 %v9166_v12 }
 0xc25   : > { %v3155_v43 = vpop.f32.mrf.mxu0 }
 0xc26   : > { %3220 = vmax.xlane.f32.xlu1 %v9171_v6 }
 0xc27   : > { %v6325_v5 = vpop.f32.mrf.mxu0 }
 0xc28   : > { %v3167_v1 = vadd.f32 %v6325_v5, %v3016_v36  ;;  %3224 = vmax.xlane.f32.xlu0 %v9177_v16  ;;  %v3018_v5 = vld [vmem:[#allocation9 + $0x248] sm:$0xff] }
 0xc29   : > { %v3158_v2 = vpop.f32.mrf.mxu0 }
 0xc2a   : > { %v9184_v20 = vadd.f32 %v9181_v35, %v3167_v1  ;;  %v3159_v28 = vadd.f32 %v3158_v2, %v3014_v40  ;;  %v9199_v2 = vld [vmem:[#allocation11 + $0x48] sm:$0xff] }
 0xc2b   : > { %v6328_v24 = vpop.f32.mrf.mxu0 }
 0xc2c   : > { %3232 = vmax.xlane.f32.xlu1 %v9184_v20  ;;  %v9190_v48 = vadd.f32 %v9187_v47, %v3159_v28  ;;  %v3015_v28 = vld [vmem:[#allocation9 + $0x230] sm:$0xff] }
 0xc2d   : > { %v3171_v17 = vpop.f32.mrf.mxu0 }
 0xc2f   : > { %v6329_v36 = vpop.f32.mrf.mxu0 }
 0xc30   : > { %v3183_v54 = vadd.f32 %v6329_v36, %v3020_v46  ;;  %3228 = vmax.xlane.f32.xlu1 %v9190_v48  ;;  %v9211_v46 = vld [vmem:[#allocation11 + $0x30] sm:$0xff] }
 0xc31   : > { %v3174_v9 = vpop.f32.mrf.mxu0 }
 0xc32   : > { %v9196_v40 = vadd.f32 %v9193_v58, %v3183_v54  ;;  %v3175_v1 = vadd.f32 %v3174_v9, %v3018_v5  ;;  %v3164_v9 = vadd.f32 %v6324_v38, %v3015_v28  ;;  %v3013_v54 = vld [vmem:[#allocation9 + $0x220] sm:$0xff]  ;;  %v9223_v38 = vld [vmem:[#allocation11 + $0x50] sm:$0xff] }
 0xc33   : > { %v3156_v5 = vadd.f32 %v3155_v43, %v3013_v54  ;;  %v6332_v33 = vpop.f32.mrf.mxu0  ;;  %v3023_v43 = vld [vmem:[#allocation9 + $0x270] sm:$0xff] }
 0xc34   : > { %3240 = vmax.xlane.f32.xlu1 %v9196_v40  ;;  %v9202_v30 = vadd.f32 %v9199_v2, %v3175_v1  ;;  %v9214_v36 = vadd.f32 %v9211_v46, %v3164_v9  ;;  %v3019_v1 = vld [vmem:[#allocation9 + $0x250] sm:$0xff]  ;;  %v3172_v9 = vadd.f32 %v3171_v17, %v3017_v56 }
 0xc35   : > { %v9220_v29 = vadd.f32 %v9217_v63, %v3156_v5  ;;  %v3180_v18 = vadd.f32 %v6328_v24, %v3019_v1  ;;  %v3187_v54 = vpop.f32.mrf.mxu0  ;;  %v3196_v24 = vadd.f32 %v6332_v33, %v3023_v43  ;;  %v3021_v1 = vld [vmem:[#allocation9 + $0x260] sm:$0xff] }
 0xc36   : > { %v9232_v5 = vadd.f32 %v9229_v50, %v3172_v9  ;;  %v3188_v56 = vadd.f32 %v3187_v54, %v3021_v1  ;;  %v9246_v9 = vld [vmem:[#allocation11 + $0x78] sm:$0xff]  ;;  %v3371_v54 = vpop.permute.xlu1 %3370 }
 0xc37   : > { %v9226_v28 = vadd.f32 %v9223_v38, %v3180_v18  ;;  %v6333_v0 = vpop.f32.mrf.mxu0  ;;  %v9238_v18 = vadd.f32 %v9235_v39, %v3196_v24  ;;  %10699 = vst [vmem:[#allocation74_spill] sm:$0xff] %v9246_v9 }
 0xc38   : > { %3236 = vmax.xlane.f32.xlu1 %v9202_v30  ;;  %v3199_v17 = vadd.f32 %v6333_v0, %v3024_v23  ;;  %v9244_v33 = vadd.f32 %v9241_v62, %v3188_v56  ;;  %v9253_v23 = vld [vmem:[#allocation11 + $0x68] sm:$0xff] }
 0xc39   : > { %v3190_v53 = vpop.f32.mrf.mxu0  ;;  %10700 = vst [vmem:[#allocation75_spill] sm:$0xff] %v9253_v23 }
 0xc3a   : > { %v9249_v43 = vadd.f32 %v9246_v9, %v3199_v17  ;;  %v3191_v27 = vadd.f32 %v3190_v53, %v3022_v8 }
 0xc3c   : > { %v9256_v0 = vadd.f32 %v9253_v23, %v3191_v27 }
 0xc3e   : > { %3372 = vrot.lane.b32.xlu0 %v7987_v61, %s7602_s12 }
 0xc49   : > { %3617 = vrot.lane.b32.xlu1 %v7942_v15, %s7603_s23 }
 0xc4d   : > { %3613 = vrot.lane.b32.xlu1 %v8013_v25, %s7603_s23 }
 0xc5d   : > { %3230 = vmax.xlane.f32.xlu0 %v9214_v36 }
 0xc61   : > { %3226 = vmax.xlane.f32.xlu0 %v9220_v29 }
 0xc65   : > { %3238 = vmax.xlane.f32.xlu0 %v9226_v28 }
 0xc69   : > { %3234 = vmax.xlane.f32.xlu0 %v9232_v5 }
 0xc6d   : > { %3246 = vmax.xlane.f32.xlu0 %v9238_v18 }
 0xc71   : > { %3248 = vmax.xlane.f32.xlu1 %v9249_v43  ;;  %3242 = vmax.xlane.f32.xlu0 %v9244_v33 }
 0xc75   : > { %3244 = vmax.xlane.f32.xlu1 %v9256_v0 }
 0xc87   : > { %3619 = vrot.lane.b32.xlu0 %v10676_v49, %s7603_s23 }
 0xc8b   : > { %3615 = vrot.lane.b32.xlu0 %v10677_v26, %s7603_s23 }
 0xc8f   : > { %3611 = vrot.lane.b32.xlu0 %v10678_v59, %s7603_s23 }
 0xca9   : > { %v3223_v8 = vpop.xlane.xlu0 %3222 }
 0xcaa   : > { %v3252_v53 = vsub.f32 %v9160_v21, %v3223_v8 }
 0xcac   : > { %v3270_v24 = vmul.f32 1.442695, %v3252_v53 }
 0xcad   : > { %v3219_v1 = vpop.xlane.xlu0 %3218 }
 0xcae   : > { %7077 = vpow2.f32 %v3270_v24  ;;  %v3250_v27 = vsub.f32 %v9166_v12, %v3219_v1 }
 0xcaf   : > { %v3221_v56 = vpop.xlane.xlu1 %3220 }
 0xcb0   : > { %v3266_v17 = vmul.f32 1.442695, %v3250_v27  ;;  %v3251_v49 = vsub.f32 %v9171_v6, %v3221_v56 }
 0xcb1   : > { %v3225_v23 = vpop.xlane.xlu0 %3224 }
 0xcb2   : > { %7079 = vpow2.f32 %v3266_v17  ;;  %v3253_v26 = vsub.f32 %v9177_v16, %v3225_v23  ;;  %v3268_v59 = vmul.f32 1.442695, %v3251_v49 }
 0xcb4   : > { %v3272_v9 = vmul.f32 1.442695, %v3253_v26 }
 0xcb5   : > { %v3373_v62 = vpop.permute.xlu0 %3372 }
 0xcb6   : > { %7081 = vpow2.f32 %v3272_v9  ;;  %6346 = vmatprep.subr.bf16.mxu1 %v3373_v62 }
 0xcb7   : > { %6347 = vmatpush3.bf16.msra.mxu1 %v3373_v62  ;;  %7083 = vpow2.f32 %v3268_v59  ;;  %v3233_v62 = vpop.xlane.xlu1 %3232 }
 0xcb8   : > { %6348 = vmatprep.subr.bf16.mxu1 %v3371_v54  ;;  %v3257_v53 = vsub.f32 %v9184_v20, %v3233_v62 }
 0xcba   : > { %v3280_v17 = vmul.f32 1.442695, %v3257_v53 }
 0xcbb   : > { %v9269_v21 = vpop.eup %7077  ;;  %6349 = vmatpush3.bf16.msra.mxu1 %v3371_v54  ;;  %v3229_v49 = vpop.xlane.xlu1 %3228 }
 0xcbc   : > { %3302 = vadd.xlane.f32.xlu1 %v9269_v21  ;;  %v3255_v16 = vsub.f32 %v9190_v48, %v3229_v49 }
 0xcbe   : > { %v3276_v54 = vmul.f32 1.442695, %v3255_v16 }
 0xcbf   : > { %v9272_v12 = vpop.eup %7079  ;;  %v3241_v59 = vpop.xlane.xlu1 %3240 }
 0xcc0   : > { %3298 = vadd.xlane.f32.xlu1 %v9272_v12 }
 0xcc3   : > { %v9275_v6 = vpop.eup %7081  ;;  %v3237_v24 = vpop.xlane.xlu1 %3236 }
 0xcc4   : > { %3304 = vadd.xlane.f32.xlu1 %v9275_v6  ;;  %v9278_v26 = vpop.eup %7083 }
 0xcc7   : > { %v9288_v48 = vpop.permute.xlu1 %3617 }
 0xcc8   : > { %3300 = vadd.xlane.f32.xlu1 %v9278_v26 }
 0xcd9   : > { %3609 = vrot.lane.b32.xlu1 %v10679_v34, %s7603_s23 }
 0xce6   : > { %v3231_v9 = vpop.xlane.xlu0 %3230 }
 0xce7   : > { %v3256_v23 = vsub.f32 %v9214_v36, %v3231_v9  ;;  %v3261_v36 = vsub.f32 %v9196_v40, %v3241_v59 }
 0xce9   : > { %v3278_v8 = vmul.f32 1.442695, %v3256_v23  ;;  %v3288_v9 = vmul.f32 1.442695, %v3261_v36 }
 0xcea   : > { %v3227_v1 = vpop.xlane.xlu0 %3226 }
 0xceb   : > { %7085 = vpow2.f32 %v3278_v8  ;;  %v3254_v27 = vsub.f32 %v9220_v29, %v3227_v1  ;;  %v9292_v29 = vpop.permute.xlu1 %3613  ;;  %v3259_v8 = vsub.f32 %v9202_v30, %v3237_v24 }
 0xcec   : > { %7087 = vpow2.f32 %v3276_v54 }
 0xced   : > { %v3274_v56 = vmul.f32 1.442695, %v3254_v27 }
 0xcee   : > { %v3239_v34 = vpop.xlane.xlu0 %3238 }
 0xcef   : > { %7089 = vpow2.f32 %v3274_v56  ;;  %v3260_v39 = vsub.f32 %v9226_v28, %v3239_v34 }
 0xcf0   : > { %7091 = vpow2.f32 %v3280_v17 }
 0xcf1   : > { %v3286_v49 = vmul.f32 1.442695, %v3260_v39 }
 0xcf2   : > { %v3235_v20 = vpop.xlane.xlu0 %3234 }
 0xcf3   : > { %7093 = vpow2.f32 %v3286_v49  ;;  %v3258_v62 = vsub.f32 %v9232_v5, %v3235_v20  ;;  %v3284_v5 = vmul.f32 1.442695, %v3259_v8 }
 0xcf5   : > { %v3282_v16 = vmul.f32 1.442695, %v3258_v62 }
 0xcf6   : > { %v3247_v23 = vpop.xlane.xlu0 %3246 }
 0xcf7   : > { %7095 = vpow2.f32 %v3282_v16  ;;  %v3264_v34 = vsub.f32 %v9238_v18, %v3247_v23 }
 0xcf8   : > { %v9296_v28 = vpop.eup %7085  ;;  %7097 = vpow2.f32 %v3288_v9 }
 0xcf9   : > { %v3294_v39 = vmul.f32 1.442695, %v3264_v34  ;;  %3310 = vadd.xlane.f32.xlu0 %v9296_v28  ;;  %v9299_v53 = vpop.eup %7087 }
 0xcfa   : > { %v3249_v40 = vpop.xlane.xlu1 %3248  ;;  %v3243_v59 = vpop.xlane.xlu0 %3242 }
 0xcfb   : > { %7099 = vpow2.f32 %v3294_v39  ;;  %v3262_v54 = vsub.f32 %v9244_v33, %v3243_v59  ;;  %v3265_v30 = vsub.f32 %v9249_v43, %v3249_v40 }
 0xcfc   : > { %v9302_v1 = vpop.eup %7089  ;;  %7101 = vpow2.f32 %v3284_v5 }
 0xcfd   : > { %v3290_v24 = vmul.f32 1.442695, %v3262_v54  ;;  %3308 = vadd.xlane.f32.xlu1 %v9299_v53  ;;  %3306 = vadd.xlane.f32.xlu0 %v9302_v1  ;;  %v9309_v56 = vpop.eup %7091  ;;  %v3296_v49 = vmul.f32 1.442695, %v3265_v30 }
 0xcfe   : > { %v3245_v18 = vpop.xlane.xlu1 %3244  ;;  %v9307_v27 = vpop.permute.xlu0 %3619 }
 0xcff   : > { %v3263_v17 = vsub.f32 %v9256_v0, %v3245_v18  ;;  %6646 = vmatprep.subr.msk.bf16.mxu1 %vm865_vm0, %v9307_v27  ;;  %7103 = vpow2.f32 %v3290_v24 }
 0xd00   : > { %v9314_v33 = vpop.eup %7093 }
 0xd01   : > { %v3292_v43 = vmul.f32 1.442695, %v3263_v17  ;;  %3312 = vadd.xlane.f32.xlu0 %v9309_v56  ;;  %3318 = vadd.xlane.f32.xlu1 %v9314_v33 }
 0xd03   : > { %7105 = vpow2.f32 %v3292_v43 }
 0xd04   : > { %v9318_v36 = vpop.eup %7095  ;;  %7107 = vpow2.f32 %v3296_v49 }
 0xd05   : > { %3314 = vadd.xlane.f32.xlu1 %v9318_v36  ;;  %v9321_v20 = vpop.eup %7097 }
 0xd08   : > { %v9323_v0 = vpop.eup %7099 }
 0xd09   : > { %3320 = vadd.xlane.f32.xlu1 %v9321_v20  ;;  %3326 = vadd.xlane.f32.xlu0 %v9323_v0  ;;  %v9327_v62 = vpop.eup %7101 }
 0xd0c   : > { %v9329_v16 = vpop.eup %7103 }
 0xd0d   : > { %3316 = vadd.xlane.f32.xlu1 %v9327_v62  ;;  %3322 = vadd.xlane.f32.xlu0 %v9329_v16 }
 0xd10   : > { %v9333_v9 = vpop.eup %7105 }
 0xd11   : > { %v9335_v23 = vpop.eup %7107  ;;  %3324 = vadd.xlane.f32.xlu1 %v9333_v9 }
 0xd12   : > { %3328 = vadd.xlane.f32.xlu0 %v9335_v23 }
 0xd22   : > { %3605 = vrot.lane.b32.xlu1 %v8053_v10, %s7603_s23 }
 0xd26   : > { %3591 = vrot.lane.b32.xlu1 %v7865_v51, %s7603_s23 }
 0xd28   : > { %3607 = vrot.lane.b32.xlu0 %v8043_v3, %s7603_s23 }
 0xd2a   : > { %3595 = vrot.lane.b32.xlu1 %v7891_v7, %s7603_s23 }
 0xd2c   : > { %3589 = vrot.lane.b32.xlu0 %v7855_v44, %s7603_s23 }
 0xd2e   : > { %3599 = vrot.lane.b32.xlu1 %v7914_v32, %s7603_s23 }
 0xd30   : > { %3593 = vrot.lane.b32.xlu0 %v7877_v60, %s7603_s23 }
 0xd32   : > { %3603 = vrot.lane.b32.xlu1 %v7963_v31, %s7603_s23 }
 0xd34   : > { %3597 = vrot.lane.b32.xlu0 %v7902_v19, %s7603_s23 }
 0xd36   : > { %3946 = vrot.lane.b32.xlu1 %v7925_v57, %s7603_s23 }
 0xd38   : > { %3601 = vrot.lane.b32.xlu0 %v7939_v13, %s7603_s23 }
 0xd3a   : > { %3938 = vrot.lane.b32.xlu1 %v7973_v37, %s7603_s23 }
 0xd3c   : > { %3948 = vrot.lane.b32.xlu0 %v7922_v52, %s7603_s23 }
 0xd3e   : > { %3934 = vrot.lane.b32.xlu1 %v7997_v45, %s7603_s23 }
 0xd40   : > { %3944 = vrot.lane.b32.xlu0 %v7934_v4, %s7603_s23 }
 0xd44   : > { %3942 = vrot.lane.b32.xlu0 %v7948_v22, %s7603_s23 }
 0xd45   : > { %v3303_v8 = vpop.xlane.xlu1 %3302 }
 0xd48   : > { %3940 = vrot.lane.b32.xlu0 %v10680_v42, %s7603_s23 }
 0xd49   : > { %v3299_v34 = vpop.xlane.xlu1 %3298 }
 0xd4d   : > { %v3305_v39 = vpop.xlane.xlu1 %3304 }
 0xd4e   : > { %7109 = vrcp.f32 %v3305_v39 }
 0xd4f   : > { %7111 = vrcp.f32 %v3299_v34  ;;  %v3616_v34 = vpop.permute.xlu0 %3615 }
 0xd50   : > { %7113 = vrcp.f32 %v3303_v8  ;;  %v3667_v8 = vsel %vm865_vm0, %v9307_v27, 0 }
 0xd51   : > { %v3301_v40 = vpop.xlane.xlu1 %3300 }
 0xd52   : > { %7115 = vrcp.f32 %v3301_v40 }
 0xd5b   : > { %v7110_v59 = vpop.eup %7109 }
 0xd5c   : > { %v7112_v5 = vpop.eup %7111  ;;  %v3349_v24 = vmul.f32 %v7110_v59, %v9275_v6  ;;  %v3664_v6 = vsel %vm865_vm0, %v9288_v48, 0 }
 0xd5d   : > { %v7114_v54 = vpop.eup %7113  ;;  %v3346_v18 = vmul.f32 %v7112_v5, %v9272_v12  ;;  %v3612_v12 = vpop.permute.xlu0 %3611 }
 0xd5e   : > { %v3348_v49 = vmul.f32 %v7114_v54, %v9269_v21  ;;  %v3661_v21 = vsel %vm865_vm0, %v3616_v34, 0 }
 0xd5f   : > { %v7116_v30 = vpop.eup %7115 }
 0xd60   : > { %v3347_v17 = vmul.f32 %v7116_v30, %v9278_v26  ;;  %v3363_v42 = vpack.c.bf16 %v3349_v24, %v3348_v49  ;;  %v3610_v26 = vpop.permute.xlu1 %3609 }
 0xd62   : > { %v3362_v43 = vpack.c.bf16 %v3347_v17, %v3346_v18 }
 0xd64   : > { %6350 = vmatprep.mubr.bf16.mxu1 %v3362_v43 }
 0xd65   : > { %6351 = vmatmul.mubr.bf16.vlgmr.msra.gmra.mxu1 %v3363_v42  ;;  %v3658_v42 = vsel %vm865_vm0, %v9292_v29, 0 }
 0xd66   : > { %6367 = vmatpush3.bf16.xpose.msra.mxu1 %v3667_v8 }
 0xd67   : > { %6647 = vmatprep.subr.msk.bf16.mxu1 %vm865_vm0, %v9288_v48  ;;  %v3655_v48 = vsel %vm865_vm0, %v3612_v12, 0 }
 0xd6e   : > { %6369 = vmatpush3.bf16.xpose.msra.mxu1 %v3664_v6 }
 0xd6f   : > { %6648 = vmatprep.subr.msk.bf16.mxu1 %vm865_vm0, %v3616_v34 }
 0xd76   : > { %6371 = vmatpush3.bf16.xpose.msra.mxu1 %v3661_v21 }
 0xd77   : > { %6649 = vmatprep.subr.msk.bf16.mxu1 %vm865_vm0, %v9292_v29  ;;  %v3652_v29 = vsel %vm865_vm0, %v3610_v26, 0 }
 0xd7e   : > { %6373 = vmatpush3.bf16.xpose.msra.mxu1 %v3658_v42 }
 0xd7f   : > { %6650 = vmatprep.subr.msk.bf16.mxu1 %vm865_vm0, %v3612_v12 }
 0xd82   : > { %v3311_v27 = vpop.xlane.xlu0 %3310 }
 0xd86   : > { %6375 = vmatpush3.bf16.xpose.msra.mxu1 %v3655_v48  ;;  %v3309_v39 = vpop.xlane.xlu1 %3308  ;;  %v3307_v40 = vpop.xlane.xlu0 %3306 }
 0xd87   : > { %7117 = vrcp.f32 %v3309_v39  ;;  %6651 = vmatprep.subr.msk.bf16.mxu1 %vm865_vm0, %v3610_v26 }
 0xd88   : > { %7119 = vrcp.f32 %v3307_v40 }
 0xd89   : > { %7121 = vrcp.f32 %v3311_v27 }
 0xd8a   : > { %v3319_v59 = vpop.xlane.xlu1 %3318  ;;  %v3313_v5 = vpop.xlane.xlu0 %3312 }
 0xd8b   : > { %7123 = vrcp.f32 %v3313_v5 }
 0xd8e   : > { %6377 = vmatpush3.bf16.xpose.msra.mxu1 %v3652_v29  ;;  %v3315_v54 = vpop.xlane.xlu1 %3314 }
 0xd92   : > { %v3321_v30 = vpop.xlane.xlu1 %3320  ;;  %v3327_v24 = vpop.xlane.xlu0 %3326 }
 0xd93   : > { %7125 = vrcp.f32 %v3321_v30 }
 0xd94   : > { %v7118_v18 = vpop.eup %7117  ;;  %7127 = vrcp.f32 %v3315_v54 }
 0xd95   : > { %v7120_v17 = vpop.eup %7119  ;;  %v3351_v49 = vmul.f32 %v7118_v18, %v9299_v53  ;;  %7129 = vrcp.f32 %v3319_v59 }
 0xd96   : > { %v3317_v43 = vpop.xlane.xlu1 %3316  ;;  %v3350_v8 = vmul.f32 %v7120_v17, %v9302_v1  ;;  %v7122_v6 = vpop.eup %7121 }
 0xd97   : > { %7131 = vrcp.f32 %v3317_v43  ;;  %v3323_v34 = vpop.xlane.xlu0 %3322  ;;  %v3352_v26 = vmul.f32 %v7122_v6, %v9296_v28 }
 0xd98   : > { %v3364_v21 = vpack.c.bf16 %v3351_v49, %v3350_v8  ;;  %v7124_v42 = vpop.eup %7123  ;;  %7133 = vrcp.f32 %v3323_v34 }
 0xd99   : > { %v3353_v27 = vmul.f32 %v7124_v42, %v9309_v56 }
 0xd9a   : > { %6354 = vmatprep.mubr.bf16.mxu1 %v3364_v21  ;;  %v3325_v12 = vpop.xlane.xlu1 %3324 }
 0xd9b   : > { %7135 = vrcp.f32 %v3325_v12  ;;  %v3329_v48 = vpop.xlane.xlu0 %3328  ;;  %v3365_v53 = vpack.c.bf16 %v3353_v27, %v3352_v26 }
 0xd9c   : > { %7137 = vrcp.f32 %v3329_v48 }
 0xd9d   : > { %7139 = vrcp.f32 %v3327_v24  ;;  %6355 = vmatmul.mubr.bf16.gmra.mxu1 %v3365_v53 }
 0xd9e   : > { %v3606_v39 = vpop.permute.xlu1 %3605 }
 0xd9f   : > { %v3608_v1 = vpop.permute.xlu0 %3607  ;;  %v3646_v21 = vsel %vm865_vm0, %v3606_v39, 0 }
 0xda0   : > { %6652 = vmatprep.subr.msk.bf16.mxu1 %vm865_vm0, %v3608_v1  ;;  %v3649_v40 = vsel %vm865_vm0, %v3608_v1, 0  ;;  %v7126_v59 = vpop.eup %7125 }
 0xda1   : > { %6379 = vmatpush3.bf16.xpose.msra.mxu1 %v3649_v40  ;;  %v7128_v5 = vpop.eup %7127  ;;  %v3357_v30 = vmul.f32 %v7126_v59, %v9321_v20 }
 0xda2   : > { %6653 = vmatprep.subr.msk.bf16.mxu1 %vm865_vm0, %v3606_v39  ;;  %v3592_v28 = vpop.permute.xlu1 %3591  ;;  %v7130_v29 = vpop.eup %7129  ;;  %v3354_v24 = vmul.f32 %v7128_v5, %v9318_v36 }
 0xda3   : > { %v3590_v56 = vpop.permute.xlu0 %3589  ;;  %v3356_v43 = vmul.f32 %v7130_v29, %v9314_v33 }
 0xda4   : > { %v7132_v54 = vpop.eup %7131 }
 0xda5   : > { %v3355_v18 = vmul.f32 %v7132_v54, %v9327_v62  ;;  %v7134_v17 = vpop.eup %7133  ;;  %v3367_v42 = vpack.c.bf16 %v3357_v30, %v3356_v43 }
 0xda6   : > { %v3596_v49 = vpop.permute.xlu1 %3595  ;;  %v3358_v26 = vmul.f32 %v7134_v17, %v9329_v16 }
 0xda7   : > { %v3594_v8 = vpop.permute.xlu0 %3593  ;;  %v3366_v6 = vpack.c.bf16 %v3355_v18, %v3354_v24 }
 0xda8   : > { %v7136_v34 = vpop.eup %7135 }
 0xda9   : > { %v7138_v12 = vpop.eup %7137  ;;  %6381 = vmatpush3.bf16.xpose.msra.mxu1 %v3646_v21  ;;  %6358 = vmatprep.mubr.bf16.mxu1 %v3366_v6  ;;  %v3359_v20 = vmul.f32 %v7136_v34, %v9333_v9 }
 0xdaa   : > { %v3600_v36 = vpop.permute.xlu1 %3599  ;;  %6359 = vmatmul.mubr.bf16.gmra.mxu1 %v3367_v42  ;;  %v7140_v62 = vpop.eup %7139  ;;  %v3361_v33 = vmul.f32 %v7138_v12, %v9335_v23 }
 0xdab   : > { %v3598_v27 = vpop.permute.xlu0 %3597  ;;  %v3368_v48 = vpack.c.bf16 %v3359_v20, %v3358_v26  ;;  %v3360_v53 = vmul.f32 %v7140_v62, %v9323_v0  ;;  %v3575_v26 = vld [vmem:[#allocation9 + $0x290] sm:$0xff] }
 0xdad   : > { %6362 = vmatprep.mubr.bf16.mxu1 %v3368_v48  ;;  %v3369_v40 = vpack.c.bf16 %v3361_v33, %v3360_v53  ;;  %v3576_v53 = vld [vmem:[#allocation9 + $0x298] sm:$0xff] }
 0xdae   : > { %v3604_v1 = vpop.permute.xlu1 %3603 }
 0xdaf   : > { %v3602_v39 = vpop.permute.xlu0 %3601 }
 0xdb2   : > { %6363 = vmatmul.mubr.bf16.gmra.mxu1 %v3369_v40  ;;  %v3947_v16 = vpop.permute.xlu1 %3946 }
 0xdb3   : > { %v3949_v59 = vpop.permute.xlu0 %3948  ;;  %6382 = vmatprep.mubr.msk.bf16.mxu1 %vm865_vm0, %v3590_v56 }
 0xdb4   : > { %6398 = vmatprep.subr.bf16.mxu0 %v3949_v59 }
 0xdb5   : > { %6399 = vmatpush3.bf16.msra.mxu0 %v3949_v59 }
 0xdb6   : > { %6400 = vmatprep.subr.bf16.mxu0 %v3947_v16  ;;  %v3939_v5 = vpop.permute.xlu1 %3938 }
 0xdb7   : > { %v3945_v9 = vpop.permute.xlu0 %3944 }
 0xdb9   : > { %6401 = vmatpush3.bf16.msra.mxu0 %v3947_v16 }
 0xdba   : > { %6402 = vmatprep.subr.bf16.mxu0 %v3945_v9  ;;  %6383 = vmatmul.mubr.msk.bf16.vlgmr.msra.gmra.mxu1 %vm865_vm0, %v3592_v28 }
 0xdbb   : > { %v3943_v23 = vpop.permute.xlu0 %3942  ;;  %6386 = vmatprep.mubr.msk.bf16.mxu1 %vm865_vm0, %v3594_v8 }
 0xdbd   : > { %6403 = vmatpush3.bf16.msra.mxu0 %v3945_v9 }
 0xdbe   : > { %6404 = vmatprep.subr.bf16.mxu0 %v3943_v23 }
 0xdbf   : > { %v3941_v0 = vpop.permute.xlu0 %3940 }
 0xdc1   : > { %6405 = vmatpush3.bf16.msra.mxu0 %v3943_v23 }
 0xdc2   : > { %6406 = vmatprep.subr.bf16.mxu0 %v3941_v0  ;;  %6387 = vmatmul.mubr.msk.bf16.gmra.mxu1 %vm865_vm0, %v3596_v49 }
 0xdc3   : > { %6390 = vmatprep.mubr.msk.bf16.mxu1 %vm865_vm0, %v3598_v27 }
 0xdc5   : > { %6407 = vmatpush3.bf16.msra.mxu0 %v3941_v0 }
 0xdc6   : > { %6408 = vmatprep.subr.bf16.mxu0 %v3939_v5 }
 0xdc9   : > { %6409 = vmatpush3.bf16.msra.mxu0 %v3939_v5  ;;  %v3580_v5 = vld [vmem:[#allocation9 + $0x2b8] sm:$0xff] }
 0xdca   : > { %6391 = vmatmul.mubr.msk.bf16.gmra.mxu1 %vm865_vm0, %v3600_v36  ;;  %v3573_v36 = vld [vmem:[#allocation9 + $0x280] sm:$0xff] }
 0xdcb   : > { %6394 = vmatprep.mubr.msk.bf16.mxu1 %vm865_vm0, %v3602_v39  ;;  %v3574_v39 = vld [vmem:[#allocation9 + $0x288] sm:$0xff] }
 0xdd2   : > { %6395 = vmatmul.mubr.msk.bf16.gmra.mxu1 %vm865_vm0, %v3604_v1 }
 0xe25   : > { %v9417_v28 = vpop.f32.mrf.mxu1 }
 0xe26   : > { %10701 = vst [vmem:[#allocation76_spill] sm:$0xff] %v9417_v28  ;;  %v4145_v28 = vld [vmem:[#allocation9 + $0x340] sm:$0xff] }
 0xe27   : > { %v9419_v29 = vpop.f32.mrf.mxu1 }
 0xe28   : > { %10702 = vst [vmem:[#allocation77_spill] sm:$0xff] %v9419_v29  ;;  %v4152_v29 = vld [vmem:[#allocation9 + $0x378] sm:$0xff] }
 0xe29   : > { %v9421_v56 = vpop.f32.mrf.mxu1 }
 0xe2a   : > { %10703 = vst [vmem:[#allocation78_spill] sm:$0xff] %v9421_v56 }
 0xe2b   : > { %v9423_v54 = vpop.f32.mrf.mxu1 }
 0xe2c   : > { %10704 = vst [vmem:[#allocation79_spill] sm:$0xff] %v9423_v54 }
 0xe5d   : > { %v9425_v30 = vpop.f32.mrf.mxu1 }
 0xe5e   : > { %10705 = vst [vmem:[#allocation80_spill] sm:$0xff] %v9425_v30 }
 0xe5f   : > { %v9427_v24 = vpop.f32.mrf.mxu1 }
 0xe60   : > { %10706 = vst [vmem:[#allocation81_spill] sm:$0xff] %v9427_v24 }
 0xe61   : > { %v9429_v18 = vpop.f32.mrf.mxu1 }
 0xe62   : > { %10707 = vst [vmem:[#allocation82_spill] sm:$0xff] %v9429_v18 }
 0xe63   : > { %v9431_v17 = vpop.f32.mrf.mxu1 }
 0xe64   : > { %10708 = vst [vmem:[#allocation83_spill] sm:$0xff] %v9431_v17 }
 0xe6a   : > { %v9433_v49 = vpop.f32.mrf.mxu1 }
 0xe6b   : > { %10709 = vst [vmem:[#allocation84_spill] sm:$0xff] %v9433_v49 }
 0xe6c   : > { %v9435_v43 = vpop.f32.mrf.mxu1 }
 0xe6d   : > { %10710 = vst [vmem:[#allocation85_spill] sm:$0xff] %v9435_v43  ;;  %v9781_v43 = vld [vmem:[#allocation11 + $0x40] sm:$0xff] }
 0xe6e   : > { %v9437_v8 = vpop.f32.mrf.mxu1 }
 0xe6f   : > { %10711 = vst [vmem:[#allocation86_spill] sm:$0xff] %v9437_v8  ;;  %v9793_v8 = vld [vmem:[#allocation11 + $0x60] sm:$0xff] }
 0xe70   : > { %v9439_v6 = vpop.f32.mrf.mxu1 }
 0xe71   : > { %10712 = vst [vmem:[#allocation87_spill] sm:$0xff] %v9439_v6 }
 0xe72   : > { %v9441_v34 = vpop.f32.mrf.mxu1 }
 0xe73   : > { %10713 = vst [vmem:[#allocation88_spill] sm:$0xff] %v9441_v34 }
 0xe74   : > { %v9443_v21 = vpop.f32.mrf.mxu1 }
 0xe75   : > { %10714 = vst [vmem:[#allocation89_spill] sm:$0xff] %v9443_v21 }
 0xe76   : > { %v9445_v42 = vpop.f32.mrf.mxu1 }
 0xe77   : > { %10715 = vst [vmem:[#allocation90_spill] sm:$0xff] %v9445_v42 }
 0xe78   : > { %v9447_v12 = vpop.f32.mrf.mxu1 }
 0xe79   : > { %10716 = vst [vmem:[#allocation91_spill] sm:$0xff] %v9447_v12 }
 0xe7a   : > { %v6384_v20 = vpop.f32.mrf.mxu1 }
 0xe7b   : > { %v3712_v62 = vadd.f32 %v6384_v20, %v3575_v26 }
 0xe7c   : > { %v3703_v27 = vpop.f32.mrf.mxu1 }
 0xe7d   : > { %v9450_v48 = vadd.f32 %v9157_v41, %v3712_v62  ;;  %v3704_v33 = vadd.f32 %v3703_v27, %v3573_v36  ;;  %v3578_v36 = vld [vmem:[#allocation9 + $0x2a8] sm:$0xff] }
 0xe7e   : > { %v6385_v1 = vpop.f32.mrf.mxu1 }
 0xe7f   : > { %3786 = vmax.xlane.f32.xlu0 %v9450_v48  ;;  %v9454_v59 = vadd.f32 %v9163_v55, %v3704_v33  ;;  %v3715_v16 = vadd.f32 %v6385_v1, %v3576_v53  ;;  %v3584_v1 = vld [vmem:[#allocation9 + $0x2d8] sm:$0xff] }
 0xe80   : > { %v3706_v40 = vpop.f32.mrf.mxu1 }
 0xe81   : > { %v3707_v9 = vadd.f32 %v3706_v40, %v3574_v39  ;;  %v9461_v26 = vadd.f32 %v9174_v14, %v3715_v16  ;;  %v3582_v40 = vld [vmem:[#allocation9 + $0x2c8] sm:$0xff] }
 0xe82   : > { %v6388_v23 = vpop.f32.mrf.mxu1 }
 0xe83   : > { %v9457_v0 = vadd.f32 %v9168_v11, %v3707_v9  ;;  %3782 = vmax.xlane.f32.xlu0 %v9454_v59 }
 0xe84   : > { %v3719_v41 = vpop.f32.mrf.mxu1 }
 0xe85   : > { %3784 = vmax.xlane.f32.xlu1 %v9457_v0 }
 0xe86   : > { %v6389_v20 = vpop.f32.mrf.mxu1 }
 0xe87   : > { %v3731_v62 = vadd.f32 %v6389_v20, %v3580_v5  ;;  %3788 = vmax.xlane.f32.xlu0 %v9461_v26 }
 0xe88   : > { %v3722_v55 = vpop.f32.mrf.mxu1 }
 0xe89   : > { %v9466_v27 = vadd.f32 %v9181_v35, %v3731_v62  ;;  %v3723_v11 = vadd.f32 %v3722_v55, %v3578_v36  ;;  %v3577_v36 = vld [vmem:[#allocation9 + $0x2a0] sm:$0xff]  ;;  %v3583_v55 = vld [vmem:[#allocation9 + $0x2d0] sm:$0xff] }
 0xe8a   : > { %v6392_v33 = vpop.f32.mrf.mxu1 }
 0xe8b   : > { %3796 = vmax.xlane.f32.xlu1 %v9466_v27  ;;  %v9470_v14 = vadd.f32 %v9187_v47, %v3723_v11 }
 0xe8c   : > { %v3735_v53 = vpop.f32.mrf.mxu1 }
 0xe8e   : > { %v6393_v39 = vpop.f32.mrf.mxu1 }
 0xe8f   : > { %v3747_v16 = vadd.f32 %v6393_v39, %v3584_v1  ;;  %3792 = vmax.xlane.f32.xlu1 %v9470_v14  ;;  %v3744_v1 = vadd.f32 %v6392_v33, %v3583_v55  ;;  %v3581_v39 = vld [vmem:[#allocation9 + $0x2c0] sm:$0xff]  ;;  %v10717_v33 = vld [vmem:[#allocation72_spill] sm:$0xff] }
 0xe90   : > { %v3738_v9 = vpop.f32.mrf.mxu1 }
 0xe91   : > { %v9474_v5 = vadd.f32 %v9193_v58, %v3747_v16  ;;  %v3739_v35 = vadd.f32 %v3738_v9, %v3582_v40  ;;  %v3579_v58 = vld [vmem:[#allocation9 + $0x2b0] sm:$0xff]  ;;  %v9496_v16 = vadd.f32 %v9223_v38, %v3744_v1  ;;  %v10718_v1 = vld [vmem:[#allocation73_spill] sm:$0xff] }
 0xe92   : > { %v3728_v47 = vadd.f32 %v6388_v23, %v3579_v58  ;;  %v6396_v40 = vpop.f32.mrf.mxu1  ;;  %v3736_v23 = vadd.f32 %v3735_v53, %v3581_v39  ;;  %v3587_v9 = vld [vmem:[#allocation9 + $0x2f0] sm:$0xff]  ;;  %v3585_v58 = vld [vmem:[#allocation9 + $0x2e0] sm:$0xff]  ;;  %v3586_v53 = vld [vmem:[#allocation9 + $0x2e8] sm:$0xff] }
 0xe93   : > { %3804 = vmax.xlane.f32.xlu1 %v9474_v5  ;;  %v9478_v20 = vadd.f32 %v9199_v2, %v3739_v35  ;;  %v3720_v2 = vadd.f32 %v3719_v41, %v3577_v36  ;;  %v3760_v41 = vadd.f32 %v6396_v40, %v3587_v9  ;;  %v10720_v9 = vld [vmem:[#allocation75_spill] sm:$0xff] }
 0xe94   : > { %v9488_v62 = vadd.f32 %v9211_v46, %v3728_v47  ;;  %v3751_v35 = vpop.f32.mrf.mxu1  ;;  %v9500_v46 = vadd.f32 %v9229_v50, %v3736_v23  ;;  %v10719_v50 = vld [vmem:[#allocation74_spill] sm:$0xff] }
 0xe95   : > { %v9492_v11 = vadd.f32 %v9217_v63, %v3720_v2  ;;  %v3588_v63 = vld [vmem:[#allocation9 + $0x2f8] sm:$0xff]  ;;  %v9504_v36 = vadd.f32 %v10717_v33, %v3760_v41  ;;  %v3752_v2 = vadd.f32 %v3751_v35, %v3585_v58  ;;  %v10721_v35 = vld [vmem:[#allocation18_spill] sm:$0xff]  ;;  %v10722_v58 = vld [vmem:[#allocation21_spill] sm:$0xff] }
 0xe96   : > { %v6397_v47 = vpop.f32.mrf.mxu1 }
 0xe97   : > { %3800 = vmax.xlane.f32.xlu1 %v9478_v20  ;;  %v3763_v38 = vadd.f32 %v6397_v47, %v3588_v63  ;;  %v9508_v39 = vadd.f32 %v10718_v1, %v3752_v2  ;;  %v10723_v63 = vld [vmem:[#allocation22_spill] sm:$0xff]  ;;  %v3935_v2 = vpop.permute.xlu1 %3934 }
 0xe98   : > { %v3754_v55 = vpop.f32.mrf.mxu1 }
 0xe99   : > { %v9511_v23 = vadd.f32 %v10719_v50, %v3763_v38  ;;  %v3755_v40 = vadd.f32 %v3754_v55, %v3586_v53 }
 0xe9b   : > { %v9516_v41 = vadd.f32 %v10720_v9, %v3755_v40 }
 0xe9d   : > { %3936 = vrot.lane.b32.xlu0 %v7987_v61, %s7603_s23 }
 0xea8   : > { %4181 = vrot.lane.b32.xlu1 %v7942_v15, %s7604_s17 }
 0xeac   : > { %4177 = vrot.lane.b32.xlu1 %v8013_v25, %s7604_s17 }
 0xebc   : > { %3794 = vmax.xlane.f32.xlu0 %v9488_v62 }
 0xec0   : > { %3790 = vmax.xlane.f32.xlu0 %v9492_v11 }
 0xec4   : > { %3802 = vmax.xlane.f32.xlu0 %v9496_v16 }
 0xec8   : > { %3798 = vmax.xlane.f32.xlu0 %v9500_v46 }
 0xecc   : > { %3810 = vmax.xlane.f32.xlu0 %v9504_v36 }
 0xed0   : > { %3812 = vmax.xlane.f32.xlu1 %v9511_v23  ;;  %3806 = vmax.xlane.f32.xlu0 %v9508_v39 }
 0xed4   : > { %3808 = vmax.xlane.f32.xlu1 %v9516_v41 }
 0xee6   : > { %4183 = vrot.lane.b32.xlu0 %v10721_v35, %s7604_s17 }
 0xeea   : > { %4179 = vrot.lane.b32.xlu0 %v10722_v58, %s7604_s17 }
 0xeee   : > { %4175 = vrot.lane.b32.xlu0 %v10723_v63, %s7604_s17 }
 0xf08   : > { %v3787_v47 = vpop.xlane.xlu0 %3786 }
 0xf09   : > { %v3816_v33 = vsub.f32 %v9450_v48, %v3787_v47 }
 0xf0b   : > { %v3834_v38 = vmul.f32 1.442695, %v3816_v33 }
 0xf0c   : > { %v3783_v55 = vpop.xlane.xlu0 %3782 }
 0xf0d   : > { %7141 = vpow2.f32 %v3834_v38  ;;  %v3814_v53 = vsub.f32 %v9454_v59, %v3783_v55 }
 0xf0e   : > { %v3785_v1 = vpop.xlane.xlu1 %3784 }
 0xf0f   : > { %v3830_v50 = vmul.f32 1.442695, %v3814_v53  ;;  %v3815_v9 = vsub.f32 %v9457_v0, %v3785_v1 }
 0xf10   : > { %v3789_v40 = vpop.xlane.xlu0 %3788 }
 0xf11   : > { %7143 = vpow2.f32 %v3830_v50  ;;  %v3817_v34 = vsub.f32 %v9461_v26, %v3789_v40  ;;  %v3832_v24 = vmul.f32 1.442695, %v3815_v9 }
 0xf13   : > { %v3836_v30 = vmul.f32 1.442695, %v3817_v34 }
 0xf14   : > { %v3937_v21 = vpop.permute.xlu0 %3936 }
 0xf15   : > { %7145 = vpow2.f32 %v3836_v30  ;;  %6410 = vmatprep.subr.bf16.mxu0 %v3937_v21  ;;  %v3797_v30 = vpop.xlane.xlu1 %3796 }
 0xf16   : > { %6411 = vmatpush3.bf16.msra.mxu0 %v3937_v21  ;;  %7147 = vpow2.f32 %v3832_v24  ;;  %v10724_v24 = vld [vmem:[#allocation23_spill] sm:$0xff]  ;;  %v3821_v55 = vsub.f32 %v9466_v27, %v3797_v30 }
 0xf17   : > { %6412 = vmatprep.subr.bf16.mxu0 %v3935_v2 }
 0xf18   : > { %v3844_v42 = vmul.f32 1.442695, %v3821_v55 }
 0xf19   : > { %v3793_v21 = vpop.xlane.xlu1 %3792 }
 0xf1a   : > { %v9529_v48 = vpop.eup %7141  ;;  %6413 = vmatpush3.bf16.msra.mxu0 %v3935_v2  ;;  %v3819_v47 = vsub.f32 %v9470_v14, %v3793_v21 }
 0xf1b   : > { %3866 = vadd.xlane.f32.xlu1 %v9529_v48 }
 0xf1c   : > { %v3840_v53 = vmul.f32 1.442695, %v3819_v47 }
 0xf1d   : > { %v3805_v26 = vpop.xlane.xlu1 %3804 }
 0xf1e   : > { %v9532_v59 = vpop.eup %7143 }
 0xf1f   : > { %3862 = vadd.xlane.f32.xlu1 %v9532_v59 }
 0xf21   : > { %v3801_v1 = vpop.xlane.xlu1 %3800 }
 0xf22   : > { %v9535_v0 = vpop.eup %7145 }
 0xf23   : > { %3868 = vadd.xlane.f32.xlu1 %v9535_v0  ;;  %v9538_v34 = vpop.eup %7147 }
 0xf25   : > { %v9548_v14 = vpop.permute.xlu1 %4181 }
 0xf27   : > { %3864 = vadd.xlane.f32.xlu1 %v9538_v34 }
 0xf38   : > { %4173 = vrot.lane.b32.xlu1 %v10724_v24, %s7604_s17 }
 0xf45   : > { %v3795_v33 = vpop.xlane.xlu0 %3794 }
 0xf46   : > { %v3820_v2 = vsub.f32 %v9488_v62, %v3795_v33  ;;  %v3825_v62 = vsub.f32 %v9474_v5, %v3805_v26 }
 0xf48   : > { %v3842_v38 = vmul.f32 1.442695, %v3820_v2  ;;  %v3852_v33 = vmul.f32 1.442695, %v3825_v62 }
 0xf49   : > { %v3791_v50 = vpop.xlane.xlu0 %3790 }
 0xf4a   : > { %7149 = vpow2.f32 %v3842_v38  ;;  %v3818_v40 = vsub.f32 %v9492_v11, %v3791_v50  ;;  %v9552_v11 = vpop.permute.xlu1 %4177  ;;  %v3823_v38 = vsub.f32 %v9478_v20, %v3801_v1 }
 0xf4b   : > { %7151 = vpow2.f32 %v3840_v53 }
 0xf4c   : > { %v3838_v9 = vmul.f32 1.442695, %v3818_v40 }
 0xf4d   : > { %v3803_v18 = vpop.xlane.xlu0 %3802 }
 0xf4e   : > { %7153 = vpow2.f32 %v3838_v9  ;;  %v3824_v12 = vsub.f32 %v9496_v16, %v3803_v18 }
 0xf4f   : > { %7155 = vpow2.f32 %v3844_v42 }
 0xf50   : > { %v3850_v21 = vmul.f32 1.442695, %v3824_v12 }
 0xf51   : > { %v3799_v27 = vpop.xlane.xlu0 %3798 }
 0xf52   : > { %7157 = vpow2.f32 %v3850_v21  ;;  %v3822_v30 = vsub.f32 %v9500_v46, %v3799_v27  ;;  %v3848_v46 = vmul.f32 1.442695, %v3823_v38 }
 0xf54   : > { %v3846_v47 = vmul.f32 1.442695, %v3822_v30 }
 0xf55   : > { %v3811_v2 = vpop.xlane.xlu0 %3810 }
 0xf56   : > { %7159 = vpow2.f32 %v3846_v47  ;;  %v3828_v18 = vsub.f32 %v9504_v36, %v3811_v2 }
 0xf57   : > { %v9556_v16 = vpop.eup %7149  ;;  %7161 = vpow2.f32 %v3852_v33 }
 0xf58   : > { %v3858_v12 = vmul.f32 1.442695, %v3828_v18  ;;  %3874 = vadd.xlane.f32.xlu0 %v9556_v16  ;;  %v9559_v26 = vpop.eup %7151  ;;  %v10725_v18 = vld [vmem:[#allocation17_spill] sm:$0xff] }
 0xf59   : > { %v3813_v42 = vpop.xlane.xlu1 %3812  ;;  %v3807_v5 = vpop.xlane.xlu0 %3806 }
 0xf5a   : > { %7163 = vpow2.f32 %v3858_v12  ;;  %v3826_v55 = vsub.f32 %v9508_v39, %v3807_v5  ;;  %v3829_v20 = vsub.f32 %v9511_v23, %v3813_v42 }
 0xf5b   : > { %v9562_v53 = vpop.eup %7153  ;;  %7165 = vpow2.f32 %v3848_v46 }
 0xf5c   : > { %v3854_v1 = vmul.f32 1.442695, %v3826_v55  ;;  %3872 = vadd.xlane.f32.xlu1 %v9559_v26  ;;  %3870 = vadd.xlane.f32.xlu0 %v9562_v53  ;;  %v9569_v40 = vpop.eup %7155  ;;  %v3860_v21 = vmul.f32 1.442695, %v3829_v20 }
 0xf5d   : > { %v3809_v36 = vpop.xlane.xlu1 %3808  ;;  %v9567_v50 = vpop.permute.xlu0 %4183 }
 0xf5e   : > { %v3827_v9 = vsub.f32 %v9516_v41, %v3809_v36  ;;  %6654 = vmatprep.subr.msk.bf16.mxu0 %vm865_vm0, %v9567_v50  ;;  %7167 = vpow2.f32 %v3854_v1 }
 0xf5f   : > { %v9574_v39 = vpop.eup %7157 }
 0xf60   : > { %v3856_v23 = vmul.f32 1.442695, %v3827_v9  ;;  %3876 = vadd.xlane.f32.xlu0 %v9569_v40  ;;  %3882 = vadd.xlane.f32.xlu1 %v9574_v39 }
 0xf62   : > { %7169 = vpow2.f32 %v3856_v23 }
 0xf63   : > { %v9578_v62 = vpop.eup %7159  ;;  %7171 = vpow2.f32 %v3860_v21 }
 0xf64   : > { %3878 = vadd.xlane.f32.xlu1 %v9578_v62  ;;  %v9581_v27 = vpop.eup %7161 }
 0xf67   : > { %v9583_v41 = vpop.eup %7163 }
 0xf68   : > { %3884 = vadd.xlane.f32.xlu1 %v9581_v27  ;;  %3890 = vadd.xlane.f32.xlu0 %v9583_v41  ;;  %v9587_v30 = vpop.eup %7165 }
 0xf6b   : > { %v9589_v47 = vpop.eup %7167 }
 0xf6c   : > { %3880 = vadd.xlane.f32.xlu1 %v9587_v30  ;;  %3886 = vadd.xlane.f32.xlu0 %v9589_v47 }
 0xf6f   : > { %v9593_v33 = vpop.eup %7169 }
 0xf70   : > { %v9595_v2 = vpop.eup %7171  ;;  %3888 = vadd.xlane.f32.xlu1 %v9593_v33 }
 0xf71   : > { %3892 = vadd.xlane.f32.xlu0 %v9595_v2 }
 0xf81   : > { %4169 = vrot.lane.b32.xlu1 %v8053_v10, %s7604_s17 }
 0xf85   : > { %4155 = vrot.lane.b32.xlu1 %v7865_v51, %s7604_s17 }
 0xf87   : > { %4171 = vrot.lane.b32.xlu0 %v8043_v3, %s7604_s17 }
 0xf89   : > { %4159 = vrot.lane.b32.xlu1 %v7891_v7, %s7604_s17 }
 0xf8b   : > { %4153 = vrot.lane.b32.xlu0 %v7855_v44, %s7604_s17 }
 0xf8d   : > { %4163 = vrot.lane.b32.xlu1 %v7914_v32, %s7604_s17 }
 0xf8f   : > { %4157 = vrot.lane.b32.xlu0 %v7877_v60, %s7604_s17 }
 0xf91   : > { %4167 = vrot.lane.b32.xlu1 %v7963_v31, %s7604_s17 }
 0xf93   : > { %4161 = vrot.lane.b32.xlu0 %v7902_v19, %s7604_s17 }
 0xf95   : > { %4510 = vrot.lane.b32.xlu1 %v7925_v57, %s7604_s17 }
 0xf97   : > { %4165 = vrot.lane.b32.xlu0 %v7939_v13, %s7604_s17 }
 0xf99   : > { %4502 = vrot.lane.b32.xlu1 %v7973_v37, %s7604_s17 }
 0xf9b   : > { %4512 = vrot.lane.b32.xlu0 %v7922_v52, %s7604_s17 }
 0xf9d   : > { %4498 = vrot.lane.b32.xlu1 %v7997_v45, %s7604_s17 }
 0xf9f   : > { %4508 = vrot.lane.b32.xlu0 %v7934_v4, %s7604_s17 }
 0xfa3   : > { %4506 = vrot.lane.b32.xlu0 %v7948_v22, %s7604_s17 }
 0xfa4   : > { %v3867_v38 = vpop.xlane.xlu1 %3866 }
 0xfa7   : > { %4504 = vrot.lane.b32.xlu0 %v10725_v18, %s7604_s17 }
 0xfa8   : > { %v3863_v12 = vpop.xlane.xlu1 %3862 }
 0xfac   : > { %v3869_v42 = vpop.xlane.xlu1 %3868 }
 0xfad   : > { %7173 = vrcp.f32 %v3869_v42 }
 0xfae   : > { %7175 = vrcp.f32 %v3863_v12  ;;  %v4180_v12 = vpop.permute.xlu0 %4179 }
 0xfaf   : > { %7177 = vrcp.f32 %v3867_v38  ;;  %v4231_v38 = vsel %vm865_vm0, %v9567_v50, 0 }
 0xfb0   : > { %v3865_v5 = vpop.xlane.xlu1 %3864 }
 0xfb1   : > { %7179 = vrcp.f32 %v3865_v5 }
 0xfba   : > { %v7174_v46 = vpop.eup %7173 }
 0xfbb   : > { %v7176_v55 = vpop.eup %7175  ;;  %v3913_v36 = vmul.f32 %v7174_v46, %v9535_v0  ;;  %v4228_v0 = vsel %vm865_vm0, %v9548_v14, 0 }
 0xfbc   : > { %v7178_v20 = vpop.eup %7177  ;;  %v3910_v9 = vmul.f32 %v7176_v55, %v9532_v59  ;;  %v4174_v59 = vpop.permute.xlu1 %4173 }
 0xfbd   : > { %v3912_v23 = vmul.f32 %v7178_v20, %v9529_v48  ;;  %v4225_v48 = vsel %vm865_vm0, %v4180_v12, 0 }
 0xfbe   : > { %v7180_v1 = vpop.eup %7179 }
 0xfbf   : > { %v3911_v21 = vmul.f32 %v7180_v1, %v9538_v34  ;;  %v3927_v49 = vpack.c.bf16 %v3913_v36, %v3912_v23 }
 0xfc1   : > { %v3926_v17 = vpack.c.bf16 %v3911_v21, %v3910_v9 }
 0xfc3   : > { %6414 = vmatprep.mubr.bf16.mxu0 %v3926_v17  ;;  %v4222_v17 = vsel %vm865_vm0, %v9552_v11, 0 }
 0xfc4   : > { %6415 = vmatmul.mubr.bf16.vlgmr.msra.gmra.mxu0 %v3927_v49  ;;  %v4176_v49 = vpop.permute.xlu0 %4175 }
 0xfc5   : > { %6431 = vmatpush3.bf16.xpose.msra.mxu0 %v4231_v38 }
 0xfc6   : > { %6655 = vmatprep.subr.msk.bf16.mxu0 %vm865_vm0, %v9548_v14  ;;  %v4219_v14 = vsel %vm865_vm0, %v4176_v49, 0 }
 0xfcd   : > { %6433 = vmatpush3.bf16.xpose.msra.mxu0 %v4228_v0 }
 0xfce   : > { %6656 = vmatprep.subr.msk.bf16.mxu0 %vm865_vm0, %v4180_v12 }
 0xfd5   : > { %6435 = vmatpush3.bf16.xpose.msra.mxu0 %v4225_v48 }
 0xfd6   : > { %6657 = vmatprep.subr.msk.bf16.mxu0 %vm865_vm0, %v9552_v11  ;;  %v4216_v11 = vsel %vm865_vm0, %v4174_v59, 0 }
 0xfdd   : > { %6437 = vmatpush3.bf16.xpose.msra.mxu0 %v4222_v17 }
 0xfde   : > { %6658 = vmatprep.subr.msk.bf16.mxu0 %vm865_vm0, %v4176_v49 }
 0xfe1   : > { %v3875_v34 = vpop.xlane.xlu0 %3874 }
 0xfe5   : > { %6439 = vmatpush3.bf16.xpose.msra.mxu0 %v4219_v14  ;;  %v3873_v50 = vpop.xlane.xlu1 %3872  ;;  %v3871_v42 = vpop.xlane.xlu0 %3870 }
 0xfe6   : > { %7181 = vrcp.f32 %v3873_v50  ;;  %6659 = vmatprep.subr.msk.bf16.mxu0 %vm865_vm0, %v4174_v59 }
 0xfe7   : > { %7183 = vrcp.f32 %v3871_v42 }
 0xfe8   : > { %7185 = vrcp.f32 %v3875_v34 }
 0xfe9   : > { %v3883_v5 = vpop.xlane.xlu1 %3882  ;;  %v3877_v46 = vpop.xlane.xlu0 %3876 }
 0xfea   : > { %7187 = vrcp.f32 %v3877_v46 }
 0xfed   : > { %6441 = vmatpush3.bf16.xpose.msra.mxu0 %v4216_v11  ;;  %v3879_v55 = vpop.xlane.xlu1 %3878 }
 0xff1   : > { %v3885_v20 = vpop.xlane.xlu1 %3884  ;;  %v3891_v1 = vpop.xlane.xlu0 %3890 }
 0xff2   : > { %7189 = vrcp.f32 %v3885_v20 }
 0xff3   : > { %v7182_v36 = vpop.eup %7181  ;;  %7191 = vrcp.f32 %v3879_v55 }
 0xff4   : > { %v7184_v9 = vpop.eup %7183  ;;  %v3915_v21 = vmul.f32 %v7182_v36, %v9559_v26  ;;  %7193 = vrcp.f32 %v3883_v5 }
 0xff5   : > { %v3881_v23 = vpop.xlane.xlu1 %3880  ;;  %v3914_v38 = vmul.f32 %v7184_v9, %v9562_v53  ;;  %v7186_v0 = vpop.eup %7185 }
 0xff6   : > { %7195 = vrcp.f32 %v3881_v23  ;;  %v3887_v12 = vpop.xlane.xlu0 %3886  ;;  %v3916_v59 = vmul.f32 %v7186_v0, %v9556_v16 }
 0xff7   : > { %v3928_v48 = vpack.c.bf16 %v3915_v21, %v3914_v38  ;;  %v7188_v17 = vpop.eup %7187  ;;  %7197 = vrcp.f32 %v3887_v12 }
 0xff8   : > { %v3917_v34 = vmul.f32 %v7188_v17, %v9569_v40 }
 0xff9   : > { %6418 = vmatprep.mubr.bf16.mxu0 %v3928_v48  ;;  %v3889_v49 = vpop.xlane.xlu1 %3888 }
 0xffa   : > { %7199 = vrcp.f32 %v3889_v49  ;;  %v3893_v14 = vpop.xlane.xlu0 %3892  ;;  %v3929_v26 = vpack.c.bf16 %v3917_v34, %v3916_v59 }
 0xffb   : > { %7201 = vrcp.f32 %v3893_v14 }
 0xffc   : > { %7203 = vrcp.f32 %v3891_v1  ;;  %6419 = vmatmul.mubr.bf16.gmra.mxu0 %v3929_v26 }
 0xffd   : > { %v4170_v50 = vpop.permute.xlu1 %4169 }
 0xffe   : > { %v4172_v53 = vpop.permute.xlu0 %4171  ;;  %v4210_v48 = vsel %vm865_vm0, %v4170_v50, 0 }
 0xfff   : > { %6660 = vmatprep.subr.msk.bf16.mxu0 %vm865_vm0, %v4172_v53  ;;  %v4213_v42 = vsel %vm865_vm0, %v4172_v53, 0  ;;  %v7190_v5 = vpop.eup %7189 }
0x1000   : > { %6443 = vmatpush3.bf16.xpose.msra.mxu0 %v4213_v42  ;;  %v7192_v46 = vpop.eup %7191  ;;  %v3921_v20 = vmul.f32 %v7190_v5, %v9581_v27 }
0x1001   : > { %6661 = vmatprep.subr.msk.bf16.mxu0 %vm865_vm0, %v4170_v50  ;;  %v4156_v16 = vpop.permute.xlu1 %4155  ;;  %v7194_v11 = vpop.eup %7193  ;;  %v3918_v1 = vmul.f32 %v7192_v46, %v9578_v62 }
0x1002   : > { %v4154_v40 = vpop.permute.xlu0 %4153  ;;  %v3920_v23 = vmul.f32 %v7194_v11, %v9574_v39 }
0x1003   : > { %v7196_v55 = vpop.eup %7195 }
0x1004   : > { %v3919_v36 = vmul.f32 %v7196_v55, %v9587_v30  ;;  %v7198_v9 = vpop.eup %7197  ;;  %v3931_v17 = vpack.c.bf16 %v3921_v20, %v3920_v23 }
0x1005   : > { %v4160_v21 = vpop.permute.xlu1 %4159  ;;  %v3922_v59 = vmul.f32 %v7198_v9, %v9589_v47 }
0x1006   : > { %v4158_v38 = vpop.permute.xlu0 %4157  ;;  %v3930_v0 = vpack.c.bf16 %v3919_v36, %v3918_v1 }
0x1007   : > { %v7200_v12 = vpop.eup %7199 }
0x1008   : > { %v7202_v49 = vpop.eup %7201  ;;  %6445 = vmatpush3.bf16.xpose.msra.mxu0 %v4210_v48  ;;  %6422 = vmatprep.mubr.bf16.mxu0 %v3930_v0  ;;  %v3923_v27 = vmul.f32 %v7200_v12, %v9593_v33 }
0x1009   : > { %v4164_v62 = vpop.permute.xlu1 %4163  ;;  %6423 = vmatmul.mubr.bf16.gmra.mxu0 %v3931_v17  ;;  %v7204_v30 = vpop.eup %7203  ;;  %v3925_v39 = vmul.f32 %v7202_v49, %v9595_v2 }
0x100a   : > { %v4162_v34 = vpop.permute.xlu0 %4161  ;;  %v3932_v14 = vpack.c.bf16 %v3923_v27, %v3922_v59  ;;  %v3924_v26 = vmul.f32 %v7204_v30, %v9583_v41  ;;  %v4139_v59 = vld [vmem:[#allocation9 + $0x310] sm:$0xff] }
0x100c   : > { %6426 = vmatprep.mubr.bf16.mxu0 %v3932_v14  ;;  %v3933_v42 = vpack.c.bf16 %v3925_v39, %v3924_v26  ;;  %v9709_v14 = vld [vmem:[#allocation11 + $0x10] sm:$0xff] }
0x100d   : > { %v4168_v53 = vpop.permute.xlu1 %4167 }
0x100e   : > { %v4166_v50 = vpop.permute.xlu0 %4165 }
0x1011   : > { %6427 = vmatmul.mubr.bf16.gmra.mxu0 %v3933_v42  ;;  %v4511_v47 = vpop.permute.xlu1 %4510  ;;  %v4138_v42 = vld [vmem:[#allocation9 + $0x308] sm:$0xff] }
0x1012   : > { %v4513_v5 = vpop.permute.xlu0 %4512  ;;  %6446 = vmatprep.mubr.msk.bf16.mxu0 %vm865_vm0, %v4154_v40 }
0x1013   : > { %6462 = vmatprep.subr.bf16.mxu1 %v4513_v5 }
0x1014   : > { %6463 = vmatpush3.bf16.msra.mxu1 %v4513_v5 }
0x1015   : > { %6464 = vmatprep.subr.bf16.mxu1 %v4511_v47  ;;  %v4503_v46 = vpop.permute.xlu1 %4502 }
0x1016   : > { %v4509_v33 = vpop.permute.xlu0 %4508 }
0x1018   : > { %6465 = vmatpush3.bf16.msra.mxu1 %v4511_v47  ;;  %v9715_v47 = vld [vmem:[#allocation11] sm:$0xff] }
0x1019   : > { %6466 = vmatprep.subr.bf16.mxu1 %v4509_v33  ;;  %6447 = vmatmul.mubr.msk.bf16.vlgmr.msra.gmra.mxu0 %vm865_vm0, %v4156_v16 }
0x101a   : > { %v4507_v2 = vpop.permute.xlu0 %4506  ;;  %6450 = vmatprep.mubr.msk.bf16.mxu0 %vm865_vm0, %v4158_v38 }
0x101c   : > { %6467 = vmatpush3.bf16.msra.mxu1 %v4509_v33 }
0x101d   : > { %6468 = vmatprep.subr.bf16.mxu1 %v4507_v2 }
0x101e   : > { %v4505_v41 = vpop.permute.xlu0 %4504 }
0x1020   : > { %6469 = vmatpush3.bf16.msra.mxu1 %v4507_v2 }
0x1021   : > { %6470 = vmatprep.subr.bf16.mxu1 %v4505_v41  ;;  %6451 = vmatmul.mubr.msk.bf16.gmra.mxu0 %vm865_vm0, %v4160_v21 }
0x1022   : > { %6454 = vmatprep.mubr.msk.bf16.mxu0 %vm865_vm0, %v4162_v34 }
0x1024   : > { %6471 = vmatpush3.bf16.msra.mxu1 %v4505_v41 }
0x1025   : > { %6472 = vmatprep.subr.bf16.mxu1 %v4503_v46 }
0x1028   : > { %6473 = vmatpush3.bf16.msra.mxu1 %v4503_v46 }
0x1029   : > { %6455 = vmatmul.mubr.msk.bf16.gmra.mxu0 %vm865_vm0, %v4164_v62  ;;  %v4137_v62 = vld [vmem:[#allocation9 + $0x300] sm:$0xff] }
0x102a   : > { %6458 = vmatprep.mubr.msk.bf16.mxu0 %vm865_vm0, %v4166_v50 }
0x1031   : > { %6459 = vmatmul.mubr.msk.bf16.gmra.mxu0 %vm865_vm0, %v4168_v53  ;;  %v4140_v53 = vld [vmem:[#allocation9 + $0x318] sm:$0xff] }
0x1084   : > { %v9677_v16 = vpop.f32.mrf.mxu0 }
0x1085   : > { %10726 = vst [vmem:[#allocation72_spill] sm:$0xff] %v9677_v16 }
0x1086   : > { %v9679_v11 = vpop.f32.mrf.mxu0 }
0x1087   : > { %10727 = vst [vmem:[#allocation73_spill] sm:$0xff] %v9679_v11 }
0x1088   : > { %v9681_v40 = vpop.f32.mrf.mxu0 }
0x1089   : > { %10728 = vst [vmem:[#allocation74_spill] sm:$0xff] %v9681_v40  ;;  %v9787_v40 = vld [vmem:[#allocation11 + $0x70] sm:$0xff] }
0x108a   : > { %v9683_v55 = vpop.f32.mrf.mxu0 }
0x108b   : > { %10729 = vst [vmem:[#allocation75_spill] sm:$0xff] %v9683_v55  ;;  %v4150_v55 = vld [vmem:[#allocation9 + $0x368] sm:$0xff] }
0x10bc   : > { %v9685_v20 = vpop.f32.mrf.mxu0 }
0x10bd   : > { %10730 = vst [vmem:[#allocation18_spill] sm:$0xff] %v9685_v20 }
0x10be   : > { %v9687_v1 = vpop.f32.mrf.mxu0 }
0x10bf   : > { %10731 = vst [vmem:[#allocation21_spill] sm:$0xff] %v9687_v1 }
0x10c0   : > { %v9689_v36 = vpop.f32.mrf.mxu0 }
0x10c1   : > { %10732 = vst [vmem:[#allocation22_spill] sm:$0xff] %v9689_v36 }
0x10c2   : > { %v9691_v9 = vpop.f32.mrf.mxu0 }
0x10c3   : > { %10733 = vst [vmem:[#allocation23_spill] sm:$0xff] %v9691_v9 }
0x10c9   : > { %v9693_v21 = vpop.f32.mrf.mxu0 }
0x10ca   : > { %10734 = vst [vmem:[#allocation17_spill] sm:$0xff] %v9693_v21  ;;  %v9745_v21 = vld [vmem:[#allocation11 + $0x58] sm:$0xff] }
0x10cb   : > { %v9695_v23 = vpop.f32.mrf.mxu0 }
0x10cc   : > { %10735 = vst [vmem:[#allocation92_spill] sm:$0xff] %v9695_v23  ;;  %v9769_v23 = vld [vmem:[#allocation11 + $0x20] sm:$0xff] }
0x10cd   : > { %v9697_v38 = vpop.f32.mrf.mxu0 }
0x10ce   : > { %10736 = vst [vmem:[#allocation93_spill] sm:$0xff] %v9697_v38 }
0x10cf   : > { %v9699_v0 = vpop.f32.mrf.mxu0 }
0x10d0   : > { %10737 = vst [vmem:[#allocation94_spill] sm:$0xff] %v9699_v0 }
0x10d1   : > { %v9701_v12 = vpop.f32.mrf.mxu0 }
0x10d2   : > { %10738 = vst [vmem:[#allocation95_spill] sm:$0xff] %v9701_v12 }
0x10d3   : > { %v9703_v48 = vpop.f32.mrf.mxu0 }
0x10d4   : > { %10739 = vst [vmem:[#allocation96_spill] sm:$0xff] %v9703_v48 }
0x10d5   : > { %v9705_v17 = vpop.f32.mrf.mxu0 }
0x10d6   : > { %10740 = vst [vmem:[#allocation97_spill] sm:$0xff] %v9705_v17  ;;  %v9739_v17 = vld [vmem:[#allocation11 + $0x28] sm:$0xff] }
0x10d7   : > { %v9707_v49 = vpop.f32.mrf.mxu0 }
0x10d8   : > { %10741 = vst [vmem:[#allocation98_spill] sm:$0xff] %v9707_v49 }
0x10d9   : > { %v6448_v27 = vpop.f32.mrf.mxu0 }
0x10da   : > { %v4276_v30 = vadd.f32 %v6448_v27, %v4139_v59  ;;  %v9720_v59 = vld [vmem:[#allocation11 + $0x8] sm:$0xff] }
0x10db   : > { %v4267_v34 = vpop.f32.mrf.mxu0 }
0x10dc   : > { %v9712_v39 = vadd.f32 %v9709_v14, %v4276_v30  ;;  %v4268_v26 = vadd.f32 %v4267_v34, %v4137_v62  ;;  %v4144_v30 = vld [vmem:[#allocation9 + $0x338] sm:$0xff] }
0x10dd   : > { %v6449_v50 = vpop.f32.mrf.mxu0  ;;  %v9726_v34 = vld [vmem:[#allocation11 + $0x18] sm:$0xff] }
0x10de   : > { %4350 = vmax.xlane.f32.xlu0 %v9712_v39  ;;  %v9718_v33 = vadd.f32 %v9715_v47, %v4268_v26  ;;  %v4279_v2 = vadd.f32 %v6449_v50, %v4140_v53  ;;  %v4142_v53 = vld [vmem:[#allocation9 + $0x328] sm:$0xff] }
0x10df   : > { %v4270_v5 = vpop.f32.mrf.mxu0 }
0x10e0   : > { %v4271_v41 = vadd.f32 %v4270_v5, %v4138_v42  ;;  %v9729_v12 = vadd.f32 %v9726_v34, %v4279_v2  ;;  %v9733_v5 = vld [vmem:[#allocation11 + $0x38] sm:$0xff] }
0x10e1   : > { %v6452_v46 = vpop.f32.mrf.mxu0  ;;  %v4148_v2 = vld [vmem:[#allocation9 + $0x358] sm:$0xff] }
0x10e2   : > { %v9723_v27 = vadd.f32 %v9720_v59, %v4271_v41  ;;  %4346 = vmax.xlane.f32.xlu0 %v9718_v33 }
0x10e3   : > { %v4283_v62 = vpop.f32.mrf.mxu0 }
0x10e4   : > { %4348 = vmax.xlane.f32.xlu1 %v9723_v27 }
0x10e5   : > { %v6453_v26 = vpop.f32.mrf.mxu0 }
0x10e6   : > { %v4295_v50 = vadd.f32 %v6453_v26, %v4144_v30  ;;  %4352 = vmax.xlane.f32.xlu0 %v9729_v12  ;;  %v4146_v26 = vld [vmem:[#allocation9 + $0x348] sm:$0xff] }
0x10e7   : > { %v4286_v42 = vpop.f32.mrf.mxu0 }
0x10e8   : > { %v9736_v41 = vadd.f32 %v9733_v5, %v4295_v50  ;;  %v4287_v20 = vadd.f32 %v4286_v42, %v4142_v53  ;;  %v9751_v42 = vld [vmem:[#allocation11 + $0x48] sm:$0xff] }
0x10e9   : > { %v6456_v48 = vpop.f32.mrf.mxu0 }
0x10ea   : > { %4360 = vmax.xlane.f32.xlu1 %v9736_v41  ;;  %v9742_v36 = vadd.f32 %v9739_v17, %v4287_v20  ;;  %v4143_v20 = vld [vmem:[#allocation9 + $0x330] sm:$0xff] }
0x10eb   : > { %v4299_v1 = vpop.f32.mrf.mxu0 }
0x10ed   : > { %v6457_v30 = vpop.f32.mrf.mxu0 }
0x10ee   : > { %v4311_v49 = vadd.f32 %v6457_v30, %v4148_v2  ;;  %4356 = vmax.xlane.f32.xlu1 %v9742_v36  ;;  %v9763_v2 = vld [vmem:[#allocation11 + $0x30] sm:$0xff] }
0x10ef   : > { %v4302_v9 = vpop.f32.mrf.mxu0 }
0x10f0   : > { %v9748_v53 = vadd.f32 %v9745_v21, %v4311_v49  ;;  %v4303_v50 = vadd.f32 %v4302_v9, %v4146_v26  ;;  %v4292_v9 = vadd.f32 %v6452_v46, %v4143_v20  ;;  %v4141_v49 = vld [vmem:[#allocation9 + $0x320] sm:$0xff]  ;;  %v9775_v46 = vld [vmem:[#allocation11 + $0x50] sm:$0xff] }
0x10f1   : > { %v4284_v26 = vadd.f32 %v4283_v62, %v4141_v49  ;;  %v4151_v62 = vld [vmem:[#allocation9 + $0x370] sm:$0xff] }
0x10f2   : > { %4368 = vmax.xlane.f32.xlu1 %v9748_v53  ;;  %v9754_v16 = vadd.f32 %v9751_v42, %v4303_v50  ;;  %v9766_v30 = vadd.f32 %v9763_v2, %v4292_v9  ;;  %v4147_v50 = vld [vmem:[#allocation9 + $0x350] sm:$0xff]  ;;  %v4300_v9 = vadd.f32 %v4299_v1, %v4145_v28 }
0x10f3   : > { %v9772_v11 = vadd.f32 %v9769_v23, %v4284_v26 }
0x10f4   : > { %v9784_v26 = vadd.f32 %v9781_v43, %v4300_v9  ;;  %v9798_v9 = vld [vmem:[#allocation11 + $0x78] sm:$0xff] }
0x10f6   : > { %4364 = vmax.xlane.f32.xlu1 %v9754_v16 }
0x10fc   : > { %4500 = vrot.lane.b32.xlu0 %v7987_v61, %s7604_s17 }
0x1107   : > { %4745 = vrot.lane.b32.xlu1 %v7942_v15, %s7605_s21  ;;  %v4308_v15 = vadd.f32 %v6456_v48, %v4147_v50  ;;  %v4149_v50 = vld [vmem:[#allocation9 + $0x360] sm:$0xff] }
0x1109   : > { %v9778_v20 = vadd.f32 %v9775_v46, %v4308_v15 }
0x110b   : > { %4741 = vrot.lane.b32.xlu1 %v8013_v25, %s7605_s21  ;;  %v6460_v25 = vpop.f32.mrf.mxu0 }
0x110c   : > { %v4324_v48 = vadd.f32 %v6460_v25, %v4151_v62 }
0x110d   : > { %v4315_v49 = vpop.f32.mrf.mxu0 }
0x110e   : > { %v9790_v15 = vadd.f32 %v9787_v40, %v4324_v48  ;;  %v4316_v28 = vadd.f32 %v4315_v49, %v4149_v50  ;;  %v4499_v49 = vpop.permute.xlu1 %4498 }
0x110f   : > { %v6461_v38 = vpop.f32.mrf.mxu0 }
0x1110   : > { %v4327_v1 = vadd.f32 %v6461_v38, %v4152_v29  ;;  %v9796_v25 = vadd.f32 %v9793_v8, %v4316_v28  ;;  %v9805_v29 = vld [vmem:[#allocation11 + $0x68] sm:$0xff] }
0x1111   : > { %v4318_v0 = vpop.f32.mrf.mxu0 }
0x1112   : > { %v9801_v62 = vadd.f32 %v9798_v9, %v4327_v1  ;;  %v4319_v56 = vadd.f32 %v4318_v0, %v4150_v55 }
0x1114   : > { %v9808_v38 = vadd.f32 %v9805_v29, %v4319_v56 }
0x111b   : > { %4358 = vmax.xlane.f32.xlu0 %v9766_v30 }
0x111f   : > { %4354 = vmax.xlane.f32.xlu0 %v9772_v11 }
0x1123   : > { %4366 = vmax.xlane.f32.xlu0 %v9778_v20 }
0x1127   : > { %4362 = vmax.xlane.f32.xlu0 %v9784_v26 }
0x112b   : > { %4374 = vmax.xlane.f32.xlu0 %v9790_v15 }
0x112f   : > { %4376 = vmax.xlane.f32.xlu1 %v9801_v62  ;;  %4370 = vmax.xlane.f32.xlu0 %v9796_v25 }
0x1133   : > { %4372 = vmax.xlane.f32.xlu1 %v9808_v38 }
0x1145   : > { %4747 = vrot.lane.b32.xlu0 %v10721_v35, %s7605_s21 }
0x1149   : > { %4743 = vrot.lane.b32.xlu0 %v10722_v58, %s7605_s21 }
0x114d   : > { %4739 = vrot.lane.b32.xlu0 %v10723_v63, %s7605_s21 }
0x1167   : > { %v4351_v55 = vpop.xlane.xlu0 %4350 }
0x1168   : > { %v4380_v0 = vsub.f32 %v9712_v39, %v4351_v55 }
0x116a   : > { %v4398_v48 = vmul.f32 1.442695, %v4380_v0 }
0x116b   : > { %v4347_v50 = vpop.xlane.xlu0 %4346 }
0x116c   : > { %7205 = vpow2.f32 %v4398_v48  ;;  %v4378_v56 = vsub.f32 %v9718_v33, %v4347_v50 }
0x116d   : > { %v4349_v28 = vpop.xlane.xlu1 %4348 }
0x116e   : > { %v4394_v1 = vmul.f32 1.442695, %v4378_v56  ;;  %v4379_v35 = vsub.f32 %v9723_v27, %v4349_v28 }
0x116f   : > { %v4353_v6 = vpop.xlane.xlu0 %4352 }
0x1170   : > { %7207 = vpow2.f32 %v4394_v1  ;;  %v4381_v58 = vsub.f32 %v9729_v12, %v4353_v6  ;;  %v4396_v63 = vmul.f32 1.442695, %v4379_v35 }
0x1172   : > { %v4400_v54 = vmul.f32 1.442695, %v4381_v58 }
0x1173   : > { %v4501_v61 = vpop.permute.xlu0 %4500 }
0x1174   : > { %7209 = vpow2.f32 %v4400_v54  ;;  %6474 = vmatprep.subr.bf16.mxu1 %v4501_v61 }
0x1175   : > { %6475 = vmatpush3.bf16.msra.mxu1 %v4501_v61  ;;  %7211 = vpow2.f32 %v4396_v63  ;;  %v4361_v61 = vpop.xlane.xlu1 %4360 }
0x1176   : > { %6476 = vmatprep.subr.bf16.mxu1 %v4499_v49  ;;  %v4385_v50 = vsub.f32 %v9736_v41, %v4361_v61 }
0x1178   : > { %v4408_v63 = vmul.f32 1.442695, %v4385_v50 }
0x1179   : > { %v9821_v39 = vpop.eup %7205  ;;  %6477 = vmatpush3.bf16.msra.mxu1 %v4499_v49  ;;  %v4357_v54 = vpop.xlane.xlu1 %4356 }
0x117a   : > { %4430 = vadd.xlane.f32.xlu1 %v9821_v39  ;;  %v4383_v55 = vsub.f32 %v9742_v36, %v4357_v54 }
0x117c   : > { %v4404_v56 = vmul.f32 1.442695, %v4383_v55 }
0x117d   : > { %v9824_v33 = vpop.eup %7207  ;;  %v4369_v12 = vpop.xlane.xlu1 %4368 }
0x117e   : > { %4426 = vadd.xlane.f32.xlu1 %v9824_v33 }
0x1181   : > { %v9827_v27 = vpop.eup %7209  ;;  %v4365_v28 = vpop.xlane.xlu1 %4364 }
0x1182   : > { %4432 = vadd.xlane.f32.xlu1 %v9827_v27  ;;  %v9830_v6 = vpop.eup %7211 }
0x1185   : > { %v9840_v36 = vpop.permute.xlu1 %4745 }
0x1186   : > { %4428 = vadd.xlane.f32.xlu1 %v9830_v6 }
0x1197   : > { %4737 = vrot.lane.b32.xlu1 %v10724_v24, %s7605_s21 }
0x11a4   : > { %v4359_v0 = vpop.xlane.xlu0 %4358 }
0x11a5   : > { %v4384_v49 = vsub.f32 %v9766_v30, %v4359_v0  ;;  %v4389_v30 = vsub.f32 %v9748_v53, %v4369_v12 }
0x11a7   : > { %v4406_v48 = vmul.f32 1.442695, %v4384_v49  ;;  %v4416_v0 = vmul.f32 1.442695, %v4389_v30 }
0x11a8   : > { %v4355_v1 = vpop.xlane.xlu0 %4354 }
0x11a9   : > { %7213 = vpow2.f32 %v4406_v48  ;;  %v4382_v35 = vsub.f32 %v9772_v11, %v4355_v1  ;;  %v9844_v11 = vpop.permute.xlu1 %4741  ;;  %v4387_v48 = vsub.f32 %v9754_v16, %v4365_v28 }
0x11aa   : > { %7215 = vpow2.f32 %v4404_v56 }
0x11ab   : > { %v4402_v58 = vmul.f32 1.442695, %v4382_v35 }
0x11ac   : > { %v4367_v24 = vpop.xlane.xlu0 %4366 }
0x11ad   : > { %7217 = vpow2.f32 %v4402_v58  ;;  %v4388_v45 = vsub.f32 %v9778_v20, %v4367_v24 }
0x11ae   : > { %7219 = vpow2.f32 %v4408_v63 }
0x11af   : > { %v4414_v54 = vmul.f32 1.442695, %v4388_v45 }
0x11b0   : > { %v4363_v41 = vpop.xlane.xlu0 %4362 }
0x11b1   : > { %7221 = vpow2.f32 %v4414_v54  ;;  %v4386_v61 = vsub.f32 %v9784_v26, %v4363_v41  ;;  %v4412_v26 = vmul.f32 1.442695, %v4387_v48 }
0x11b3   : > { %v4410_v55 = vmul.f32 1.442695, %v4386_v61 }
0x11b4   : > { %v4375_v49 = vpop.xlane.xlu0 %4374 }
0x11b5   : > { %7223 = vpow2.f32 %v4410_v55  ;;  %v4392_v20 = vsub.f32 %v9790_v15, %v4375_v49 }
0x11b6   : > { %v9848_v50 = vpop.eup %7213  ;;  %7225 = vpow2.f32 %v4416_v0 }
0x11b7   : > { %v4422_v45 = vmul.f32 1.442695, %v4392_v20  ;;  %4438 = vadd.xlane.f32.xlu0 %v9848_v50  ;;  %v9851_v56 = vpop.eup %7215 }
0x11b8   : > { %v4377_v53 = vpop.xlane.xlu1 %4376  ;;  %v4371_v12 = vpop.xlane.xlu0 %4370 }
0x11b9   : > { %7227 = vpow2.f32 %v4422_v45  ;;  %v4390_v1 = vsub.f32 %v9796_v25, %v4371_v12  ;;  %v4393_v16 = vsub.f32 %v9801_v62, %v4377_v53  ;;  %v4792_v45 = vsel %vm865_vm0, %v9840_v36, 0 }
0x11ba   : > { %v9854_v35 = vpop.eup %7217  ;;  %7229 = vpow2.f32 %v4412_v26 }
0x11bb   : > { %v4418_v28 = vmul.f32 1.442695, %v4390_v1  ;;  %4436 = vadd.xlane.f32.xlu1 %v9851_v56  ;;  %4434 = vadd.xlane.f32.xlu0 %v9854_v35  ;;  %v9859_v63 = vpop.eup %7219  ;;  %v4424_v25 = vmul.f32 1.442695, %v4393_v16 }
0x11bc   : > { %v4373_v15 = vpop.xlane.xlu1 %4372  ;;  %v4748_v58 = vpop.permute.xlu0 %4747 }
0x11bd   : > { %v4391_v24 = vsub.f32 %v9808_v38, %v4373_v15  ;;  %6662 = vmatprep.subr.msk.bf16.mxu1 %vm865_vm0, %v4748_v58  ;;  %7231 = vpow2.f32 %v4418_v28  ;;  %v4795_v20 = vsel %vm865_vm0, %v4748_v58, 0 }
0x11be   : > { %v9863_v54 = vpop.eup %7221 }
0x11bf   : > { %v4420_v30 = vmul.f32 1.442695, %v4391_v24  ;;  %4440 = vadd.xlane.f32.xlu0 %v9859_v63  ;;  %4446 = vadd.xlane.f32.xlu1 %v9863_v54 }
0x11c1   : > { %7233 = vpow2.f32 %v4420_v30 }
0x11c2   : > { %v9867_v62 = vpop.eup %7223  ;;  %7235 = vpow2.f32 %v4424_v25 }
0x11c3   : > { %4442 = vadd.xlane.f32.xlu1 %v9867_v62  ;;  %v9870_v41 = vpop.eup %7225 }
0x11c6   : > { %v9872_v38 = vpop.eup %7227 }
0x11c7   : > { %4448 = vadd.xlane.f32.xlu1 %v9870_v41  ;;  %4454 = vadd.xlane.f32.xlu0 %v9872_v38  ;;  %v9876_v61 = vpop.eup %7229 }
0x11ca   : > { %v9878_v55 = vpop.eup %7231 }
0x11cb   : > { %4444 = vadd.xlane.f32.xlu1 %v9876_v61  ;;  %4450 = vadd.xlane.f32.xlu0 %v9878_v55 }
0x11ce   : > { %v9882_v0 = vpop.eup %7233 }
0x11cf   : > { %v9884_v49 = vpop.eup %7235  ;;  %4452 = vadd.xlane.f32.xlu1 %v9882_v0 }
0x11d0   : > { %4456 = vadd.xlane.f32.xlu0 %v9884_v49 }
0x11e0   : > { %4733 = vrot.lane.b32.xlu1 %v8053_v10, %s7605_s21 }
0x11e4   : > { %4719 = vrot.lane.b32.xlu1 %v7865_v51, %s7605_s21 }
0x11e6   : > { %4735 = vrot.lane.b32.xlu0 %v8043_v3, %s7605_s21 }
0x11e8   : > { %4723 = vrot.lane.b32.xlu1 %v7891_v7, %s7605_s21 }
0x11ea   : > { %4717 = vrot.lane.b32.xlu0 %v7855_v44, %s7605_s21 }
0x11ec   : > { %4727 = vrot.lane.b32.xlu1 %v7914_v32, %s7605_s21 }
0x11ee   : > { %4721 = vrot.lane.b32.xlu0 %v7877_v60, %s7605_s21 }
0x11f0   : > { %4731 = vrot.lane.b32.xlu1 %v7963_v31, %s7605_s21 }
0x11f2   : > { %4725 = vrot.lane.b32.xlu0 %v7902_v19, %s7605_s21 }
0x11f4   : > { %5074 = vrot.lane.b32.xlu1 %v7925_v57, %s7605_s21 }
0x11f6   : > { %4729 = vrot.lane.b32.xlu0 %v7939_v13, %s7605_s21 }
0x11fa   : > { %5076 = vrot.lane.b32.xlu0 %v7922_v52, %s7605_s21 }
0x11fe   : > { %5072 = vrot.lane.b32.xlu0 %v7934_v4, %s7605_s21 }
0x1203   : > { %v4431_v44 = vpop.xlane.xlu1 %4430 }
0x1207   : > { %v4427_v51 = vpop.xlane.xlu1 %4426 }
0x120b   : > { %v4433_v60 = vpop.xlane.xlu1 %4432 }
0x120c   : > { %7237 = vrcp.f32 %v4433_v60 }
0x120d   : > { %7239 = vrcp.f32 %v4427_v51 }
0x120e   : > { %7241 = vrcp.f32 %v4431_v44 }
0x120f   : > { %v4429_v7 = vpop.xlane.xlu1 %4428 }
0x1210   : > { %7243 = vrcp.f32 %v4429_v7 }
0x1213   : > { %v4738_v53 = vpop.permute.xlu1 %4737 }
0x1219   : > { %v7238_v19 = vpop.eup %7237 }
0x121a   : > { %v7240_v32 = vpop.eup %7239  ;;  %v4477_v13 = vmul.f32 %v7238_v19, %v9827_v27  ;;  %v4744_v27 = vpop.permute.xlu0 %4743 }
0x121b   : > { %v7242_v57 = vpop.eup %7241  ;;  %v4474_v3 = vmul.f32 %v7240_v32, %v9824_v33  ;;  %v4789_v33 = vsel %vm865_vm0, %v4744_v27, 0 }
0x121c   : > { %v4476_v4 = vmul.f32 %v7242_v57, %v9821_v39  ;;  %v4786_v39 = vsel %vm865_vm0, %v9844_v11, 0 }
0x121d   : > { %v7244_v31 = vpop.eup %7243 }
0x121e   : > { %v4475_v52 = vmul.f32 %v7244_v31, %v9830_v6  ;;  %v4491_v48 = vpack.c.bf16 %v4477_v13, %v4476_v4  ;;  %v4740_v6 = vpop.permute.xlu0 %4739 }
0x1220   : > { %v4490_v10 = vpack.c.bf16 %v4475_v52, %v4474_v3 }
0x1222   : > { %6478 = vmatprep.mubr.bf16.mxu1 %v4490_v10 }
0x1223   : > { %6479 = vmatmul.mubr.bf16.vlgmr.msra.gmra.mxu1 %v4491_v48 }
0x1224   : > { %6495 = vmatpush3.bf16.xpose.msra.mxu1 %v4795_v20 }
0x1225   : > { %6663 = vmatprep.subr.msk.bf16.mxu1 %vm865_vm0, %v9840_v36  ;;  %v4783_v36 = vsel %vm865_vm0, %v4740_v6, 0 }
0x122c   : > { %6497 = vmatpush3.bf16.xpose.msra.mxu1 %v4792_v45 }
0x122d   : > { %6664 = vmatprep.subr.msk.bf16.mxu1 %vm865_vm0, %v4744_v27 }
0x1234   : > { %6499 = vmatpush3.bf16.xpose.msra.mxu1 %v4789_v33 }
0x1235   : > { %6665 = vmatprep.subr.msk.bf16.mxu1 %vm865_vm0, %v9844_v11  ;;  %v4780_v11 = vsel %vm865_vm0, %v4738_v53, 0 }
0x123c   : > { %6501 = vmatpush3.bf16.xpose.msra.mxu1 %v4786_v39 }
0x123d   : > { %6666 = vmatprep.subr.msk.bf16.mxu1 %vm865_vm0, %v4740_v6 }
0x1240   : > { %v4439_v12 = vpop.xlane.xlu0 %4438 }
0x1244   : > { %6503 = vmatpush3.bf16.xpose.msra.mxu1 %v4783_v36  ;;  %v4437_v26 = vpop.xlane.xlu1 %4436  ;;  %v4435_v1 = vpop.xlane.xlu0 %4434 }
0x1245   : > { %7245 = vrcp.f32 %v4437_v26  ;;  %6667 = vmatprep.subr.msk.bf16.mxu1 %vm865_vm0, %v4738_v53 }
0x1246   : > { %7247 = vrcp.f32 %v4435_v1 }
0x1247   : > { %7249 = vrcp.f32 %v4439_v12 }
0x1248   : > { %v4447_v16 = vpop.xlane.xlu1 %4446  ;;  %v4441_v28 = vpop.xlane.xlu0 %4440 }
0x1249   : > { %7251 = vrcp.f32 %v4441_v28 }
0x124c   : > { %6505 = vmatpush3.bf16.xpose.msra.mxu1 %v4780_v11  ;;  %v4443_v15 = vpop.xlane.xlu1 %4442 }
0x1250   : > { %v4449_v58 = vpop.xlane.xlu1 %4448  ;;  %v4455_v24 = vpop.xlane.xlu0 %4454 }
0x1251   : > { %7253 = vrcp.f32 %v4449_v58 }
0x1252   : > { %v7246_v25 = vpop.eup %7245  ;;  %7255 = vrcp.f32 %v4443_v15 }
0x1253   : > { %v7248_v30 = vpop.eup %7247  ;;  %v4479_v44 = vmul.f32 %v7246_v25, %v9851_v56  ;;  %7257 = vrcp.f32 %v4447_v16 }
0x1254   : > { %v4445_v51 = vpop.xlane.xlu1 %4444  ;;  %v4478_v60 = vmul.f32 %v7248_v30, %v9854_v35  ;;  %v7250_v7 = vpop.eup %7249 }
0x1255   : > { %7259 = vrcp.f32 %v4445_v51  ;;  %v4451_v19 = vpop.xlane.xlu0 %4450  ;;  %v4480_v13 = vmul.f32 %v7250_v7, %v9848_v50 }
0x1256   : > { %v4492_v32 = vpack.c.bf16 %v4479_v44, %v4478_v60  ;;  %v7252_v57 = vpop.eup %7251  ;;  %7261 = vrcp.f32 %v4451_v19 }
0x1257   : > { %v4481_v3 = vmul.f32 %v7252_v57, %v9859_v63 }
0x1258   : > { %6482 = vmatprep.mubr.bf16.mxu1 %v4492_v32  ;;  %v4453_v31 = vpop.xlane.xlu1 %4452 }
0x1259   : > { %7263 = vrcp.f32 %v4453_v31  ;;  %v4457_v52 = vpop.xlane.xlu0 %4456  ;;  %v4493_v56 = vpack.c.bf16 %v4481_v3, %v4480_v13 }
0x125a   : > { %7265 = vrcp.f32 %v4457_v52 }
0x125b   : > { %7267 = vrcp.f32 %v4455_v24  ;;  %6483 = vmatmul.mubr.bf16.gmra.mxu1 %v4493_v56 }
0x125c   : > { %v4734_v4 = vpop.permute.xlu1 %4733 }
0x125d   : > { %v4736_v35 = vpop.permute.xlu0 %4735  ;;  %v4774_v28 = vsel %vm865_vm0, %v4734_v4, 0 }
0x125e   : > { %6668 = vmatprep.subr.msk.bf16.mxu1 %vm865_vm0, %v4736_v35  ;;  %v4777_v10 = vsel %vm865_vm0, %v4736_v35, 0  ;;  %v7254_v48 = vpop.eup %7253 }
0x125f   : > { %6507 = vmatpush3.bf16.xpose.msra.mxu1 %v4777_v10  ;;  %v7256_v20 = vpop.eup %7255  ;;  %v4485_v33 = vmul.f32 %v7254_v48, %v9870_v41 }
0x1260   : > { %6669 = vmatprep.subr.msk.bf16.mxu1 %vm865_vm0, %v4734_v4  ;;  %v4720_v50 = vpop.permute.xlu1 %4719  ;;  %v7258_v45 = vpop.eup %7257  ;;  %v4482_v39 = vmul.f32 %v7256_v20, %v9867_v62 }
0x1261   : > { %v4718_v63 = vpop.permute.xlu0 %4717  ;;  %v4484_v36 = vmul.f32 %v7258_v45, %v9863_v54  ;;  %v4703_v45 = vld [vmem:[#allocation9 + $0x390] sm:$0xff] }
0x1262   : > { %v7260_v27 = vpop.eup %7259 }
0x1263   : > { %v4483_v6 = vmul.f32 %v7260_v27, %v9876_v61  ;;  %v7262_v53 = vpop.eup %7261  ;;  %v4495_v11 = vpack.c.bf16 %v4485_v33, %v4484_v36  ;;  %v4701_v27 = vld [vmem:[#allocation9 + $0x380] sm:$0xff] }
0x1264   : > { %v4724_v12 = vpop.permute.xlu1 %4723  ;;  %v4486_v58 = vmul.f32 %v7262_v53, %v9878_v55 }
0x1265   : > { %v4722_v26 = vpop.permute.xlu0 %4721  ;;  %v4494_v1 = vpack.c.bf16 %v4483_v6, %v4482_v39 }
0x1266   : > { %v7264_v16 = vpop.eup %7263 }
0x1267   : > { %v7266_v15 = vpop.eup %7265  ;;  %6509 = vmatpush3.bf16.xpose.msra.mxu1 %v4774_v28  ;;  %6486 = vmatprep.mubr.bf16.mxu1 %v4494_v1  ;;  %v4487_v41 = vmul.f32 %v7264_v16, %v9882_v0 }
0x1268   : > { %v4728_v62 = vpop.permute.xlu1 %4727  ;;  %6487 = vmatmul.mubr.bf16.gmra.mxu1 %v4495_v11  ;;  %v7268_v61 = vpop.eup %7267  ;;  %v4489_v54 = vmul.f32 %v7266_v15, %v9884_v49  ;;  %v4707_v15 = vld [vmem:[#allocation9 + $0x3b0] sm:$0xff] }
0x1269   : > { %v4726_v24 = vpop.permute.xlu0 %4725  ;;  %v4496_v25 = vpack.c.bf16 %v4487_v41, %v4486_v58  ;;  %v4488_v30 = vmul.f32 %v7268_v61, %v9872_v38 }
0x126b   : > { %6490 = vmatprep.mubr.bf16.mxu1 %v4496_v25  ;;  %v4497_v60 = vpack.c.bf16 %v4489_v54, %v4488_v30  ;;  %v4705_v25 = vld [vmem:[#allocation9 + $0x3a0] sm:$0xff]  ;;  %v4706_v54 = vld [vmem:[#allocation9 + $0x3a8] sm:$0xff] }
0x126c   : > { %v4732_v44 = vpop.permute.xlu1 %4731 }
0x126d   : > { %v4730_v51 = vpop.permute.xlu0 %4729 }
0x1270   : > { %6491 = vmatmul.mubr.bf16.gmra.mxu1 %v4497_v60  ;;  %v5075_v55 = vpop.permute.xlu1 %5074 }
0x1271   : > { %v5077_v7 = vpop.permute.xlu0 %5076  ;;  %6510 = vmatprep.mubr.msk.bf16.mxu1 %vm865_vm0, %v4718_v63 }
0x1272   : > { %6526 = vmatprep.subr.bf16.mxu0 %v5077_v7 }
0x1273   : > { %6527 = vmatpush3.bf16.msra.mxu0 %v5077_v7 }
0x1274   : > { %6528 = vmatprep.subr.bf16.mxu0 %v5075_v55 }
0x1275   : > { %v5073_v0 = vpop.permute.xlu0 %5072 }
0x1277   : > { %6529 = vmatpush3.bf16.msra.mxu0 %v5075_v55 }
0x1278   : > { %6530 = vmatprep.subr.bf16.mxu0 %v5073_v0  ;;  %6511 = vmatmul.mubr.msk.bf16.vlgmr.msra.gmra.mxu1 %vm865_vm0, %v4720_v50 }
0x1279   : > { %6514 = vmatprep.mubr.msk.bf16.mxu1 %vm865_vm0, %v4722_v26  ;;  %v4702_v26 = vld [vmem:[#allocation9 + $0x388] sm:$0xff] }
0x127b   : > { %6531 = vmatpush3.bf16.msra.mxu0 %v5073_v0 }
0x1280   : > { %6515 = vmatmul.mubr.msk.bf16.gmra.mxu1 %vm865_vm0, %v4724_v12  ;;  %v4704_v12 = vld [vmem:[#allocation9 + $0x398] sm:$0xff] }
0x1281   : > { %6518 = vmatprep.mubr.msk.bf16.mxu1 %vm865_vm0, %v4726_v24 }
0x1288   : > { %6519 = vmatmul.mubr.msk.bf16.gmra.mxu1 %vm865_vm0, %v4728_v62  ;;  %v4708_v62 = vld [vmem:[#allocation9 + $0x3b8] sm:$0xff] }
0x1289   : > { %6522 = vmatprep.mubr.msk.bf16.mxu1 %vm865_vm0, %v4730_v51 }
0x1290   : > { %6523 = vmatmul.mubr.msk.bf16.gmra.mxu1 %vm865_vm0, %v4732_v44 }
0x12e3   : > { %v9957_v38 = vpop.f32.mrf.mxu1 }
0x12e5   : > { %v9959_v49 = vpop.f32.mrf.mxu1 }
0x12e7   : > { %v9961_v19 = vpop.f32.mrf.mxu1 }
0x12e9   : > { %v9963_v32 = vpop.f32.mrf.mxu1 }
0x131b   : > { %v9965_v57 = vpop.f32.mrf.mxu1 }
0x131d   : > { %v9967_v31 = vpop.f32.mrf.mxu1 }
0x131f   : > { %v9969_v13 = vpop.f32.mrf.mxu1 }
0x1321   : > { %v9971_v3 = vpop.f32.mrf.mxu1 }
0x1328   : > { %v9973_v52 = vpop.f32.mrf.mxu1 }
0x132a   : > { %v9975_v56 = vpop.f32.mrf.mxu1 }
0x132c   : > { %v9977_v4 = vpop.f32.mrf.mxu1 }
0x132e   : > { %v9979_v35 = vpop.f32.mrf.mxu1 }
0x1330   : > { %v9981_v10 = vpop.f32.mrf.mxu1 }
0x1332   : > { %v9983_v48 = vpop.f32.mrf.mxu1 }
0x1334   : > { %v9985_v20 = vpop.f32.mrf.mxu1 }
0x1336   : > { %v9987_v50 = vpop.f32.mrf.mxu1 }
0x1338   : > { %v6512_v63 = vpop.f32.mrf.mxu1 }
0x1339   : > { %v4840_v33 = vadd.f32 %v6512_v63, %v4703_v45  ;;  %v4712_v45 = vld [vmem:[#allocation9 + $0x3d8] sm:$0xff] }
0x133a   : > { %v4831_v39 = vpop.f32.mrf.mxu1 }
0x133b   : > { %v9990_v6 = vadd.f32 %v9709_v14, %v4840_v33  ;;  %v4832_v53 = vadd.f32 %v4831_v39, %v4701_v27  ;;  %v4709_v33 = vld [vmem:[#allocation9 + $0x3c0] sm:$0xff] }
0x133c   : > { %v6513_v36 = vpop.f32.mrf.mxu1 }
0x133d   : > { %4914 = vmax.xlane.f32.xlu0 %v9990_v6  ;;  %v9994_v16 = vadd.f32 %v9715_v47, %v4832_v53  ;;  %v4843_v28 = vadd.f32 %v6513_v36, %v4704_v12 }
0x133e   : > { %v4834_v1 = vpop.f32.mrf.mxu1 }
0x133f   : > { %v4835_v11 = vadd.f32 %v4834_v1, %v4702_v26  ;;  %v10001_v61 = vadd.f32 %v9726_v34, %v4843_v28  ;;  %v4711_v34 = vld [vmem:[#allocation9 + $0x3d0] sm:$0xff] }
0x1340   : > { %v6516_v58 = vpop.f32.mrf.mxu1 }
0x1341   : > { %v9997_v41 = vadd.f32 %v9720_v59, %v4835_v11  ;;  %4910 = vmax.xlane.f32.xlu0 %v9994_v16  ;;  %v4856_v24 = vadd.f32 %v6516_v58, %v4707_v15 }
0x1342   : > { %v4847_v14 = vpop.f32.mrf.mxu1 }
0x1343   : > { %4912 = vmax.xlane.f32.xlu1 %v9997_v41  ;;  %v10006_v59 = vadd.f32 %v9763_v2, %v4856_v24  ;;  %v4848_v51 = vadd.f32 %v4847_v14, %v4705_v25  ;;  %v4713_v14 = vld [vmem:[#allocation9 + $0x3e0] sm:$0xff] }
0x1344   : > { %v6517_v47 = vpop.f32.mrf.mxu1 }
0x1345   : > { %v4859_v30 = vadd.f32 %v6517_v47, %v4708_v62  ;;  %4916 = vmax.xlane.f32.xlu0 %v10001_v61  ;;  %v10014_v63 = vadd.f32 %v9769_v23, %v4848_v51 }
0x1346   : > { %v4850_v44 = vpop.f32.mrf.mxu1 }
0x1347   : > { %v10009_v60 = vadd.f32 %v9733_v5, %v4859_v30  ;;  %v4851_v7 = vadd.f32 %v4850_v44, %v4706_v54  ;;  %v4710_v5 = vld [vmem:[#allocation9 + $0x3c8] sm:$0xff] }
0x1348   : > { %v6520_v55 = vpop.f32.mrf.mxu1 }
0x1349   : > { %4922 = vmax.xlane.f32.xlu0 %v10006_v59  ;;  %4924 = vmax.xlane.f32.xlu1 %v10009_v60  ;;  %v10017_v27 = vadd.f32 %v9739_v17, %v4851_v7  ;;  %v4872_v2 = vadd.f32 %v6520_v55, %v4711_v34  ;;  %v4715_v17 = vld [vmem:[#allocation9 + $0x3f0] sm:$0xff] }
0x134a   : > { %v4863_v0 = vpop.f32.mrf.mxu1 }
0x134b   : > { %v10022_v36 = vadd.f32 %v9775_v46, %v4872_v2  ;;  %v4864_v26 = vadd.f32 %v4863_v0, %v4709_v33 }
0x134c   : > { %v6521_v39 = vpop.f32.mrf.mxu1 }
0x134d   : > { %v4875_v53 = vadd.f32 %v6521_v39, %v4712_v45  ;;  %4920 = vmax.xlane.f32.xlu1 %v10017_v27  ;;  %4918 = vmax.xlane.f32.xlu0 %v10014_v63  ;;  %v10030_v11 = vadd.f32 %v9781_v43, %v4864_v26  ;;  %v4716_v43 = vld [vmem:[#allocation9 + $0x3f8] sm:$0xff] }
0x134e   : > { %v4866_v12 = vpop.f32.mrf.mxu1 }
0x134f   : > { %v10025_v23 = vadd.f32 %v9745_v21, %v4875_v53  ;;  %v4867_v1 = vadd.f32 %v4866_v12, %v4710_v5 }
0x1350   : > { %v6524_v28 = vpop.f32.mrf.mxu1 }
0x1351   : > { %4930 = vmax.xlane.f32.xlu0 %v10022_v36  ;;  %4932 = vmax.xlane.f32.xlu1 %v10025_v23  ;;  %v10033_v15 = vadd.f32 %v9751_v42, %v4867_v1  ;;  %v4888_v58 = vadd.f32 %v6524_v28, %v4715_v17 }
0x1352   : > { %v4879_v46 = vpop.f32.mrf.mxu1 }
0x1353   : > { %v10038_v21 = vadd.f32 %v9787_v40, %v4888_v58  ;;  %v4880_v62 = vadd.f32 %v4879_v46, %v4713_v14  ;;  %v4714_v40 = vld [vmem:[#allocation9 + $0x3e8] sm:$0xff] }
0x1354   : > { %v6525_v42 = vpop.f32.mrf.mxu1 }
0x1355   : > { %4928 = vmax.xlane.f32.xlu1 %v10033_v15  ;;  %4926 = vmax.xlane.f32.xlu0 %v10030_v11  ;;  %v10042_v24 = vadd.f32 %v9793_v8, %v4880_v62  ;;  %v4891_v25 = vadd.f32 %v6525_v42, %v4716_v43 }
0x1356   : > { %v4882_v47 = vpop.f32.mrf.mxu1 }
0x1357   : > { %v10050_v54 = vadd.f32 %v9798_v9, %v4891_v25  ;;  %v4883_v30 = vadd.f32 %v4882_v47, %v4714_v40 }
0x1359   : > { %4938 = vmax.xlane.f32.xlu0 %v10038_v21  ;;  %v10054_v8 = vadd.f32 %v9805_v29, %v4883_v30 }
0x135d   : > { %4934 = vmax.xlane.f32.xlu0 %v10042_v24 }
0x1366   : > { %5068 = vrot.lane.b32.xlu1 %v10725_v18, %s7605_s21 }
0x1373   : > { %5070 = vrot.lane.b32.xlu0 %v7948_v22, %s7605_s21 }
0x138a   : > { %4940 = vmax.xlane.f32.xlu1 %v10050_v54 }
0x138e   : > { %4936 = vmax.xlane.f32.xlu1 %v10054_v8 }
0x139f   : > { %5066 = vrot.lane.b32.xlu1 %v7973_v37, %s7605_s21 }
0x13c6   : > { %v4915_v22 = vpop.xlane.xlu0 %4914 }
0x13c7   : > { %v4944_v18 = vsub.f32 %v9990_v6, %v4915_v22 }
0x13c9   : > { %v4962_v44 = vmul.f32 1.442695, %v4944_v18 }
0x13ca   : > { %v4911_v51 = vpop.xlane.xlu0 %4910 }
0x13cb   : > { %7269 = vpow2.f32 %v4962_v44  ;;  %v4942_v9 = vsub.f32 %v9994_v16, %v4911_v51 }
0x13cc   : > { %v4913_v7 = vpop.xlane.xlu1 %4912 }
0x13cd   : > { %v4958_v34 = vmul.f32 1.442695, %v4942_v9  ;;  %v4943_v29 = vsub.f32 %v9997_v41, %v4913_v7 }
0x13ce   : > { %v4917_v55 = vpop.xlane.xlu0 %4916 }
0x13cf   : > { %7271 = vpow2.f32 %v4958_v34  ;;  %v4945_v0 = vsub.f32 %v10001_v61, %v4917_v55  ;;  %v4960_v37 = vmul.f32 1.442695, %v4943_v29 }
0x13d1   : > { %v4964_v45 = vmul.f32 1.442695, %v4945_v0 }
0x13d2   : > { %v4925_v2 = vpop.xlane.xlu1 %4924  ;;  %v4923_v33 = vpop.xlane.xlu0 %4922 }
0x13d3   : > { %7273 = vpow2.f32 %v4964_v45  ;;  %v4948_v6 = vsub.f32 %v10006_v59, %v4923_v33  ;;  %v4949_v41 = vsub.f32 %v10009_v60, %v4925_v2  ;;  %v10742_v33 = vld [vmem:[#allocation20_spill] sm:$0xff] }
0x13d4   : > { %7275 = vpow2.f32 %v4960_v37  ;;  %v10743_v37 = vld [vmem:[#allocation27_spill] sm:$0xff] }
0x13d5   : > { %v4970_v39 = vmul.f32 1.442695, %v4948_v6  ;;  %v4972_v46 = vmul.f32 1.442695, %v4949_v41  ;;  %v10744_v6 = vld [vmem:[#allocation19_spill] sm:$0xff]  ;;  %v10747_v41 = vld [vmem:[#allocation26_spill] sm:$0xff] }
0x13d6   : > { %v4921_v5 = vpop.xlane.xlu1 %4920  ;;  %v4919_v53 = vpop.xlane.xlu0 %4918 }
0x13d7   : > { %v4947_v16 = vsub.f32 %v10017_v27, %v4921_v5  ;;  %v4946_v12 = vsub.f32 %v10014_v63, %v4919_v53  ;;  %7277 = vpow2.f32 %v4970_v39  ;;  %v10745_v39 = vld [vmem:[#allocation33_spill] sm:$0xff]  ;;  %v10746_v53 = vld [vmem:[#allocation35_spill] sm:$0xff] }
0x13d8   : > { %v10066_v26 = vpop.eup %7269 }
0x13d9   : > { %v4968_v61 = vmul.f32 1.442695, %v4947_v16  ;;  %v4966_v1 = vmul.f32 1.442695, %v4946_v12  ;;  %4994 = vadd.xlane.f32.xlu1 %v10066_v26 }
0x13da   : > { %v4931_v17 = vpop.xlane.xlu0 %4930  ;;  %v4933_v59 = vpop.xlane.xlu1 %4932 }
0x13db   : > { %7279 = vpow2.f32 %v4968_v61  ;;  %v4952_v28 = vsub.f32 %v10022_v36, %v4931_v17  ;;  %v4953_v62 = vsub.f32 %v10025_v23, %v4933_v59  ;;  %v10748_v59 = vld [vmem:[#allocation34_spill] sm:$0xff] }
0x13dc   : > { %v10071_v58 = vpop.eup %7271  ;;  %7281 = vpow2.f32 %v4966_v1 }
0x13dd   : > { %4990 = vadd.xlane.f32.xlu1 %v10071_v58  ;;  %v4978_v27 = vmul.f32 1.442695, %v4952_v28  ;;  %7283 = vpow2.f32 %v4972_v46  ;;  %v4980_v40 = vmul.f32 1.442695, %v4953_v62  ;;  %v10749_v46 = vld [vmem:[#allocation47_spill] sm:$0xff] }
0x13de   : > { %v4927_v63 = vpop.xlane.xlu0 %4926  ;;  %v4929_v43 = vpop.xlane.xlu1 %4928  ;;  %v10753_v62 = vld [vmem:[#allocation43_spill] sm:$0xff] }
0x13df   : > { %v4950_v60 = vsub.f32 %v10030_v11, %v4927_v63  ;;  %7285 = vpow2.f32 %v4978_v27  ;;  %v4951_v30 = vsub.f32 %v10033_v15, %v4929_v43  ;;  %v10751_v63 = vld [vmem:[#allocation46_spill] sm:$0xff]  ;;  %v10754_v43 = vld [vmem:[#allocation67_spill] sm:$0xff] }
0x13e0   : > { %v10075_v14 = vpop.eup %7273 }
0x13e1   : > { %v4974_v42 = vmul.f32 1.442695, %v4950_v60  ;;  %4996 = vadd.xlane.f32.xlu1 %v10075_v14  ;;  %v10080_v47 = vpop.eup %7275 }
0x13e2   : > { %v4939_v36 = vpop.xlane.xlu0 %4938  ;;  %v5069_v7 = vpop.permute.xlu1 %5068 }
0x13e3   : > { %v4956_v25 = vsub.f32 %v10038_v21, %v4939_v36  ;;  %7287 = vpow2.f32 %v4974_v42  ;;  %v4976_v21 = vmul.f32 1.442695, %v4951_v30  ;;  %v10755_v42 = vld [vmem:[#allocation42_spill] sm:$0xff]  ;;  %v10759_v30 = vld [vmem:[#allocation25_spill] sm:$0xff] }
0x13e4   : > { %v10083_v11 = vpop.eup %7277  ;;  %v10756_v36 = vld [vmem:[#allocation66_spill] sm:$0xff] }
0x13e5   : > { %v4986_v22 = vmul.f32 1.442695, %v4956_v25  ;;  %4992 = vadd.xlane.f32.xlu1 %v10080_v47  ;;  %5002 = vadd.xlane.f32.xlu0 %v10083_v11  ;;  %v10757_v25 = vld [vmem:[#allocation79_spill] sm:$0xff] }
0x13e6   : > { %v4935_v23 = vpop.xlane.xlu0 %4934 }
0x13e7   : > { %7289 = vpow2.f32 %v4986_v22  ;;  %v4954_v18 = vsub.f32 %v10042_v24, %v4935_v23  ;;  %v10760_v22 = vld [vmem:[#allocation78_spill] sm:$0xff]  ;;  %v10761_v23 = vld [vmem:[#allocation24_spill] sm:$0xff] }
0x13e8   : > { %v10088_v44 = vpop.eup %7279  ;;  %7291 = vpow2.f32 %v4980_v40  ;;  %v10758_v40 = vld [vmem:[#allocation87_spill] sm:$0xff] }
0x13e9   : > { %v10090_v51 = vpop.eup %7281  ;;  %v4982_v9 = vmul.f32 1.442695, %v4954_v18  ;;  %5000 = vadd.xlane.f32.xlu1 %v10088_v44  ;;  %v10762_v18 = vld [vmem:[#allocation86_spill] sm:$0xff] }
0x13ea   : > { %4998 = vadd.xlane.f32.xlu0 %v10090_v51  ;;  %v5071_v15 = vpop.permute.xlu0 %5070  ;;  %v10094_v34 = vpop.eup %7283 }
0x13eb   : > { %7293 = vpow2.f32 %v4982_v9  ;;  %6532 = vmatprep.subr.bf16.mxu0 %v5071_v15  ;;  %v10764_v9 = vld [vmem:[#allocation75_spill] sm:$0xff] }
0x13ec   : > { %7295 = vpow2.f32 %v4976_v21  ;;  %6533 = vmatpush3.bf16.msra.mxu0 %v5071_v15  ;;  %v10097_v24 = vpop.eup %7285  ;;  %v10763_v21 = vld [vmem:[#allocation32_spill] sm:$0xff]  ;;  %v10765_v15 = vld [vmem:[#allocation45_spill] sm:$0xff] }
0x13ed   : > { %6534 = vmatprep.subr.bf16.mxu0 %v5069_v7 }
0x13ee   : > { %5004 = vadd.xlane.f32.xlu0 %v10094_v34 }
0x13f0   : > { %6535 = vmatpush3.bf16.msra.mxu0 %v5069_v7  ;;  %v10099_v55 = vpop.eup %7287  ;;  %v10766_v7 = vld [vmem:[#allocation94_spill] sm:$0xff] }
0x13f1   : > { %5006 = vadd.xlane.f32.xlu1 %v10099_v55 }
0x13f2   : > { %5010 = vadd.xlane.f32.xlu0 %v10097_v24 }
0x13f4   : > { %v10103_v29 = vpop.eup %7289 }
0x13f5   : > { %v10105_v0 = vpop.eup %7291  ;;  %5018 = vadd.xlane.f32.xlu1 %v10103_v29 }
0x13f6   : > { %5012 = vadd.xlane.f32.xlu0 %v10105_v0 }
0x13f8   : > { %v10109_v45 = vpop.eup %7293 }
0x13f9   : > { %v10111_v2 = vpop.eup %7295  ;;  %5014 = vadd.xlane.f32.xlu1 %v10109_v45 }
0x13fa   : > { %5008 = vadd.xlane.f32.xlu0 %v10111_v2 }
0x140a   : > { %5062 = vrot.lane.b32.xlu1 %v10742_v33, %s7605_s21  ;;  %v10767_v33 = vld [vmem:[#allocation53_spill] sm:$0xff] }
0x140e   : > { %1817 = vrot.lane.b32.xlu1 %v10743_v37, %s7605_s21  ;;  %v10768_v37 = vld [vmem:[#allocation74_spill] sm:$0xff] }
0x1410   : > { %5064 = vrot.lane.b32.xlu0 %v10744_v6, %s7605_s21  ;;  %v10769_v6 = vld [vmem:[#allocation44_spill] sm:$0xff] }
0x1412   : > { %1831 = vrot.lane.b32.xlu1 %v10745_v39, %s7605_s21  ;;  %v10770_v39 = vld [vmem:[#allocation93_spill] sm:$0xff] }
0x1413   : > { %v4941_v5 = vpop.xlane.xlu1 %4940 }
0x1414   : > { %v4957_v1 = vsub.f32 %v10050_v54, %v4941_v5  ;;  %v10752_v54 = vld [vmem:[#allocation54_spill] sm:$0xff]  ;;  %v10771_v5 = vld [vmem:[#allocation52_spill] sm:$0xff] }
0x1416   : > { %1833 = vrot.lane.b32.xlu1 %v10746_v53, %s7605_s21  ;;  %v4988_v28 = vmul.f32 1.442695, %v4957_v1  ;;  %v10774_v1 = vld [vmem:[#allocation40_spill] sm:$0xff] }
0x1417   : > { %v4937_v16 = vpop.xlane.xlu1 %4936 }
0x1418   : > { %v4955_v12 = vsub.f32 %v10054_v8, %v4937_v16  ;;  %v10750_v8 = vld [vmem:[#allocation55_spill] sm:$0xff]  ;;  %v10772_v16 = vld [vmem:[#allocation41_spill] sm:$0xff] }
0x141a   : > { %1821 = vrot.lane.b32.xlu1 %v10747_v41, %s7605_s21  ;;  %v4984_v17 = vmul.f32 1.442695, %v4955_v12  ;;  %v10773_v41 = vld [vmem:[#allocation65_spill] sm:$0xff] }
0x141b   : > { %v5067_v61 = vpop.permute.xlu1 %5066 }
0x141c   : > { %6536 = vmatprep.subr.bf16.mxu0 %v5067_v61  ;;  %7297 = vpow2.f32 %v4984_v17 }
0x141d   : > { %6537 = vmatpush3.bf16.msra.mxu0 %v5067_v61  ;;  %7299 = vpow2.f32 %v4988_v28 }
0x141e   : > { %1837 = vrot.lane.b32.xlu1 %v10748_v59, %s7605_s21  ;;  %v10775_v59 = vld [vmem:[#allocation64_spill] sm:$0xff] }
0x1422   : > { %2381 = vrot.lane.b32.xlu1 %v10749_v46, %s7604_s17  ;;  %v10777_v46 = vld [vmem:[#allocation77_spill] sm:$0xff] }
0x1426   : > { %2397 = vrot.lane.b32.xlu1 %v10750_v8, %s7604_s17  ;;  %v10778_v8 = vld [vmem:[#allocation39_spill] sm:$0xff] }
0x1429   : > { %v10137_v27 = vpop.eup %7297 }
0x142a   : > { %2385 = vrot.lane.b32.xlu1 %v10751_v63, %s7604_s17  ;;  %v10142_v60 = vpop.eup %7299 }
0x142e   : > { %2401 = vrot.lane.b32.xlu1 %v10752_v54, %s7604_s17  ;;  %v10779_v54 = vld [vmem:[#allocation85_spill] sm:$0xff] }
0x142f   : > { %5016 = vadd.xlane.f32.xlu0 %v10137_v27 }
0x1432   : > { %2945 = vrot.lane.b32.xlu1 %v10753_v62, %s7603_s23 }
0x1433   : > { %5020 = vadd.xlane.f32.xlu0 %v10142_v60 }
0x1436   : > { %2961 = vrot.lane.b32.xlu1 %v10754_v43, %s7603_s23  ;;  %v10780_v43 = vld [vmem:[#allocation29_spill] sm:$0xff] }
0x143a   : > { %2949 = vrot.lane.b32.xlu1 %v10755_v42, %s7603_s23 }
0x143e   : > { %2965 = vrot.lane.b32.xlu1 %v10756_v36, %s7603_s23 }
0x1442   : > { %3509 = vrot.lane.b32.xlu1 %v10757_v25, %s7602_s12  ;;  %v10781_v25 = vld [vmem:[#allocation76_spill] sm:$0xff] }
0x1446   : > { %3525 = vrot.lane.b32.xlu1 %v10758_v40, %s7602_s12 }
0x1449   : > { %1815 = vrot.lane.b32.xlu0 %v10759_v30, %s7605_s21 }
0x144a   : > { %3513 = vrot.lane.b32.xlu1 %v10760_v22, %s7602_s12 }
0x144d   : > { %1819 = vrot.lane.b32.xlu0 %v10761_v23, %s7605_s21  ;;  %v10782_v23 = vld [vmem:[#allocation38_spill] sm:$0xff] }
0x144e   : > { %3529 = vrot.lane.b32.xlu1 %v10762_v18, %s7602_s12 }
0x1451   : > { %1835 = vrot.lane.b32.xlu0 %v10763_v21, %s7605_s21 }
0x1452   : > { %4073 = vrot.lane.b32.xlu1 %v10764_v9, %s7601_s11  ;;  %v10783_v9 = vld [vmem:[#allocation84_spill] sm:$0xff] }
0x1455   : > { %2379 = vrot.lane.b32.xlu0 %v10765_v15, %s7604_s17  ;;  %v10784_v15 = vld [vmem:[#allocation51_spill] sm:$0xff] }
0x1456   : > { %4089 = vrot.lane.b32.xlu1 %v10766_v7, %s7601_s11 }
0x1459   : > { %2395 = vrot.lane.b32.xlu0 %v10767_v33, %s7604_s17 }
0x145a   : > { %4077 = vrot.lane.b32.xlu1 %v10768_v37, %s7601_s11 }
0x145d   : > { %2383 = vrot.lane.b32.xlu0 %v10769_v6, %s7604_s17  ;;  %v10786_v6 = vld [vmem:[#allocation59_spill] sm:$0xff] }
0x145e   : > { %4093 = vrot.lane.b32.xlu1 %v10770_v39, %s7601_s11 }
0x1461   : > { %2399 = vrot.lane.b32.xlu0 %v10771_v5, %s7604_s17 }
0x1462   : > { %v4995_v53 = vpop.xlane.xlu1 %4994  ;;  %4637 = vrot.lane.b32.xlu1 %v9963_v32, %s7600_s29 }
0x1465   : > { %2943 = vrot.lane.b32.xlu0 %v10772_v16, %s7603_s23 }
0x1466   : > { %v4991_v12 = vpop.xlane.xlu1 %4990  ;;  %4653 = vrot.lane.b32.xlu1 %v9979_v35, %s7600_s29  ;;  %v10776_v35 = vld [vmem:[#allocation31_spill] sm:$0xff] }
0x1467   : > { %7301 = vrcp.f32 %v4991_v12  ;;  %v10787_v12 = vld [vmem:[#allocation92_spill] sm:$0xff] }
0x1469   : > { %2959 = vrot.lane.b32.xlu0 %v10773_v41, %s7603_s23 }
0x146a   : > { %v4997_v61 = vpop.xlane.xlu1 %4996  ;;  %4641 = vrot.lane.b32.xlu1 %v9961_v19, %s7600_s29 }
0x146d   : > { %2947 = vrot.lane.b32.xlu0 %v10774_v1, %s7603_s23 }
0x146e   : > { %v4993_v17 = vpop.xlane.xlu1 %4992  ;;  %4657 = vrot.lane.b32.xlu1 %v9977_v4, %s7600_s29  ;;  %v5003_v32 = vpop.xlane.xlu0 %5002 }
0x146f   : > { %7303 = vrcp.f32 %v4993_v17 }
0x1470   : > { %7305 = vrcp.f32 %v4997_v61  ;;  %v10788_v61 = vld [vmem:[#allocation50_spill] sm:$0xff] }
0x1471   : > { %2963 = vrot.lane.b32.xlu0 %v10775_v59, %s7603_s23 }
0x1472   : > { %1825 = vrot.lane.b32.xlu1 %v10776_v35, %s7605_s21  ;;  %v5001_v19 = vpop.xlane.xlu1 %5000  ;;  %v10789_v35 = vld [vmem:[#allocation72_spill] sm:$0xff] }
0x1473   : > { %v4999_v28 = vpop.xlane.xlu0 %4998  ;;  %7307 = vrcp.f32 %v5001_v19 }
0x1474   : > { %v7302_v4 = vpop.eup %7301  ;;  %7309 = vrcp.f32 %v4999_v28 }
0x1475   : > { %3507 = vrot.lane.b32.xlu0 %v10777_v46, %s7602_s12  ;;  %7311 = vrcp.f32 %v4995_v53  ;;  %v5038_v40 = vmul.f32 %v7302_v4, %v10071_v58  ;;  %v10790_v46 = vld [vmem:[#allocation58_spill] sm:$0xff]  ;;  %v10792_v4 = vld [vmem:[#allocation63_spill] sm:$0xff] }
0x1476   : > { %1841 = vrot.lane.b32.xlu1 %v10778_v8, %s7605_s21 }
0x1477   : > { %v5005_v63 = vpop.xlane.xlu0 %5004 }
0x1478   : > { %7313 = vrcp.f32 %v5005_v63 }
0x1479   : > { %3523 = vrot.lane.b32.xlu0 %v10779_v54, %s7602_s12  ;;  %7315 = vrcp.f32 %v5003_v32 }
0x147a   : > { %v5007_v62 = vpop.xlane.xlu1 %5006  ;;  %1829 = vrot.lane.b32.xlu1 %v10780_v43, %s7605_s21 }
0x147b   : > { %v5011_v42 = vpop.xlane.xlu0 %5010  ;;  %7317 = vrcp.f32 %v5007_v62 }
0x147c   : > { %v7304_v36 = vpop.eup %7303 }
0x147d   : > { %3511 = vrot.lane.b32.xlu0 %v10781_v25, %s7602_s12  ;;  %v5039_v30 = vmul.f32 %v7304_v36, %v10080_v47  ;;  %v10785_v47 = vld [vmem:[#allocation73_spill] sm:$0xff]  ;;  %v7306_v33 = vpop.eup %7305 }
0x147e   : > { %v10213_v22 = vpop.xlane.xlu1 %5018  ;;  %1845 = vrot.lane.b32.xlu1 %v10782_v23, %s7605_s21  ;;  %v5041_v41 = vmul.f32 %v7306_v33, %v10075_v14 }
0x147f   : > { %v5013_v18 = vpop.xlane.xlu0 %5012  ;;  %v5054_v21 = vpack.c.bf16 %v5039_v30, %v5038_v40  ;;  %v10793_v30 = vld [vmem:[#allocation71_spill] sm:$0xff] }
0x1480   : > { %v7308_v37 = vpop.eup %7307 }
0x1481   : > { %3527 = vrot.lane.b32.xlu0 %v10783_v9, %s7602_s12  ;;  %6542 = vmatprep.mubr.bf16.mxu0 %v5054_v21  ;;  %v7310_v53 = vpop.eup %7309  ;;  %v5043_v32 = vmul.f32 %v7308_v37, %v10088_v44  ;;  %v10795_v9 = vld [vmem:[#allocation70_spill] sm:$0xff]  ;;  %v10801_v37 = vld [vmem:[#allocation28_spill] sm:$0xff] }
0x1482   : > { %2389 = vrot.lane.b32.xlu1 %v10784_v15, %s7604_s17  ;;  %v10221_v7 = vpop.xlane.xlu1 %5014  ;;  %v7312_v16 = vpop.eup %7311  ;;  %v5042_v17 = vmul.f32 %v7310_v53, %v10090_v51  ;;  %v10804_v53 = vld [vmem:[#allocation23_spill] sm:$0xff] }
0x1483   : > { %v5009_v58 = vpop.xlane.xlu0 %5008  ;;  %v5040_v59 = vmul.f32 %v7312_v16, %v10066_v26  ;;  %v10791_v26 = vld [vmem:[#allocation17_spill] sm:$0xff] }
0x1484   : > { %7319 = vrcp.f32 %v5009_v58  ;;  %v5056_v8 = vpack.c.bf16 %v5043_v32, %v5042_v17  ;;  %v10807_v17 = vld [vmem:[#allocation57_spill] sm:$0xff]  ;;  %v10808_v32 = vld [vmem:[#allocation22_spill] sm:$0xff] }
0x1485   : > { %4071 = vrot.lane.b32.xlu0 %v10785_v47, %s7601_s11  ;;  %7321 = vrcp.f32 %v5013_v18  ;;  %v5055_v14 = vpack.c.bf16 %v5041_v41, %v5040_v59  ;;  %v7314_v28 = vpop.eup %7313  ;;  %v10799_v47 = vld [vmem:[#allocation37_spill] sm:$0xff]  ;;  %v10806_v41 = vld [vmem:[#allocation98_spill] sm:$0xff] }
0x1486   : > { %2405 = vrot.lane.b32.xlu1 %v10786_v6, %s7604_s17  ;;  %v5063_v39 = vpop.permute.xlu1 %5062  ;;  %7323 = vrcp.f32 %v5011_v42  ;;  %v7316_v63 = vpop.eup %7315  ;;  %v5045_v54 = vmul.f32 %v7314_v28, %v10094_v34  ;;  %v10802_v6 = vld [vmem:[#allocation90_spill] sm:$0xff] }
0x1487   : > { %v5065_v5 = vpop.permute.xlu0 %5064  ;;  %v5044_v42 = vmul.f32 %v7316_v63, %v10083_v11  ;;  %7325 = vrcp.f32 %v10221_v7 }
0x1488   : > { %6538 = vmatprep.subr.bf16.mxu0 %v5065_v5  ;;  %v7318_v44 = vpop.eup %7317 }
0x1489   : > { %4087 = vrot.lane.b32.xlu0 %v10787_v12, %s7601_s11  ;;  %6539 = vmatpush3.bf16.msra.mxu0 %v5065_v5  ;;  %v5046_v36 = vmul.f32 %v7318_v44, %v10099_v55  ;;  %v5057_v25 = vpack.c.bf16 %v5045_v54, %v5044_v42  ;;  %v10803_v5 = vld [vmem:[#allocation36_spill] sm:$0xff]  ;;  %v10805_v12 = vld [vmem:[#allocation49_spill] sm:$0xff] }
0x148a   : > { %6540 = vmatprep.subr.bf16.mxu0 %v5063_v39  ;;  %2393 = vrot.lane.b32.xlu1 %v10788_v61, %s7604_s17  ;;  %v1818_v1 = vpop.permute.xlu1 %1817  ;;  %v10812_v44 = vld [vmem:[#allocation61_spill] sm:$0xff] }
0x148b   : > { %1865 = vst.msk [vmem:[#allocation2 + $0x8] sm:$0xff] %vm1863_vm1, %v1818_v1 }
0x148d   : > { %4075 = vrot.lane.b32.xlu0 %v10789_v35, %s7601_s11  ;;  %6541 = vmatpush3.bf16.msra.mxu0 %v5063_v39  ;;  %v10809_v35 = vld [vmem:[#allocation48_spill] sm:$0xff] }
0x148e   : > { %2409 = vrot.lane.b32.xlu1 %v10790_v46, %s7604_s17  ;;  %v1832_v19 = vpop.permute.xlu1 %1831 }
0x148f   : > { %1872 = vst.msk [vmem:[#allocation2 + $0x40] sm:$0xff] %vm1863_vm1, %v1832_v19 }
0x1490   : > { %6543 = vmatmul.mubr.bf16.vlgmr.msra.gmra.mxu0 %v5055_v14  ;;  %v10810_v14 = vld [vmem:[#allocation97_spill] sm:$0xff] }
0x1491   : > { %4091 = vrot.lane.b32.xlu0 %v10791_v26, %s7601_s11  ;;  %6546 = vmatprep.mubr.bf16.mxu0 %v5056_v8  ;;  %v7320_v51 = vpop.eup %7319 }
0x1492   : > { %2953 = vrot.lane.b32.xlu1 %v10792_v4, %s7603_s23  ;;  %v1834_v62 = vpop.permute.xlu1 %1833  ;;  %v5047_v43 = vmul.f32 %v7320_v51, %v10111_v2  ;;  %v7322_v40 = vpop.eup %7321 }
0x1493   : > { %1873 = vst.msk [vmem:[#allocation2 + $0x48] sm:$0xff] %vm1863_vm1, %v1834_v62  ;;  %v7324_v2 = vpop.eup %7323  ;;  %v5049_v11 = vmul.f32 %v7322_v40, %v10105_v0  ;;  %v10796_v0 = vld [vmem:[#allocation83_spill] sm:$0xff]  ;;  %v10814_v40 = vld [vmem:[#allocation60_spill] sm:$0xff] }
0x1494   : > { %v5058_v23 = vpack.c.bf16 %v5047_v43, %v5046_v36  ;;  %v5048_v18 = vmul.f32 %v7324_v2, %v10097_v24  ;;  %v10798_v24 = vld [vmem:[#allocation91_spill] sm:$0xff]  ;;  %v7326_v8 = vpop.eup %7325  ;;  %v10813_v43 = vld [vmem:[#allocation69_spill] sm:$0xff] }
0x1495   : > { %4635 = vrot.lane.b32.xlu0 %v9959_v49, %s7600_s29  ;;  %v10794_v49 = vld [vmem:[#allocation62_spill] sm:$0xff]  ;;  %v5050_v54 = vmul.f32 %v7326_v8, %v10109_v45  ;;  %v10816_v2 = vld [vmem:[#allocation81_spill] sm:$0xff] }
0x1496   : > { %2969 = vrot.lane.b32.xlu1 %v10793_v30, %s7603_s23  ;;  %v1822_v34 = vpop.permute.xlu1 %1821  ;;  %v5059_v21 = vpack.c.bf16 %v5049_v11, %v5048_v18 }
0x1497   : > { %1867 = vst.msk [vmem:[#allocation2 + $0x18] sm:$0xff] %vm1863_vm1, %v1822_v34 }
0x1498   : > { %6547 = vmatmul.mubr.bf16.gmra.mxu0 %v5057_v25 }
0x1499   : > { %4651 = vrot.lane.b32.xlu0 %v9975_v56, %s7600_s29  ;;  %6550 = vmatprep.mubr.bf16.mxu0 %v5058_v23 }
0x149a   : > { %2957 = vrot.lane.b32.xlu1 %v10794_v49, %s7603_s23  ;;  %v1838_v55 = vpop.permute.xlu1 %1837  ;;  %v10817_v49 = vld [vmem:[#allocation89_spill] sm:$0xff] }
0x149b   : > { %1875 = vst.msk [vmem:[#allocation2 + $0x58] sm:$0xff] %vm1863_vm1, %v1838_v55 }
0x149d   : > { %4639 = vrot.lane.b32.xlu0 %v9957_v38, %s7600_s29  ;;  %v10797_v38 = vld [vmem:[#allocation30_spill] sm:$0xff] }
0x149e   : > { %2973 = vrot.lane.b32.xlu1 %v10795_v9, %s7603_s23  ;;  %v2382_v56 = vpop.permute.xlu1 %2381 }
0x149f   : > { %2429 = vst.msk [vmem:[#allocation2 + $0x8] sm:$0xff] %vm2427_vm2, %v2382_v56 }
0x14a0   : > { %6551 = vmatmul.mubr.bf16.gmra.mxu0 %v5059_v21  ;;  %v10818_v21 = vld [vmem:[#allocation80_spill] sm:$0xff] }
0x14a1   : > { %4655 = vrot.lane.b32.xlu0 %v9973_v52, %s7600_s29  ;;  %v10800_v52 = vld [vmem:[#allocation82_spill] sm:$0xff] }
0x14a2   : > { %3517 = vrot.lane.b32.xlu1 %v10796_v0, %s7602_s12  ;;  %v2398_v15 = vpop.permute.xlu1 %2397  ;;  %v10819_v0 = vld [vmem:[#allocation88_spill] sm:$0xff] }
0x14a3   : > { %2437 = vst.msk [vmem:[#allocation2 + $0x48] sm:$0xff] %vm2427_vm2, %v2398_v15 }
0x14a5   : > { %1823 = vrot.lane.b32.xlu0 %v10797_v38, %s7605_s21 }
0x14a6   : > { %3533 = vrot.lane.b32.xlu1 %v10798_v24, %s7602_s12  ;;  %v2386_v58 = vpop.permute.xlu1 %2385  ;;  %v10820_v24 = vld [vmem:[#allocation21_spill] sm:$0xff] }
0x14a7   : > { %2431 = vst.msk [vmem:[#allocation2 + $0x18] sm:$0xff] %vm2427_vm2, %v2386_v58 }
0x14a9   : > { %1839 = vrot.lane.b32.xlu0 %v10799_v47, %s7605_s21 }
0x14aa   : > { %3521 = vrot.lane.b32.xlu1 %v10800_v52, %s7602_s12  ;;  %v2402_v33 = vpop.permute.xlu1 %2401  ;;  %v10821_v52 = vld [vmem:[#allocation96_spill] sm:$0xff] }
0x14ab   : > { %2439 = vst.msk [vmem:[#allocation2 + $0x58] sm:$0xff] %vm2427_vm2, %v2402_v33 }
0x14ad   : > { %1827 = vrot.lane.b32.xlu0 %v10801_v37, %s7605_s21 }
0x14ae   : > { %3537 = vrot.lane.b32.xlu1 %v10802_v6, %s7602_s12  ;;  %v2946_v39 = vpop.permute.xlu1 %2945  ;;  %v10822_v6 = vld [vmem:[#allocation18_spill] sm:$0xff] }
0x14af   : > { %2993 = vst.msk [vmem:[#allocation2 + $0x8] sm:$0xff] %vm2991_vm3, %v2946_v39 }
0x14b1   : > { %1843 = vrot.lane.b32.xlu0 %v10803_v5, %s7605_s21 }
0x14b2   : > { %4081 = vrot.lane.b32.xlu1 %v10804_v53, %s7601_s11  ;;  %v2962_v16 = vpop.permute.xlu1 %2961  ;;  %v10823_v53 = vld [vmem:[#allocation95_spill] sm:$0xff] }
0x14b3   : > { %3001 = vst.msk [vmem:[#allocation2 + $0x48] sm:$0xff] %vm2991_vm3, %v2962_v16 }
0x14b5   : > { %2387 = vrot.lane.b32.xlu0 %v10805_v12, %s7604_s17 }
0x14b6   : > { %4097 = vrot.lane.b32.xlu1 %v10806_v41, %s7601_s11  ;;  %v2950_v61 = vpop.permute.xlu1 %2949 }
0x14b7   : > { %2995 = vst.msk [vmem:[#allocation2 + $0x18] sm:$0xff] %vm2991_vm3, %v2950_v61 }
0x14b8   : > { %v5017_v1 = vpop.xlane.xlu0 %5016 }
0x14b9   : > { %7327 = vrcp.f32 %v5017_v1  ;;  %2403 = vrot.lane.b32.xlu0 %v10807_v17, %s7604_s17 }
0x14ba   : > { %7329 = vrcp.f32 %v10213_v22  ;;  %4085 = vrot.lane.b32.xlu1 %v10808_v32, %s7601_s11  ;;  %v2966_v59 = vpop.permute.xlu1 %2965  ;;  %v10811_v22 = vld [vmem:[#allocation56_spill] sm:$0xff] }
0x14bb   : > { %3003 = vst.msk [vmem:[#allocation2 + $0x58] sm:$0xff] %vm2991_vm3, %v2966_v59 }
0x14bc   : > { %v5021_v7 = vpop.xlane.xlu0 %5020 }
0x14bd   : > { %7331 = vrcp.f32 %v5021_v7  ;;  %2391 = vrot.lane.b32.xlu0 %v10809_v35, %s7604_s17 }
0x14be   : > { %4101 = vrot.lane.b32.xlu1 %v10810_v14, %s7601_s11  ;;  %v3510_v28 = vpop.permute.xlu1 %3509 }
0x14bf   : > { %3557 = vst.msk [vmem:[#allocation2 + $0x8] sm:$0xff] %vm3555_vm4, %v3510_v28 }
0x14c0   : > { %v1816_v46 = vpop.permute.xlu0 %1815 }
0x14c1   : > { %1864 = vst.msk [vmem:[#allocation2] sm:$0xff] %vm1863_vm1, %v1816_v46  ;;  %2407 = vrot.lane.b32.xlu0 %v10811_v22, %s7604_s17 }
0x14c2   : > { %4645 = vrot.lane.b32.xlu1 %v9971_v3, %s7600_s29  ;;  %v3526_v19 = vpop.permute.xlu1 %3525 }
0x14c3   : > { %3565 = vst.msk [vmem:[#allocation2 + $0x48] sm:$0xff] %vm3555_vm4, %v3526_v19 }
0x14c4   : > { %v1820_v63 = vpop.permute.xlu0 %1819 }
0x14c5   : > { %1866 = vst.msk [vmem:[#allocation2 + $0x10] sm:$0xff] %vm1863_vm1, %v1820_v63  ;;  %2951 = vrot.lane.b32.xlu0 %v10812_v44, %s7603_s23  ;;  %v6813_v63 = vld [vmem:[#allocation8 + $0x38] sm:$0xff]   ;;  %v6814_v44 = vld [vmem:[#allocation8 + $0x30] sm:$0xff]  }
0x14c6   : > { %v7328_v26 = vpop.eup %7327  ;;  %4661 = vrot.lane.b32.xlu1 %v9987_v50, %s7600_s29  ;;  %v3514_v51 = vpop.permute.xlu1 %3513  ;;  %6558 = vmatprep.subr.bf16.mxu0 %v6813_v63 }
0x14c7   : > { %v5051_v4 = vmul.f32 %v7328_v26, %v10137_v27  ;;  %v7330_v3 = vpop.eup %7329  ;;  %3559 = vst.msk [vmem:[#allocation2 + $0x18] sm:$0xff] %vm3555_vm4, %v3514_v51  ;;  %6590 = vmatprep.subr.bf16.mxu1 %v6813_v63  ;;  %6559 = vmatpush3.bf16.msra.mxu0 %v6813_v63 }
0x14c8   : > { %v1836_v62 = vpop.permute.xlu0 %1835  ;;  %v5052_v45 = vmul.f32 %v7330_v3, %v10103_v29  ;;  %6598 = vmatpush3.bf16.msra.mxu1 %v6813_v63  ;;  %6560 = vmatprep.subr.bf16.mxu0 %v6814_v44 }
0x14c9   : > { %1874 = vst.msk [vmem:[#allocation2 + $0x50] sm:$0xff] %vm1863_vm1, %v1836_v62  ;;  %2967 = vrot.lane.b32.xlu0 %v10813_v43, %s7603_s23  ;;  %v5060_v42 = vpack.c.bf16 %v5051_v4, %v5050_v54  ;;  %v6815_v54 = vld [vmem:[#allocation8 + $0x28] sm:$0xff]   ;;  %6591 = vmatprep.subr.bf16.mxu1 %v6814_v44  ;;  %v6816_v62 = vld [vmem:[#allocation8 + $0x20] sm:$0xff]  }
0x14ca   : > { %v7332_v36 = vpop.eup %7331  ;;  %4649 = vrot.lane.b32.xlu1 %v9969_v13, %s7600_s29  ;;  %v3530_v50 = vpop.permute.xlu1 %3529 }
0x14cb   : > { %6554 = vmatprep.mubr.bf16.mxu0 %v5060_v42  ;;  %v5053_v27 = vmul.f32 %v7332_v36, %v10142_v60  ;;  %3567 = vst.msk [vmem:[#allocation2 + $0x58] sm:$0xff] %vm3555_vm4, %v3530_v50  ;;  %v10815_v60 = vld [vmem:[#allocation68_spill] sm:$0xff]  ;;  %6561 = vmatpush3.bf16.msra.mxu0 %v6814_v44 }
0x14cc   : > { %v2380_v25 = vpop.permute.xlu0 %2379  ;;  %6599 = vmatpush3.bf16.msra.mxu1 %v6814_v44  ;;  %6562 = vmatprep.subr.bf16.mxu0 %v6815_v54 }
0x14cd   : > { %2428 = vst.msk [vmem:[#allocation2] sm:$0xff] %vm2427_vm2, %v2380_v25  ;;  %2955 = vrot.lane.b32.xlu0 %v10814_v40, %s7603_s23  ;;  %v5061_v30 = vpack.c.bf16 %v5053_v27, %v5052_v45  ;;  %6592 = vmatprep.subr.bf16.mxu1 %v6815_v54 }
0x14ce   : > { %4665 = vrot.lane.b32.xlu1 %v9985_v20, %s7600_s29  ;;  %v4074_v13 = vpop.permute.xlu1 %4073 }
0x14cf   : > { %6555 = vmatmul.mubr.bf16.gmra.mxu0 %v5061_v30  ;;  %4121 = vst.msk [vmem:[#allocation2 + $0x8] sm:$0xff] %vm4119_vm5, %v4074_v13 }
0x14d0   : > { %v2396_v29 = vpop.permute.xlu0 %2395  ;;  %6563 = vmatpush3.bf16.msra.mxu0 %v6815_v54  ;;  %6600 = vmatpush3.bf16.msra.mxu1 %v6815_v54 }
0x14d1   : > { %2436 = vst.msk [vmem:[#allocation2 + $0x40] sm:$0xff] %vm2427_vm2, %v2396_v29  ;;  %2971 = vrot.lane.b32.xlu0 %v10815_v60, %s7603_s23  ;;  %6564 = vmatprep.subr.bf16.mxu0 %v6816_v62 }
0x14d2   : > { %v4090_v34 = vpop.permute.xlu1 %4089  ;;  %6593 = vmatprep.subr.bf16.mxu1 %v6816_v62 }
0x14d3   : > { %4129 = vst.msk [vmem:[#allocation2 + $0x48] sm:$0xff] %vm4119_vm5, %v4090_v34 }
0x14d4   : > { %v2384_v23 = vpop.permute.xlu0 %2383  ;;  %6565 = vmatpush3.bf16.msra.mxu0 %v6816_v62  ;;  %6601 = vmatpush3.bf16.msra.mxu1 %v6816_v62 }
0x14d5   : > { %2430 = vst.msk [vmem:[#allocation2 + $0x10] sm:$0xff] %vm2427_vm2, %v2384_v23  ;;  %3515 = vrot.lane.b32.xlu0 %v10816_v2, %s7602_s12 }
0x14d6   : > { %v4078_v20 = vpop.permute.xlu1 %4077 }
0x14d7   : > { %4123 = vst.msk [vmem:[#allocation2 + $0x18] sm:$0xff] %vm4119_vm5, %v4078_v20 }
0x14d8   : > { %v2400_v11 = vpop.permute.xlu0 %2399 }
0x14d9   : > { %2438 = vst.msk [vmem:[#allocation2 + $0x50] sm:$0xff] %vm2427_vm2, %v2400_v11  ;;  %3531 = vrot.lane.b32.xlu0 %v10817_v49, %s7602_s12 }
0x14da   : > { %v4094_v55 = vpop.permute.xlu1 %4093 }
0x14db   : > { %4131 = vst.msk [vmem:[#allocation2 + $0x58] sm:$0xff] %vm4119_vm5, %v4094_v55  ;;  %v6817_v55 = vld [vmem:[#allocation8 + $0x18] sm:$0xff]  }
0x14dc   : > { %v2944_v18 = vpop.permute.xlu0 %2943  ;;  %6566 = vmatprep.subr.bf16.mxu0 %v6817_v55  ;;  %6594 = vmatprep.subr.bf16.mxu1 %v6817_v55 }
0x14dd   : > { %2992 = vst.msk [vmem:[#allocation2] sm:$0xff] %vm2991_vm3, %v2944_v18  ;;  %3519 = vrot.lane.b32.xlu0 %v10818_v21, %s7602_s12  ;;  %6567 = vmatpush3.bf16.msra.mxu0 %v6817_v55 }
0x14de   : > { %v4638_v9 = vpop.permute.xlu1 %4637  ;;  %6602 = vmatpush3.bf16.msra.mxu1 %v6817_v55 }
0x14df   : > { %4685 = vst.msk [vmem:[#allocation2 + $0x8] sm:$0xff] %vm4683_vm6, %v4638_v9  ;;  %v6818_v9 = vld [vmem:[#allocation8 + $0x10] sm:$0xff]  }
0x14e0   : > { %v2960_v56 = vpop.permute.xlu0 %2959  ;;  %6568 = vmatprep.subr.bf16.mxu0 %v6818_v9  ;;  %6595 = vmatprep.subr.bf16.mxu1 %v6818_v9 }
0x14e1   : > { %3000 = vst.msk [vmem:[#allocation2 + $0x40] sm:$0xff] %vm2991_vm3, %v2960_v56  ;;  %3535 = vrot.lane.b32.xlu0 %v10819_v0, %s7602_s12  ;;  %6569 = vmatpush3.bf16.msra.mxu0 %v6818_v9  ;;  %s7606_s12 = smov [#allocation12]  }
0x14e2   : > { %v4654_v15 = vpop.permute.xlu1 %4653  ;;  %6603 = vmatpush3.bf16.msra.mxu1 %v6818_v9  ;;  %s7517_s23 = sshll.u32 %s7606_s12, 4  ;;  %s7518_s23 = int_to_ptr.vmem [resolvable:$false] %s7517_s23 }
0x14e3   : > { %4693 = vst.msk [vmem:[#allocation2 + $0x48] sm:$0xff] %vm4683_vm6, %v4654_v15  ;;  %v6819_v15 = vld [vmem:[#allocation8 + $0x8] sm:$0xff]   ;;  %s7519_s17 = scalar_lea.vmem %s7518_s23, 4096  ;;  %p7520_p5 = scmp.lt.s32.totalorder %s10496_s30, %s7518_s23 }
0x14e4   : > { %v2948_v38 = vpop.permute.xlu0 %2947  ;;  %6570 = vmatprep.subr.bf16.mxu0 %v6819_v15  ;;  %6596 = vmatprep.subr.bf16.mxu1 %v6819_v15  ;;  %p7521_p10 = scmp.lt.s32.totalorder %s7519_s17, %s7513_s28 }
0x14e5   : > { %2994 = vst.msk [vmem:[#allocation2 + $0x10] sm:$0xff] %vm2991_vm3, %v2948_v38  ;;  %4079 = vrot.lane.b32.xlu0 %v10820_v24, %s7601_s11  ;;  %6571 = vmatpush3.bf16.msra.mxu0 %v6819_v15 }
0x14e6   : > { %v4642_v58 = vpop.permute.xlu1 %4641  ;;  %6604 = vmatpush3.bf16.msra.mxu1 %v6819_v15  ;;  %p7522_p1 = por %p7521_p10, %p7520_p5 }
0x14e7   : > { %4687 = vst.msk [vmem:[#allocation2 + $0x18] sm:$0xff] %vm4683_vm6, %v4642_v58 }
0x14e8   : > { %v2964_v47 = vpop.permute.xlu0 %2963  ;;  %p7523_p6 = pnand %p7522_p1, %p7516_p13 }
0x14e9   : > { %3002 = vst.msk [vmem:[#allocation2 + $0x50] sm:$0xff] %vm2991_vm3, %v2964_v47  ;;  %4095 = vrot.lane.b32.xlu0 %v10821_v52, %s7601_s11  ;;  %v6820_v47 = vld [vmem:[#allocation8] sm:$0xff]  }
0x14ea   : > { %v4658_v33 = vpop.permute.xlu1 %4657  ;;  %6572 = vmatprep.subr.bf16.mxu0 %v6820_v47  ;;  %6597 = vmatprep.subr.bf16.mxu1 %v6820_v47 }
0x14eb   : > { %4695 = vst.msk [vmem:[#allocation2 + $0x58] sm:$0xff] %vm4683_vm6, %v4658_v33  ;;  %6573 = vmatpush3.bf16.msra.mxu0 %v6820_v47  ;;  %6605 = vmatpush3.bf16.msra.mxu1 %v6820_v47 }
0x14ec   : > { %v3508_v37 = vpop.permute.xlu0 %3507 }
0x14ed   : > { %3556 = vst.msk [vmem:[#allocation2] sm:$0xff] %vm3555_vm4, %v3508_v37  ;;  %4083 = vrot.lane.b32.xlu0 %v10822_v6, %s7601_s11 }
0x14ee   : > { %v1826_v39 = vpop.permute.xlu1 %1825 }
0x14ef   : > { %1869 = vst.msk [vmem:[#allocation2 + $0x28] sm:$0xff] %vm1863_vm1, %v1826_v39 }
0x14f0   : > { %v3524_v5 = vpop.permute.xlu0 %3523 }
0x14f1   : > { %3564 = vst.msk [vmem:[#allocation2 + $0x40] sm:$0xff] %vm3555_vm4, %v3524_v5  ;;  %4099 = vrot.lane.b32.xlu0 %v10823_v53, %s7601_s11  ;;  %s5473_s11 = scalar_lea.sflag [#allocation5], %s7804_s16 }
0x14f2   : > { %v1842_v16 = vpop.permute.xlu1 %1841 }
0x14f3   : > { %1877 = vst.msk [vmem:[#allocation2 + $0x68] sm:$0xff] %vm1863_vm1, %v1842_v16 }
0x14f4   : > { %v3512_v12 = vpop.permute.xlu0 %3511 }
0x14f5   : > { %3558 = vst.msk [vmem:[#allocation2 + $0x10] sm:$0xff] %vm3555_vm4, %v3512_v12  ;;  %4643 = vrot.lane.b32.xlu0 %v9967_v31, %s7600_s29 }
0x14f6   : > { %v1830_v41 = vpop.permute.xlu1 %1829 }
0x14f7   : > { %1871 = vst.msk [vmem:[#allocation2 + $0x38] sm:$0xff] %vm1863_vm1, %v1830_v41 }
0x14f8   : > { %v3528_v61 = vpop.permute.xlu0 %3527 }
0x14f9   : > { %3566 = vst.msk [vmem:[#allocation2 + $0x50] sm:$0xff] %vm3555_vm4, %v3528_v61  ;;  %4659 = vrot.lane.b32.xlu0 %v9983_v48, %s7600_s29 }
0x14fa   : > { %v1846_v1 = vpop.permute.xlu1 %1845 }
0x14fb   : > { %1879 = vst.msk [vmem:[#allocation2 + $0x78] sm:$0xff] %vm1863_vm1, %v1846_v1 }
0x14fc   : > { %v4072_v17 = vpop.permute.xlu0 %4071 }
0x14fd   : > { %4120 = vst.msk [vmem:[#allocation2] sm:$0xff] %vm4119_vm5, %v4072_v17  ;;  %4647 = vrot.lane.b32.xlu0 %v9965_v57, %s7600_s29 }
0x14fe   : > { %v2390_v32 = vpop.permute.xlu1 %2389 }
0x14ff   : > { %2433 = vst.msk [vmem:[#allocation2 + $0x28] sm:$0xff] %vm2427_vm2, %v2390_v32 }
0x1500   : > { %v4088_v31 = vpop.permute.xlu0 %4087 }
0x1501   : > { %4128 = vst.msk [vmem:[#allocation2 + $0x40] sm:$0xff] %vm4119_vm5, %v4088_v31  ;;  %4663 = vrot.lane.b32.xlu0 %v9981_v10, %s7600_s29  ;;  %s10494_s29 = scalar_lea.hbm %s10548_s7, %s5725_s19 }
0x1502   : > { %v2406_v59 = vpop.permute.xlu1 %2405 }
0x1503   : > { %2441 = vst.msk [vmem:[#allocation2 + $0x68] sm:$0xff] %vm2427_vm2, %v2406_v59 }
0x1504   : > { %v4076_v48 = vpop.permute.xlu0 %4075 }
0x1505   : > { %4122 = vst.msk [vmem:[#allocation2 + $0x10] sm:$0xff] %vm4119_vm5, %v4076_v48 }
0x1506   : > { %v2394_v7 = vpop.permute.xlu1 %2393 }
0x1507   : > { %2435 = vst.msk [vmem:[#allocation2 + $0x38] sm:$0xff] %vm2427_vm2, %v2394_v7 }
0x1508   : > { %v4092_v35 = vpop.permute.xlu0 %4091 }
0x1509   : > { %4130 = vst.msk [vmem:[#allocation2 + $0x50] sm:$0xff] %vm4119_vm5, %v4092_v35 }
0x150a   : > { %v2410_v57 = vpop.permute.xlu1 %2409 }
0x150b   : > { %2443 = vst.msk [vmem:[#allocation2 + $0x78] sm:$0xff] %vm2427_vm2, %v2410_v57 }
0x150c   : > { %v4636_v14 = vpop.permute.xlu0 %4635 }
0x150d   : > { %4684 = vst.msk [vmem:[#allocation2] sm:$0xff] %vm4683_vm6, %v4636_v14 }
0x150e   : > { %v2954_v28 = vpop.permute.xlu1 %2953 }
0x150f   : > { %2997 = vst.msk [vmem:[#allocation2 + $0x28] sm:$0xff] %vm2991_vm3, %v2954_v28 }
0x1510   : > { %v4652_v10 = vpop.permute.xlu0 %4651 }
0x1511   : > { %4692 = vst.msk [vmem:[#allocation2 + $0x40] sm:$0xff] %vm4683_vm6, %v4652_v10 }
0x1512   : > { %v2970_v46 = vpop.permute.xlu1 %2969 }
0x1513   : > { %3005 = vst.msk [vmem:[#allocation2 + $0x68] sm:$0xff] %vm2991_vm3, %v2970_v46 }
0x1514   : > { %v4640_v22 = vpop.permute.xlu0 %4639 }
0x1515   : > { %4686 = vst.msk [vmem:[#allocation2 + $0x10] sm:$0xff] %vm4683_vm6, %v4640_v22 }
0x1516   : > { %v2958_v19 = vpop.permute.xlu1 %2957 }
0x1517   : > { %2999 = vst.msk [vmem:[#allocation2 + $0x38] sm:$0xff] %vm2991_vm3, %v2958_v19 }
0x1518   : > { %v4656_v8 = vpop.permute.xlu0 %4655 }
0x1519   : > { %4694 = vst.msk [vmem:[#allocation2 + $0x50] sm:$0xff] %vm4683_vm6, %v4656_v8 }
0x151a   : > { %v2974_v26 = vpop.permute.xlu1 %2973 }
0x151b   : > { %3007 = vst.msk [vmem:[#allocation2 + $0x78] sm:$0xff] %vm2991_vm3, %v2974_v26 }
0x151c   : > { %v1824_v51 = vpop.permute.xlu0 %1823 }
0x151d   : > { %1868 = vst.msk [vmem:[#allocation2 + $0x20] sm:$0xff] %vm1863_vm1, %v1824_v51 }
0x151e   : > { %v3518_v4 = vpop.permute.xlu1 %3517 }
0x151f   : > { %3561 = vst.msk [vmem:[#allocation2 + $0x28] sm:$0xff] %vm3555_vm4, %v3518_v4 }
0x1520   : > { %v1840_v3 = vpop.permute.xlu0 %1839 }
0x1521   : > { %1876 = vst.msk [vmem:[#allocation2 + $0x60] sm:$0xff] %vm1863_vm1, %v1840_v3 }
0x1522   : > { %v3534_v43 = vpop.permute.xlu1 %3533 }
0x1523   : > { %3569 = vst.msk [vmem:[#allocation2 + $0x68] sm:$0xff] %vm3555_vm4, %v3534_v43 }
0x1524   : > { %v1828_v42 = vpop.permute.xlu0 %1827 }
0x1525   : > { %1870 = vst.msk [vmem:[#allocation2 + $0x30] sm:$0xff] %vm1863_vm1, %v1828_v42 }
0x1526   : > { %v3522_v36 = vpop.permute.xlu1 %3521 }
0x1527   : > { %3563 = vst.msk [vmem:[#allocation2 + $0x38] sm:$0xff] %vm3555_vm4, %v3522_v36 }
0x1528   : > { %v1844_v50 = vpop.permute.xlu0 %1843 }
0x1529   : > { %1878 = vst.msk [vmem:[#allocation2 + $0x70] sm:$0xff] %vm1863_vm1, %v1844_v50 }
0x152a   : > { %v3538_v45 = vpop.permute.xlu1 %3537 }
0x152b   : > { %3571 = vst.msk [vmem:[#allocation2 + $0x78] sm:$0xff] %vm3555_vm4, %v3538_v45 }
0x152c   : > { %v2388_v27 = vpop.permute.xlu0 %2387 }
0x152d   : > { %2432 = vst.msk [vmem:[#allocation2 + $0x20] sm:$0xff] %vm2427_vm2, %v2388_v27 }
0x152e   : > { %v4082_v25 = vpop.permute.xlu1 %4081 }
0x152f   : > { %4125 = vst.msk [vmem:[#allocation2 + $0x28] sm:$0xff] %vm4119_vm5, %v4082_v25 }
0x1530   : > { %v2404_v40 = vpop.permute.xlu0 %2403 }
0x1531   : > { %2440 = vst.msk [vmem:[#allocation2 + $0x60] sm:$0xff] %vm2427_vm2, %v2404_v40 }
0x1532   : > { %v4098_v30 = vpop.permute.xlu1 %4097 }
0x1533   : > { %4133 = vst.msk [vmem:[#allocation2 + $0x68] sm:$0xff] %vm4119_vm5, %v4098_v30 }
0x1534   : > { %v2392_v13 = vpop.permute.xlu0 %2391 }
0x1535   : > { %2434 = vst.msk [vmem:[#allocation2 + $0x30] sm:$0xff] %vm2427_vm2, %v2392_v13 }
0x1536   : > { %v4086_v29 = vpop.permute.xlu1 %4085 }
0x1537   : > { %4127 = vst.msk [vmem:[#allocation2 + $0x38] sm:$0xff] %vm4119_vm5, %v4086_v29 }
0x1538   : > { %v2408_v60 = vpop.permute.xlu0 %2407 }
0x1539   : > { %2442 = vst.msk [vmem:[#allocation2 + $0x70] sm:$0xff] %vm2427_vm2, %v2408_v60 }
0x153a   : > { %v4102_v34 = vpop.permute.xlu1 %4101 }
0x153b   : > { %4135 = vst.msk [vmem:[#allocation2 + $0x78] sm:$0xff] %vm4119_vm5, %v4102_v34 }
0x153c   : > { %v2952_v23 = vpop.permute.xlu0 %2951 }
0x153d   : > { %2996 = vst.msk [vmem:[#allocation2 + $0x20] sm:$0xff] %vm2991_vm3, %v2952_v23 }
0x153e   : > { %v4646_v2 = vpop.permute.xlu1 %4645 }
0x153f   : > { %4689 = vst.msk [vmem:[#allocation2 + $0x28] sm:$0xff] %vm4683_vm6, %v4646_v2 }
0x1540   : > { %v2968_v20 = vpop.permute.xlu0 %2967 }
0x1541   : > { %3004 = vst.msk [vmem:[#allocation2 + $0x60] sm:$0xff] %vm2991_vm3, %v2968_v20 }
0x1542   : > { %v4662_v11 = vpop.permute.xlu1 %4661 }
0x1543   : > { %4697 = vst.msk [vmem:[#allocation2 + $0x68] sm:$0xff] %vm4683_vm6, %v4662_v11 }
0x1544   : > { %v2956_v49 = vpop.permute.xlu0 %2955 }
0x1545   : > { %2998 = vst.msk [vmem:[#allocation2 + $0x30] sm:$0xff] %vm2991_vm3, %v2956_v49 }
0x1546   : > { %v4650_v18 = vpop.permute.xlu1 %4649 }
0x1547   : > { %4691 = vst.msk [vmem:[#allocation2 + $0x38] sm:$0xff] %vm4683_vm6, %v4650_v18 }
0x1548   : > { %v2972_v21 = vpop.permute.xlu0 %2971 }
0x1549   : > { %3006 = vst.msk [vmem:[#allocation2 + $0x70] sm:$0xff] %vm2991_vm3, %v2972_v21 }
0x154a   : > { %v4666_v56 = vpop.permute.xlu1 %4665 }
0x154b   : > { %4699 = vst.msk [vmem:[#allocation2 + $0x78] sm:$0xff] %vm4683_vm6, %v4666_v56 }
0x154c   : > { %v3516_v0 = vpop.permute.xlu0 %3515 }
0x154d   : > { %3560 = vst.msk [vmem:[#allocation2 + $0x20] sm:$0xff] %vm3555_vm4, %v3516_v0 }
0x1550   : > { %v6544_v38 = vpop.f32.mrf.mxu0  ;;  %v3532_v24 = vpop.permute.xlu0 %3531 }
0x1551   : > { %3568 = vst.msk [vmem:[#allocation2 + $0x60] sm:$0xff] %vm3555_vm4, %v3532_v24  ;;  %5203 = vrot.lane.b32.xlu0 %v6544_v38, %s7599_s20 }
0x1552   : > { %v5120_v58 = vpop.f32.mrf.mxu0 }
0x1554   : > { %v6545_v52 = vpop.f32.mrf.mxu0  ;;  %v3520_v33 = vpop.permute.xlu0 %3519 }
0x1555   : > { %3562 = vst.msk [vmem:[#allocation2 + $0x30] sm:$0xff] %vm3555_vm4, %v3520_v33  ;;  %5205 = vrot.lane.b32.xlu1 %v6545_v52, %s7599_s20  ;;  %5199 = vrot.lane.b32.xlu0 %v5120_v58, %s7599_s20  ;;  %v5710_v52 = vld [vmem:[%s10545_s4] ss:$0 sm:$0xff] }
0x1556   : > { %v5123_v37 = vpop.f32.mrf.mxu0 }
0x1558   : > { %v6548_v6 = vpop.f32.mrf.mxu0  ;;  %v3536_v39 = vpop.permute.xlu0 %3535 }
0x1559   : > { %3570 = vst.msk [vmem:[#allocation2 + $0x70] sm:$0xff] %vm3555_vm4, %v3536_v39  ;;  %5201 = vrot.lane.b32.xlu1 %v5123_v37, %s7599_s20 }
0x155a   : > { %v5136_v5 = vpop.f32.mrf.mxu0 }
0x155b   : > { %5207 = vrot.lane.b32.xlu0 %v5136_v5, %s7599_s20 }
0x155c   : > { %v6549_v53 = vpop.f32.mrf.mxu0  ;;  %v4080_v16 = vpop.permute.xlu0 %4079 }
0x155d   : > { %4124 = vst.msk [vmem:[#allocation2 + $0x20] sm:$0xff] %vm4119_vm5, %v4080_v16 }
0x155e   : > { %v5139_v12 = vpop.f32.mrf.mxu0 }
0x155f   : > { %5209 = vrot.lane.b32.xlu1 %v5139_v12, %s7599_s20 }
0x1560   : > { %v6552_v41 = vpop.f32.mrf.mxu0  ;;  %v4096_v61 = vpop.permute.xlu0 %4095 }
0x1561   : > { %4132 = vst.msk [vmem:[#allocation2 + $0x60] sm:$0xff] %vm4119_vm5, %v4096_v61  ;;  %5219 = vrot.lane.b32.xlu0 %v6552_v41, %s7599_s20 }
0x1562   : > { %v5152_v1 = vpop.f32.mrf.mxu0 }
0x1564   : > { %v6553_v17 = vpop.f32.mrf.mxu0  ;;  %v4084_v32 = vpop.permute.xlu0 %4083 }
0x1565   : > { %4126 = vst.msk [vmem:[#allocation2 + $0x30] sm:$0xff] %vm4119_vm5, %v4084_v32  ;;  %5221 = vrot.lane.b32.xlu1 %v6553_v17, %s7599_s20  ;;  %5215 = vrot.lane.b32.xlu0 %v5152_v1, %s7599_s20 }
0x1566   : > { %v5155_v31 = vpop.f32.mrf.mxu0 }
0x1568   : > { %v4100_v59 = vpop.permute.xlu0 %4099 }
0x1569   : > { %4134 = vst.msk [vmem:[#allocation2 + $0x70] sm:$0xff] %vm4119_vm5, %v4100_v59  ;;  %5217 = vrot.lane.b32.xlu1 %v5155_v31, %s7599_s20  ;;  %5211 = vrot.lane.b32.xlu0 %v6548_v6, %s7599_s20 }
0x156c   : > { %v4644_v48 = vpop.permute.xlu0 %4643 }
0x156d   : > { %4688 = vst.msk [vmem:[#allocation2 + $0x20] sm:$0xff] %vm4683_vm6, %v4644_v48  ;;  %5213 = vrot.lane.b32.xlu1 %v6549_v53, %s7599_s20 }
0x1570   : > { %v4660_v7 = vpop.permute.xlu0 %4659 }
0x1571   : > { %4696 = vst.msk [vmem:[#allocation2 + $0x60] sm:$0xff] %vm4683_vm6, %v4660_v7 }
0x1574   : > { %v4648_v35 = vpop.permute.xlu0 %4647 }
0x1575   : > { %4690 = vst.msk [vmem:[#allocation2 + $0x30] sm:$0xff] %vm4683_vm6, %v4648_v35 }
0x1578   : > { %v4664_v57 = vpop.permute.xlu0 %4663 }
0x1579   : > { %4698 = vst.msk [vmem:[#allocation2 + $0x70] sm:$0xff] %vm4683_vm6, %v4664_v57 }
0x158f   : > { %v6556_v14 = vpop.f32.mrf.mxu0 }
0x1591   : > { %v5168_v28 = vpop.f32.mrf.mxu0 }
0x1592   : > { %5223 = vrot.lane.b32.xlu0 %v5168_v28, %s7599_s20 }
0x1593   : > { %v6557_v10 = vpop.f32.mrf.mxu0 }
0x1595   : > { %v5171_v46 = vpop.f32.mrf.mxu0 }
0x1596   : > { %5225 = vrot.lane.b32.xlu1 %v5171_v46, %s7599_s20  ;;  %5227 = vrot.lane.b32.xlu0 %v6556_v14, %s7599_s20 }
0x159a   : > { %5229 = vrot.lane.b32.xlu1 %v6557_v10, %s7599_s20 }
0x15c3   : > { %v5204_v22 = vpop.permute.xlu0 %5203 }
0x15c4   : > { %5250 = vst.msk [vmem:[#allocation2 + $0x10] sm:$0xff] %vm5247_vm7, %v5204_v22 }
0x15c7   : > { %v5206_v19 = vpop.permute.xlu1 %5205  ;;  %v5200_v8 = vpop.permute.xlu0 %5199 }
0x15c8   : > { %5251 = vst.msk [vmem:[#allocation2 + $0x18] sm:$0xff] %vm5247_vm7, %v5206_v19  ;;  %5248 = vst.msk [vmem:[#allocation2] sm:$0xff] %vm5247_vm7, %v5200_v8 }
0x15cb   : > { %v5202_v63 = vpop.permute.xlu1 %5201  ;;  %v5266_v43 = vld [vmem:[#allocation2 + $0x10] sm:$0xff] }
0x15cc   : > { %5249 = vst.msk [vmem:[#allocation2 + $0x8] sm:$0xff] %vm5247_vm7, %v5202_v63 }
0x15cd   : > { %v5208_v44 = vpop.permute.xlu0 %5207 }
0x15ce   : > { %5252 = vst.msk [vmem:[#allocation2 + $0x20] sm:$0xff] %vm5247_vm7, %v5208_v44 }
0x15cf   : > { %v5267_v51 = vld [vmem:[#allocation2 + $0x18] sm:$0xff]  ;;  %v5264_v4 = vld [vmem:[#allocation2] sm:$0xff] }
0x15d0   : > { %v5281_v42 = vpack.c.bf16 %v5267_v51, %v5266_v43 }
0x15d1   : > { %v5210_v26 = vpop.permute.xlu1 %5209 }
0x15d2   : > { %5253 = vst.msk [vmem:[#allocation2 + $0x28] sm:$0xff] %vm5247_vm7, %v5210_v26 }
0x15d3   : > { %v5220_v54 = vpop.permute.xlu0 %5219  ;;  %v5265_v3 = vld [vmem:[#allocation2 + $0x8] sm:$0xff] }
0x15d4   : > { %5258 = vst.msk [vmem:[#allocation2 + $0x50] sm:$0xff] %vm5247_vm7, %v5220_v54  ;;  %v5280_v62 = vpack.c.bf16 %v5265_v3, %v5264_v4 }
0x15d5   : > { %v5268_v45 = vld [vmem:[#allocation2 + $0x20] sm:$0xff] }
0x15d6   : > { %6574 = vmatprep.mubr.bf16.mxu0 %v5280_v62 }
0x15d7   : > { %v5222_v36 = vpop.permute.xlu1 %5221  ;;  %6575 = vmatmul.mubr.bf16.vlgmr.msra.gmra.mxu0 %v5281_v42  ;;  %v5216_v50 = vpop.permute.xlu0 %5215 }
0x15d8   : > { %5259 = vst.msk [vmem:[#allocation2 + $0x58] sm:$0xff] %vm5247_vm7, %v5222_v36  ;;  %5256 = vst.msk [vmem:[#allocation2 + $0x40] sm:$0xff] %vm5247_vm7, %v5216_v50 }
0x15d9   : > { %v5269_v27 = vld [vmem:[#allocation2 + $0x28] sm:$0xff] }
0x15da   : > { %v5282_v25 = vpack.c.bf16 %v5269_v27, %v5268_v45 }
0x15db   : > { %v5218_v40 = vpop.permute.xlu1 %5217  ;;  %v5212_v30 = vpop.permute.xlu0 %5211  ;;  %v5274_v2 = vld [vmem:[#allocation2 + $0x50] sm:$0xff] }
0x15dc   : > { %5257 = vst.msk [vmem:[#allocation2 + $0x48] sm:$0xff] %vm5247_vm7, %v5218_v40  ;;  %5254 = vst.msk [vmem:[#allocation2 + $0x30] sm:$0xff] %vm5247_vm7, %v5212_v30  ;;  %6578 = vmatprep.mubr.bf16.mxu0 %v5282_v25 }
0x15df   : > { %v5214_v13 = vpop.permute.xlu1 %5213  ;;  %v5275_v29 = vld [vmem:[#allocation2 + $0x58] sm:$0xff]  ;;  %v5272_v60 = vld [vmem:[#allocation2 + $0x40] sm:$0xff] }
0x15e0   : > { %5255 = vst.msk [vmem:[#allocation2 + $0x38] sm:$0xff] %vm5247_vm7, %v5214_v13  ;;  %v5285_v20 = vpack.c.bf16 %v5275_v29, %v5274_v2 }
0x15e3   : > { %v5273_v34 = vld [vmem:[#allocation2 + $0x48] sm:$0xff]  ;;  %v5270_v11 = vld [vmem:[#allocation2 + $0x30] sm:$0xff] }
0x15e4   : > { %v5284_v23 = vpack.c.bf16 %v5273_v34, %v5272_v60 }
0x15e6   : > { %6582 = vmatprep.mubr.bf16.mxu1 %v5284_v23 }
0x15e7   : > { %6583 = vmatmul.mubr.bf16.vlgmr.msra.gmra.mxu1 %v5285_v20  ;;  %v5271_v49 = vld [vmem:[#allocation2 + $0x38] sm:$0xff] }
0x15e8   : > { %v5283_v55 = vpack.c.bf16 %v5271_v49, %v5270_v11 }
0x15ea   : > { %6579 = vmatmul.mubr.bf16.gmra.mxu0 %v5283_v55 }
0x1604   : > { %v5224_v18 = vpop.permute.xlu0 %5223 }
0x1605   : > { %5260 = vst.msk [vmem:[#allocation2 + $0x60] sm:$0xff] %vm5247_vm7, %v5224_v18 }
0x1608   : > { %v5226_v21 = vpop.permute.xlu1 %5225  ;;  %v5228_v9 = vpop.permute.xlu0 %5227 }
0x1609   : > { %5261 = vst.msk [vmem:[#allocation2 + $0x68] sm:$0xff] %vm5247_vm7, %v5226_v21  ;;  %5262 = vst.msk [vmem:[#allocation2 + $0x70] sm:$0xff] %vm5247_vm7, %v5228_v9 }
0x160c   : > { %v5230_v56 = vpop.permute.xlu1 %5229  ;;  %v5276_v0 = vld [vmem:[#allocation2 + $0x60] sm:$0xff] }
0x160d   : > { %5263 = vst.msk [vmem:[#allocation2 + $0x78] sm:$0xff] %vm5247_vm7, %v5230_v56 }
0x1610   : > { %v5277_v15 = vld [vmem:[#allocation2 + $0x68] sm:$0xff]  ;;  %v5278_v24 = vld [vmem:[#allocation2 + $0x70] sm:$0xff] }
0x1611   : > { %v5286_v38 = vpack.c.bf16 %v5277_v15, %v5276_v0 }
0x1613   : > { %6586 = vmatprep.mubr.bf16.mxu1 %v5286_v38 }
0x1614   : > { %v5279_v58 = vld [vmem:[#allocation2 + $0x78] sm:$0xff] }
0x1615   : > { %v5287_v47 = vpack.c.bf16 %v5279_v58, %v5278_v24 }
0x1617   : > { %6587 = vmatmul.mubr.bf16.gmra.mxu1 %v5287_v47 }
0x1697   : > { %v6576_v33 = vpop.f32.mrf.mxu0 }
0x1698   : > { %v5402_v37 = vadd.f32 %v6576_v33, %v5710_v52 }
0x1699   : > { %v5393_v6 = vpop.f32.mrf.mxu0 }
0x169a   : > { %5458 = vst [vmem:[%s10473_s18 + $0x10] sm:$0xff] %v5402_v37  ;;  %v5394_v39 = vadd.f32 %v5710_v52, %v5393_v6 }
0x169b   : > { %v6577_v5 = vpop.f32.mrf.mxu0 }
0x169c   : > { %5456 = vst [vmem:[%s10473_s18] sm:$0xff] %v5394_v39  ;;  %v5405_v53 = vadd.f32 %v6577_v5, %v5710_v52 }
0x169d   : > { %v5396_v16 = vpop.f32.mrf.mxu0 }
0x169e   : > { %5459 = vst [vmem:[%s10473_s18 + $0x18] sm:$0xff] %v5405_v53  ;;  %v5397_v12 = vadd.f32 %v5710_v52, %v5396_v16 }
0x16a0   : > { %5457 = vst [vmem:[%s10473_s18 + $0x8] sm:$0xff] %v5397_v12 }
0x16a7   : > { %v6584_v41 = vpop.f32.mrf.mxu1 }
0x16a8   : > { %v5434_v61 = vadd.f32 %v6584_v41, %v5710_v52 }
0x16a9   : > { %v5425_v1 = vpop.f32.mrf.mxu1 }
0x16aa   : > { %5466 = vst [vmem:[%s10473_s18 + $0x50] sm:$0xff] %v5434_v61  ;;  %v5426_v17 = vadd.f32 %v5710_v52, %v5425_v1  ;;  %v6580_v32 = vpop.f32.mrf.mxu0 }
0x16ab   : > { %v5418_v31 = vadd.f32 %v6580_v32, %v5710_v52  ;;  %v6585_v59 = vpop.f32.mrf.mxu1 }
0x16ac   : > { %5464 = vst [vmem:[%s10473_s18 + $0x40] sm:$0xff] %v5426_v17  ;;  %v5437_v48 = vadd.f32 %v6585_v59, %v5710_v52  ;;  %v5409_v7 = vpop.f32.mrf.mxu0 }
0x16ad   : > { %5462 = vst [vmem:[%s10473_s18 + $0x30] sm:$0xff] %v5418_v31  ;;  %v5410_v35 = vadd.f32 %v5710_v52, %v5409_v7  ;;  %v5428_v57 = vpop.f32.mrf.mxu1 }
0x16ae   : > { %5467 = vst [vmem:[%s10473_s18 + $0x58] sm:$0xff] %v5437_v48  ;;  %v5429_v14 = vadd.f32 %v5710_v52, %v5428_v57  ;;  %v6581_v28 = vpop.f32.mrf.mxu0 }
0x16af   : > { %5460 = vst [vmem:[%s10473_s18 + $0x20] sm:$0xff] %v5410_v35  ;;  %v5421_v10 = vadd.f32 %v6581_v28, %v5710_v52 }
0x16b0   : > { %5465 = vst [vmem:[%s10473_s18 + $0x48] sm:$0xff] %v5429_v14  ;;  %v5412_v46 = vpop.f32.mrf.mxu0 }
0x16b1   : > { %5463 = vst [vmem:[%s10473_s18 + $0x38] sm:$0xff] %v5421_v10  ;;  %v5413_v22 = vadd.f32 %v5710_v52, %v5412_v46 }
0x16b3   : > { %5461 = vst [vmem:[%s10473_s18 + $0x28] sm:$0xff] %v5413_v22 }
0x16d7   : > { %v6588_v19 = vpop.f32.mrf.mxu1 }
0x16d8   : > { %v5450_v8 = vadd.f32 %v6588_v19, %v5710_v52 }
0x16d9   : > { %v5441_v63 = vpop.f32.mrf.mxu1 }
0x16da   : > { %5470 = vst [vmem:[%s10473_s18 + $0x70] sm:$0xff] %v5450_v8  ;;  %v5442_v44 = vadd.f32 %v5710_v52, %v5441_v63 }
0x16db   : > { %v6589_v26 = vpop.f32.mrf.mxu1 }
0x16dc   : > { %5468 = vst [vmem:[%s10473_s18 + $0x60] sm:$0xff] %v5442_v44  ;;  %v5453_v51 = vadd.f32 %v6589_v26, %v5710_v52 }
0x16dd   : > { %v5444_v54 = vpop.f32.mrf.mxu1 }
0x16de   : > { %5471 = vst [vmem:[%s10473_s18 + $0x78] sm:$0xff] %v5453_v51  ;;  %v5445_v4 = vadd.f32 %v5710_v52, %v5444_v54 }
0x16e0   : > { %5469 = vst [vmem:[%s10473_s18 + $0x68] sm:$0xff] %v5445_v4 }
0x16e1   : > { %7526 = shalt.err (!%p7523_p6)
}
0x16e2   : > { %s7527_s21 = scalar_lea.hbm %s10494_s29, 2048  ;;  %s7531_s1 = scalar_lea.hbm %s10548_s7, 4096 }
0x16e3   : > { %p7528_p2 = scmp.ne.s32.totalorder %s10494_s29, %s7527_s21  ;;  %p7532_p0 = scmp.lt.s32.totalorder %s10494_s29, %s10548_s7 }
0x16e4   : > { %p7533_p11 = scmp.lt.s32.totalorder %s7531_s1, %s7527_s21 }
0x16e5   : > { %p7529_p4 = pnand %p7528_p2, %p10824_p7 }
0x16e6   : > { %p7534_p3 = por %p7533_p11, %p7532_p0 }
0x16e7   : > { %p7530_p8 = pneg %p7529_p4 }
0x16e9   : > { %p7535_p12 = pnand %p7534_p3, %p7530_p8 }
0x16eb   : > { %7538 = shalt.err (!%p7535_p12)
}
0x16ec   : > { %s7607_s9 = smov 128   ;;  %s7608_s20 = smov 8  }
0x16ed   : > { %6688 = dma.vmem_to_hbm [thread:$0]  (%p10824_p7), %s10496_s30, 2048, %s10494_s29, %s5473_s11, %s7607_s9, %s7607_s9, %s7608_s20  }
0x16ee PF: > { %s5501_s28 = sand.u32 1, %s7573_s24   ;;  %p10825_p9 = scmp.ne.s32.totalorder %s10594_s8, 0 }
0x16ef   : > { %p10826_p13 = scmp.ge.s32.totalorder %s7585_s27, 2  ;;  %s5502_s12 = scalar_lea.sflag [#allocation5], %s5501_s28 }
0x16f1   : > { %p6708_p5 = pnand %p10826_p13, %p10825_p9 }
0x16f3   : > { %p6709_p10 = pneg %p6708_p5 }
0x16f5   : > { %7568 = dma.done.wait (%p6709_p10), %s5502_s12, 2048  }
0x16f6   : > { %7570 = vsyncadd (%p6709_p10), %s5502_s12, 4294965248  ;;  %p22_p1 = scmp.ge.s32.totalorder %s7746_s10, 4   ;;  %s10827_s24 = smov %s7577_s25 }
0x16f7   : > { %s10828_s25 = smov %s7581_s26  ;;  %s10829_s26 = smov %s7762_s14 }
0x16f8   : > { %s10830_s27 = smov %s7746_s10  ;;  %24 = sbr.rel (!%p22_p1) target bundleno = 9 (0x9), region = 116 }
0x16fd   :  { %5507 = vsyncpa [#allocation4], 1 }
0x16fe   :  { %5509 = vsyncpa [#allocation4 + $0x1], 1 }
0x16ff   :  { %5510 = vsyncpa [#allocation7], 1 }
0x1700   :  { %5511 = vsyncpa [#allocation10], 1 }
0x1701   :  { %5512 = vsyncpa [#allocation5], 1 }
0x1702   :  { %5514 = vsyncpa [#allocation5 + $0x1], 1 }

</bundles_post_ra>
